<compile_context>
chip_gen: v7x
topology: tpu7x:2x2x1
jax: 0.10.0
libtpu: 0.0.40
codegen_flags: <defaults>
</compile_context>

<pallas_src>
import functools
import math

import jax
import jax.numpy as jnp
from jax.experimental import pallas as pl
from jax.experimental.pallas import tpu as pltpu

NEG_SLOPE = 0.2   # LeakyReLU(0.2)
LANE = 128


def _round_up(x, m):
    return (x + m - 1) // m * m


# ------------------------------------------------------------------ kernel math
def _im2col(src, wp, dilation):
    """Im2col matrix of a dilated 3x3 'same' conv on the flattened padded grid.

    src: (Cin, S) activation whose border (width >= dilation) and lane tail are
    zero.  Returns (9*Cin, S); row t*Cin + c holds channel c shifted by tap t
    (t = (ky+1)*3 + (kx+1)).  Values are valid at interior grid positions.
    """
    s_len = src.shape[-1]
    taps = []
    for ky in (-1, 0, 1):
        for kx in (-1, 0, 1):
            off = (ky * wp + kx) * dilation
            if off == 0:
                taps.append(src)
            else:
                # shifted[:, i] == src[:, i + off]   (jnp.roll convention)
                taps.append(pltpu.roll(src, shift=(-off) % s_len, axis=1))
    return jnp.concatenate(taps, axis=0)


def _conv(w_ref, patches, b_ref):
    """One gate-fused conv matmul: (Nout, 9*Cin) @ (9*Cin, S) + bias."""
    return jnp.dot(w_ref[...], patches,
                   preferred_element_type=jnp.float32) + b_ref[...]


def _se_leaky(h, w1_ref, w2_ref, inv_hw):
    """SELayer (reduction) + LeakyReLU(0.2), channels-first, VPU squeeze path.

    h: (C, S) with zeros outside the interior.  w1: (C, red) = fc1.weight^T,
    w2: (C, red) = fc2.weight.
    """
    pooled = jnp.sum(h, axis=1, keepdims=True) * inv_hw                         # (C, 1)
    y = jnp.maximum(jnp.sum(w1_ref[...] * pooled, axis=0, keepdims=True), 0.0)  # (1, red)
    y = jax.nn.sigmoid(jnp.sum(w2_ref[...] * y, axis=1, keepdims=True))         # (C, 1)
    h = h * y
    return jnp.where(h >= 0.0, h, NEG_SLOPE * h)


# ------------------------------------------------------------------ fused kernel
def _rescan_kernel(depth, num_stages, dilations, wp, inv_hw, additive,
                   x_ref, mask_ref, *refs):
    """Whole RESCAN forward for one batch element (all stages, all units).

    refs layout: per recurrent unit 8 weight refs
        [wx, bx, wh_zr, bh_zr, wh_n, bh_n, se_w1, se_w2] * depth
    then the output layer [w1, b1, se_w1, se_w2, w2, b2], then out_ref.
    out_ref: (1, num_stages, Cpad, S) background estimates on the padded grid.
    """
    nwu = 8
    unit_refs = [refs[d * nwu:(d + 1) * nwu] for d in range(depth)]
    off = depth * nwu
    ow1, ob1, osw1, osw2, ow2, ob2 = refs[off:off + 6]
    out_ref = refs[off + 6]

    mask = mask_ref[...]                      # (1, S) interior mask
    ori = x_ref[0]                            # (Cpad, S), zero border/tail
    c = unit_refs[0][0].shape[0] // 3         # mid channels

    memories = [None] * depth
    prev_bg = ori
    prev_rain = None
    for stage in range(num_stages):
        cur = prev_bg
        for d in range(depth):
            wx, bx, whzr, bhzr, whn, bhn, sw1, sw2 = unit_refs[d]
            dil = dilations[d]
            xg = _conv(wx, _im2col(cur, wp, dil), bx)             # (3C, S): z|r|n
            if memories[d] is None:
                # RESCAN_GRU with h=None: h = sigmoid(conv_xz(x)) * tanh(conv_xn(x))
                h_new = (jax.nn.sigmoid(xg[0:c]) *
                         jnp.tanh(xg[2 * c:3 * c])) * mask
            else:
                h = memories[d]                                   # zero border/tail
                hg = _conv(whzr, _im2col(h, wp, dil), bhzr)       # (2C, S): z|r
                z = jax.nn.sigmoid(xg[0:c] + hg[0:c])
                r = jax.nn.sigmoid(xg[c:2 * c] + hg[c:2 * c])
                n = jnp.tanh(xg[2 * c:3 * c] +
                             _conv(whn, _im2col(r * h, wp, dil), bhn))
                h_new = (h + z * (n - h)) * mask                  # (1-z)h + z n
            h_new = _se_leaky(h_new, sw1, sw2, inv_hw)
            memories[d] = h_new
            cur = h_new

        # output layer: Conv3x3 -> SE -> LeakyReLU -> Conv3x3  (pad=1, dil=1)
        y = _conv(ow1, _im2col(cur, wp, 1), ob1) * mask
        y = _se_leaky(y, osw1, osw2, inv_hw)
        rain = _conv(ow2, _im2col(y, wp, 1), ob2) * mask          # (Cpad, S)
        if additive and stage > 0:
            rain = rain + prev_rain
        prev_rain = rain
        prev_bg = ori - rain                                      # zero border kept
        out_ref[0, stage] = prev_bg.astype(out_ref.dtype)


# ------------------------------------------------------------------ wrapper
def _full(arr):
    n = arr.ndim
    return pl.BlockSpec(arr.shape, lambda i, _n=n: (0,) * _n)


def _compiler_params(args, out_shape):
    blk = sum(int(math.prod(a.shape)) * 4 for a in args)
    blk += int(math.prod(out_shape)) * 4
    # slack for im2col temporaries + live GRU memories + double buffering
    limit = int(min(max(8 * blk, 32 << 20), 48 << 20))
    return pltpu.CompilerParams(dimension_semantics=("parallel",),
                                vmem_limit_bytes=limit)


def rescan_forward(x_nchw, params, *, dilations, num_stages,
                   prediction_type='Full'):
    """Mirrors RESCAN.forward: returns a list of background estimates (NCHW)."""
    assert prediction_type in ('Full', 'Additive')
    b, in_ch, h, w = x_nchw.shape
    units = params['units']
    depth = len(units)
    out_ch = params['out']['w2'].shape[0]
    assert out_ch == in_ch, "bg = ori - rain requires out_channels == in_channels"

    pad = max(dilations)
    hp, wp = h + 2 * pad, w + 2 * pad
    sp = hp * wp
    s = _round_up(sp, LANE)
    inv_hw = 1.0 / float(h * w)
    cin0 = units[0]['wx'].shape[1] // 9     # unit-0 input channels (padded to 8)
    cpad = cin0

    # (B, in_ch, H, W) -> (B, Cpad, S) channel-padded, zero-bordered, lane-padded
    xz = jnp.pad(x_nchw.astype(jnp.float32),
                 ((0, 0), (0, cin0 - in_ch), (0, 0), (0, 0)))
    xz = jnp.pad(xz, ((0, 0), (0, 0), (pad, pad), (pad, pad))).reshape(b, cin0, sp)
    x_flat = jnp.pad(xz, ((0, 0), (0, 0), (0, s - sp)))

    # interior mask on the flattened padded grid (shared by all convs)
    mask2d = jnp.pad(jnp.ones((h, w), jnp.float32), ((pad, pad), (pad, pad)))
    mask = jnp.pad(mask2d.reshape(1, sp), ((0, 0), (0, s - sp)))

    # pad the final conv to Cpad output rows (extra rows are zero), so the rain
    # estimate fed back into the recurrence needs no in-kernel channel padding
    w2p = jnp.pad(params['out']['w2'], ((0, cpad - out_ch), (0, 0)))
    b2p = jnp.pad(params['out']['b2'], ((0, cpad - out_ch), (0, 0)))

    weights = []
    for u in units:
        weights += [u['wx'], u['bx'], u['wh_zr'], u['bh_zr'],
                    u['wh_n'], u['bh_n'], u['se_w1'], u['se_w2']]
    weights += [params['out']['w1'], params['out']['b1'],
                params['out']['se_w1'], params['out']['se_w2'], w2p, b2p]

    args = (x_flat, mask) + tuple(weights)
    out_shape = (b, num_stages, cpad, s)
    kern = functools.partial(_rescan_kernel, depth, num_stages, tuple(dilations),
                             wp, inv_hw, prediction_type == 'Additive')
    out = pl.pallas_call(
        kern,
        out_shape=jax.ShapeDtypeStruct(out_shape, jnp.float32),
        grid=(b,),
        in_specs=[pl.BlockSpec((1, cin0, s), lambda i: (i, 0, 0)),
                  _full(mask)] + [_full(a) for a in weights],
        out_specs=pl.BlockSpec((1, num_stages, cpad, s),
                               lambda i: (i, 0, 0, 0)),
        compiler_params=_compiler_params(args, (1,) + out_shape[1:]),
    )(*args)

    # crop padded-grid background estimates back to (B, in_ch, H, W) per stage
    bg = out[:, :, :in_ch, :sp].reshape(b, num_stages, in_ch, hp, wp)[
        :, :, :, pad:pad + h, pad:pad + w]
    return [bg[:, st] for st in range(num_stages)]


# ------------------------------------------------------------------ params
def init_rescan_params(key, in_ch, out_ch, mid_ch, depth, reduction=4):
    assert mid_ch % 8 == 0, "mid_channels should be a multiple of 8 (sublane tile)"
    red = max(mid_ch // reduction, 1)
    cin0 = _round_up(in_ch, 8)   # unit-0 input channels are zero-padded to 8
    k = key

    def nxt():
        nonlocal k
        k, sub = jax.random.split(k)
        return sub

    def nrm(shape, scale):
        return scale * jax.random.normal(nxt(), shape, jnp.float32)

    units, dilations = [], []
    for d in range(depth):
        cin = cin0 if d == 0 else mid_ch
        dil = 1 if d == 0 else 2 ** (d - 1)
        dilations.append(dil)
        units.append(dict(
            # gate-fused conv weights: rows = [z | r | n] outputs, columns are
            # tap-major im2col order (col = tap*Cin + cin, tap = (ky+1)*3+(kx+1))
            wx=nrm((3 * mid_ch, 9 * cin), 0.2),        # conv_xz / conv_xr / conv_xn
            bx=nrm((3 * mid_ch, 1), 0.05),
            wh_zr=nrm((2 * mid_ch, 9 * mid_ch), 0.2),  # conv_hz / conv_hr
            bh_zr=nrm((2 * mid_ch, 1), 0.05),
            wh_n=nrm((mid_ch, 9 * mid_ch), 0.2),       # conv_hn
            bh_n=nrm((mid_ch, 1), 0.05),
            se_w1=nrm((mid_ch, red), 0.3),             # SE fc1.weight^T
            se_w2=nrm((mid_ch, red), 0.3),             # SE fc2.weight
        ))
    out = dict(
        w1=nrm((mid_ch, 9 * mid_ch), 0.2), b1=nrm((mid_ch, 1), 0.05),
        se_w1=nrm((mid_ch, red), 0.3), se_w2=nrm((mid_ch, red), 0.3),
        w2=nrm((out_ch, 9 * mid_ch), 0.2), b2=nrm((out_ch, 1), 0.05),
    )
    return dict(units=units, out=out), tuple(dilations)


# ------------------------------------------------------------------ pure-JAX ref
def _conv3x3_ref(x, w_flat, b, dilation, in_ch=None):
    n_out = w_flat.shape[0]
    cin = w_flat.shape[1] // 9
    w = w_flat.reshape(n_out, 3, 3, cin)
    if in_ch is not None and in_ch < cin:
        w = w[:, :, :, :in_ch]
    w = jnp.transpose(w, (0, 3, 1, 2))   # OIHW
    y = jax.lax.conv_general_dilated(
        x, w, window_strides=(1, 1),
        padding=((dilation, dilation), (dilation, dilation)),
        rhs_dilation=(dilation, dilation),
        dimension_numbers=('NCHW', 'OIHW', 'NCHW'))
    return y + b.reshape(1, -1, 1, 1)


def _se_leaky_ref(h, w1, w2):
    pooled = jnp.mean(h, axis=(2, 3))           # (B, C)
    y = jnp.maximum(pooled @ w1, 0.0)           # (B, red)
    scale = jax.nn.sigmoid(y @ w2.T)            # (B, C)
    h = h * scale[:, :, None, None]
    return jnp.where(h >= 0.0, h, NEG_SLOPE * h)


def rescan_forward_ref(x, params, *, dilations, num_stages,
                       prediction_type='Full'):
    in_ch = x.shape[1]
    units = params['units']
    mid = units[0]['wx'].shape[0] // 3
    memories = [None] * len(units)
    ori = x
    prev_bg = x
    prev_rain = jnp.zeros_like(x)
    outs = []
    for st in range(num_stages):
        cur = prev_bg
        for d, (u, dil) in enumerate(zip(units, dilations)):
            cin_real = in_ch if d == 0 else mid
            xg = _conv3x3_ref(cur, u['wx'], u['bx'], dil, in_ch=cin_real)
            if memories[d] is None:
                h = jax.nn.sigmoid(xg[:, :mid]) * jnp.tanh(xg[:, 2 * mid:])
            else:
                hp_ = memories[d]
                hg = _conv3x3_ref(hp_, u['wh_zr'], u['bh_zr'], dil)
                z = jax.nn.sigmoid(xg[:, :mid] + hg[:, :mid])
                r = jax.nn.sigmoid(xg[:, mid:2 * mid] + hg[:, mid:])
                n = jnp.tanh(xg[:, 2 * mid:] +
                             _conv3x3_ref(r * hp_, u['wh_n'], u['bh_n'], dil))
                h = (1.0 - z) * hp_ + z * n
            h = _se_leaky_ref(h, u['se_w1'], u['se_w2'])
            memories[d] = h
            cur = h
        p = params['out']
        y = _conv3x3_ref(cur, p['w1'], p['b1'], 1)
        y = _se_leaky_ref(y, p['se_w1'], p['se_w2'])
        rain = _conv3x3_ref(y, p['w2'], p['b2'], 1)
        if prediction_type == 'Additive' and st > 0:
            rain = rain + prev_rain
        prev_rain = rain
        prev_bg = ori - prev_rain
        outs.append(prev_bg)
    return outs


# ------------------------------------------------------------------ main
if __name__ == "__main__":
    IN_CH = 4
    OUT_CH = 4
    MID_CH = 8        # mid_channels (small for the demo; default is 24)
    DEPTH = 3         # depth (dilations: 1, 1, 2)
    NUM_STAGES = 2    # num_stages
    B, H, W = 2, 16, 16

    key = jax.random.PRNGKey(0)
    kp, kx = jax.random.split(key)
    params, dilations = init_rescan_params(kp, IN_CH, OUT_CH, MID_CH, DEPTH)
    x = jax.random.uniform(kx, (B, IN_CH, H, W), jnp.float32)

    fwd = jax.jit(functools.partial(rescan_forward,
                                    dilations=dilations,
                                    num_stages=NUM_STAGES,
                                    prediction_type='Full'))
    outs = jax.block_until_ready(fwd(x, params))

    assert len(outs) == NUM_STAGES
    assert all(o.shape == (B, OUT_CH, H, W) for o in outs)
    assert all(bool(jnp.all(jnp.isfinite(o))) for o in outs)

    # correctness vs. pure-JAX reference (tolerance covers MXU bf16-pass rounding)
    ref = jax.jit(functools.partial(rescan_forward_ref,
                                    dilations=dilations,
                                    num_stages=NUM_STAGES,
                                    prediction_type='Full'))
    ref_outs = jax.block_until_ready(ref(x, params))
    for o, r in zip(outs, ref_outs):
        assert o.shape == r.shape
        assert bool(jnp.allclose(o, r, atol=5e-2, rtol=5e-2)), \
            f"max abs diff {float(jnp.max(jnp.abs(o - r)))}"

    print("KERNEL_OK")
</pallas_src>

<mosaic_0001>
module attributes {stable_mosaic.version = 11 : i64} {
  func.func @_rescan_kernel(%arg0: i32, %arg1: memref<1x8x512xf32, #tpu.memory_space<vmem>>, %arg2: memref<1x512xf32, #tpu.memory_space<vmem>>, %arg3: memref<24x72xf32, #tpu.memory_space<vmem>>, %arg4: memref<24x1xf32, #tpu.memory_space<vmem>>, %arg5: memref<16x72xf32, #tpu.memory_space<vmem>>, %arg6: memref<16x1xf32, #tpu.memory_space<vmem>>, %arg7: memref<8x72xf32, #tpu.memory_space<vmem>>, %arg8: memref<8x1xf32, #tpu.memory_space<vmem>>, %arg9: memref<8x2xf32, #tpu.memory_space<vmem>>, %arg10: memref<8x2xf32, #tpu.memory_space<vmem>>, %arg11: memref<24x72xf32, #tpu.memory_space<vmem>>, %arg12: memref<24x1xf32, #tpu.memory_space<vmem>>, %arg13: memref<16x72xf32, #tpu.memory_space<vmem>>, %arg14: memref<16x1xf32, #tpu.memory_space<vmem>>, %arg15: memref<8x72xf32, #tpu.memory_space<vmem>>, %arg16: memref<8x1xf32, #tpu.memory_space<vmem>>, %arg17: memref<8x2xf32, #tpu.memory_space<vmem>>, %arg18: memref<8x2xf32, #tpu.memory_space<vmem>>, %arg19: memref<24x72xf32, #tpu.memory_space<vmem>>, %arg20: memref<24x1xf32, #tpu.memory_space<vmem>>, %arg21: memref<16x72xf32, #tpu.memory_space<vmem>>, %arg22: memref<16x1xf32, #tpu.memory_space<vmem>>, %arg23: memref<8x72xf32, #tpu.memory_space<vmem>>, %arg24: memref<8x1xf32, #tpu.memory_space<vmem>>, %arg25: memref<8x2xf32, #tpu.memory_space<vmem>>, %arg26: memref<8x2xf32, #tpu.memory_space<vmem>>, %arg27: memref<8x72xf32, #tpu.memory_space<vmem>>, %arg28: memref<8x1xf32, #tpu.memory_space<vmem>>, %arg29: memref<8x2xf32, #tpu.memory_space<vmem>>, %arg30: memref<8x2xf32, #tpu.memory_space<vmem>>, %arg31: memref<8x72xf32, #tpu.memory_space<vmem>>, %arg32: memref<8x1xf32, #tpu.memory_space<vmem>>, %arg33: memref<1x2x8x512xf32, #tpu.memory_space<vmem>>) attributes {dimension_semantics = [#tpu.dimension_semantics<parallel>], iteration_bounds = array<i64: 2>, scalar_prefetch = 0 : i64, scratch_operands = 0 : i64, tpu.core_type = #tpu.core_type<tc>, window_params = [{transform_indices = @transform_0, window_bounds = array<i64: 1, 8, 512>}, {pipeline_mode = #tpu.pipeline_mode<synchronous>, transform_indices = @transform_1, window_bounds = array<i64: 1, 512>}, {pipeline_mode = #tpu.pipeline_mode<synchronous>, transform_indices = @transform_2, window_bounds = array<i64: 24, 72>}, {pipeline_mode = #tpu.pipeline_mode<synchronous>, transform_indices = @transform_3, window_bounds = array<i64: 24, 1>}, {pipeline_mode = #tpu.pipeline_mode<synchronous>, transform_indices = @transform_4, window_bounds = array<i64: 16, 72>}, {pipeline_mode = #tpu.pipeline_mode<synchronous>, transform_indices = @transform_5, window_bounds = array<i64: 16, 1>}, {pipeline_mode = #tpu.pipeline_mode<synchronous>, transform_indices = @transform_6, window_bounds = array<i64: 8, 72>}, {pipeline_mode = #tpu.pipeline_mode<synchronous>, transform_indices = @transform_7, window_bounds = array<i64: 8, 1>}, {pipeline_mode = #tpu.pipeline_mode<synchronous>, transform_indices = @transform_8, window_bounds = array<i64: 8, 2>}, {pipeline_mode = #tpu.pipeline_mode<synchronous>, transform_indices = @transform_9, window_bounds = array<i64: 8, 2>}, {pipeline_mode = #tpu.pipeline_mode<synchronous>, transform_indices = @transform_10, window_bounds = array<i64: 24, 72>}, {pipeline_mode = #tpu.pipeline_mode<synchronous>, transform_indices = @transform_11, window_bounds = array<i64: 24, 1>}, {pipeline_mode = #tpu.pipeline_mode<synchronous>, transform_indices = @transform_12, window_bounds = array<i64: 16, 72>}, {pipeline_mode = #tpu.pipeline_mode<synchronous>, transform_indices = @transform_13, window_bounds = array<i64: 16, 1>}, {pipeline_mode = #tpu.pipeline_mode<synchronous>, transform_indices = @transform_14, window_bounds = array<i64: 8, 72>}, {pipeline_mode = #tpu.pipeline_mode<synchronous>, transform_indices = @transform_15, window_bounds = array<i64: 8, 1>}, {pipeline_mode = #tpu.pipeline_mode<synchronous>, transform_indices = @transform_16, window_bounds = array<i64: 8, 2>}, {pipeline_mode = #tpu.pipeline_mode<synchronous>, transform_indices = @transform_17, window_bounds = array<i64: 8, 2>}, {pipeline_mode = #tpu.pipeline_mode<synchronous>, transform_indices = @transform_18, window_bounds = array<i64: 24, 72>}, {pipeline_mode = #tpu.pipeline_mode<synchronous>, transform_indices = @transform_19, window_bounds = array<i64: 24, 1>}, {pipeline_mode = #tpu.pipeline_mode<synchronous>, transform_indices = @transform_20, window_bounds = array<i64: 16, 72>}, {pipeline_mode = #tpu.pipeline_mode<synchronous>, transform_indices = @transform_21, window_bounds = array<i64: 16, 1>}, {pipeline_mode = #tpu.pipeline_mode<synchronous>, transform_indices = @transform_22, window_bounds = array<i64: 8, 72>}, {pipeline_mode = #tpu.pipeline_mode<synchronous>, transform_indices = @transform_23, window_bounds = array<i64: 8, 1>}, {pipeline_mode = #tpu.pipeline_mode<synchronous>, transform_indices = @transform_24, window_bounds = array<i64: 8, 2>}, {pipeline_mode = #tpu.pipeline_mode<synchronous>, transform_indices = @transform_25, window_bounds = array<i64: 8, 2>}, {pipeline_mode = #tpu.pipeline_mode<synchronous>, transform_indices = @transform_26, window_bounds = array<i64: 8, 72>}, {pipeline_mode = #tpu.pipeline_mode<synchronous>, transform_indices = @transform_27, window_bounds = array<i64: 8, 1>}, {pipeline_mode = #tpu.pipeline_mode<synchronous>, transform_indices = @transform_28, window_bounds = array<i64: 8, 2>}, {pipeline_mode = #tpu.pipeline_mode<synchronous>, transform_indices = @transform_29, window_bounds = array<i64: 8, 2>}, {pipeline_mode = #tpu.pipeline_mode<synchronous>, transform_indices = @transform_30, window_bounds = array<i64: 8, 72>}, {pipeline_mode = #tpu.pipeline_mode<synchronous>, transform_indices = @transform_31, window_bounds = array<i64: 8, 1>}, {transform_indices = @transform_32, window_bounds = array<i64: 1, 2, 8, 512>}]} {
    %c0 = arith.constant 0 : index
    %c0_0 = arith.constant 0 : index
    %0 = vector.load %arg2[%c0, %c0_0] : memref<1x512xf32, #tpu.memory_space<vmem>>, vector<1x512xf32>
    %c0_1 = arith.constant 0 : index
    %c0_2 = arith.constant 0 : index
    %c0_3 = arith.constant 0 : index
    %1 = vector.load %arg1[%c0_1, %c0_2, %c0_3] : memref<1x8x512xf32, #tpu.memory_space<vmem>>, vector<1x8x512xf32>
    %2 = vector.shape_cast %1 : vector<1x8x512xf32> to vector<8x512xf32>
    %c21_i32 = arith.constant 21 : i32
    %3 = tpu.dynamic_rotate %2 by %c21_i32 dim 1 : vector<8x512xf32>, i32 -> vector<8x512xf32>
    %c20_i32 = arith.constant 20 : i32
    %4 = tpu.dynamic_rotate %2 by %c20_i32 dim 1 : vector<8x512xf32>, i32 -> vector<8x512xf32>
    %c19_i32 = arith.constant 19 : i32
    %5 = tpu.dynamic_rotate %2 by %c19_i32 dim 1 : vector<8x512xf32>, i32 -> vector<8x512xf32>
    %c1_i32 = arith.constant 1 : i32
    %6 = tpu.dynamic_rotate %2 by %c1_i32 dim 1 : vector<8x512xf32>, i32 -> vector<8x512xf32>
    %c511_i32 = arith.constant 511 : i32
    %7 = tpu.dynamic_rotate %2 by %c511_i32 dim 1 : vector<8x512xf32>, i32 -> vector<8x512xf32>
    %c493_i32 = arith.constant 493 : i32
    %8 = tpu.dynamic_rotate %2 by %c493_i32 dim 1 : vector<8x512xf32>, i32 -> vector<8x512xf32>
    %c492_i32 = arith.constant 492 : i32
    %9 = tpu.dynamic_rotate %2 by %c492_i32 dim 1 : vector<8x512xf32>, i32 -> vector<8x512xf32>
    %c491_i32 = arith.constant 491 : i32
    %10 = tpu.dynamic_rotate %2 by %c491_i32 dim 1 : vector<8x512xf32>, i32 -> vector<8x512xf32>
    %11 = tpu.concatenate %3, %4, %5, %6, %2, %7, %8, %9, %10 in 0 : vector<8x512xf32>, vector<8x512xf32>, vector<8x512xf32>, vector<8x512xf32>, vector<8x512xf32>, vector<8x512xf32>, vector<8x512xf32>, vector<8x512xf32>, vector<8x512xf32> -> vector<72x512xf32>
    %c0_4 = arith.constant 0 : index
    %c0_5 = arith.constant 0 : index
    %12 = vector.load %arg3[%c0_4, %c0_5] : memref<24x72xf32, #tpu.memory_space<vmem>>, vector<24x72xf32>
    %cst = arith.constant dense<0.000000e+00> : vector<24x512xf32>
    %13 = tpu.matmul %12, %11, %cst {dimension_numbers = #tpu.dot_dimension_numbers<[1], [0], [0], [1], [0, 0, 1, 1], [], []>} : vector<24x72xf32>, vector<72x512xf32>, vector<24x512xf32> -> vector<24x512xf32>
    %c0_6 = arith.constant 0 : index
    %c0_7 = arith.constant 0 : index
    %14 = vector.load %arg4[%c0_6, %c0_7] : memref<24x1xf32, #tpu.memory_space<vmem>>, vector<24x1xf32>
    %15 = vector.broadcast %14 : vector<24x1xf32> to vector<24x512xf32>
    %16 = arith.addf %13, %15 : vector<24x512xf32>
    %17 = vector.extract_strided_slice %16 {offsets = [0, 0], sizes = [8, 512], strides = [1, 1]} : vector<24x512xf32> to vector<8x512xf32>
    %18 = arith.negf %17 : vector<8x512xf32>
    %19 = math.exp %18 : vector<8x512xf32>
    %cst_8 = arith.constant 1.000000e+00 : f32
    %20 = vector.broadcast %cst_8 : f32 to vector<8x512xf32>
    %21 = arith.addf %20, %19 : vector<8x512xf32>
    %22 = arith.divf %20, %21 : vector<8x512xf32>
    %23 = vector.extract_strided_slice %16 {offsets = [16, 0], sizes = [8, 512], strides = [1, 1]} : vector<24x512xf32> to vector<8x512xf32>
    %24 = math.tanh %23 : vector<8x512xf32>
    %25 = arith.mulf %22, %24 : vector<8x512xf32>
    %26 = vector.broadcast %0 : vector<1x512xf32> to vector<8x512xf32>
    %27 = arith.mulf %25, %26 : vector<8x512xf32>
    %cst_9 = arith.constant dense<0.000000e+00> : vector<8xf32>
    %28 = vector.multi_reduction <add>, %27, %cst_9 [1] : vector<8x512xf32> to vector<8xf32>
    %29 = vector.shape_cast %28 : vector<8xf32> to vector<8x1xf32>
    %cst_10 = arith.constant 3.906250e-03 : f32
    %30 = vector.broadcast %cst_10 : f32 to vector<8x1xf32>
    %31 = arith.mulf %29, %30 : vector<8x1xf32>
    %c0_11 = arith.constant 0 : index
    %c0_12 = arith.constant 0 : index
    %32 = vector.load %arg9[%c0_11, %c0_12] : memref<8x2xf32, #tpu.memory_space<vmem>>, vector<8x2xf32>
    %33 = vector.broadcast %31 : vector<8x1xf32> to vector<8x2xf32>
    %34 = arith.mulf %32, %33 : vector<8x2xf32>
    %cst_13 = arith.constant dense<0.000000e+00> : vector<2xf32>
    %35 = vector.multi_reduction <add>, %34, %cst_13 [0] : vector<8x2xf32> to vector<2xf32>
    %36 = vector.shape_cast %35 : vector<2xf32> to vector<1x2xf32>
    %cst_14 = arith.constant 0.000000e+00 : f32
    %37 = vector.broadcast %cst_14 : f32 to vector<1x2xf32>
    %38 = arith.maximumf %36, %37 : vector<1x2xf32>
    %c0_15 = arith.constant 0 : index
    %c0_16 = arith.constant 0 : index
    %39 = vector.load %arg10[%c0_15, %c0_16] : memref<8x2xf32, #tpu.memory_space<vmem>>, vector<8x2xf32>
    %40 = vector.broadcast %38 : vector<1x2xf32> to vector<8x2xf32>
    %41 = arith.mulf %39, %40 : vector<8x2xf32>
    %cst_17 = arith.constant dense<0.000000e+00> : vector<8xf32>
    %42 = vector.multi_reduction <add>, %41, %cst_17 [1] : vector<8x2xf32> to vector<8xf32>
    %43 = vector.shape_cast %42 : vector<8xf32> to vector<8x1xf32>
    %44 = arith.negf %43 : vector<8x1xf32>
    %45 = math.exp %44 : vector<8x1xf32>
    %cst_18 = arith.constant 1.000000e+00 : f32
    %46 = vector.broadcast %cst_18 : f32 to vector<8x1xf32>
    %47 = arith.addf %46, %45 : vector<8x1xf32>
    %48 = arith.divf %46, %47 : vector<8x1xf32>
    %49 = vector.broadcast %48 : vector<8x1xf32> to vector<8x512xf32>
    %50 = arith.mulf %27, %49 : vector<8x512xf32>
    %cst_19 = arith.constant 0.000000e+00 : f32
    %51 = vector.broadcast %cst_19 : f32 to vector<8x512xf32>
    %52 = arith.cmpf oge, %50, %51 : vector<8x512xf32>
    %cst_20 = arith.constant 2.000000e-01 : f32
    %53 = vector.broadcast %cst_20 : f32 to vector<8x512xf32>
    %54 = arith.mulf %53, %50 : vector<8x512xf32>
    %55 = arith.select %52, %50, %54 : vector<8x512xi1>, vector<8x512xf32>
    %c21_i32_21 = arith.constant 21 : i32
    %56 = tpu.dynamic_rotate %55 by %c21_i32_21 dim 1 : vector<8x512xf32>, i32 -> vector<8x512xf32>
    %c20_i32_22 = arith.constant 20 : i32
    %57 = tpu.dynamic_rotate %55 by %c20_i32_22 dim 1 : vector<8x512xf32>, i32 -> vector<8x512xf32>
    %c19_i32_23 = arith.constant 19 : i32
    %58 = tpu.dynamic_rotate %55 by %c19_i32_23 dim 1 : vector<8x512xf32>, i32 -> vector<8x512xf32>
    %c1_i32_24 = arith.constant 1 : i32
    %59 = tpu.dynamic_rotate %55 by %c1_i32_24 dim 1 : vector<8x512xf32>, i32 -> vector<8x512xf32>
    %c511_i32_25 = arith.constant 511 : i32
    %60 = tpu.dynamic_rotate %55 by %c511_i32_25 dim 1 : vector<8x512xf32>, i32 -> vector<8x512xf32>
    %c493_i32_26 = arith.constant 493 : i32
    %61 = tpu.dynamic_rotate %55 by %c493_i32_26 dim 1 : vector<8x512xf32>, i32 -> vector<8x512xf32>
    %c492_i32_27 = arith.constant 492 : i32
    %62 = tpu.dynamic_rotate %55 by %c492_i32_27 dim 1 : vector<8x512xf32>, i32 -> vector<8x512xf32>
    %c491_i32_28 = arith.constant 491 : i32
    %63 = tpu.dynamic_rotate %55 by %c491_i32_28 dim 1 : vector<8x512xf32>, i32 -> vector<8x512xf32>
    %64 = tpu.concatenate %56, %57, %58, %59, %55, %60, %61, %62, %63 in 0 : vector<8x512xf32>, vector<8x512xf32>, vector<8x512xf32>, vector<8x512xf32>, vector<8x512xf32>, vector<8x512xf32>, vector<8x512xf32>, vector<8x512xf32>, vector<8x512xf32> -> vector<72x512xf32>
    %c0_29 = arith.constant 0 : index
    %c0_30 = arith.constant 0 : index
    %65 = vector.load %arg11[%c0_29, %c0_30] : memref<24x72xf32, #tpu.memory_space<vmem>>, vector<24x72xf32>
    %cst_31 = arith.constant dense<0.000000e+00> : vector<24x512xf32>
    %66 = tpu.matmul %65, %64, %cst_31 {dimension_numbers = #tpu.dot_dimension_numbers<[1], [0], [0], [1], [0, 0, 1, 1], [], []>} : vector<24x72xf32>, vector<72x512xf32>, vector<24x512xf32> -> vector<24x512xf32>
    %c0_32 = arith.constant 0 : index
    %c0_33 = arith.constant 0 : index
    %67 = vector.load %arg12[%c0_32, %c0_33] : memref<24x1xf32, #tpu.memory_space<vmem>>, vector<24x1xf32>
    %68 = vector.broadcast %67 : vector<24x1xf32> to vector<24x512xf32>
    %69 = arith.addf %66, %68 : vector<24x512xf32>
    %70 = vector.extract_strided_slice %69 {offsets = [0, 0], sizes = [8, 512], strides = [1, 1]} : vector<24x512xf32> to vector<8x512xf32>
    %71 = arith.negf %70 : vector<8x512xf32>
    %72 = math.exp %71 : vector<8x512xf32>
    %cst_34 = arith.constant 1.000000e+00 : f32
    %73 = vector.broadcast %cst_34 : f32 to vector<8x512xf32>
    %74 = arith.addf %73, %72 : vector<8x512xf32>
    %75 = arith.divf %73, %74 : vector<8x512xf32>
    %76 = vector.extract_strided_slice %69 {offsets = [16, 0], sizes = [8, 512], strides = [1, 1]} : vector<24x512xf32> to vector<8x512xf32>
    %77 = math.tanh %76 : vector<8x512xf32>
    %78 = arith.mulf %75, %77 : vector<8x512xf32>
    %79 = vector.broadcast %0 : vector<1x512xf32> to vector<8x512xf32>
    %80 = arith.mulf %78, %79 : vector<8x512xf32>
    %cst_35 = arith.constant dense<0.000000e+00> : vector<8xf32>
    %81 = vector.multi_reduction <add>, %80, %cst_35 [1] : vector<8x512xf32> to vector<8xf32>
    %82 = vector.shape_cast %81 : vector<8xf32> to vector<8x1xf32>
    %cst_36 = arith.constant 3.906250e-03 : f32
    %83 = vector.broadcast %cst_36 : f32 to vector<8x1xf32>
    %84 = arith.mulf %82, %83 : vector<8x1xf32>
    %c0_37 = arith.constant 0 : index
    %c0_38 = arith.constant 0 : index
    %85 = vector.load %arg17[%c0_37, %c0_38] : memref<8x2xf32, #tpu.memory_space<vmem>>, vector<8x2xf32>
    %86 = vector.broadcast %84 : vector<8x1xf32> to vector<8x2xf32>
    %87 = arith.mulf %85, %86 : vector<8x2xf32>
    %cst_39 = arith.constant dense<0.000000e+00> : vector<2xf32>
    %88 = vector.multi_reduction <add>, %87, %cst_39 [0] : vector<8x2xf32> to vector<2xf32>
    %89 = vector.shape_cast %88 : vector<2xf32> to vector<1x2xf32>
    %cst_40 = arith.constant 0.000000e+00 : f32
    %90 = vector.broadcast %cst_40 : f32 to vector<1x2xf32>
    %91 = arith.maximumf %89, %90 : vector<1x2xf32>
    %c0_41 = arith.constant 0 : index
    %c0_42 = arith.constant 0 : index
    %92 = vector.load %arg18[%c0_41, %c0_42] : memref<8x2xf32, #tpu.memory_space<vmem>>, vector<8x2xf32>
    %93 = vector.broadcast %91 : vector<1x2xf32> to vector<8x2xf32>
    %94 = arith.mulf %92, %93 : vector<8x2xf32>
    %cst_43 = arith.constant dense<0.000000e+00> : vector<8xf32>
    %95 = vector.multi_reduction <add>, %94, %cst_43 [1] : vector<8x2xf32> to vector<8xf32>
    %96 = vector.shape_cast %95 : vector<8xf32> to vector<8x1xf32>
    %97 = arith.negf %96 : vector<8x1xf32>
    %98 = math.exp %97 : vector<8x1xf32>
    %cst_44 = arith.constant 1.000000e+00 : f32
    %99 = vector.broadcast %cst_44 : f32 to vector<8x1xf32>
    %100 = arith.addf %99, %98 : vector<8x1xf32>
    %101 = arith.divf %99, %100 : vector<8x1xf32>
    %102 = vector.broadcast %101 : vector<8x1xf32> to vector<8x512xf32>
    %103 = arith.mulf %80, %102 : vector<8x512xf32>
    %cst_45 = arith.constant 0.000000e+00 : f32
    %104 = vector.broadcast %cst_45 : f32 to vector<8x512xf32>
    %105 = arith.cmpf oge, %103, %104 : vector<8x512xf32>
    %cst_46 = arith.constant 2.000000e-01 : f32
    %106 = vector.broadcast %cst_46 : f32 to vector<8x512xf32>
    %107 = arith.mulf %106, %103 : vector<8x512xf32>
    %108 = arith.select %105, %103, %107 : vector<8x512xi1>, vector<8x512xf32>
    %c42_i32 = arith.constant 42 : i32
    %109 = tpu.dynamic_rotate %108 by %c42_i32 dim 1 : vector<8x512xf32>, i32 -> vector<8x512xf32>
    %c40_i32 = arith.constant 40 : i32
    %110 = tpu.dynamic_rotate %108 by %c40_i32 dim 1 : vector<8x512xf32>, i32 -> vector<8x512xf32>
    %c38_i32 = arith.constant 38 : i32
    %111 = tpu.dynamic_rotate %108 by %c38_i32 dim 1 : vector<8x512xf32>, i32 -> vector<8x512xf32>
    %c2_i32 = arith.constant 2 : i32
    %112 = tpu.dynamic_rotate %108 by %c2_i32 dim 1 : vector<8x512xf32>, i32 -> vector<8x512xf32>
    %c510_i32 = arith.constant 510 : i32
    %113 = tpu.dynamic_rotate %108 by %c510_i32 dim 1 : vector<8x512xf32>, i32 -> vector<8x512xf32>
    %c474_i32 = arith.constant 474 : i32
    %114 = tpu.dynamic_rotate %108 by %c474_i32 dim 1 : vector<8x512xf32>, i32 -> vector<8x512xf32>
    %c472_i32 = arith.constant 472 : i32
    %115 = tpu.dynamic_rotate %108 by %c472_i32 dim 1 : vector<8x512xf32>, i32 -> vector<8x512xf32>
    %c470_i32 = arith.constant 470 : i32
    %116 = tpu.dynamic_rotate %108 by %c470_i32 dim 1 : vector<8x512xf32>, i32 -> vector<8x512xf32>
    %117 = tpu.concatenate %109, %110, %111, %112, %108, %113, %114, %115, %116 in 0 : vector<8x512xf32>, vector<8x512xf32>, vector<8x512xf32>, vector<8x512xf32>, vector<8x512xf32>, vector<8x512xf32>, vector<8x512xf32>, vector<8x512xf32>, vector<8x512xf32> -> vector<72x512xf32>
    %c0_47 = arith.constant 0 : index
    %c0_48 = arith.constant 0 : index
    %118 = vector.load %arg19[%c0_47, %c0_48] : memref<24x72xf32, #tpu.memory_space<vmem>>, vector<24x72xf32>
    %cst_49 = arith.constant dense<0.000000e+00> : vector<24x512xf32>
    %119 = tpu.matmul %118, %117, %cst_49 {dimension_numbers = #tpu.dot_dimension_numbers<[1], [0], [0], [1], [0, 0, 1, 1], [], []>} : vector<24x72xf32>, vector<72x512xf32>, vector<24x512xf32> -> vector<24x512xf32>
    %c0_50 = arith.constant 0 : index
    %c0_51 = arith.constant 0 : index
    %120 = vector.load %arg20[%c0_50, %c0_51] : memref<24x1xf32, #tpu.memory_space<vmem>>, vector<24x1xf32>
    %121 = vector.broadcast %120 : vector<24x1xf32> to vector<24x512xf32>
    %122 = arith.addf %119, %121 : vector<24x512xf32>
    %123 = vector.extract_strided_slice %122 {offsets = [0, 0], sizes = [8, 512], strides = [1, 1]} : vector<24x512xf32> to vector<8x512xf32>
    %124 = arith.negf %123 : vector<8x512xf32>
    %125 = math.exp %124 : vector<8x512xf32>
    %cst_52 = arith.constant 1.000000e+00 : f32
    %126 = vector.broadcast %cst_52 : f32 to vector<8x512xf32>
    %127 = arith.addf %126, %125 : vector<8x512xf32>
    %128 = arith.divf %126, %127 : vector<8x512xf32>
    %129 = vector.extract_strided_slice %122 {offsets = [16, 0], sizes = [8, 512], strides = [1, 1]} : vector<24x512xf32> to vector<8x512xf32>
    %130 = math.tanh %129 : vector<8x512xf32>
    %131 = arith.mulf %128, %130 : vector<8x512xf32>
    %132 = vector.broadcast %0 : vector<1x512xf32> to vector<8x512xf32>
    %133 = arith.mulf %131, %132 : vector<8x512xf32>
    %cst_53 = arith.constant dense<0.000000e+00> : vector<8xf32>
    %134 = vector.multi_reduction <add>, %133, %cst_53 [1] : vector<8x512xf32> to vector<8xf32>
    %135 = vector.shape_cast %134 : vector<8xf32> to vector<8x1xf32>
    %cst_54 = arith.constant 3.906250e-03 : f32
    %136 = vector.broadcast %cst_54 : f32 to vector<8x1xf32>
    %137 = arith.mulf %135, %136 : vector<8x1xf32>
    %c0_55 = arith.constant 0 : index
    %c0_56 = arith.constant 0 : index
    %138 = vector.load %arg25[%c0_55, %c0_56] : memref<8x2xf32, #tpu.memory_space<vmem>>, vector<8x2xf32>
    %139 = vector.broadcast %137 : vector<8x1xf32> to vector<8x2xf32>
    %140 = arith.mulf %138, %139 : vector<8x2xf32>
    %cst_57 = arith.constant dense<0.000000e+00> : vector<2xf32>
    %141 = vector.multi_reduction <add>, %140, %cst_57 [0] : vector<8x2xf32> to vector<2xf32>
    %142 = vector.shape_cast %141 : vector<2xf32> to vector<1x2xf32>
    %cst_58 = arith.constant 0.000000e+00 : f32
    %143 = vector.broadcast %cst_58 : f32 to vector<1x2xf32>
    %144 = arith.maximumf %142, %143 : vector<1x2xf32>
    %c0_59 = arith.constant 0 : index
    %c0_60 = arith.constant 0 : index
    %145 = vector.load %arg26[%c0_59, %c0_60] : memref<8x2xf32, #tpu.memory_space<vmem>>, vector<8x2xf32>
    %146 = vector.broadcast %144 : vector<1x2xf32> to vector<8x2xf32>
    %147 = arith.mulf %145, %146 : vector<8x2xf32>
    %cst_61 = arith.constant dense<0.000000e+00> : vector<8xf32>
    %148 = vector.multi_reduction <add>, %147, %cst_61 [1] : vector<8x2xf32> to vector<8xf32>
    %149 = vector.shape_cast %148 : vector<8xf32> to vector<8x1xf32>
    %150 = arith.negf %149 : vector<8x1xf32>
    %151 = math.exp %150 : vector<8x1xf32>
    %cst_62 = arith.constant 1.000000e+00 : f32
    %152 = vector.broadcast %cst_62 : f32 to vector<8x1xf32>
    %153 = arith.addf %152, %151 : vector<8x1xf32>
    %154 = arith.divf %152, %153 : vector<8x1xf32>
    %155 = vector.broadcast %154 : vector<8x1xf32> to vector<8x512xf32>
    %156 = arith.mulf %133, %155 : vector<8x512xf32>
    %cst_63 = arith.constant 0.000000e+00 : f32
    %157 = vector.broadcast %cst_63 : f32 to vector<8x512xf32>
    %158 = arith.cmpf oge, %156, %157 : vector<8x512xf32>
    %cst_64 = arith.constant 2.000000e-01 : f32
    %159 = vector.broadcast %cst_64 : f32 to vector<8x512xf32>
    %160 = arith.mulf %159, %156 : vector<8x512xf32>
    %161 = arith.select %158, %156, %160 : vector<8x512xi1>, vector<8x512xf32>
    %c21_i32_65 = arith.constant 21 : i32
    %162 = tpu.dynamic_rotate %161 by %c21_i32_65 dim 1 : vector<8x512xf32>, i32 -> vector<8x512xf32>
    %c20_i32_66 = arith.constant 20 : i32
    %163 = tpu.dynamic_rotate %161 by %c20_i32_66 dim 1 : vector<8x512xf32>, i32 -> vector<8x512xf32>
    %c19_i32_67 = arith.constant 19 : i32
    %164 = tpu.dynamic_rotate %161 by %c19_i32_67 dim 1 : vector<8x512xf32>, i32 -> vector<8x512xf32>
    %c1_i32_68 = arith.constant 1 : i32
    %165 = tpu.dynamic_rotate %161 by %c1_i32_68 dim 1 : vector<8x512xf32>, i32 -> vector<8x512xf32>
    %c511_i32_69 = arith.constant 511 : i32
    %166 = tpu.dynamic_rotate %161 by %c511_i32_69 dim 1 : vector<8x512xf32>, i32 -> vector<8x512xf32>
    %c493_i32_70 = arith.constant 493 : i32
    %167 = tpu.dynamic_rotate %161 by %c493_i32_70 dim 1 : vector<8x512xf32>, i32 -> vector<8x512xf32>
    %c492_i32_71 = arith.constant 492 : i32
    %168 = tpu.dynamic_rotate %161 by %c492_i32_71 dim 1 : vector<8x512xf32>, i32 -> vector<8x512xf32>
    %c491_i32_72 = arith.constant 491 : i32
    %169 = tpu.dynamic_rotate %161 by %c491_i32_72 dim 1 : vector<8x512xf32>, i32 -> vector<8x512xf32>
    %170 = tpu.concatenate %162, %163, %164, %165, %161, %166, %167, %168, %169 in 0 : vector<8x512xf32>, vector<8x512xf32>, vector<8x512xf32>, vector<8x512xf32>, vector<8x512xf32>, vector<8x512xf32>, vector<8x512xf32>, vector<8x512xf32>, vector<8x512xf32> -> vector<72x512xf32>
    %c0_73 = arith.constant 0 : index
    %c0_74 = arith.constant 0 : index
    %171 = vector.load %arg27[%c0_73, %c0_74] : memref<8x72xf32, #tpu.memory_space<vmem>>, vector<8x72xf32>
    %cst_75 = arith.constant dense<0.000000e+00> : vector<8x512xf32>
    %172 = tpu.matmul %171, %170, %cst_75 {dimension_numbers = #tpu.dot_dimension_numbers<[1], [0], [0], [1], [0, 0, 1, 1], [], []>} : vector<8x72xf32>, vector<72x512xf32>, vector<8x512xf32> -> vector<8x512xf32>
    %c0_76 = arith.constant 0 : index
    %c0_77 = arith.constant 0 : index
    %173 = vector.load %arg28[%c0_76, %c0_77] : memref<8x1xf32, #tpu.memory_space<vmem>>, vector<8x1xf32>
    %174 = vector.broadcast %173 : vector<8x1xf32> to vector<8x512xf32>
    %175 = arith.addf %172, %174 : vector<8x512xf32>
    %176 = vector.broadcast %0 : vector<1x512xf32> to vector<8x512xf32>
    %177 = arith.mulf %175, %176 : vector<8x512xf32>
    %cst_78 = arith.constant dense<0.000000e+00> : vector<8xf32>
    %178 = vector.multi_reduction <add>, %177, %cst_78 [1] : vector<8x512xf32> to vector<8xf32>
    %179 = vector.shape_cast %178 : vector<8xf32> to vector<8x1xf32>
    %cst_79 = arith.constant 3.906250e-03 : f32
    %180 = vector.broadcast %cst_79 : f32 to vector<8x1xf32>
    %181 = arith.mulf %179, %180 : vector<8x1xf32>
    %c0_80 = arith.constant 0 : index
    %c0_81 = arith.constant 0 : index
    %182 = vector.load %arg29[%c0_80, %c0_81] : memref<8x2xf32, #tpu.memory_space<vmem>>, vector<8x2xf32>
    %183 = vector.broadcast %181 : vector<8x1xf32> to vector<8x2xf32>
    %184 = arith.mulf %182, %183 : vector<8x2xf32>
    %cst_82 = arith.constant dense<0.000000e+00> : vector<2xf32>
    %185 = vector.multi_reduction <add>, %184, %cst_82 [0] : vector<8x2xf32> to vector<2xf32>
    %186 = vector.shape_cast %185 : vector<2xf32> to vector<1x2xf32>
    %cst_83 = arith.constant 0.000000e+00 : f32
    %187 = vector.broadcast %cst_83 : f32 to vector<1x2xf32>
    %188 = arith.maximumf %186, %187 : vector<1x2xf32>
    %c0_84 = arith.constant 0 : index
    %c0_85 = arith.constant 0 : index
    %189 = vector.load %arg30[%c0_84, %c0_85] : memref<8x2xf32, #tpu.memory_space<vmem>>, vector<8x2xf32>
    %190 = vector.broadcast %188 : vector<1x2xf32> to vector<8x2xf32>
    %191 = arith.mulf %189, %190 : vector<8x2xf32>
    %cst_86 = arith.constant dense<0.000000e+00> : vector<8xf32>
    %192 = vector.multi_reduction <add>, %191, %cst_86 [1] : vector<8x2xf32> to vector<8xf32>
    %193 = vector.shape_cast %192 : vector<8xf32> to vector<8x1xf32>
    %194 = arith.negf %193 : vector<8x1xf32>
    %195 = math.exp %194 : vector<8x1xf32>
    %cst_87 = arith.constant 1.000000e+00 : f32
    %196 = vector.broadcast %cst_87 : f32 to vector<8x1xf32>
    %197 = arith.addf %196, %195 : vector<8x1xf32>
    %198 = arith.divf %196, %197 : vector<8x1xf32>
    %199 = vector.broadcast %198 : vector<8x1xf32> to vector<8x512xf32>
    %200 = arith.mulf %177, %199 : vector<8x512xf32>
    %cst_88 = arith.constant 0.000000e+00 : f32
    %201 = vector.broadcast %cst_88 : f32 to vector<8x512xf32>
    %202 = arith.cmpf oge, %200, %201 : vector<8x512xf32>
    %cst_89 = arith.constant 2.000000e-01 : f32
    %203 = vector.broadcast %cst_89 : f32 to vector<8x512xf32>
    %204 = arith.mulf %203, %200 : vector<8x512xf32>
    %205 = arith.select %202, %200, %204 : vector<8x512xi1>, vector<8x512xf32>
    %c21_i32_90 = arith.constant 21 : i32
    %206 = tpu.dynamic_rotate %205 by %c21_i32_90 dim 1 : vector<8x512xf32>, i32 -> vector<8x512xf32>
    %c20_i32_91 = arith.constant 20 : i32
    %207 = tpu.dynamic_rotate %205 by %c20_i32_91 dim 1 : vector<8x512xf32>, i32 -> vector<8x512xf32>
    %c19_i32_92 = arith.constant 19 : i32
    %208 = tpu.dynamic_rotate %205 by %c19_i32_92 dim 1 : vector<8x512xf32>, i32 -> vector<8x512xf32>
    %c1_i32_93 = arith.constant 1 : i32
    %209 = tpu.dynamic_rotate %205 by %c1_i32_93 dim 1 : vector<8x512xf32>, i32 -> vector<8x512xf32>
    %c511_i32_94 = arith.constant 511 : i32
    %210 = tpu.dynamic_rotate %205 by %c511_i32_94 dim 1 : vector<8x512xf32>, i32 -> vector<8x512xf32>
    %c493_i32_95 = arith.constant 493 : i32
    %211 = tpu.dynamic_rotate %205 by %c493_i32_95 dim 1 : vector<8x512xf32>, i32 -> vector<8x512xf32>
    %c492_i32_96 = arith.constant 492 : i32
    %212 = tpu.dynamic_rotate %205 by %c492_i32_96 dim 1 : vector<8x512xf32>, i32 -> vector<8x512xf32>
    %c491_i32_97 = arith.constant 491 : i32
    %213 = tpu.dynamic_rotate %205 by %c491_i32_97 dim 1 : vector<8x512xf32>, i32 -> vector<8x512xf32>
    %214 = tpu.concatenate %206, %207, %208, %209, %205, %210, %211, %212, %213 in 0 : vector<8x512xf32>, vector<8x512xf32>, vector<8x512xf32>, vector<8x512xf32>, vector<8x512xf32>, vector<8x512xf32>, vector<8x512xf32>, vector<8x512xf32>, vector<8x512xf32> -> vector<72x512xf32>
    %c0_98 = arith.constant 0 : index
    %c0_99 = arith.constant 0 : index
    %215 = vector.load %arg31[%c0_98, %c0_99] : memref<8x72xf32, #tpu.memory_space<vmem>>, vector<8x72xf32>
    %cst_100 = arith.constant dense<0.000000e+00> : vector<8x512xf32>
    %216 = tpu.matmul %215, %214, %cst_100 {dimension_numbers = #tpu.dot_dimension_numbers<[1], [0], [0], [1], [0, 0, 1, 1], [], []>} : vector<8x72xf32>, vector<72x512xf32>, vector<8x512xf32> -> vector<8x512xf32>
    %c0_101 = arith.constant 0 : index
    %c0_102 = arith.constant 0 : index
    %217 = vector.load %arg32[%c0_101, %c0_102] : memref<8x1xf32, #tpu.memory_space<vmem>>, vector<8x1xf32>
    %218 = vector.broadcast %217 : vector<8x1xf32> to vector<8x512xf32>
    %219 = arith.addf %216, %218 : vector<8x512xf32>
    %220 = vector.broadcast %0 : vector<1x512xf32> to vector<8x512xf32>
    %221 = arith.mulf %219, %220 : vector<8x512xf32>
    %222 = arith.subf %2, %221 : vector<8x512xf32>
    %c0_103 = arith.constant 0 : index
    %c0_104 = arith.constant 0 : index
    %c0_105 = arith.constant 0 : index
    %c0_106 = arith.constant 0 : index
    %223 = vector.load %arg33[%c0_103, %c0_104, %c0_105, %c0_106] : memref<1x2x8x512xf32, #tpu.memory_space<vmem>>, vector<1x1x8x512xf32>
    %224 = vector.shape_cast %223 : vector<1x1x8x512xf32> to vector<8x512xf32>
    %225 = vector.shape_cast %222 : vector<8x512xf32> to vector<1x1x8x512xf32>
    tpu.vector_store %arg33[%c0_103, %c0_104, %c0_105, %c0_106], %225 {strides = array<i32>} : memref<1x2x8x512xf32, #tpu.memory_space<vmem>>, vector<1x1x8x512xf32>,
    %c21_i32_107 = arith.constant 21 : i32
    %226 = tpu.dynamic_rotate %222 by %c21_i32_107 dim 1 : vector<8x512xf32>, i32 -> vector<8x512xf32>
    %c20_i32_108 = arith.constant 20 : i32
    %227 = tpu.dynamic_rotate %222 by %c20_i32_108 dim 1 : vector<8x512xf32>, i32 -> vector<8x512xf32>
    %c19_i32_109 = arith.constant 19 : i32
    %228 = tpu.dynamic_rotate %222 by %c19_i32_109 dim 1 : vector<8x512xf32>, i32 -> vector<8x512xf32>
    %c1_i32_110 = arith.constant 1 : i32
    %229 = tpu.dynamic_rotate %222 by %c1_i32_110 dim 1 : vector<8x512xf32>, i32 -> vector<8x512xf32>
    %c511_i32_111 = arith.constant 511 : i32
    %230 = tpu.dynamic_rotate %222 by %c511_i32_111 dim 1 : vector<8x512xf32>, i32 -> vector<8x512xf32>
    %c493_i32_112 = arith.constant 493 : i32
    %231 = tpu.dynamic_rotate %222 by %c493_i32_112 dim 1 : vector<8x512xf32>, i32 -> vector<8x512xf32>
    %c492_i32_113 = arith.constant 492 : i32
    %232 = tpu.dynamic_rotate %222 by %c492_i32_113 dim 1 : vector<8x512xf32>, i32 -> vector<8x512xf32>
    %c491_i32_114 = arith.constant 491 : i32
    %233 = tpu.dynamic_rotate %222 by %c491_i32_114 dim 1 : vector<8x512xf32>, i32 -> vector<8x512xf32>
    %234 = tpu.concatenate %226, %227, %228, %229, %222, %230, %231, %232, %233 in 0 : vector<8x512xf32>, vector<8x512xf32>, vector<8x512xf32>, vector<8x512xf32>, vector<8x512xf32>, vector<8x512xf32>, vector<8x512xf32>, vector<8x512xf32>, vector<8x512xf32> -> vector<72x512xf32>
    %c0_115 = arith.constant 0 : index
    %c0_116 = arith.constant 0 : index
    %235 = vector.load %arg3[%c0_115, %c0_116] : memref<24x72xf32, #tpu.memory_space<vmem>>, vector<24x72xf32>
    %cst_117 = arith.constant dense<0.000000e+00> : vector<24x512xf32>
    %236 = tpu.matmul %235, %234, %cst_117 {dimension_numbers = #tpu.dot_dimension_numbers<[1], [0], [0], [1], [0, 0, 1, 1], [], []>} : vector<24x72xf32>, vector<72x512xf32>, vector<24x512xf32> -> vector<24x512xf32>
    %c0_118 = arith.constant 0 : index
    %c0_119 = arith.constant 0 : index
    %237 = vector.load %arg4[%c0_118, %c0_119] : memref<24x1xf32, #tpu.memory_space<vmem>>, vector<24x1xf32>
    %238 = vector.broadcast %237 : vector<24x1xf32> to vector<24x512xf32>
    %239 = arith.addf %236, %238 : vector<24x512xf32>
    %c21_i32_120 = arith.constant 21 : i32
    %240 = tpu.dynamic_rotate %55 by %c21_i32_120 dim 1 : vector<8x512xf32>, i32 -> vector<8x512xf32>
    %c20_i32_121 = arith.constant 20 : i32
    %241 = tpu.dynamic_rotate %55 by %c20_i32_121 dim 1 : vector<8x512xf32>, i32 -> vector<8x512xf32>
    %c19_i32_122 = arith.constant 19 : i32
    %242 = tpu.dynamic_rotate %55 by %c19_i32_122 dim 1 : vector<8x512xf32>, i32 -> vector<8x512xf32>
    %c1_i32_123 = arith.constant 1 : i32
    %243 = tpu.dynamic_rotate %55 by %c1_i32_123 dim 1 : vector<8x512xf32>, i32 -> vector<8x512xf32>
    %c511_i32_124 = arith.constant 511 : i32
    %244 = tpu.dynamic_rotate %55 by %c511_i32_124 dim 1 : vector<8x512xf32>, i32 -> vector<8x512xf32>
    %c493_i32_125 = arith.constant 493 : i32
    %245 = tpu.dynamic_rotate %55 by %c493_i32_125 dim 1 : vector<8x512xf32>, i32 -> vector<8x512xf32>
    %c492_i32_126 = arith.constant 492 : i32
    %246 = tpu.dynamic_rotate %55 by %c492_i32_126 dim 1 : vector<8x512xf32>, i32 -> vector<8x512xf32>
    %c491_i32_127 = arith.constant 491 : i32
    %247 = tpu.dynamic_rotate %55 by %c491_i32_127 dim 1 : vector<8x512xf32>, i32 -> vector<8x512xf32>
    %248 = tpu.concatenate %240, %241, %242, %243, %55, %244, %245, %246, %247 in 0 : vector<8x512xf32>, vector<8x512xf32>, vector<8x512xf32>, vector<8x512xf32>, vector<8x512xf32>, vector<8x512xf32>, vector<8x512xf32>, vector<8x512xf32>, vector<8x512xf32> -> vector<72x512xf32>
    %c0_128 = arith.constant 0 : index
    %c0_129 = arith.constant 0 : index
    %249 = vector.load %arg5[%c0_128, %c0_129] : memref<16x72xf32, #tpu.memory_space<vmem>>, vector<16x72xf32>
    %cst_130 = arith.constant dense<0.000000e+00> : vector<16x512xf32>
    %250 = tpu.matmul %249, %248, %cst_130 {dimension_numbers = #tpu.dot_dimension_numbers<[1], [0], [0], [1], [0, 0, 1, 1], [], []>} : vector<16x72xf32>, vector<72x512xf32>, vector<16x512xf32> -> vector<16x512xf32>
    %c0_131 = arith.constant 0 : index
    %c0_132 = arith.constant 0 : index
    %251 = vector.load %arg6[%c0_131, %c0_132] : memref<16x1xf32, #tpu.memory_space<vmem>>, vector<16x1xf32>
    %252 = vector.broadcast %251 : vector<16x1xf32> to vector<16x512xf32>
    %253 = arith.addf %250, %252 : vector<16x512xf32>
    %254 = vector.extract_strided_slice %239 {offsets = [0, 0], sizes = [8, 512], strides = [1, 1]} : vector<24x512xf32> to vector<8x512xf32>
    %255 = vector.extract_strided_slice %253 {offsets = [0, 0], sizes = [8, 512], strides = [1, 1]} : vector<16x512xf32> to vector<8x512xf32>
    %256 = arith.addf %254, %255 : vector<8x512xf32>
    %257 = arith.negf %256 : vector<8x512xf32>
    %258 = math.exp %257 : vector<8x512xf32>
    %cst_133 = arith.constant 1.000000e+00 : f32
    %259 = vector.broadcast %cst_133 : f32 to vector<8x512xf32>
    %260 = arith.addf %259, %258 : vector<8x512xf32>
    %261 = arith.divf %259, %260 : vector<8x512xf32>
    %262 = vector.extract_strided_slice %239 {offsets = [8, 0], sizes = [8, 512], strides = [1, 1]} : vector<24x512xf32> to vector<8x512xf32>
    %263 = vector.extract_strided_slice %253 {offsets = [8, 0], sizes = [8, 512], strides = [1, 1]} : vector<16x512xf32> to vector<8x512xf32>
    %264 = arith.addf %262, %263 : vector<8x512xf32>
    %265 = arith.negf %264 : vector<8x512xf32>
    %266 = math.exp %265 : vector<8x512xf32>
    %cst_134 = arith.constant 1.000000e+00 : f32
    %267 = vector.broadcast %cst_134 : f32 to vector<8x512xf32>
    %268 = arith.addf %267, %266 : vector<8x512xf32>
    %269 = arith.divf %267, %268 : vector<8x512xf32>
    %270 = vector.extract_strided_slice %239 {offsets = [16, 0], sizes = [8, 512], strides = [1, 1]} : vector<24x512xf32> to vector<8x512xf32>
    %271 = arith.mulf %269, %55 : vector<8x512xf32>
    %c21_i32_135 = arith.constant 21 : i32
    %272 = tpu.dynamic_rotate %271 by %c21_i32_135 dim 1 : vector<8x512xf32>, i32 -> vector<8x512xf32>
    %c20_i32_136 = arith.constant 20 : i32
    %273 = tpu.dynamic_rotate %271 by %c20_i32_136 dim 1 : vector<8x512xf32>, i32 -> vector<8x512xf32>
    %c19_i32_137 = arith.constant 19 : i32
    %274 = tpu.dynamic_rotate %271 by %c19_i32_137 dim 1 : vector<8x512xf32>, i32 -> vector<8x512xf32>
    %c1_i32_138 = arith.constant 1 : i32
    %275 = tpu.dynamic_rotate %271 by %c1_i32_138 dim 1 : vector<8x512xf32>, i32 -> vector<8x512xf32>
    %c511_i32_139 = arith.constant 511 : i32
    %276 = tpu.dynamic_rotate %271 by %c511_i32_139 dim 1 : vector<8x512xf32>, i32 -> vector<8x512xf32>
    %c493_i32_140 = arith.constant 493 : i32
    %277 = tpu.dynamic_rotate %271 by %c493_i32_140 dim 1 : vector<8x512xf32>, i32 -> vector<8x512xf32>
    %c492_i32_141 = arith.constant 492 : i32
    %278 = tpu.dynamic_rotate %271 by %c492_i32_141 dim 1 : vector<8x512xf32>, i32 -> vector<8x512xf32>
    %c491_i32_142 = arith.constant 491 : i32
    %279 = tpu.dynamic_rotate %271 by %c491_i32_142 dim 1 : vector<8x512xf32>, i32 -> vector<8x512xf32>
    %280 = tpu.concatenate %272, %273, %274, %275, %271, %276, %277, %278, %279 in 0 : vector<8x512xf32>, vector<8x512xf32>, vector<8x512xf32>, vector<8x512xf32>, vector<8x512xf32>, vector<8x512xf32>, vector<8x512xf32>, vector<8x512xf32>, vector<8x512xf32> -> vector<72x512xf32>
    %c0_143 = arith.constant 0 : index
    %c0_144 = arith.constant 0 : index
    %281 = vector.load %arg7[%c0_143, %c0_144] : memref<8x72xf32, #tpu.memory_space<vmem>>, vector<8x72xf32>
    %cst_145 = arith.constant dense<0.000000e+00> : vector<8x512xf32>
    %282 = tpu.matmul %281, %280, %cst_145 {dimension_numbers = #tpu.dot_dimension_numbers<[1], [0], [0], [1], [0, 0, 1, 1], [], []>} : vector<8x72xf32>, vector<72x512xf32>, vector<8x512xf32> -> vector<8x512xf32>
    %c0_146 = arith.constant 0 : index
    %c0_147 = arith.constant 0 : index
    %283 = vector.load %arg8[%c0_146, %c0_147] : memref<8x1xf32, #tpu.memory_space<vmem>>, vector<8x1xf32>
    %284 = vector.broadcast %283 : vector<8x1xf32> to vector<8x512xf32>
    %285 = arith.addf %282, %284 : vector<8x512xf32>
    %286 = arith.addf %270, %285 : vector<8x512xf32>
    %287 = math.tanh %286 : vector<8x512xf32>
    %288 = arith.subf %287, %55 : vector<8x512xf32>
    %289 = arith.mulf %261, %288 : vector<8x512xf32>
    %290 = arith.addf %55, %289 : vector<8x512xf32>
    %291 = vector.broadcast %0 : vector<1x512xf32> to vector<8x512xf32>
    %292 = arith.mulf %290, %291 : vector<8x512xf32>
    %cst_148 = arith.constant dense<0.000000e+00> : vector<8xf32>
    %293 = vector.multi_reduction <add>, %292, %cst_148 [1] : vector<8x512xf32> to vector<8xf32>
    %294 = vector.shape_cast %293 : vector<8xf32> to vector<8x1xf32>
    %cst_149 = arith.constant 3.906250e-03 : f32
    %295 = vector.broadcast %cst_149 : f32 to vector<8x1xf32>
    %296 = arith.mulf %294, %295 : vector<8x1xf32>
    %c0_150 = arith.constant 0 : index
    %c0_151 = arith.constant 0 : index
    %297 = vector.load %arg9[%c0_150, %c0_151] : memref<8x2xf32, #tpu.memory_space<vmem>>, vector<8x2xf32>
    %298 = vector.broadcast %296 : vector<8x1xf32> to vector<8x2xf32>
    %299 = arith.mulf %297, %298 : vector<8x2xf32>
    %cst_152 = arith.constant dense<0.000000e+00> : vector<2xf32>
    %300 = vector.multi_reduction <add>, %299, %cst_152 [0] : vector<8x2xf32> to vector<2xf32>
    %301 = vector.shape_cast %300 : vector<2xf32> to vector<1x2xf32>
    %cst_153 = arith.constant 0.000000e+00 : f32
    %302 = vector.broadcast %cst_153 : f32 to vector<1x2xf32>
    %303 = arith.maximumf %301, %302 : vector<1x2xf32>
    %c0_154 = arith.constant 0 : index
    %c0_155 = arith.constant 0 : index
    %304 = vector.load %arg10[%c0_154, %c0_155] : memref<8x2xf32, #tpu.memory_space<vmem>>, vector<8x2xf32>
    %305 = vector.broadcast %303 : vector<1x2xf32> to vector<8x2xf32>
    %306 = arith.mulf %304, %305 : vector<8x2xf32>
    %cst_156 = arith.constant dense<0.000000e+00> : vector<8xf32>
    %307 = vector.multi_reduction <add>, %306, %cst_156 [1] : vector<8x2xf32> to vector<8xf32>
    %308 = vector.shape_cast %307 : vector<8xf32> to vector<8x1xf32>
    %309 = arith.negf %308 : vector<8x1xf32>
    %310 = math.exp %309 : vector<8x1xf32>
    %cst_157 = arith.constant 1.000000e+00 : f32
    %311 = vector.broadcast %cst_157 : f32 to vector<8x1xf32>
    %312 = arith.addf %311, %310 : vector<8x1xf32>
    %313 = arith.divf %311, %312 : vector<8x1xf32>
    %314 = vector.broadcast %313 : vector<8x1xf32> to vector<8x512xf32>
    %315 = arith.mulf %292, %314 : vector<8x512xf32>
    %cst_158 = arith.constant 0.000000e+00 : f32
    %316 = vector.broadcast %cst_158 : f32 to vector<8x512xf32>
    %317 = arith.cmpf oge, %315, %316 : vector<8x512xf32>
    %cst_159 = arith.constant 2.000000e-01 : f32
    %318 = vector.broadcast %cst_159 : f32 to vector<8x512xf32>
    %319 = arith.mulf %318, %315 : vector<8x512xf32>
    %320 = arith.select %317, %315, %319 : vector<8x512xi1>, vector<8x512xf32>
    %c21_i32_160 = arith.constant 21 : i32
    %321 = tpu.dynamic_rotate %320 by %c21_i32_160 dim 1 : vector<8x512xf32>, i32 -> vector<8x512xf32>
    %c20_i32_161 = arith.constant 20 : i32
    %322 = tpu.dynamic_rotate %320 by %c20_i32_161 dim 1 : vector<8x512xf32>, i32 -> vector<8x512xf32>
    %c19_i32_162 = arith.constant 19 : i32
    %323 = tpu.dynamic_rotate %320 by %c19_i32_162 dim 1 : vector<8x512xf32>, i32 -> vector<8x512xf32>
    %c1_i32_163 = arith.constant 1 : i32
    %324 = tpu.dynamic_rotate %320 by %c1_i32_163 dim 1 : vector<8x512xf32>, i32 -> vector<8x512xf32>
    %c511_i32_164 = arith.constant 511 : i32
    %325 = tpu.dynamic_rotate %320 by %c511_i32_164 dim 1 : vector<8x512xf32>, i32 -> vector<8x512xf32>
    %c493_i32_165 = arith.constant 493 : i32
    %326 = tpu.dynamic_rotate %320 by %c493_i32_165 dim 1 : vector<8x512xf32>, i32 -> vector<8x512xf32>
    %c492_i32_166 = arith.constant 492 : i32
    %327 = tpu.dynamic_rotate %320 by %c492_i32_166 dim 1 : vector<8x512xf32>, i32 -> vector<8x512xf32>
    %c491_i32_167 = arith.constant 491 : i32
    %328 = tpu.dynamic_rotate %320 by %c491_i32_167 dim 1 : vector<8x512xf32>, i32 -> vector<8x512xf32>
    %329 = tpu.concatenate %321, %322, %323, %324, %320, %325, %326, %327, %328 in 0 : vector<8x512xf32>, vector<8x512xf32>, vector<8x512xf32>, vector<8x512xf32>, vector<8x512xf32>, vector<8x512xf32>, vector<8x512xf32>, vector<8x512xf32>, vector<8x512xf32> -> vector<72x512xf32>
    %c0_168 = arith.constant 0 : index
    %c0_169 = arith.constant 0 : index
    %330 = vector.load %arg11[%c0_168, %c0_169] : memref<24x72xf32, #tpu.memory_space<vmem>>, vector<24x72xf32>
    %cst_170 = arith.constant dense<0.000000e+00> : vector<24x512xf32>
    %331 = tpu.matmul %330, %329, %cst_170 {dimension_numbers = #tpu.dot_dimension_numbers<[1], [0], [0], [1], [0, 0, 1, 1], [], []>} : vector<24x72xf32>, vector<72x512xf32>, vector<24x512xf32> -> vector<24x512xf32>
    %c0_171 = arith.constant 0 : index
    %c0_172 = arith.constant 0 : index
    %332 = vector.load %arg12[%c0_171, %c0_172] : memref<24x1xf32, #tpu.memory_space<vmem>>, vector<24x1xf32>
    %333 = vector.broadcast %332 : vector<24x1xf32> to vector<24x512xf32>
    %334 = arith.addf %331, %333 : vector<24x512xf32>
    %c21_i32_173 = arith.constant 21 : i32
    %335 = tpu.dynamic_rotate %108 by %c21_i32_173 dim 1 : vector<8x512xf32>, i32 -> vector<8x512xf32>
    %c20_i32_174 = arith.constant 20 : i32
    %336 = tpu.dynamic_rotate %108 by %c20_i32_174 dim 1 : vector<8x512xf32>, i32 -> vector<8x512xf32>
    %c19_i32_175 = arith.constant 19 : i32
    %337 = tpu.dynamic_rotate %108 by %c19_i32_175 dim 1 : vector<8x512xf32>, i32 -> vector<8x512xf32>
    %c1_i32_176 = arith.constant 1 : i32
    %338 = tpu.dynamic_rotate %108 by %c1_i32_176 dim 1 : vector<8x512xf32>, i32 -> vector<8x512xf32>
    %c511_i32_177 = arith.constant 511 : i32
    %339 = tpu.dynamic_rotate %108 by %c511_i32_177 dim 1 : vector<8x512xf32>, i32 -> vector<8x512xf32>
    %c493_i32_178 = arith.constant 493 : i32
    %340 = tpu.dynamic_rotate %108 by %c493_i32_178 dim 1 : vector<8x512xf32>, i32 -> vector<8x512xf32>
    %c492_i32_179 = arith.constant 492 : i32
    %341 = tpu.dynamic_rotate %108 by %c492_i32_179 dim 1 : vector<8x512xf32>, i32 -> vector<8x512xf32>
    %c491_i32_180 = arith.constant 491 : i32
    %342 = tpu.dynamic_rotate %108 by %c491_i32_180 dim 1 : vector<8x512xf32>, i32 -> vector<8x512xf32>
    %343 = tpu.concatenate %335, %336, %337, %338, %108, %339, %340, %341, %342 in 0 : vector<8x512xf32>, vector<8x512xf32>, vector<8x512xf32>, vector<8x512xf32>, vector<8x512xf32>, vector<8x512xf32>, vector<8x512xf32>, vector<8x512xf32>, vector<8x512xf32> -> vector<72x512xf32>
    %c0_181 = arith.constant 0 : index
    %c0_182 = arith.constant 0 : index
    %344 = vector.load %arg13[%c0_181, %c0_182] : memref<16x72xf32, #tpu.memory_space<vmem>>, vector<16x72xf32>
    %cst_183 = arith.constant dense<0.000000e+00> : vector<16x512xf32>
    %345 = tpu.matmul %344, %343, %cst_183 {dimension_numbers = #tpu.dot_dimension_numbers<[1], [0], [0], [1], [0, 0, 1, 1], [], []>} : vector<16x72xf32>, vector<72x512xf32>, vector<16x512xf32> -> vector<16x512xf32>
    %c0_184 = arith.constant 0 : index
    %c0_185 = arith.constant 0 : index
    %346 = vector.load %arg14[%c0_184, %c0_185] : memref<16x1xf32, #tpu.memory_space<vmem>>, vector<16x1xf32>
    %347 = vector.broadcast %346 : vector<16x1xf32> to vector<16x512xf32>
    %348 = arith.addf %345, %347 : vector<16x512xf32>
    %349 = vector.extract_strided_slice %334 {offsets = [0, 0], sizes = [8, 512], strides = [1, 1]} : vector<24x512xf32> to vector<8x512xf32>
    %350 = vector.extract_strided_slice %348 {offsets = [0, 0], sizes = [8, 512], strides = [1, 1]} : vector<16x512xf32> to vector<8x512xf32>
    %351 = arith.addf %349, %350 : vector<8x512xf32>
    %352 = arith.negf %351 : vector<8x512xf32>
    %353 = math.exp %352 : vector<8x512xf32>
    %cst_186 = arith.constant 1.000000e+00 : f32
    %354 = vector.broadcast %cst_186 : f32 to vector<8x512xf32>
    %355 = arith.addf %354, %353 : vector<8x512xf32>
    %356 = arith.divf %354, %355 : vector<8x512xf32>
    %357 = vector.extract_strided_slice %334 {offsets = [8, 0], sizes = [8, 512], strides = [1, 1]} : vector<24x512xf32> to vector<8x512xf32>
    %358 = vector.extract_strided_slice %348 {offsets = [8, 0], sizes = [8, 512], strides = [1, 1]} : vector<16x512xf32> to vector<8x512xf32>
    %359 = arith.addf %357, %358 : vector<8x512xf32>
    %360 = arith.negf %359 : vector<8x512xf32>
    %361 = math.exp %360 : vector<8x512xf32>
    %cst_187 = arith.constant 1.000000e+00 : f32
    %362 = vector.broadcast %cst_187 : f32 to vector<8x512xf32>
    %363 = arith.addf %362, %361 : vector<8x512xf32>
    %364 = arith.divf %362, %363 : vector<8x512xf32>
    %365 = vector.extract_strided_slice %334 {offsets = [16, 0], sizes = [8, 512], strides = [1, 1]} : vector<24x512xf32> to vector<8x512xf32>
    %366 = arith.mulf %364, %108 : vector<8x512xf32>
    %c21_i32_188 = arith.constant 21 : i32
    %367 = tpu.dynamic_rotate %366 by %c21_i32_188 dim 1 : vector<8x512xf32>, i32 -> vector<8x512xf32>
    %c20_i32_189 = arith.constant 20 : i32
    %368 = tpu.dynamic_rotate %366 by %c20_i32_189 dim 1 : vector<8x512xf32>, i32 -> vector<8x512xf32>
    %c19_i32_190 = arith.constant 19 : i32
    %369 = tpu.dynamic_rotate %366 by %c19_i32_190 dim 1 : vector<8x512xf32>, i32 -> vector<8x512xf32>
    %c1_i32_191 = arith.constant 1 : i32
    %370 = tpu.dynamic_rotate %366 by %c1_i32_191 dim 1 : vector<8x512xf32>, i32 -> vector<8x512xf32>
    %c511_i32_192 = arith.constant 511 : i32
    %371 = tpu.dynamic_rotate %366 by %c511_i32_192 dim 1 : vector<8x512xf32>, i32 -> vector<8x512xf32>
    %c493_i32_193 = arith.constant 493 : i32
    %372 = tpu.dynamic_rotate %366 by %c493_i32_193 dim 1 : vector<8x512xf32>, i32 -> vector<8x512xf32>
    %c492_i32_194 = arith.constant 492 : i32
    %373 = tpu.dynamic_rotate %366 by %c492_i32_194 dim 1 : vector<8x512xf32>, i32 -> vector<8x512xf32>
    %c491_i32_195 = arith.constant 491 : i32
    %374 = tpu.dynamic_rotate %366 by %c491_i32_195 dim 1 : vector<8x512xf32>, i32 -> vector<8x512xf32>
    %375 = tpu.concatenate %367, %368, %369, %370, %366, %371, %372, %373, %374 in 0 : vector<8x512xf32>, vector<8x512xf32>, vector<8x512xf32>, vector<8x512xf32>, vector<8x512xf32>, vector<8x512xf32>, vector<8x512xf32>, vector<8x512xf32>, vector<8x512xf32> -> vector<72x512xf32>
    %c0_196 = arith.constant 0 : index
    %c0_197 = arith.constant 0 : index
    %376 = vector.load %arg15[%c0_196, %c0_197] : memref<8x72xf32, #tpu.memory_space<vmem>>, vector<8x72xf32>
    %cst_198 = arith.constant dense<0.000000e+00> : vector<8x512xf32>
    %377 = tpu.matmul %376, %375, %cst_198 {dimension_numbers = #tpu.dot_dimension_numbers<[1], [0], [0], [1], [0, 0, 1, 1], [], []>} : vector<8x72xf32>, vector<72x512xf32>, vector<8x512xf32> -> vector<8x512xf32>
    %c0_199 = arith.constant 0 : index
    %c0_200 = arith.constant 0 : index
    %378 = vector.load %arg16[%c0_199, %c0_200] : memref<8x1xf32, #tpu.memory_space<vmem>>, vector<8x1xf32>
    %379 = vector.broadcast %378 : vector<8x1xf32> to vector<8x512xf32>
    %380 = arith.addf %377, %379 : vector<8x512xf32>
    %381 = arith.addf %365, %380 : vector<8x512xf32>
    %382 = math.tanh %381 : vector<8x512xf32>
    %383 = arith.subf %382, %108 : vector<8x512xf32>
    %384 = arith.mulf %356, %383 : vector<8x512xf32>
    %385 = arith.addf %108, %384 : vector<8x512xf32>
    %386 = vector.broadcast %0 : vector<1x512xf32> to vector<8x512xf32>
    %387 = arith.mulf %385, %386 : vector<8x512xf32>
    %cst_201 = arith.constant dense<0.000000e+00> : vector<8xf32>
    %388 = vector.multi_reduction <add>, %387, %cst_201 [1] : vector<8x512xf32> to vector<8xf32>
    %389 = vector.shape_cast %388 : vector<8xf32> to vector<8x1xf32>
    %cst_202 = arith.constant 3.906250e-03 : f32
    %390 = vector.broadcast %cst_202 : f32 to vector<8x1xf32>
    %391 = arith.mulf %389, %390 : vector<8x1xf32>
    %c0_203 = arith.constant 0 : index
    %c0_204 = arith.constant 0 : index
    %392 = vector.load %arg17[%c0_203, %c0_204] : memref<8x2xf32, #tpu.memory_space<vmem>>, vector<8x2xf32>
    %393 = vector.broadcast %391 : vector<8x1xf32> to vector<8x2xf32>
    %394 = arith.mulf %392, %393 : vector<8x2xf32>
    %cst_205 = arith.constant dense<0.000000e+00> : vector<2xf32>
    %395 = vector.multi_reduction <add>, %394, %cst_205 [0] : vector<8x2xf32> to vector<2xf32>
    %396 = vector.shape_cast %395 : vector<2xf32> to vector<1x2xf32>
    %cst_206 = arith.constant 0.000000e+00 : f32
    %397 = vector.broadcast %cst_206 : f32 to vector<1x2xf32>
    %398 = arith.maximumf %396, %397 : vector<1x2xf32>
    %c0_207 = arith.constant 0 : index
    %c0_208 = arith.constant 0 : index
    %399 = vector.load %arg18[%c0_207, %c0_208] : memref<8x2xf32, #tpu.memory_space<vmem>>, vector<8x2xf32>
    %400 = vector.broadcast %398 : vector<1x2xf32> to vector<8x2xf32>
    %401 = arith.mulf %399, %400 : vector<8x2xf32>
    %cst_209 = arith.constant dense<0.000000e+00> : vector<8xf32>
    %402 = vector.multi_reduction <add>, %401, %cst_209 [1] : vector<8x2xf32> to vector<8xf32>
    %403 = vector.shape_cast %402 : vector<8xf32> to vector<8x1xf32>
    %404 = arith.negf %403 : vector<8x1xf32>
    %405 = math.exp %404 : vector<8x1xf32>
    %cst_210 = arith.constant 1.000000e+00 : f32
    %406 = vector.broadcast %cst_210 : f32 to vector<8x1xf32>
    %407 = arith.addf %406, %405 : vector<8x1xf32>
    %408 = arith.divf %406, %407 : vector<8x1xf32>
    %409 = vector.broadcast %408 : vector<8x1xf32> to vector<8x512xf32>
    %410 = arith.mulf %387, %409 : vector<8x512xf32>
    %cst_211 = arith.constant 0.000000e+00 : f32
    %411 = vector.broadcast %cst_211 : f32 to vector<8x512xf32>
    %412 = arith.cmpf oge, %410, %411 : vector<8x512xf32>
    %cst_212 = arith.constant 2.000000e-01 : f32
    %413 = vector.broadcast %cst_212 : f32 to vector<8x512xf32>
    %414 = arith.mulf %413, %410 : vector<8x512xf32>
    %415 = arith.select %412, %410, %414 : vector<8x512xi1>, vector<8x512xf32>
    %c42_i32_213 = arith.constant 42 : i32
    %416 = tpu.dynamic_rotate %415 by %c42_i32_213 dim 1 : vector<8x512xf32>, i32 -> vector<8x512xf32>
    %c40_i32_214 = arith.constant 40 : i32
    %417 = tpu.dynamic_rotate %415 by %c40_i32_214 dim 1 : vector<8x512xf32>, i32 -> vector<8x512xf32>
    %c38_i32_215 = arith.constant 38 : i32
    %418 = tpu.dynamic_rotate %415 by %c38_i32_215 dim 1 : vector<8x512xf32>, i32 -> vector<8x512xf32>
    %c2_i32_216 = arith.constant 2 : i32
    %419 = tpu.dynamic_rotate %415 by %c2_i32_216 dim 1 : vector<8x512xf32>, i32 -> vector<8x512xf32>
    %c510_i32_217 = arith.constant 510 : i32
    %420 = tpu.dynamic_rotate %415 by %c510_i32_217 dim 1 : vector<8x512xf32>, i32 -> vector<8x512xf32>
    %c474_i32_218 = arith.constant 474 : i32
    %421 = tpu.dynamic_rotate %415 by %c474_i32_218 dim 1 : vector<8x512xf32>, i32 -> vector<8x512xf32>
    %c472_i32_219 = arith.constant 472 : i32
    %422 = tpu.dynamic_rotate %415 by %c472_i32_219 dim 1 : vector<8x512xf32>, i32 -> vector<8x512xf32>
    %c470_i32_220 = arith.constant 470 : i32
    %423 = tpu.dynamic_rotate %415 by %c470_i32_220 dim 1 : vector<8x512xf32>, i32 -> vector<8x512xf32>
    %424 = tpu.concatenate %416, %417, %418, %419, %415, %420, %421, %422, %423 in 0 : vector<8x512xf32>, vector<8x512xf32>, vector<8x512xf32>, vector<8x512xf32>, vector<8x512xf32>, vector<8x512xf32>, vector<8x512xf32>, vector<8x512xf32>, vector<8x512xf32> -> vector<72x512xf32>
    %c0_221 = arith.constant 0 : index
    %c0_222 = arith.constant 0 : index
    %425 = vector.load %arg19[%c0_221, %c0_222] : memref<24x72xf32, #tpu.memory_space<vmem>>, vector<24x72xf32>
    %cst_223 = arith.constant dense<0.000000e+00> : vector<24x512xf32>
    %426 = tpu.matmul %425, %424, %cst_223 {dimension_numbers = #tpu.dot_dimension_numbers<[1], [0], [0], [1], [0, 0, 1, 1], [], []>} : vector<24x72xf32>, vector<72x512xf32>, vector<24x512xf32> -> vector<24x512xf32>
    %c0_224 = arith.constant 0 : index
    %c0_225 = arith.constant 0 : index
    %427 = vector.load %arg20[%c0_224, %c0_225] : memref<24x1xf32, #tpu.memory_space<vmem>>, vector<24x1xf32>
    %428 = vector.broadcast %427 : vector<24x1xf32> to vector<24x512xf32>
    %429 = arith.addf %426, %428 : vector<24x512xf32>
    %c42_i32_226 = arith.constant 42 : i32
    %430 = tpu.dynamic_rotate %161 by %c42_i32_226 dim 1 : vector<8x512xf32>, i32 -> vector<8x512xf32>
    %c40_i32_227 = arith.constant 40 : i32
    %431 = tpu.dynamic_rotate %161 by %c40_i32_227 dim 1 : vector<8x512xf32>, i32 -> vector<8x512xf32>
    %c38_i32_228 = arith.constant 38 : i32
    %432 = tpu.dynamic_rotate %161 by %c38_i32_228 dim 1 : vector<8x512xf32>, i32 -> vector<8x512xf32>
    %c2_i32_229 = arith.constant 2 : i32
    %433 = tpu.dynamic_rotate %161 by %c2_i32_229 dim 1 : vector<8x512xf32>, i32 -> vector<8x512xf32>
    %c510_i32_230 = arith.constant 510 : i32
    %434 = tpu.dynamic_rotate %161 by %c510_i32_230 dim 1 : vector<8x512xf32>, i32 -> vector<8x512xf32>
    %c474_i32_231 = arith.constant 474 : i32
    %435 = tpu.dynamic_rotate %161 by %c474_i32_231 dim 1 : vector<8x512xf32>, i32 -> vector<8x512xf32>
    %c472_i32_232 = arith.constant 472 : i32
    %436 = tpu.dynamic_rotate %161 by %c472_i32_232 dim 1 : vector<8x512xf32>, i32 -> vector<8x512xf32>
    %c470_i32_233 = arith.constant 470 : i32
    %437 = tpu.dynamic_rotate %161 by %c470_i32_233 dim 1 : vector<8x512xf32>, i32 -> vector<8x512xf32>
    %438 = tpu.concatenate %430, %431, %432, %433, %161, %434, %435, %436, %437 in 0 : vector<8x512xf32>, vector<8x512xf32>, vector<8x512xf32>, vector<8x512xf32>, vector<8x512xf32>, vector<8x512xf32>, vector<8x512xf32>, vector<8x512xf32>, vector<8x512xf32> -> vector<72x512xf32>
    %c0_234 = arith.constant 0 : index
    %c0_235 = arith.constant 0 : index
    %439 = vector.load %arg21[%c0_234, %c0_235] : memref<16x72xf32, #tpu.memory_space<vmem>>, vector<16x72xf32>
    %cst_236 = arith.constant dense<0.000000e+00> : vector<16x512xf32>
    %440 = tpu.matmul %439, %438, %cst_236 {dimension_numbers = #tpu.dot_dimension_numbers<[1], [0], [0], [1], [0, 0, 1, 1], [], []>} : vector<16x72xf32>, vector<72x512xf32>, vector<16x512xf32> -> vector<16x512xf32>
    %c0_237 = arith.constant 0 : index
    %c0_238 = arith.constant 0 : index
    %441 = vector.load %arg22[%c0_237, %c0_238] : memref<16x1xf32, #tpu.memory_space<vmem>>, vector<16x1xf32>
    %442 = vector.broadcast %441 : vector<16x1xf32> to vector<16x512xf32>
    %443 = arith.addf %440, %442 : vector<16x512xf32>
    %444 = vector.extract_strided_slice %429 {offsets = [0, 0], sizes = [8, 512], strides = [1, 1]} : vector<24x512xf32> to vector<8x512xf32>
    %445 = vector.extract_strided_slice %443 {offsets = [0, 0], sizes = [8, 512], strides = [1, 1]} : vector<16x512xf32> to vector<8x512xf32>
    %446 = arith.addf %444, %445 : vector<8x512xf32>
    %447 = arith.negf %446 : vector<8x512xf32>
    %448 = math.exp %447 : vector<8x512xf32>
    %cst_239 = arith.constant 1.000000e+00 : f32
    %449 = vector.broadcast %cst_239 : f32 to vector<8x512xf32>
    %450 = arith.addf %449, %448 : vector<8x512xf32>
    %451 = arith.divf %449, %450 : vector<8x512xf32>
    %452 = vector.extract_strided_slice %429 {offsets = [8, 0], sizes = [8, 512], strides = [1, 1]} : vector<24x512xf32> to vector<8x512xf32>
    %453 = vector.extract_strided_slice %443 {offsets = [8, 0], sizes = [8, 512], strides = [1, 1]} : vector<16x512xf32> to vector<8x512xf32>
    %454 = arith.addf %452, %453 : vector<8x512xf32>
    %455 = arith.negf %454 : vector<8x512xf32>
    %456 = math.exp %455 : vector<8x512xf32>
    %cst_240 = arith.constant 1.000000e+00 : f32
    %457 = vector.broadcast %cst_240 : f32 to vector<8x512xf32>
    %458 = arith.addf %457, %456 : vector<8x512xf32>
    %459 = arith.divf %457, %458 : vector<8x512xf32>
    %460 = vector.extract_strided_slice %429 {offsets = [16, 0], sizes = [8, 512], strides = [1, 1]} : vector<24x512xf32> to vector<8x512xf32>
    %461 = arith.mulf %459, %161 : vector<8x512xf32>
    %c42_i32_241 = arith.constant 42 : i32
    %462 = tpu.dynamic_rotate %461 by %c42_i32_241 dim 1 : vector<8x512xf32>, i32 -> vector<8x512xf32>
    %c40_i32_242 = arith.constant 40 : i32
    %463 = tpu.dynamic_rotate %461 by %c40_i32_242 dim 1 : vector<8x512xf32>, i32 -> vector<8x512xf32>
    %c38_i32_243 = arith.constant 38 : i32
    %464 = tpu.dynamic_rotate %461 by %c38_i32_243 dim 1 : vector<8x512xf32>, i32 -> vector<8x512xf32>
    %c2_i32_244 = arith.constant 2 : i32
    %465 = tpu.dynamic_rotate %461 by %c2_i32_244 dim 1 : vector<8x512xf32>, i32 -> vector<8x512xf32>
    %c510_i32_245 = arith.constant 510 : i32
    %466 = tpu.dynamic_rotate %461 by %c510_i32_245 dim 1 : vector<8x512xf32>, i32 -> vector<8x512xf32>
    %c474_i32_246 = arith.constant 474 : i32
    %467 = tpu.dynamic_rotate %461 by %c474_i32_246 dim 1 : vector<8x512xf32>, i32 -> vector<8x512xf32>
    %c472_i32_247 = arith.constant 472 : i32
    %468 = tpu.dynamic_rotate %461 by %c472_i32_247 dim 1 : vector<8x512xf32>, i32 -> vector<8x512xf32>
    %c470_i32_248 = arith.constant 470 : i32
    %469 = tpu.dynamic_rotate %461 by %c470_i32_248 dim 1 : vector<8x512xf32>, i32 -> vector<8x512xf32>
    %470 = tpu.concatenate %462, %463, %464, %465, %461, %466, %467, %468, %469 in 0 : vector<8x512xf32>, vector<8x512xf32>, vector<8x512xf32>, vector<8x512xf32>, vector<8x512xf32>, vector<8x512xf32>, vector<8x512xf32>, vector<8x512xf32>, vector<8x512xf32> -> vector<72x512xf32>
    %c0_249 = arith.constant 0 : index
    %c0_250 = arith.constant 0 : index
    %471 = vector.load %arg23[%c0_249, %c0_250] : memref<8x72xf32, #tpu.memory_space<vmem>>, vector<8x72xf32>
    %cst_251 = arith.constant dense<0.000000e+00> : vector<8x512xf32>
    %472 = tpu.matmul %471, %470, %cst_251 {dimension_numbers = #tpu.dot_dimension_numbers<[1], [0], [0], [1], [0, 0, 1, 1], [], []>} : vector<8x72xf32>, vector<72x512xf32>, vector<8x512xf32> -> vector<8x512xf32>
    %c0_252 = arith.constant 0 : index
    %c0_253 = arith.constant 0 : index
    %473 = vector.load %arg24[%c0_252, %c0_253] : memref<8x1xf32, #tpu.memory_space<vmem>>, vector<8x1xf32>
    %474 = vector.broadcast %473 : vector<8x1xf32> to vector<8x512xf32>
    %475 = arith.addf %472, %474 : vector<8x512xf32>
    %476 = arith.addf %460, %475 : vector<8x512xf32>
    %477 = math.tanh %476 : vector<8x512xf32>
    %478 = arith.subf %477, %161 : vector<8x512xf32>
    %479 = arith.mulf %451, %478 : vector<8x512xf32>
    %480 = arith.addf %161, %479 : vector<8x512xf32>
    %481 = vector.broadcast %0 : vector<1x512xf32> to vector<8x512xf32>
    %482 = arith.mulf %480, %481 : vector<8x512xf32>
    %cst_254 = arith.constant dense<0.000000e+00> : vector<8xf32>
    %483 = vector.multi_reduction <add>, %482, %cst_254 [1] : vector<8x512xf32> to vector<8xf32>
    %484 = vector.shape_cast %483 : vector<8xf32> to vector<8x1xf32>
    %cst_255 = arith.constant 3.906250e-03 : f32
    %485 = vector.broadcast %cst_255 : f32 to vector<8x1xf32>
    %486 = arith.mulf %484, %485 : vector<8x1xf32>
    %c0_256 = arith.constant 0 : index
    %c0_257 = arith.constant 0 : index
    %487 = vector.load %arg25[%c0_256, %c0_257] : memref<8x2xf32, #tpu.memory_space<vmem>>, vector<8x2xf32>
    %488 = vector.broadcast %486 : vector<8x1xf32> to vector<8x2xf32>
    %489 = arith.mulf %487, %488 : vector<8x2xf32>
    %cst_258 = arith.constant dense<0.000000e+00> : vector<2xf32>
    %490 = vector.multi_reduction <add>, %489, %cst_258 [0] : vector<8x2xf32> to vector<2xf32>
    %491 = vector.shape_cast %490 : vector<2xf32> to vector<1x2xf32>
    %cst_259 = arith.constant 0.000000e+00 : f32
    %492 = vector.broadcast %cst_259 : f32 to vector<1x2xf32>
    %493 = arith.maximumf %491, %492 : vector<1x2xf32>
    %c0_260 = arith.constant 0 : index
    %c0_261 = arith.constant 0 : index
    %494 = vector.load %arg26[%c0_260, %c0_261] : memref<8x2xf32, #tpu.memory_space<vmem>>, vector<8x2xf32>
    %495 = vector.broadcast %493 : vector<1x2xf32> to vector<8x2xf32>
    %496 = arith.mulf %494, %495 : vector<8x2xf32>
    %cst_262 = arith.constant dense<0.000000e+00> : vector<8xf32>
    %497 = vector.multi_reduction <add>, %496, %cst_262 [1] : vector<8x2xf32> to vector<8xf32>
    %498 = vector.shape_cast %497 : vector<8xf32> to vector<8x1xf32>
    %499 = arith.negf %498 : vector<8x1xf32>
    %500 = math.exp %499 : vector<8x1xf32>
    %cst_263 = arith.constant 1.000000e+00 : f32
    %501 = vector.broadcast %cst_263 : f32 to vector<8x1xf32>
    %502 = arith.addf %501, %500 : vector<8x1xf32>
    %503 = arith.divf %501, %502 : vector<8x1xf32>
    %504 = vector.broadcast %503 : vector<8x1xf32> to vector<8x512xf32>
    %505 = arith.mulf %482, %504 : vector<8x512xf32>
    %cst_264 = arith.constant 0.000000e+00 : f32
    %506 = vector.broadcast %cst_264 : f32 to vector<8x512xf32>
    %507 = arith.cmpf oge, %505, %506 : vector<8x512xf32>
    %cst_265 = arith.constant 2.000000e-01 : f32
    %508 = vector.broadcast %cst_265 : f32 to vector<8x512xf32>
    %509 = arith.mulf %508, %505 : vector<8x512xf32>
    %510 = arith.select %507, %505, %509 : vector<8x512xi1>, vector<8x512xf32>
    %c21_i32_266 = arith.constant 21 : i32
    %511 = tpu.dynamic_rotate %510 by %c21_i32_266 dim 1 : vector<8x512xf32>, i32 -> vector<8x512xf32>
    %c20_i32_267 = arith.constant 20 : i32
    %512 = tpu.dynamic_rotate %510 by %c20_i32_267 dim 1 : vector<8x512xf32>, i32 -> vector<8x512xf32>
    %c19_i32_268 = arith.constant 19 : i32
    %513 = tpu.dynamic_rotate %510 by %c19_i32_268 dim 1 : vector<8x512xf32>, i32 -> vector<8x512xf32>
    %c1_i32_269 = arith.constant 1 : i32
    %514 = tpu.dynamic_rotate %510 by %c1_i32_269 dim 1 : vector<8x512xf32>, i32 -> vector<8x512xf32>
    %c511_i32_270 = arith.constant 511 : i32
    %515 = tpu.dynamic_rotate %510 by %c511_i32_270 dim 1 : vector<8x512xf32>, i32 -> vector<8x512xf32>
    %c493_i32_271 = arith.constant 493 : i32
    %516 = tpu.dynamic_rotate %510 by %c493_i32_271 dim 1 : vector<8x512xf32>, i32 -> vector<8x512xf32>
    %c492_i32_272 = arith.constant 492 : i32
    %517 = tpu.dynamic_rotate %510 by %c492_i32_272 dim 1 : vector<8x512xf32>, i32 -> vector<8x512xf32>
    %c491_i32_273 = arith.constant 491 : i32
    %518 = tpu.dynamic_rotate %510 by %c491_i32_273 dim 1 : vector<8x512xf32>, i32 -> vector<8x512xf32>
    %519 = tpu.concatenate %511, %512, %513, %514, %510, %515, %516, %517, %518 in 0 : vector<8x512xf32>, vector<8x512xf32>, vector<8x512xf32>, vector<8x512xf32>, vector<8x512xf32>, vector<8x512xf32>, vector<8x512xf32>, vector<8x512xf32>, vector<8x512xf32> -> vector<72x512xf32>
    %c0_274 = arith.constant 0 : index
    %c0_275 = arith.constant 0 : index
    %520 = vector.load %arg27[%c0_274, %c0_275] : memref<8x72xf32, #tpu.memory_space<vmem>>, vector<8x72xf32>
    %cst_276 = arith.constant dense<0.000000e+00> : vector<8x512xf32>
    %521 = tpu.matmul %520, %519, %cst_276 {dimension_numbers = #tpu.dot_dimension_numbers<[1], [0], [0], [1], [0, 0, 1, 1], [], []>} : vector<8x72xf32>, vector<72x512xf32>, vector<8x512xf32> -> vector<8x512xf32>
    %c0_277 = arith.constant 0 : index
    %c0_278 = arith.constant 0 : index
    %522 = vector.load %arg28[%c0_277, %c0_278] : memref<8x1xf32, #tpu.memory_space<vmem>>, vector<8x1xf32>
    %523 = vector.broadcast %522 : vector<8x1xf32> to vector<8x512xf32>
    %524 = arith.addf %521, %523 : vector<8x512xf32>
    %525 = vector.broadcast %0 : vector<1x512xf32> to vector<8x512xf32>
    %526 = arith.mulf %524, %525 : vector<8x512xf32>
    %cst_279 = arith.constant dense<0.000000e+00> : vector<8xf32>
    %527 = vector.multi_reduction <add>, %526, %cst_279 [1] : vector<8x512xf32> to vector<8xf32>
    %528 = vector.shape_cast %527 : vector<8xf32> to vector<8x1xf32>
    %cst_280 = arith.constant 3.906250e-03 : f32
    %529 = vector.broadcast %cst_280 : f32 to vector<8x1xf32>
    %530 = arith.mulf %528, %529 : vector<8x1xf32>
    %c0_281 = arith.constant 0 : index
    %c0_282 = arith.constant 0 : index
    %531 = vector.load %arg29[%c0_281, %c0_282] : memref<8x2xf32, #tpu.memory_space<vmem>>, vector<8x2xf32>
    %532 = vector.broadcast %530 : vector<8x1xf32> to vector<8x2xf32>
    %533 = arith.mulf %531, %532 : vector<8x2xf32>
    %cst_283 = arith.constant dense<0.000000e+00> : vector<2xf32>
    %534 = vector.multi_reduction <add>, %533, %cst_283 [0] : vector<8x2xf32> to vector<2xf32>
    %535 = vector.shape_cast %534 : vector<2xf32> to vector<1x2xf32>
    %cst_284 = arith.constant 0.000000e+00 : f32
    %536 = vector.broadcast %cst_284 : f32 to vector<1x2xf32>
    %537 = arith.maximumf %535, %536 : vector<1x2xf32>
    %c0_285 = arith.constant 0 : index
    %c0_286 = arith.constant 0 : index
    %538 = vector.load %arg30[%c0_285, %c0_286] : memref<8x2xf32, #tpu.memory_space<vmem>>, vector<8x2xf32>
    %539 = vector.broadcast %537 : vector<1x2xf32> to vector<8x2xf32>
    %540 = arith.mulf %538, %539 : vector<8x2xf32>
    %cst_287 = arith.constant dense<0.000000e+00> : vector<8xf32>
    %541 = vector.multi_reduction <add>, %540, %cst_287 [1] : vector<8x2xf32> to vector<8xf32>
    %542 = vector.shape_cast %541 : vector<8xf32> to vector<8x1xf32>
    %543 = arith.negf %542 : vector<8x1xf32>
    %544 = math.exp %543 : vector<8x1xf32>
    %cst_288 = arith.constant 1.000000e+00 : f32
    %545 = vector.broadcast %cst_288 : f32 to vector<8x1xf32>
    %546 = arith.addf %545, %544 : vector<8x1xf32>
    %547 = arith.divf %545, %546 : vector<8x1xf32>
    %548 = vector.broadcast %547 : vector<8x1xf32> to vector<8x512xf32>
    %549 = arith.mulf %526, %548 : vector<8x512xf32>
    %cst_289 = arith.constant 0.000000e+00 : f32
    %550 = vector.broadcast %cst_289 : f32 to vector<8x512xf32>
    %551 = arith.cmpf oge, %549, %550 : vector<8x512xf32>
    %cst_290 = arith.constant 2.000000e-01 : f32
    %552 = vector.broadcast %cst_290 : f32 to vector<8x512xf32>
    %553 = arith.mulf %552, %549 : vector<8x512xf32>
    %554 = arith.select %551, %549, %553 : vector<8x512xi1>, vector<8x512xf32>
    %c21_i32_291 = arith.constant 21 : i32
    %555 = tpu.dynamic_rotate %554 by %c21_i32_291 dim 1 : vector<8x512xf32>, i32 -> vector<8x512xf32>
    %c20_i32_292 = arith.constant 20 : i32
    %556 = tpu.dynamic_rotate %554 by %c20_i32_292 dim 1 : vector<8x512xf32>, i32 -> vector<8x512xf32>
    %c19_i32_293 = arith.constant 19 : i32
    %557 = tpu.dynamic_rotate %554 by %c19_i32_293 dim 1 : vector<8x512xf32>, i32 -> vector<8x512xf32>
    %c1_i32_294 = arith.constant 1 : i32
    %558 = tpu.dynamic_rotate %554 by %c1_i32_294 dim 1 : vector<8x512xf32>, i32 -> vector<8x512xf32>
    %c511_i32_295 = arith.constant 511 : i32
    %559 = tpu.dynamic_rotate %554 by %c511_i32_295 dim 1 : vector<8x512xf32>, i32 -> vector<8x512xf32>
    %c493_i32_296 = arith.constant 493 : i32
    %560 = tpu.dynamic_rotate %554 by %c493_i32_296 dim 1 : vector<8x512xf32>, i32 -> vector<8x512xf32>
    %c492_i32_297 = arith.constant 492 : i32
    %561 = tpu.dynamic_rotate %554 by %c492_i32_297 dim 1 : vector<8x512xf32>, i32 -> vector<8x512xf32>
    %c491_i32_298 = arith.constant 491 : i32
    %562 = tpu.dynamic_rotate %554 by %c491_i32_298 dim 1 : vector<8x512xf32>, i32 -> vector<8x512xf32>
    %563 = tpu.concatenate %555, %556, %557, %558, %554, %559, %560, %561, %562 in 0 : vector<8x512xf32>, vector<8x512xf32>, vector<8x512xf32>, vector<8x512xf32>, vector<8x512xf32>, vector<8x512xf32>, vector<8x512xf32>, vector<8x512xf32>, vector<8x512xf32> -> vector<72x512xf32>
    %c0_299 = arith.constant 0 : index
    %c0_300 = arith.constant 0 : index
    %564 = vector.load %arg31[%c0_299, %c0_300] : memref<8x72xf32, #tpu.memory_space<vmem>>, vector<8x72xf32>
    %cst_301 = arith.constant dense<0.000000e+00> : vector<8x512xf32>
    %565 = tpu.matmul %564, %563, %cst_301 {dimension_numbers = #tpu.dot_dimension_numbers<[1], [0], [0], [1], [0, 0, 1, 1], [], []>} : vector<8x72xf32>, vector<72x512xf32>, vector<8x512xf32> -> vector<8x512xf32>
    %c0_302 = arith.constant 0 : index
    %c0_303 = arith.constant 0 : index
    %566 = vector.load %arg32[%c0_302, %c0_303] : memref<8x1xf32, #tpu.memory_space<vmem>>, vector<8x1xf32>
    %567 = vector.broadcast %566 : vector<8x1xf32> to vector<8x512xf32>
    %568 = arith.addf %565, %567 : vector<8x512xf32>
    %569 = vector.broadcast %0 : vector<1x512xf32> to vector<8x512xf32>
    %570 = arith.mulf %568, %569 : vector<8x512xf32>
    %571 = arith.subf %2, %570 : vector<8x512xf32>
    %c0_304 = arith.constant 0 : index
    %c1 = arith.constant 1 : index
    %c0_305 = arith.constant 0 : index
    %c0_306 = arith.constant 0 : index
    %572 = vector.load %arg33[%c0_304, %c1, %c0_305, %c0_306] : memref<1x2x8x512xf32, #tpu.memory_space<vmem>>, vector<1x1x8x512xf32>
    %573 = vector.shape_cast %572 : vector<1x1x8x512xf32> to vector<8x512xf32>
    %574 = vector.shape_cast %571 : vector<8x512xf32> to vector<1x1x8x512xf32>
    tpu.vector_store %arg33[%c0_304, %c1, %c0_305, %c0_306], %574 {strides = array<i32>} : memref<1x2x8x512xf32, #tpu.memory_space<vmem>>, vector<1x1x8x512xf32>,
    return
  }
  func.func @transform_0(%arg0: i32) -> (i32, i32, i32) {
    %c0_i32 = arith.constant 0 : i32
    %c0_i32_0 = arith.constant 0 : i32
    %c0_i32_1 = arith.constant 0 : i32
    return %arg0, %c0_i32, %c0_i32_0 : i32, i32, i32
  }
  func.func @transform_1(%arg0: i32) -> (i32, i32) {
    %c0_i32 = arith.constant 0 : i32
    %c0_i32_0 = arith.constant 0 : i32
    %c0_i32_1 = arith.constant 0 : i32
    return %c0_i32, %c0_i32_0 : i32, i32
  }
  func.func @transform_2(%arg0: i32) -> (i32, i32) {
    %c0_i32 = arith.constant 0 : i32
    %c0_i32_0 = arith.constant 0 : i32
    %c0_i32_1 = arith.constant 0 : i32
    return %c0_i32, %c0_i32_0 : i32, i32
  }
  func.func @transform_3(%arg0: i32) -> (i32, i32) {
    %c0_i32 = arith.constant 0 : i32
    %c0_i32_0 = arith.constant 0 : i32
    %c0_i32_1 = arith.constant 0 : i32
    return %c0_i32, %c0_i32_0 : i32, i32
  }
  func.func @transform_4(%arg0: i32) -> (i32, i32) {
    %c0_i32 = arith.constant 0 : i32
    %c0_i32_0 = arith.constant 0 : i32
    %c0_i32_1 = arith.constant 0 : i32
    return %c0_i32, %c0_i32_0 : i32, i32
  }
  func.func @transform_5(%arg0: i32) -> (i32, i32) {
    %c0_i32 = arith.constant 0 : i32
    %c0_i32_0 = arith.constant 0 : i32
    %c0_i32_1 = arith.constant 0 : i32
    return %c0_i32, %c0_i32_0 : i32, i32
  }
  func.func @transform_6(%arg0: i32) -> (i32, i32) {
    %c0_i32 = arith.constant 0 : i32
    %c0_i32_0 = arith.constant 0 : i32
    %c0_i32_1 = arith.constant 0 : i32
    return %c0_i32, %c0_i32_0 : i32, i32
  }
  func.func @transform_7(%arg0: i32) -> (i32, i32) {
    %c0_i32 = arith.constant 0 : i32
    %c0_i32_0 = arith.constant 0 : i32
    %c0_i32_1 = arith.constant 0 : i32
    return %c0_i32, %c0_i32_0 : i32, i32
  }
  func.func @transform_8(%arg0: i32) -> (i32, i32) {
    %c0_i32 = arith.constant 0 : i32
    %c0_i32_0 = arith.constant 0 : i32
    %c0_i32_1 = arith.constant 0 : i32
    return %c0_i32, %c0_i32_0 : i32, i32
  }
  func.func @transform_9(%arg0: i32) -> (i32, i32) {
    %c0_i32 = arith.constant 0 : i32
    %c0_i32_0 = arith.constant 0 : i32
    %c0_i32_1 = arith.constant 0 : i32
    return %c0_i32, %c0_i32_0 : i32, i32
  }
  func.func @transform_10(%arg0: i32) -> (i32, i32) {
    %c0_i32 = arith.constant 0 : i32
    %c0_i32_0 = arith.constant 0 : i32
    %c0_i32_1 = arith.constant 0 : i32
    return %c0_i32, %c0_i32_0 : i32, i32
  }
  func.func @transform_11(%arg0: i32) -> (i32, i32) {
    %c0_i32 = arith.constant 0 : i32
    %c0_i32_0 = arith.constant 0 : i32
    %c0_i32_1 = arith.constant 0 : i32
    return %c0_i32, %c0_i32_0 : i32, i32
  }
  func.func @transform_12(%arg0: i32) -> (i32, i32) {
    %c0_i32 = arith.constant 0 : i32
    %c0_i32_0 = arith.constant 0 : i32
    %c0_i32_1 = arith.constant 0 : i32
    return %c0_i32, %c0_i32_0 : i32, i32
  }
  func.func @transform_13(%arg0: i32) -> (i32, i32) {
    %c0_i32 = arith.constant 0 : i32
    %c0_i32_0 = arith.constant 0 : i32
    %c0_i32_1 = arith.constant 0 : i32
    return %c0_i32, %c0_i32_0 : i32, i32
  }
  func.func @transform_14(%arg0: i32) -> (i32, i32) {
    %c0_i32 = arith.constant 0 : i32
    %c0_i32_0 = arith.constant 0 : i32
    %c0_i32_1 = arith.constant 0 : i32
    return %c0_i32, %c0_i32_0 : i32, i32
  }
  func.func @transform_15(%arg0: i32) -> (i32, i32) {
    %c0_i32 = arith.constant 0 : i32
    %c0_i32_0 = arith.constant 0 : i32
    %c0_i32_1 = arith.constant 0 : i32
    return %c0_i32, %c0_i32_0 : i32, i32
  }
  func.func @transform_16(%arg0: i32) -> (i32, i32) {
    %c0_i32 = arith.constant 0 : i32
    %c0_i32_0 = arith.constant 0 : i32
    %c0_i32_1 = arith.constant 0 : i32
    return %c0_i32, %c0_i32_0 : i32, i32
  }
  func.func @transform_17(%arg0: i32) -> (i32, i32) {
    %c0_i32 = arith.constant 0 : i32
    %c0_i32_0 = arith.constant 0 : i32
    %c0_i32_1 = arith.constant 0 : i32
    return %c0_i32, %c0_i32_0 : i32, i32
  }
  func.func @transform_18(%arg0: i32) -> (i32, i32) {
    %c0_i32 = arith.constant 0 : i32
    %c0_i32_0 = arith.constant 0 : i32
    %c0_i32_1 = arith.constant 0 : i32
    return %c0_i32, %c0_i32_0 : i32, i32
  }
  func.func @transform_19(%arg0: i32) -> (i32, i32) {
    %c0_i32 = arith.constant 0 : i32
    %c0_i32_0 = arith.constant 0 : i32
    %c0_i32_1 = arith.constant 0 : i32
    return %c0_i32, %c0_i32_0 : i32, i32
  }
  func.func @transform_20(%arg0: i32) -> (i32, i32) {
    %c0_i32 = arith.constant 0 : i32
    %c0_i32_0 = arith.constant 0 : i32
    %c0_i32_1 = arith.constant 0 : i32
    return %c0_i32, %c0_i32_0 : i32, i32
  }
  func.func @transform_21(%arg0: i32) -> (i32, i32) {
    %c0_i32 = arith.constant 0 : i32
    %c0_i32_0 = arith.constant 0 : i32
    %c0_i32_1 = arith.constant 0 : i32
    return %c0_i32, %c0_i32_0 : i32, i32
  }
  func.func @transform_22(%arg0: i32) -> (i32, i32) {
    %c0_i32 = arith.constant 0 : i32
    %c0_i32_0 = arith.constant 0 : i32
    %c0_i32_1 = arith.constant 0 : i32
    return %c0_i32, %c0_i32_0 : i32, i32
  }
  func.func @transform_23(%arg0: i32) -> (i32, i32) {
    %c0_i32 = arith.constant 0 : i32
    %c0_i32_0 = arith.constant 0 : i32
    %c0_i32_1 = arith.constant 0 : i32
    return %c0_i32, %c0_i32_0 : i32, i32
  }
  func.func @transform_24(%arg0: i32) -> (i32, i32) {
    %c0_i32 = arith.constant 0 : i32
    %c0_i32_0 = arith.constant 0 : i32
    %c0_i32_1 = arith.constant 0 : i32
    return %c0_i32, %c0_i32_0 : i32, i32
  }
  func.func @transform_25(%arg0: i32) -> (i32, i32) {
    %c0_i32 = arith.constant 0 : i32
    %c0_i32_0 = arith.constant 0 : i32
    %c0_i32_1 = arith.constant 0 : i32
    return %c0_i32, %c0_i32_0 : i32, i32
  }
  func.func @transform_26(%arg0: i32) -> (i32, i32) {
    %c0_i32 = arith.constant 0 : i32
    %c0_i32_0 = arith.constant 0 : i32
    %c0_i32_1 = arith.constant 0 : i32
    return %c0_i32, %c0_i32_0 : i32, i32
  }
  func.func @transform_27(%arg0: i32) -> (i32, i32) {
    %c0_i32 = arith.constant 0 : i32
    %c0_i32_0 = arith.constant 0 : i32
    %c0_i32_1 = arith.constant 0 : i32
    return %c0_i32, %c0_i32_0 : i32, i32
  }
  func.func @transform_28(%arg0: i32) -> (i32, i32) {
    %c0_i32 = arith.constant 0 : i32
    %c0_i32_0 = arith.constant 0 : i32
    %c0_i32_1 = arith.constant 0 : i32
    return %c0_i32, %c0_i32_0 : i32, i32
  }
  func.func @transform_29(%arg0: i32) -> (i32, i32) {
    %c0_i32 = arith.constant 0 : i32
    %c0_i32_0 = arith.constant 0 : i32
    %c0_i32_1 = arith.constant 0 : i32
    return %c0_i32, %c0_i32_0 : i32, i32
  }
  func.func @transform_30(%arg0: i32) -> (i32, i32) {
    %c0_i32 = arith.constant 0 : i32
    %c0_i32_0 = arith.constant 0 : i32
    %c0_i32_1 = arith.constant 0 : i32
    return %c0_i32, %c0_i32_0 : i32, i32
  }
  func.func @transform_31(%arg0: i32) -> (i32, i32) {
    %c0_i32 = arith.constant 0 : i32
    %c0_i32_0 = arith.constant 0 : i32
    %c0_i32_1 = arith.constant 0 : i32
    return %c0_i32, %c0_i32_0 : i32, i32
  }
  func.func @transform_32(%arg0: i32) -> (i32, i32, i32, i32) {
    %c0_i32 = arith.constant 0 : i32
    %c0_i32_0 = arith.constant 0 : i32
    %c0_i32_1 = arith.constant 0 : i32
    %c0_i32_2 = arith.constant 0 : i32
    return %arg0, %c0_i32, %c0_i32_0, %c0_i32_1 : i32, i32, i32, i32
  }
}

</mosaic_0001>

<bundles_post_ra>
// kernel: rescan_forward.1
= control target key start
LH: loop header
LB: loop body
LE: loop exit
PB: predicated region body
PF: predicated region fallthrough
CT: control target
= control target key end

     0   :  { %s8137_s6 = smov 1   ;;  %s8138_s10 = smov 2   ;;  %s10550_s0 = inlined_call_operand.smem [shape: u32[33], index: -1, kind: input, shape index: {}] }
   0x1   :  { %s8195_s5 = sld [smem:[%s10550_s0]]   ;;  %s8139_s14 = smov 3  }
   0x2   :  { %s8200_s9 = sld [smem:[%s10550_s0 + %s8137_s6]]   ;;  %s8140_s18 = smov 4  }
   0x3   :  { %s8205_s13 = sld [smem:[%s10550_s0 + %s8138_s10]]   ;;  %s8141_s22 = smov 5  }
   0x4   :  { %s8210_s17 = sld [smem:[%s10550_s0 + %s8139_s14]]   ;;  %s8142_s26 = smov 6  }
   0x5   :  { %s8215_s21 = sld [smem:[%s10550_s0 + %s8140_s18]]   ;;  %s8143_s30 = smov 7  }
   0x6   :  { %s8220_s25 = sld [smem:[%s10550_s0 + %s8141_s22]]   ;;  %s8144_s4 = smov 8  }
   0x7   :  { %10625 = sst [smem:[#allocation2_spill]] %s8195_s5  ;;  %s8145_s10 = smov 9  }
   0x8   :  { %10626 = sst [smem:[#allocation3_spill]] %s8200_s9  ;;  %s8146_s15 = smov 10  }
   0x9   :  { %10627 = sst [smem:[#allocation4_spill]] %s8205_s13  ;;  %s8147_s20 = smov 11  }
   0xa   :  { %10628 = sst [smem:[#allocation5_spill]] %s8210_s17  ;;  %s8149_s1 = smov 13  }
   0xb   :  { %10629 = sst [smem:[#allocation6_spill]] %s8215_s21  ;;  %s8150_s7 = smov 14  }
   0xc   :  { %10630 = sst [smem:[#allocation7_spill]] %s8220_s25  ;;  %s8152_s22 = smov 16  }
   0xd   :  { %s8225_s29 = sld [smem:[%s10550_s0 + %s8142_s26]]   ;;  %s8148_s26 = smov 12  }
   0xe   :  { %s8230_s3 = sld [smem:[%s10550_s0 + %s8143_s30]]   ;;  %s8153_s28 = smov 17  }
   0xf   :  { %s8235_s8 = sld [smem:[%s10550_s0 + %s8144_s4]]  }
  0x10   :  { %s8240_s14 = sld [smem:[%s10550_s0 + %s8145_s10]]  }
  0x11   :  { %s8245_s19 = sld [smem:[%s10550_s0 + %s8146_s15]]   ;;  %s8151_s15 = smov 15  }
  0x12   :  { %s8250_s24 = sld [smem:[%s10550_s0 + %s8147_s20]]  }
  0x13   :  { %10631 = sst [smem:[#allocation8_spill]] %s8225_s29 }
  0x14   :  { %10632 = sst [smem:[#allocation9_spill]] %s8230_s3 }
  0x15   :  { %10633 = sst [smem:[#allocation10_spill]] %s8235_s8 }
  0x16   :  { %10634 = sst [smem:[#allocation11_spill]] %s8240_s14 }
  0x17   :  { %10635 = sst [smem:[#allocation12_spill]] %s8245_s19 }
  0x18   :  { %10636 = sst [smem:[#allocation13_spill]] %s8250_s24 }
  0x19   :  { %s8255_s30 = sld [smem:[%s10550_s0 + %s8148_s26]]  }
  0x1a   :  { %s8260_s6 = sld [smem:[%s10550_s0 + %s8149_s1]]  }
  0x1b   :  { %s8265_s12 = sld [smem:[%s10550_s0 + %s8150_s7]]   ;;  %s8154_s7 = smov 18  }
  0x1c   :  { %s8270_s20 = sld [smem:[%s10550_s0 + %s8151_s15]]   ;;  %s8155_s15 = smov 19  }
  0x1d   :  { %s8275_s27 = sld [smem:[%s10550_s0 + %s8152_s22]]   ;;  %s8156_s22 = smov 20  }
  0x1e   :  { %s8280_s4 = sld [smem:[%s10550_s0 + %s8153_s28]]   ;;  %s8157_s28 = smov 21  }
  0x1f   :  { %10637 = sst [smem:[#allocation14_spill]] %s8255_s30 }
  0x20   :  { %10638 = sst [smem:[#allocation15_spill]] %s8260_s6 }
  0x21   :  { %10639 = sst [smem:[#allocation16_spill]] %s8265_s12 }
  0x22   :  { %10640 = sst [smem:[#allocation17_spill]] %s8270_s20 }
  0x23   :  { %s8285_s12 = sld [smem:[%s10550_s0 + %s8154_s7]]   ;;  %s8158_s7 = smov 22  }
  0x24   :  { %10641 = sst [smem:[#allocation18_spill]] %s8280_s4 }
  0x25   :  { %s8290_s20 = sld [smem:[%s10550_s0 + %s8155_s15]]   ;;  %s8159_s15 = smov 23  }
  0x26   :  { %s8295_s30 = sld [smem:[%s10550_s0 + %s8156_s22]]   ;;  %s8160_s22 = smov 24  }
  0x27   :  { %s8300_s6 = sld [smem:[%s10550_s0 + %s8157_s28]]   ;;  %s8161_s28 = smov 25  }
  0x28   :  { %s8305_s29 = sld [smem:[%s10550_s0 + %s8158_s7]]   ;;  %s8162_s7 = smov 26  }
  0x29   :  { %10642 = sst [smem:[#allocation19_spill]] %s8285_s12 }
  0x2a   :  { %s8310_s3 = sld [smem:[%s10550_s0 + %s8159_s15]]   ;;  %s8163_s15 = smov 27  }
  0x2c   :  { %10643 = sst [smem:[#allocation20_spill]] %s8295_s30 }
  0x2d   :  { %10644 = sst [smem:[#allocation21_spill]] %s8300_s6 }
  0x2e   :  { %10645 = sst [smem:[#allocation22_spill]] %s8305_s29 }
  0x2f   :  { %s8315_s30 = sld [smem:[%s10550_s0 + %s8160_s22]]   ;;  %s8164_s22 = smov 28  }
  0x30   :  { %10646 = sst [smem:[#allocation23_spill]] %s8310_s3 }
  0x31   :  { %s8320_s6 = sld [smem:[%s10550_s0 + %s8161_s28]]   ;;  %s8165_s28 = smov 29  }
  0x32   :  { %s8325_s29 = sld [smem:[%s10550_s0 + %s8162_s7]]   ;;  %s8166_s7 = smov 30  }
  0x33   :  { %s8330_s3 = sld [smem:[%s10550_s0 + %s8163_s15]]   ;;  %s8167_s15 = smov 31  }
  0x34   :  { %s8335_s21 = sld [smem:[%s10550_s0 + %s8164_s22]]   ;;  %s8168_s22 = smov 32  }
  0x35   :  { %s8340_s25 = sld [smem:[%s10550_s0 + %s8165_s28]]   ;;  %s8357_s28 = smov 0  }
  0x38   :  { %10647 = sst [smem:[#allocation24_spill]] %s8325_s29 }
  0x39   :  { %10648 = sst [smem:[#allocation25_spill]] %s8330_s3 }
  0x3a   :  { %10649 = sst [smem:[#allocation26_spill]] %s8335_s21 }
  0x3b   :  { %s8345_s29 = sld [smem:[%s10550_s0 + %s8166_s7]]  }
  0x3c   :  { %s8350_s3 = sld [smem:[%s10550_s0 + %s8167_s15]]  }
  0x3d   :  { %s8355_s21 = sld [smem:[%s10550_s0 + %s8168_s22]]  }
  0x43   :  { %10650 = sst [smem:[#allocation27_spill]] %s8355_s21 }
  0x44 LB: > { %s10651_s12 = sld [smem:[#allocation19_spill]]  ;;  %s10652_s24 = sld [smem:[#allocation13_spill]]  ;;  %s8135_s28 = sphi %s8357_s28, %s75_s28  }
  0x45   : > { %s10653_s19 = sld [smem:[#allocation12_spill]]  ;;  %s10654_s17 = sld [smem:[#allocation5_spill]] }
  0x46   : > { %s10655_s4 = sld [smem:[#allocation18_spill]]  ;;  %s10656_s14 = sld [smem:[#allocation11_spill]] }
  0x47   : > { %s10657_s8 = sld [smem:[#allocation10_spill]]  ;;  %s10658_s13 = sld [smem:[#allocation4_spill]] }
  0x48   : > { %s6044_s1 = sadd.s32 4294967295, %s8135_s28   ;;  %p6048_p0 = scmp.ge.s32.totalorder %s8135_s28, 1 }
  0x49   : > { %p895_p1 = scmp.lt.s32.totalorder %s8135_s28, 3 }
  0x4b   : > { %p896_p2 = pnand %p6048_p0, %p895_p1 }
  0x4d   : > { %899 = sbr.rel (%p896_p2) target bundleno = 7912 (0x1ee8), region = 148 }
  0x54   : > { %p977_p3 = scmp.lt.s32.totalorder %s6044_s1, 1  ;;  %s10659_s5 = sld [smem:[#allocation2_spill]]  ;;  %v10584_v8 = vmov 0.0   ;;  %v8178_v9 = vmov 0   ;;  %v1103_v10 = vld [vmem:[%s10654_s17 + $0x10] sm:$0xff]  ;;  %v1101_v11 = vld [vmem:[%s10654_s17] sm:$0xff]  ;;  %v1000_v12 = vlaneseq }
  0x55   : > { %s10594_s7 = smov 21   ;;  %s10610_s10 = smov 20   ;;  %1192 = vmatprep.mubr.f32.mxu0 %v10584_v8  ;;  %1273 = vmatprep.mubr.f32.mxu1 %v10584_v8  ;;  %vm1118_vm8 = vcmask 588800   ;;  %vm1355_vm9 = vcmask 15360  }
  0x56   : > { %s10793_s1 = smov (!%p977_p3, %s6044_s1), 1  ;;  %s10606_s11 = smov 1   ;;  %6915 = vset.pattern.permute.xlu0 %v8178_v9  ;;  %6916 = vset.pattern.permute.xlu1 %v8178_v9  ;;  %v8418_v13 = vand.u32 127, %v1000_v12 }
  0x57   : > { %s6165_s0 = sshll.u32 %s10793_s1, 5  ;;  %s10604_s15 = smov 19  }
  0x58   : > { %s10602_s16 = smov 127   ;;  %s10562_s18 = smov 108   ;;  %vm1002_vm0 = vcmp.lt.s32.totalorder %v8418_v13, 21  ;;  %vm1015_vm1 = vcmp.lt.s32.totalorder %v8418_v13, 20  ;;  %vm1028_vm2 = vcmp.lt.s32.totalorder %v8418_v13, 19  ;;  %vm1041_vm3 = vcmp.lt.s32.totalorder %v8418_v13, 1 }
  0x59   : > { %s10588_s22 = smov 109   ;;  %s10560_s23 = smov 107   ;;  %vm1054_vm4 = vcmp.lt.s32.totalorder %v8418_v13, 127  ;;  %vm1067_vm5 = vcmp.lt.s32.totalorder %v8418_v13, 109  ;;  %vm10622_vm6 = vcmp.lt.s32.totalorder %v8418_v13, 108  ;;  %vm10621_vm7 = vcmp.lt.s32.totalorder %v8418_v13, 107 }
  0x5a   : > { %s8369_s2 = scalar_lea.vmem %s10659_s5, %s6165_s0  ;;  %s10660_s9 = sld [smem:[#allocation3_spill]] }
  0x5b   : > { %v8372_v0 = vld [vmem:[%s8369_s2 + $0x10] sm:$0xff]  ;;  %v8375_v1 = vld [vmem:[%s8369_s2 + $0x18] sm:$0xff]  ;;  %v8378_v2 = vld [vmem:[%s8369_s2] sm:$0xff]  ;;  %s10564_s26 = smov 40   ;;  %s10570_s0 = smov 42  }
  0x5c   : > { %v6855_v3 = vpack.i.bf16 %v8372_v0, %v8375_v1  ;;  %v8383_v4 = vld [vmem:[%s8369_s2 + $0x8] sm:$0xff]  ;;  %v6890_v6 = vpack.i.bf16 %v8375_v1, %v8378_v2  ;;  %s10673_s21 = sld [smem:[#allocation27_spill]]  ;;  %s10676_s5 = sld [smem:[#allocation7_spill]] }
  0x5d   : > { %v6845_v5 = vpack.i.bf16 %v8383_v4, %v8378_v2  ;;  %v6885_v7 = vpack.i.bf16 %v8372_v0, %v8383_v4 }
  0x5e   : > { %6856 = vrot.lane.b32.xlu1 %v6855_v3, %s10594_s7 }
  0x5f   : > { %6846 = vrot.lane.b32.xlu0 %v6845_v5, %s10594_s7 }
  0x62   : > { %6861 = vrot.lane.b32.xlu1 %v6855_v3, %s10610_s10 }
  0x63   : > { %6851 = vrot.lane.b32.xlu0 %v6845_v5, %s10610_s10 }
  0x66   : > { %6871 = vrot.lane.b32.xlu1 %v6845_v5, %s10606_s11 }
  0x67   : > { %6866 = vrot.lane.b32.xlu0 %v6845_v5, %s10604_s15 }
  0x6a   : > { %6881 = vrot.lane.b32.xlu1 %v6855_v3, %s10606_s11 }
  0x6b   : > { %6876 = vrot.lane.b32.xlu0 %v6855_v3, %s10604_s15 }
  0x6e   : > { %6891 = vrot.lane.b32.xlu1 %v6890_v6, %s10602_s16 }
  0x6f   : > { %6886 = vrot.lane.b32.xlu0 %v6885_v7, %s10602_s16 }
  0x72   : > { %6901 = vrot.lane.b32.xlu1 %v6885_v7, %s10562_s18 }
  0x73   : > { %6896 = vrot.lane.b32.xlu0 %v6885_v7, %s10588_s22 }
  0x76   : > { %6911 = vrot.lane.b32.xlu1 %v6890_v6, %s10562_s18 }
  0x77   : > { %6906 = vrot.lane.b32.xlu0 %v6890_v6, %s10588_s22 }
  0x7a   : > { %1089 = vrot.lane.b32.xlu1 %v8372_v0, %s10560_s23 }
  0x7b   : > { %1087 = vrot.lane.b32.xlu0 %v8383_v4, %s10560_s23 }
  0x7e   : > { %1091 = vrot.lane.b32.xlu1 %v8375_v1, %s10560_s23 }
  0x7f   : > { %1085 = vrot.lane.b32.xlu0 %v8378_v2, %s10560_s23 }
  0x82   : > { %1115 = vperm.xlu1 %6916, %v1103_v10  }
  0x83   : > { %1106 = vperm.xlu0 %6915, %v1101_v11  }
  0xd0   : > { %v6857_v14 = vpop.permute.xlu1 %6856 }
  0xd1   : > { %v6847_v15 = vpop.permute.xlu0 %6846  ;;  %v6859_v16 = vunpack.i.h.bf16 %v6857_v14  ;;  %v6858_v17 = vunpack.i.l.bf16 %v6857_v14 }
  0xd2   : > { %v6849_v18 = vunpack.i.h.bf16 %v6847_v15  ;;  %v6848_v19 = vunpack.i.l.bf16 %v6847_v15 }
  0xd3   : > { %v1003_v26 = vsel %vm1002_vm0, %v6859_v16, %v6858_v17 }
  0xd4   : > { %v6862_v20 = vpop.permute.xlu1 %6861  ;;  %v1005_v27 = vsel %vm1002_vm0, %v6848_v19, %v6849_v18  ;;  %v1006_v29 = vsel %vm1002_vm0, %v6858_v17, %v6848_v19  ;;  %v1004_v30 = vsel %vm1002_vm0, %v6849_v18, %v6859_v16 }
  0xd5   : > { %v6864_v21 = vunpack.i.h.bf16 %v6862_v20  ;;  %v6863_v22 = vunpack.i.l.bf16 %v6862_v20  ;;  %v6852_v23 = vpop.permute.xlu0 %6851 }
  0xd6   : > { %v6854_v24 = vunpack.i.h.bf16 %v6852_v23  ;;  %v6853_v25 = vunpack.i.l.bf16 %v6852_v23 }
  0xd7   : > { %v1016_v28 = vsel %vm1015_vm1, %v6864_v21, %v6863_v22 }
  0xd8   : > { %v6872_v31 = vpop.permute.xlu1 %6871  ;;  %v1018_v32 = vsel %vm1015_vm1, %v6853_v25, %v6854_v24  ;;  %v6183_v33 = vpack.c.bf16 %v1016_v28, %v1003_v26  ;;  %v1019_v34 = vsel %vm1015_vm1, %v6863_v22, %v6853_v25  ;;  %v1017_v35 = vsel %vm1015_vm1, %v6854_v24, %v6864_v21 }
  0xd9   : > { %v6874_v36 = vunpack.i.h.bf16 %v6872_v31  ;;  %v6873_v37 = vunpack.i.l.bf16 %v6872_v31  ;;  %v6867_v38 = vpop.permute.xlu0 %6866  ;;  %v6167_v39 = vpack.c.bf16 %v1018_v32, %v1005_v27  ;;  %v6169_v40 = vpack.c.bf16 %v1019_v34, %v1006_v29 }
  0xda   : > { %v6869_v41 = vunpack.i.h.bf16 %v6867_v38  ;;  %v6868_v42 = vunpack.i.l.bf16 %v6867_v38  ;;  %6184 = vmatprep.subr.bf16.mxu1 %v6183_v33  ;;  %v6185_v43 = vpack.c.bf16 %v1017_v35, %v1004_v30 }
  0xdb   : > { %6168 = vmatprep.subr.bf16.mxu0 %v6167_v39  ;;  %v1044_v44 = vsel %vm1041_vm3, %v6873_v37, %v6874_v36 }
  0xdc   : > { %6170 = vmatpush1.bf16.msra.mxu0 %v6169_v40  ;;  %6186 = vmatpush1.bf16.msra.mxu1 %v6185_v43  ;;  %v6882_v45 = vpop.permute.xlu1 %6881  ;;  %v1031_v46 = vsel %vm1028_vm2, %v6868_v42, %v6869_v41 }
  0xdd   : > { %v6884_v47 = vunpack.i.h.bf16 %v6882_v45  ;;  %v6883_v48 = vunpack.i.l.bf16 %v6882_v45  ;;  %v6877_v49 = vpop.permute.xlu0 %6876  ;;  %v6171_v50 = vpack.c.bf16 %v1044_v44, %v1031_v46  ;;  %v1098_v44 = vld [vmem:[%s10658_s13] sm:$0xff] }
  0xde   : > { %v6879_v51 = vunpack.i.h.bf16 %v6877_v49  ;;  %v6878_v52 = vunpack.i.l.bf16 %v6877_v49  ;;  %v1100_v49 = vld [vmem:[%s10658_s13 + $0x10] sm:$0xff] }
  0xdf   : > { %6172 = vmatprep.subr.bf16.mxu0 %v6171_v50  ;;  %v1045_v53 = vsel %vm1041_vm3, %v6883_v48, %v6873_v37  ;;  %v1042_v54 = vsel %vm1041_vm3, %v6884_v47, %v6883_v48  ;;  %v1043_v55 = vsel %vm1041_vm3, %v6874_v36, %v6884_v47  ;;  %v1099_v48 = vld [vmem:[%s10658_s13 + $0x8] sm:$0xff] }
  0xe0   : > { %v6892_v56 = vpop.permute.xlu1 %6891  ;;  %v1032_v57 = vsel %vm1028_vm2, %v6878_v52, %v6868_v42  ;;  %v1029_v58 = vsel %vm1028_vm2, %v6879_v51, %v6878_v52  ;;  %v1030_v59 = vsel %vm1028_vm2, %v6869_v41, %v6879_v51 }
  0xe1   : > { %v6894_v60 = vunpack.i.h.bf16 %v6892_v56  ;;  %v6893_v61 = vunpack.i.l.bf16 %v6892_v56  ;;  %v6887_v62 = vpop.permute.xlu0 %6886  ;;  %v6173_v63 = vpack.c.bf16 %v1045_v53, %v1032_v57  ;;  %v6187_v3 = vpack.c.bf16 %v1042_v54, %v1029_v58 }
  0xe2   : > { %v6889_v5 = vunpack.i.h.bf16 %v6887_v62  ;;  %v6888_v6 = vunpack.i.l.bf16 %v6887_v62  ;;  %v6189_v7 = vpack.c.bf16 %v1043_v55, %v1030_v59 }
  0xe3   : > { %6174 = vmatpush1.bf16.msra.mxu0 %v6173_v63  ;;  %6188 = vmatprep.subr.bf16.mxu1 %v6187_v3  ;;  %v1058_v9 = vsel %vm1054_vm4, %v6894_v60, %v6893_v61 }
  0xe4   : > { %6190 = vmatpush1.bf16.msra.mxu1 %v6189_v7  ;;  %v6902_v10 = vpop.permute.xlu1 %6901  ;;  %v1056_v11 = vsel %vm1054_vm4, %v6888_v6, %v6889_v5  ;;  %v6191_v14 = vpack.c.bf16 %v1058_v9, %v8375_v1  ;;  %v1057_v15 = vsel %vm1054_vm4, %v6893_v61, %v6888_v6  ;;  %v1055_v16 = vsel %vm1054_vm4, %v6889_v5, %v6894_v60 }
  0xe5   : > { %v6904_v17 = vunpack.i.h.bf16 %v6902_v10  ;;  %v6903_v18 = vunpack.i.l.bf16 %v6902_v10  ;;  %v6897_v19 = vpop.permute.xlu0 %6896  ;;  %v6175_v20 = vpack.c.bf16 %v1056_v11, %v8383_v4  ;;  %v6177_v21 = vpack.c.bf16 %v1057_v15, %v8378_v2 }
  0xe6   : > { %v6899_v22 = vunpack.i.h.bf16 %v6897_v19  ;;  %v6898_v23 = vunpack.i.l.bf16 %v6897_v19  ;;  %6192 = vmatprep.subr.bf16.mxu1 %v6191_v14  ;;  %v6193_v24 = vpack.c.bf16 %v1055_v16, %v8372_v0 }
  0xe7   : > { %6176 = vmatprep.subr.bf16.mxu0 %v6175_v20  ;;  %v1082_v1 = vsel %vm10622_vm6, %v6903_v18, %v6904_v17 }
  0xe8   : > { %6178 = vmatpush1.bf16.msra.mxu0 %v6177_v21  ;;  %6194 = vmatpush1.bf16.msra.mxu1 %v6193_v24  ;;  %v6912_v25 = vpop.permute.xlu1 %6911  ;;  %v1069_v26 = vsel %vm1067_vm5, %v6898_v23, %v6899_v22 }
  0xe9   : > { %v6914_v27 = vunpack.i.h.bf16 %v6912_v25  ;;  %v6913_v28 = vunpack.i.l.bf16 %v6912_v25  ;;  %v6907_v4 = vpop.permute.xlu0 %6906  ;;  %v6179_v29 = vpack.c.bf16 %v1082_v1, %v1069_v26  ;;  %v1324_v26 = vshrl.u32 %v1000_v12, 7 }
  0xea   : > { %v6909_v2 = vunpack.i.h.bf16 %v6907_v4  ;;  %v6908_v30 = vunpack.i.l.bf16 %v6907_v4  ;;  %v987_v4 = vld [vmem:[%s10660_s9] sm:$0xf]  ;;  %s10677_s9 = smov 127  }
  0xeb   : > { %6180 = vmatprep.subr.bf16.mxu0 %v6179_v29  ;;  %v1083_v0 = vsel %vm10622_vm6, %v6913_v28, %v6903_v18  ;;  %v1084_v31 = vsel %vm10622_vm6, %v6914_v27, %v6913_v28  ;;  %v1081_v32 = vsel %vm10622_vm6, %v6904_v17, %v6914_v27  ;;  %v1325_v27 = vsub.s32 0, %v1324_v26 }
  0xec   : > { %v1090_v33 = vpop.permute.xlu1 %1089  ;;  %v1070_v34 = vsel %vm1067_vm5, %v6908_v30, %v6898_v23  ;;  %v1071_v35 = vsel %vm1067_vm5, %v6909_v2, %v6908_v30  ;;  %v1068_v36 = vsel %vm1067_vm5, %v6899_v22, %v6909_v2  ;;  %v1329_v29 = vsub.s32 1, %v1324_v26 }
  0xed   : > { %v1088_v37 = vpop.permute.xlu0 %1087  ;;  %v6181_v38 = vpack.c.bf16 %v1083_v0, %v1070_v34  ;;  %v6195_v39 = vpack.c.bf16 %v1084_v31, %v1071_v35  ;;  %v6197_v40 = vpack.c.bf16 %v1081_v32, %v1068_v36  ;;  %v1333_v0 = vsub.s32 2, %v1324_v26 }
  0xee   : > { %v1095_v41 = vsel %vm10621_vm7, %v1088_v37, %v1090_v33  ;;  %v8513_v32 = vrot.slane %v987_v4, %v1325_v27  ;;  %v8515_v34 = vrot.slane %v987_v4, %v1329_v29  ;;  %v1337_v35 = vsub.s32 3, %v1324_v26  ;;  %v1492_v29 = vld [vmem:[%s10652_s24 + $0x10] sm:$0xff] }
  0xef   : > { %6182 = vmatpush1.bf16.msra.mxu0 %v6181_v38  ;;  %6196 = vmatprep.subr.bf16.mxu1 %v6195_v39  ;;  %v8517_v39 = vrot.slane %v987_v4, %v1333_v0 }
  0xf0   : > { %1144 = vmatprep.subr.mxu0 %v1095_v41  ;;  %6198 = vmatpush1.bf16.msra.mxu1 %v6197_v40  ;;  %v1092_v42 = vpop.permute.xlu1 %1091 }
  0xf1   : > { %v1086_v43 = vpop.permute.xlu0 %1085  ;;  %v1094_v45 = vsel %vm10621_vm7, %v1090_v33, %v1092_v42 }
  0xf2   : > { %v1096_v46 = vsel %vm10621_vm7, %v1086_v43, %v1088_v37  ;;  %v1097_v47 = vsel %vm10621_vm7, %v1092_v42, %v1086_v43 }
  0xf3   : > { %1145 = vmatpush1.msra.mxu0 %v1096_v46  ;;  %1225 = vmatprep.subr.mxu1 %v1097_v47 }
  0xf4   : > { %6053 = vmatmul.mubr.msk.f32.vlgmr.msra.gmra.mrb[0].mxu0 %vm1118_vm8, %v1098_v44  ;;  %1226 = vmatpush1.msra.mxu1 %v1094_v45 }
  0xf5   : > { %6056 = vmatmul.mubr.msk.f32.vlgmr.msra.gmra.mrb[0].mxu1 %vm1118_vm8, %v1098_v44  ;;  %1198 = vmatprep.mubr.f32.mxu0 %v10584_v8  ;;  %v8520_v44 = vrot.slane %v987_v4, %v1337_v35  ;;  %v1490_v4 = vld [vmem:[%s10652_s24] sm:$0xff] }
  0xf6   : > { %1279 = vmatprep.mubr.f32.mxu1 %v10584_v8 }
  0xf8   : > { %6054 = vmatmul.mubr.msk.f32.gmra.mrb[2].mxu0 %vm1118_vm8, %v1099_v48 }
  0xf9   : > { %6057 = vmatmul.mubr.msk.f32.gmra.mrb[2].mxu1 %vm1118_vm8, %v1099_v48  ;;  %1202 = vmatprep.mubr.f32.mxu0 %v10584_v8 }
  0xfa   : > { %1283 = vmatprep.mubr.f32.mxu1 %v10584_v8 }
  0xfc   : > { %6055 = vmatmul.mubr.msk.f32.gmra.mrb[4].mxu0 %vm1118_vm8, %v1100_v49 }
  0xfd   : > { %6058 = vmatmul.mubr.msk.f32.gmra.mrb[4].mxu1 %vm1118_vm8, %v1100_v49  ;;  %1580 = vmatprep.mubr.f32.mxu0 %v10584_v8 }
  0xfe   : > { %1661 = vmatprep.mubr.f32.mxu1 %v10584_v8 }
 0x101   : > { %v1116_v7 = vpop.permute.xlu1 %1115 }
 0x102   : > { %v1107_v50 = vpop.permute.xlu0 %1106 }
 0x1c7   : > { %v1194_v51 = vpop.f32.mrb[0].mxu0 }
 0x1c8   : > { %v1195_v52 = vadd.f32 %v1194_v51, %v1107_v50  ;;  %v1196_v53 = vpop.f32.mrb[1].mxu0  ;;  %v1275_v54 = vpop.f32.mrb[0].mxu1  ;;  %v1353_v51 = vld [vmem:[%s10657_s8] sm:$0xff] }
 0x1c9   : > { %v1197_v55 = vadd.f32 %v1196_v53, %v1107_v50  ;;  %v1276_v56 = vadd.f32 %v1275_v54, %v1107_v50  ;;  %v1277_v57 = vpop.f32.mrb[1].mxu1 }
 0x1ca   : > { %v6059_v58 = vmul.f32 -1.442695, %v1195_v52  ;;  %v1278_v59 = vadd.f32 %v1277_v57, %v1107_v50 }
 0x1cb   : > { %v6060_v60 = vmul.f32 -1.442695, %v1197_v55  ;;  %v6061_v61 = vmul.f32 -1.442695, %v1276_v56  ;;  %v1200_v62 = vpop.f32.mrb[2].mxu0 }
 0x1cc   : > { %7897 = vpow2.f32 %v6059_v58  ;;  %v6062_v63 = vmul.f32 -1.442695, %v1278_v59  ;;  %v1201_v3 = vpop.f32.mrb[3].mxu0  ;;  %v1281_v5 = vpop.f32.mrb[2].mxu1  ;;  %v1364_v62 = vld [vmem:[%s10656_s14] sm:$0xff] }
 0x1cd   : > { %7899 = vpow2.f32 %v6060_v60  ;;  %v1282_v6 = vpop.f32.mrb[3].mxu1 }
 0x1ce   : > { %7901 = vpow2.f32 %v6061_v61 }
 0x1cf   : > { %7903 = vpow2.f32 %v6062_v63  ;;  %v1204_v9 = vpop.f32.mrb[4].mxu0 }
 0x1d0   : > { %v1206_v10 = vpop.f32.mrb[5].mxu0  ;;  %v1285_v11 = vpop.f32.mrb[4].mxu1  ;;  %v1205_v14 = vadd.f32 %v1204_v9, %v1116_v7 }
 0x1d1   : > { %v1287_v15 = vpop.f32.mrb[5].mxu1  ;;  %v1207_v16 = vadd.f32 %v1206_v10, %v1116_v7  ;;  %v1286_v17 = vadd.f32 %v1285_v11, %v1116_v7 }
 0x1d2   : > { %v1288_v18 = vadd.f32 %v1287_v15, %v1116_v7  ;;  %7905 = vtanh.f32 %v1205_v14 }
 0x1d3   : > { %7907 = vtanh.f32 %v1207_v16 }
 0x1d4   : > { %7909 = vtanh.f32 %v1286_v17 }
 0x1d5   : > { %7911 = vtanh.f32 %v1288_v18 }
 0x1d6   : > { %v7898_v19 = vpop.eup %7897 }
 0x1d7   : > { %v7900_v20 = vpop.eup %7899  ;;  %v1302_v21 = vadd.f32 1.0, %v7898_v19 }
 0x1d8   : > { %v7902_v22 = vpop.eup %7901  ;;  %v1303_v23 = vadd.f32 1.0, %v7900_v20 }
 0x1d9   : > { %v7904_v24 = vpop.eup %7903  ;;  %7913 = vrcp.f32 %v1302_v21  ;;  %v1304_v1 = vadd.f32 1.0, %v7902_v22 }
 0x1da   : > { %7915 = vrcp.f32 %v1303_v23  ;;  %v1305_v25 = vadd.f32 1.0, %v7904_v24 }
 0x1db   : > { %7917 = vrcp.f32 %v1304_v1 }
 0x1dc   : > { %7919 = vrcp.f32 %v1305_v25  ;;  %v7906_v28 = vpop.eup %7905 }
 0x1dd   : > { %v7908_v2 = vpop.eup %7907 }
 0x1de   : > { %v7910_v30 = vpop.eup %7909 }
 0x1df   : > { %v7912_v31 = vpop.eup %7911 }
 0x1e3   : > { %v7914_v33 = vpop.eup %7913 }
 0x1e4   : > { %v7916_v36 = vpop.eup %7915  ;;  %v1318_v37 = vmul.f32 %v7914_v33, %v7906_v28 }
 0x1e5   : > { %v7918_v12 = vpop.eup %7917  ;;  %v1319_v38 = vmul.f32 %v7916_v36, %v7908_v2 }
 0x1e6   : > { %v7920_v40 = vpop.eup %7919  ;;  %v1320_v41 = vmul.f32 %v7918_v12, %v7910_v30  ;;  %v1343_v42 = vmul.f32 %v8513_v32, %v1318_v37 }
 0x1e7   : > { %v1321_v43 = vmul.f32 %v7920_v40, %v7912_v31  ;;  %v1344_v45 = vmul.f32 %v8515_v34, %v1319_v38 }
 0x1e8   : > { %v1345_v46 = vmul.f32 %v8517_v39, %v1320_v41 }
 0x1e9   : > { %v1347_v47 = vadd.f32 %v1344_v45, %v1343_v42  ;;  %v1346_v48 = vmul.f32 %v8520_v44, %v1321_v43 }
 0x1eb   : > { %v1348_v49 = vadd.f32 %v1347_v47, %v1345_v46 }
 0x1ed   : > { %v1349_v50 = vadd.f32 %v1348_v49, %v1346_v48 }
 0x1ef   : > { %1350 = vadd.xlane.f32.xlu1 %v1349_v50 }
 0x27c   : > { %v1351_v52 = vpop.xlane.xlu1 %1350 }
 0x27d   : > { %v1352_v53 = vmul.f32 0.00390625, %v1351_v52 }
 0x27f   : > { %v1354_v54 = vmul.f32 %v1353_v51, %v1352_v53 }
 0x281   : > { %v1356_v55 = vsel %vm1355_vm9, %v1354_v54, 0.0 }
 0x282   : > { %v1357_v56 = vrot.slane %v1356_v55, 4 }
 0x284   : > { %v1358_v57 = vadd.f32 %v1357_v56, %v1356_v55 }
 0x286   : > { %v1359_v58 = vrot.slane %v1358_v57, 2 }
 0x288   : > { %v1360_v59 = vadd.f32 %v1359_v58, %v1358_v57 }
 0x28a   : > { %v1361_v60 = vrot.slane %v1360_v59, 1 }
 0x28c   : > { %v1362_v61 = vadd.f32 %v1361_v60, %v1360_v59 }
 0x28e   : > { %v1363_v63 = vmax.f32 %v1362_v61, 0.0 }
 0x290   : > { %v1365_v3 = vmul.f32 %v1364_v62, %v1363_v63 }
 0x292   : > { %v1366_v5 = vsel %vm1355_vm9, %v1365_v3, 0.0 }
 0x293   : > { %1367 = vadd.xlane.f32.xlu0 %v1366_v5 }
 0x320   : > { %v1368_v6 = vpop.xlane.xlu0 %1367 }
 0x321   : > { %v6063_v7 = vmul.f32 -1.442695, %v1368_v6 }
 0x323   : > { %7921 = vpow2.f32 %v6063_v7 }
 0x32d   : > { %v7922_v9 = vpop.eup %7921 }
 0x32e   : > { %v1372_v10 = vadd.f32 1.0, %v7922_v9 }
 0x330   : > { %7923 = vrcp.f32 %v1372_v10 }
 0x33a   : > { %v7924_v11 = vpop.eup %7923 }
 0x33b   : > { %v1375_v14 = vmul.f32 %v7924_v11, %v1343_v42  ;;  %v1376_v15 = vmul.f32 %v7924_v11, %v1344_v45  ;;  %v1377_v16 = vmul.f32 %v7924_v11, %v1345_v46  ;;  %v1378_v17 = vmul.f32 %v7924_v11, %v1346_v48 }
 0x33d   : > { %vm1379_vm10 = vcmp.ge.f32.partialorder %v1375_v14, 0.0  ;;  %vm1380_vm11 = vcmp.ge.f32.partialorder %v1376_v15, 0.0  ;;  %v1383_v18 = vmul.f32 0.2, %v1375_v14  ;;  %v1384_v19 = vmul.f32 0.2, %v1376_v15 }
 0x33e   : > { %vm1381_vm12 = vcmp.ge.f32.partialorder %v1377_v16, 0.0  ;;  %vm1382_vm13 = vcmp.ge.f32.partialorder %v1378_v17, 0.0  ;;  %v1385_v20 = vmul.f32 0.2, %v1377_v16  ;;  %v1386_v21 = vmul.f32 0.2, %v1378_v17 }
 0x33f   : > { %v8529_v22 = vsel %vm1379_vm10, %v1375_v14, %v1383_v18  ;;  %v8531_v23 = vsel %vm1380_vm11, %v1376_v15, %v1384_v19 }
 0x340   : > { %v6922_v24 = vpack.i.bf16 %v8531_v23, %v8529_v22  ;;  %v8535_v1 = vsel %vm1381_vm12, %v1377_v16, %v1385_v20  ;;  %v8537_v25 = vsel %vm1382_vm13, %v1378_v17, %v1386_v21  ;;  %vm1765_vm12 = vcmp.lt.s32.totalorder %v8418_v13, 42 }
 0x341   : > { %v6927_v26 = vpack.i.bf16 %v8535_v1, %v8537_v25  ;;  %v6957_v27 = vpack.i.bf16 %v8535_v1, %v8531_v23  ;;  %v6962_v28 = vpack.i.bf16 %v8537_v25, %v8529_v22  ;;  %vm10572_vm13 = vcmp.lt.s32.totalorder %v8418_v13, 40 }
 0x342   : > { %6923 = vrot.lane.b32.xlu1 %v6922_v24, %s10610_s10  ;;  %6918 = vrot.lane.b32.xlu0 %v6922_v24, %s10594_s7 }
 0x346   : > { %6928 = vrot.lane.b32.xlu1 %v6927_v26, %s10594_s7  ;;  %6933 = vrot.lane.b32.xlu0 %v6927_v26, %s10610_s10 }
 0x34a   : > { %6938 = vrot.lane.b32.xlu1 %v6922_v24, %s10604_s15  ;;  %6943 = vrot.lane.b32.xlu0 %v6922_v24, %s10606_s11 }
 0x34e   : > { %6948 = vrot.lane.b32.xlu1 %v6927_v26, %s10604_s15  ;;  %6953 = vrot.lane.b32.xlu0 %v6927_v26, %s10606_s11 }
 0x352   : > { %6958 = vrot.lane.b32.xlu1 %v6957_v27, %s10602_s16  ;;  %6963 = vrot.lane.b32.xlu0 %v6962_v28, %s10602_s16 }
 0x356   : > { %6968 = vrot.lane.b32.xlu1 %v6957_v27, %s10588_s22  ;;  %6973 = vrot.lane.b32.xlu0 %v6957_v27, %s10562_s18 }
 0x35a   : > { %6978 = vrot.lane.b32.xlu1 %v6962_v28, %s10588_s22  ;;  %6983 = vrot.lane.b32.xlu0 %v6962_v28, %s10562_s18  ;;  %s10568_s18 = smov 2  }
 0x35e   : > { %1477 = vrot.lane.b32.xlu1 %v8531_v23, %s10560_s23  ;;  %1479 = vrot.lane.b32.xlu0 %v8535_v1, %s10560_s23 }
 0x362   : > { %1475 = vrot.lane.b32.xlu1 %v8529_v22, %s10560_s23  ;;  %1481 = vrot.lane.b32.xlu0 %v8537_v25, %s10560_s23  ;;  %s10566_s23 = smov 38  }
 0x366   : > { %1495 = vperm.xlu1 %6916, %v1490_v4   ;;  %1504 = vperm.xlu0 %6915, %v1492_v29  }
 0x3b4   : > { %v6924_v2 = vpop.permute.xlu1 %6923  ;;  %v6919_v30 = vpop.permute.xlu0 %6918 }
 0x3b5   : > { %v6926_v0 = vunpack.i.h.bf16 %v6924_v2  ;;  %v6925_v31 = vunpack.i.l.bf16 %v6924_v2  ;;  %v6921_v33 = vunpack.i.h.bf16 %v6919_v30  ;;  %v6920_v35 = vunpack.i.l.bf16 %v6919_v30 }
 0x3b7   : > { %v1401_v36 = vsel %vm1002_vm0, %v6920_v35, %v6921_v33  ;;  %v1413_v37 = vsel %vm1015_vm1, %v6925_v31, %v6926_v0 }
 0x3b8   : > { %v6929_v12 = vpop.permute.xlu1 %6928  ;;  %v6934_v38 = vpop.permute.xlu0 %6933  ;;  %v8573_v40 = vpack.c.bf16 %v1413_v37, %v1401_v36 }
 0x3b9   : > { %v6931_v41 = vunpack.i.h.bf16 %v6929_v12  ;;  %v6930_v42 = vunpack.i.l.bf16 %v6929_v12  ;;  %v6936_v43 = vunpack.i.h.bf16 %v6934_v38  ;;  %v6935_v45 = vunpack.i.l.bf16 %v6934_v38 }
 0x3ba   : > { %6200 = vmatprep.subr.bf16.mxu0 %v8573_v40 }
 0x3bb   : > { %v1400_v46 = vsel %vm1002_vm0, %v6921_v33, %v6931_v41  ;;  %v1402_v47 = vsel %vm1002_vm0, %v6930_v42, %v6920_v35  ;;  %v1412_v48 = vsel %vm1015_vm1, %v6926_v0, %v6936_v43  ;;  %v1414_v49 = vsel %vm1015_vm1, %v6935_v45, %v6925_v31 }
 0x3bc   : > { %v6939_v50 = vpop.permute.xlu1 %6938  ;;  %v6944_v51 = vpop.permute.xlu0 %6943  ;;  %v8584_v52 = vpack.c.bf16 %v1414_v49, %v1402_v47  ;;  %v1399_v53 = vsel %vm1002_vm0, %v6931_v41, %v6930_v42  ;;  %v1411_v54 = vsel %vm1015_vm1, %v6936_v43, %v6935_v45  ;;  %v8590_v55 = vpack.c.bf16 %v1412_v48, %v1400_v46 }
 0x3bd   : > { %v6941_v56 = vunpack.i.h.bf16 %v6939_v50  ;;  %v6940_v57 = vunpack.i.l.bf16 %v6939_v50  ;;  %v6946_v58 = vunpack.i.h.bf16 %v6944_v51  ;;  %v6945_v59 = vunpack.i.l.bf16 %v6944_v51 }
 0x3be   : > { %6202 = vmatpush1.bf16.msra.mxu0 %v8584_v52  ;;  %v8593_v60 = vpack.c.bf16 %v1411_v54, %v1399_v53 }
 0x3bf   : > { %v1425_v61 = vsel %vm1028_vm2, %v6940_v57, %v6941_v56  ;;  %v1437_v62 = vsel %vm1041_vm3, %v6945_v59, %v6946_v58 }
 0x3c0   : > { %6216 = vmatprep.subr.bf16.mxu1 %v8593_v60  ;;  %v6949_v63 = vpop.permute.xlu1 %6948  ;;  %v6954_v3 = vpop.permute.xlu0 %6953  ;;  %v8600_v5 = vpack.c.bf16 %v1437_v62, %v1425_v61 }
 0x3c1   : > { %6218 = vmatpush1.bf16.msra.mxu1 %v8590_v55  ;;  %v6951_v6 = vunpack.i.h.bf16 %v6949_v63  ;;  %v6950_v7 = vunpack.i.l.bf16 %v6949_v63  ;;  %v6956_v9 = vunpack.i.h.bf16 %v6954_v3  ;;  %v6955_v10 = vunpack.i.l.bf16 %v6954_v3 }
 0x3c2   : > { %6204 = vmatprep.subr.bf16.mxu0 %v8600_v5 }
 0x3c3   : > { %v1424_v11 = vsel %vm1028_vm2, %v6941_v56, %v6951_v6  ;;  %v1426_v14 = vsel %vm1028_vm2, %v6950_v7, %v6940_v57  ;;  %v1436_v15 = vsel %vm1041_vm3, %v6946_v58, %v6956_v9  ;;  %v1438_v16 = vsel %vm1041_vm3, %v6955_v10, %v6945_v59 }
 0x3c4   : > { %v6959_v17 = vpop.permute.xlu1 %6958  ;;  %v6964_v18 = vpop.permute.xlu0 %6963  ;;  %v8612_v19 = vpack.c.bf16 %v1438_v16, %v1426_v14  ;;  %v1423_v20 = vsel %vm1028_vm2, %v6951_v6, %v6950_v7  ;;  %v1435_v21 = vsel %vm1041_vm3, %v6956_v9, %v6955_v10  ;;  %v8618_v24 = vpack.c.bf16 %v1436_v15, %v1424_v11  ;;  %v1487_v16 = vld [vmem:[%s10653_s19] sm:$0xff] }
 0x3c5   : > { %v6961_v26 = vunpack.i.h.bf16 %v6959_v17  ;;  %v6960_v27 = vunpack.i.l.bf16 %v6959_v17  ;;  %v6966_v28 = vunpack.i.h.bf16 %v6964_v18  ;;  %v6965_v4 = vunpack.i.l.bf16 %v6964_v18 }
 0x3c6   : > { %6206 = vmatpush1.bf16.msra.mxu0 %v8612_v19  ;;  %v8621_v29 = vpack.c.bf16 %v1435_v21, %v1423_v20  ;;  %v1488_v21 = vld [vmem:[%s10653_s19 + $0x8] sm:$0xff] }
 0x3c7   : > { %v1447_v2 = vsel %vm1054_vm4, %v6961_v26, %v6966_v28  ;;  %v1449_v30 = vsel %vm1054_vm4, %v6965_v4, %v6960_v27  ;;  %v1448_v0 = vsel %vm1054_vm4, %v6960_v27, %v6961_v26  ;;  %v1450_v31 = vsel %vm1054_vm4, %v6966_v28, %v6965_v4  ;;  %v1489_v26 = vld [vmem:[%s10653_s19 + $0x10] sm:$0xff] }
 0x3c8   : > { %6220 = vmatprep.subr.bf16.mxu1 %v8621_v29  ;;  %v6969_v33 = vpop.permute.xlu1 %6968  ;;  %v6974_v35 = vpop.permute.xlu0 %6973  ;;  %v8633_v36 = vpack.c.bf16 %v1448_v0, %v8531_v23  ;;  %v8636_v37 = vpack.c.bf16 %v1450_v31, %v8537_v25  ;;  %v8639_v12 = vpack.c.bf16 %v1449_v30, %v8529_v22  ;;  %v8642_v38 = vpack.c.bf16 %v1447_v2, %v8535_v1 }
 0x3c9   : > { %6222 = vmatpush1.bf16.msra.mxu1 %v8618_v24  ;;  %v6971_v41 = vunpack.i.h.bf16 %v6969_v33  ;;  %v6970_v42 = vunpack.i.l.bf16 %v6969_v33  ;;  %v6976_v43 = vunpack.i.h.bf16 %v6974_v35  ;;  %v6975_v45 = vunpack.i.l.bf16 %v6974_v35 }
 0x3ca   : > { %6208 = vmatprep.subr.bf16.mxu0 %v8633_v36  ;;  %6224 = vmatprep.subr.bf16.mxu1 %v8636_v37 }
 0x3cb   : > { %6210 = vmatpush1.bf16.msra.mxu0 %v8639_v12  ;;  %v1460_v46 = vsel %vm1067_vm5, %v6970_v42, %v6971_v41  ;;  %v1472_v47 = vsel %vm10622_vm6, %v6975_v45, %v6976_v43 }
 0x3cc   : > { %v6979_v48 = vpop.permute.xlu1 %6978  ;;  %v6984_v49 = vpop.permute.xlu0 %6983  ;;  %v8652_v50 = vpack.c.bf16 %v1472_v47, %v1460_v46 }
 0x3cd   : > { %6226 = vmatpush1.bf16.msra.mxu1 %v8642_v38  ;;  %v6981_v51 = vunpack.i.h.bf16 %v6979_v48  ;;  %v6980_v53 = vunpack.i.l.bf16 %v6979_v48  ;;  %v6986_v54 = vunpack.i.h.bf16 %v6984_v49  ;;  %v6985_v56 = vunpack.i.l.bf16 %v6984_v49 }
 0x3ce   : > { %6212 = vmatprep.subr.bf16.mxu0 %v8652_v50 }
 0x3cf   : > { %v1459_v57 = vsel %vm1067_vm5, %v6971_v41, %v6981_v51  ;;  %v1461_v58 = vsel %vm1067_vm5, %v6980_v53, %v6970_v42  ;;  %v1471_v59 = vsel %vm10622_vm6, %v6976_v43, %v6986_v54  ;;  %v1473_v61 = vsel %vm10622_vm6, %v6985_v56, %v6975_v45 }
 0x3d0   : > { %v1478_v62 = vpop.permute.xlu1 %1477  ;;  %v1480_v63 = vpop.permute.xlu0 %1479  ;;  %v8664_v3 = vpack.c.bf16 %v1473_v61, %v1461_v58  ;;  %v1462_v6 = vsel %vm1067_vm5, %v6981_v51, %v6980_v53  ;;  %v1474_v7 = vsel %vm10622_vm6, %v6986_v54, %v6985_v56  ;;  %v8670_v9 = vpack.c.bf16 %v1471_v59, %v1459_v57 }
 0x3d1   : > { %v8672_v10 = vpack.c.bf16 %v1474_v7, %v1462_v6  ;;  %v8676_v11 = vsel %vm10621_vm7, %v1478_v62, %v1480_v63 }
 0x3d2   : > { %6214 = vmatpush1.bf16.msra.mxu0 %v8664_v3 }
 0x3d3   : > { %6228 = vmatprep.subr.bf16.mxu1 %v8672_v10  ;;  %1532 = vmatprep.subr.mxu0 %v8676_v11 }
 0x3d4   : > { %6230 = vmatpush1.bf16.msra.mxu1 %v8670_v9  ;;  %v1476_v14 = vpop.permute.xlu1 %1475  ;;  %v1482_v15 = vpop.permute.xlu0 %1481 }
 0x3d5   : > { %v8685_v17 = vsel %vm10621_vm7, %v1476_v14, %v1478_v62  ;;  %v8689_v18 = vsel %vm10621_vm7, %v1482_v15, %v1476_v14  ;;  %v8693_v20 = vsel %vm10621_vm7, %v1480_v63, %v1482_v15 }
 0x3d6   : > { %1533 = vmatpush1.msra.mxu0 %v8685_v17  ;;  %1613 = vmatprep.subr.mxu1 %v8689_v18 }
 0x3d7   : > { %6064 = vmatmul.mubr.msk.f32.vlgmr.msra.gmra.mrb[6].mxu0 %vm1118_vm8, %v1487_v16 }
 0x3d8   : > { %1614 = vmatpush1.msra.mxu1 %v8693_v20  ;;  %1586 = vmatprep.mubr.f32.mxu0 %v10584_v8 }
 0x3d9   : > { %6067 = vmatmul.mubr.msk.f32.vlgmr.msra.gmra.mrb[6].mxu1 %vm1118_vm8, %v1487_v16 }
 0x3da   : > { %1667 = vmatprep.mubr.f32.mxu1 %v10584_v8 }
 0x3db   : > { %6065 = vmatmul.mubr.msk.f32.gmra.mrb[8].mxu0 %vm1118_vm8, %v1488_v21 }
 0x3dc   : > { %1590 = vmatprep.mubr.f32.mxu0 %v10584_v8 }
 0x3dd   : > { %6068 = vmatmul.mubr.msk.f32.gmra.mrb[8].mxu1 %vm1118_vm8, %v1488_v21 }
 0x3de   : > { %1671 = vmatprep.mubr.f32.mxu1 %v10584_v8 }
 0x3df   : > { %6066 = vmatmul.mubr.msk.f32.gmra.mrb[10].mxu0 %vm1118_vm8, %v1489_v26 }
 0x3e0   : > { %1954 = vmatprep.mubr.f32.mxu0 %v10584_v8 }
 0x3e1   : > { %6069 = vmatmul.mubr.msk.f32.gmra.mrb[10].mxu1 %vm1118_vm8, %v1489_v26 }
 0x3e2   : > { %2035 = vmatprep.mubr.f32.mxu1 %v10584_v8 }
 0x3e5   : > { %v1496_v27 = vpop.permute.xlu1 %1495  ;;  %v1505_v53 = vpop.permute.xlu0 %1504 }
 0x4aa   : > { %v1582_v28 = vpop.f32.mrb[6].mxu0 }
 0x4ab   : > { %v1583_v4 = vadd.f32 %v1582_v28, %v1496_v27  ;;  %v1584_v2 = vpop.f32.mrb[7].mxu0 }
 0x4ac   : > { %v1585_v30 = vadd.f32 %v1584_v2, %v1496_v27  ;;  %v1663_v0 = vpop.f32.mrb[6].mxu1 }
 0x4ad   : > { %v6070_v31 = vmul.f32 -1.442695, %v1583_v4  ;;  %v1664_v33 = vadd.f32 %v1663_v0, %v1496_v27  ;;  %v1665_v35 = vpop.f32.mrb[7].mxu1 }
 0x4ae   : > { %v6071_v41 = vmul.f32 -1.442695, %v1585_v30  ;;  %v1666_v42 = vadd.f32 %v1665_v35, %v1496_v27  ;;  %v1588_v43 = vpop.f32.mrb[8].mxu0 }
 0x4af   : > { %7925 = vpow2.f32 %v6070_v31  ;;  %v6072_v45 = vmul.f32 -1.442695, %v1664_v33  ;;  %v1589_v46 = vpop.f32.mrb[9].mxu0 }
 0x4b0   : > { %7927 = vpow2.f32 %v6071_v41  ;;  %v6073_v47 = vmul.f32 -1.442695, %v1666_v42  ;;  %v1669_v48 = vpop.f32.mrb[8].mxu1 }
 0x4b1   : > { %7929 = vpow2.f32 %v6072_v45  ;;  %v1670_v49 = vpop.f32.mrb[9].mxu1 }
 0x4b2   : > { %7931 = vpow2.f32 %v6073_v47  ;;  %v1592_v51 = vpop.f32.mrb[10].mxu0 }
 0x4b3   : > { %v1594_v54 = vpop.f32.mrb[11].mxu0  ;;  %v1593_v56 = vadd.f32 %v1592_v51, %v1505_v53 }
 0x4b4   : > { %v1673_v57 = vpop.f32.mrb[10].mxu1  ;;  %v1595_v58 = vadd.f32 %v1594_v54, %v1505_v53  ;;  %v1720_v54 = vld [vmem:[%s8275_s27] sm:$0xff] }
 0x4b5   : > { %v1675_v59 = vpop.f32.mrb[11].mxu1  ;;  %v1674_v61 = vadd.f32 %v1673_v57, %v1505_v53  ;;  %7933 = vtanh.f32 %v1593_v56 }
 0x4b6   : > { %v1676_v62 = vadd.f32 %v1675_v59, %v1505_v53  ;;  %7935 = vtanh.f32 %v1595_v58 }
 0x4b7   : > { %7937 = vtanh.f32 %v1674_v61 }
 0x4b8   : > { %7939 = vtanh.f32 %v1676_v62 }
 0x4b9   : > { %v7926_v63 = vpop.eup %7925 }
 0x4ba   : > { %v7928_v6 = vpop.eup %7927  ;;  %v1690_v7 = vadd.f32 1.0, %v7926_v63 }
 0x4bb   : > { %v7930_v14 = vpop.eup %7929  ;;  %v1691_v15 = vadd.f32 1.0, %v7928_v6 }
 0x4bc   : > { %v7932_v16 = vpop.eup %7931  ;;  %7941 = vrcp.f32 %v1690_v7  ;;  %v1692_v21 = vadd.f32 1.0, %v7930_v14 }
 0x4bd   : > { %7943 = vrcp.f32 %v1691_v15  ;;  %v1693_v26 = vadd.f32 1.0, %v7932_v16  ;;  %v1730_v15 = vld [vmem:[%s10655_s4] sm:$0xff] }
 0x4be   : > { %7945 = vrcp.f32 %v1692_v21 }
 0x4bf   : > { %7947 = vrcp.f32 %v1693_v26  ;;  %v7934_v27 = vpop.eup %7933 }
 0x4c0   : > { %v7936_v28 = vpop.eup %7935 }
 0x4c1   : > { %v7938_v4 = vpop.eup %7937 }
 0x4c2   : > { %v7940_v2 = vpop.eup %7939 }
 0x4c6   : > { %v7942_v30 = vpop.eup %7941 }
 0x4c7   : > { %v7944_v0 = vpop.eup %7943  ;;  %v1706_v31 = vmul.f32 %v7942_v30, %v7934_v27 }
 0x4c8   : > { %v7946_v33 = vpop.eup %7945  ;;  %v1707_v35 = vmul.f32 %v7944_v0, %v7936_v28 }
 0x4c9   : > { %v7948_v41 = vpop.eup %7947  ;;  %v1708_v42 = vmul.f32 %v7946_v33, %v7938_v4  ;;  %v1710_v43 = vmul.f32 %v1706_v31, %v8513_v32 }
 0x4ca   : > { %v1709_v45 = vmul.f32 %v7948_v41, %v7940_v2  ;;  %v1711_v46 = vmul.f32 %v1707_v35, %v8515_v34 }
 0x4cb   : > { %v1712_v47 = vmul.f32 %v1708_v42, %v8517_v39 }
 0x4cc   : > { %v1714_v48 = vadd.f32 %v1711_v46, %v1710_v43  ;;  %v1713_v49 = vmul.f32 %v1709_v45, %v8520_v44 }
 0x4ce   : > { %v1715_v51 = vadd.f32 %v1714_v48, %v1712_v47 }
 0x4d0   : > { %v1716_v53 = vadd.f32 %v1715_v51, %v1713_v49 }
 0x4d2   : > { %1717 = vadd.xlane.f32.xlu1 %v1716_v53 }
 0x55f   : > { %v1718_v56 = vpop.xlane.xlu1 %1717 }
 0x560   : > { %v1719_v57 = vmul.f32 0.00390625, %v1718_v56 }
 0x562   : > { %v1721_v58 = vmul.f32 %v1720_v54, %v1719_v57  ;;  %v1864_v57 = vld [vmem:[%s8290_s20] sm:$0xff] }
 0x564   : > { %v1722_v59 = vsel %vm1355_vm9, %v1721_v58, 0.0  ;;  %v1866_v58 = vld [vmem:[%s8290_s20 + $0x10] sm:$0xff] }
 0x565   : > { %v1723_v61 = vrot.slane %v1722_v59, 4 }
 0x567   : > { %v1724_v62 = vadd.f32 %v1723_v61, %v1722_v59 }
 0x569   : > { %v1725_v63 = vrot.slane %v1724_v62, 2 }
 0x56b   : > { %v1726_v6 = vadd.f32 %v1725_v63, %v1724_v62 }
 0x56d   : > { %v1727_v7 = vrot.slane %v1726_v6, 1 }
 0x56f   : > { %v1728_v14 = vadd.f32 %v1727_v7, %v1726_v6 }
 0x571   : > { %v1729_v16 = vmax.f32 %v1728_v14, 0.0 }
 0x573   : > { %v1731_v21 = vmul.f32 %v1730_v15, %v1729_v16 }
 0x575   : > { %v1732_v26 = vsel %vm1355_vm9, %v1731_v21, 0.0 }
 0x576   : > { %1733 = vadd.xlane.f32.xlu0 %v1732_v26 }
 0x603   : > { %v1734_v27 = vpop.xlane.xlu0 %1733 }
 0x604   : > { %v6074_v28 = vmul.f32 -1.442695, %v1734_v27 }
 0x606   : > { %7949 = vpow2.f32 %v6074_v28 }
 0x610   : > { %v7950_v4 = vpop.eup %7949 }
 0x611   : > { %v1738_v2 = vadd.f32 1.0, %v7950_v4 }
 0x613   : > { %7951 = vrcp.f32 %v1738_v2 }
 0x61d   : > { %v7952_v30 = vpop.eup %7951 }
 0x61e   : > { %v1741_v0 = vmul.f32 %v7952_v30, %v1710_v43  ;;  %v1742_v31 = vmul.f32 %v7952_v30, %v1711_v46  ;;  %v1743_v33 = vmul.f32 %v7952_v30, %v1712_v47  ;;  %v1744_v35 = vmul.f32 %v7952_v30, %v1713_v49 }
 0x620   : > { %vm1745_vm14 = vcmp.ge.f32.partialorder %v1741_v0, 0.0  ;;  %vm1746_vm15 = vcmp.ge.f32.partialorder %v1742_v31, 0.0  ;;  %v1749_v41 = vmul.f32 0.2, %v1741_v0  ;;  %v1750_v42 = vmul.f32 0.2, %v1742_v31 }
 0x621   : > { %v1751_v45 = vmul.f32 0.2, %v1743_v33  ;;  %vm1747_vm10 = vcmp.ge.f32.partialorder %v1743_v33, 0.0  ;;  %vm1748_vm11 = vcmp.ge.f32.partialorder %v1744_v35, 0.0  ;;  %v1752_v48 = vmul.f32 0.2, %v1744_v35 }
 0x622   : > { %v8720_v51 = vsel %vm1745_vm14, %v1741_v0, %v1749_v41  ;;  %v8722_v53 = vsel %vm1746_vm15, %v1742_v31, %v1750_v42  ;;  %vm1791_vm14 = vcmp.lt.s32.totalorder %v8418_v13, 38  ;;  %vm10577_vm15 = vcmp.lt.s32.totalorder %v8418_v13, 2 }
 0x623   : > { %v8726_v54 = vpack.i.bf16 %v8722_v53, %v8720_v51  ;;  %v8728_v43 = vsel %vm1747_vm10, %v1743_v33, %v1751_v45  ;;  %v8730_v46 = vsel %vm1748_vm11, %v1744_v35, %v1752_v48  ;;  %vm10573_vm10 = vcmp.lt.s32.totalorder %v8418_v13, 126 }
 0x624   : > { %v6997_v47 = vpack.i.bf16 %v8728_v43, %v8730_v46  ;;  %v8748_v49 = vpack.i.bf16 %v8728_v43, %v8722_v53  ;;  %v8752_v56 = vpack.i.bf16 %v8730_v46, %v8720_v51  ;;  %vm10576_vm11 = vcmp.lt.s32.totalorder %v8418_v13, 90 }
 0x625   : > { %6993 = vrot.lane.b32.xlu1 %v8726_v54, %s10564_s26  ;;  %6988 = vrot.lane.b32.xlu0 %v8726_v54, %s10570_s0 }
 0x629   : > { %6998 = vrot.lane.b32.xlu1 %v6997_v47, %s10570_s0  ;;  %7003 = vrot.lane.b32.xlu0 %v6997_v47, %s10564_s26  ;;  %s10586_s26 = smov 126   ;;  %s10578_s0 = smov 86  }
 0x62d   : > { %7008 = vrot.lane.b32.xlu1 %v8726_v54, %s10566_s23  ;;  %7013 = vrot.lane.b32.xlu0 %v8726_v54, %s10568_s18 }
 0x631   : > { %7018 = vrot.lane.b32.xlu1 %v6997_v47, %s10566_s23  ;;  %7023 = vrot.lane.b32.xlu0 %v6997_v47, %s10568_s18  ;;  %s10582_s23 = smov 90   ;;  %s10580_s18 = smov 88  }
 0x635   : > { %7028 = vrot.lane.b32.xlu1 %v8748_v49, %s10586_s26  ;;  %7033 = vrot.lane.b32.xlu0 %v8752_v56, %s10586_s26  ;;  %s10669_s26 = sld [smem:[#allocation24_spill]] }
 0x639   : > { %7038 = vrot.lane.b32.xlu1 %v8748_v49, %s10582_s23  ;;  %7043 = vrot.lane.b32.xlu0 %v8748_v49, %s10580_s18 }
 0x63d   : > { %7048 = vrot.lane.b32.xlu1 %v8752_v56, %s10582_s23  ;;  %7053 = vrot.lane.b32.xlu0 %v8752_v56, %s10580_s18  ;;  %s10667_s18 = smov 108   ;;  %s10668_s23 = smov 107  }
 0x641   : > { %1850 = vrot.lane.b32.xlu1 %v8722_v53, %s10578_s0  ;;  %1852 = vrot.lane.b32.xlu0 %v8728_v43, %s10578_s0 }
 0x645   : > { %1848 = vrot.lane.b32.xlu1 %v8720_v51, %s10578_s0  ;;  %1854 = vrot.lane.b32.xlu0 %v8730_v46, %s10578_s0  ;;  %s10664_s0 = sld [smem:[#allocation25_spill]] }
 0x649   : > { %1869 = vperm.xlu1 %6916, %v1864_v57   ;;  %1878 = vperm.xlu0 %6915, %v1866_v58  }
 0x697   : > { %v6994_v59 = vpop.permute.xlu1 %6993  ;;  %v6989_v61 = vpop.permute.xlu0 %6988 }
 0x698   : > { %v6996_v62 = vunpack.i.h.bf16 %v6994_v59  ;;  %v6995_v63 = vunpack.i.l.bf16 %v6994_v59  ;;  %v6991_v6 = vunpack.i.h.bf16 %v6989_v61  ;;  %v6990_v7 = vunpack.i.l.bf16 %v6989_v61 }
 0x69a   : > { %v1768_v14 = vsel %vm1765_vm12, %v6990_v7, %v6991_v6  ;;  %v1781_v15 = vsel %vm10572_vm13, %v6995_v63, %v6996_v62 }
 0x69b   : > { %v6999_v16 = vpop.permute.xlu1 %6998  ;;  %v7004_v21 = vpop.permute.xlu0 %7003  ;;  %v6231_v26 = vpack.c.bf16 %v1781_v15, %v1768_v14 }
 0x69c   : > { %v7001_v27 = vunpack.i.h.bf16 %v6999_v16  ;;  %v7000_v28 = vunpack.i.l.bf16 %v6999_v16  ;;  %v7006_v4 = vunpack.i.h.bf16 %v7004_v21  ;;  %v7005_v2 = vunpack.i.l.bf16 %v7004_v21 }
 0x69d   : > { %6232 = vmatprep.subr.bf16.mxu0 %v6231_v26 }
 0x69e   : > { %v1767_v30 = vsel %vm1765_vm12, %v6991_v6, %v7001_v27  ;;  %v1769_v0 = vsel %vm1765_vm12, %v7000_v28, %v6990_v7  ;;  %v1780_v31 = vsel %vm10572_vm13, %v6996_v62, %v7006_v4  ;;  %v1782_v33 = vsel %vm10572_vm13, %v7005_v2, %v6995_v63 }
 0x69f   : > { %v7009_v35 = vpop.permute.xlu1 %7008  ;;  %v7014_v41 = vpop.permute.xlu0 %7013  ;;  %v6233_v42 = vpack.c.bf16 %v1782_v33, %v1769_v0  ;;  %v1766_v45 = vsel %vm1765_vm12, %v7001_v27, %v7000_v28  ;;  %v1779_v48 = vsel %vm10572_vm13, %v7006_v4, %v7005_v2  ;;  %v6249_v47 = vpack.c.bf16 %v1780_v31, %v1767_v30 }
 0x6a0   : > { %v7011_v57 = vunpack.i.h.bf16 %v7009_v35  ;;  %v7010_v58 = vunpack.i.l.bf16 %v7009_v35  ;;  %v7016_v59 = vunpack.i.h.bf16 %v7014_v41  ;;  %v7015_v61 = vunpack.i.l.bf16 %v7014_v41 }
 0x6a1   : > { %6234 = vmatpush1.bf16.msra.mxu0 %v6233_v42  ;;  %v6247_v6 = vpack.c.bf16 %v1779_v48, %v1766_v45  ;;  %vm10575_vm13 = vcmp.lt.s32.totalorder %v8418_v13, 88 }
 0x6a2   : > { %v1794_v62 = vsel %vm1791_vm14, %v7010_v58, %v7011_v57  ;;  %v1807_v63 = vsel %vm10577_vm15, %v7015_v61, %v7016_v59 }
 0x6a3   : > { %6248 = vmatprep.subr.bf16.mxu1 %v6247_v6  ;;  %v7019_v7 = vpop.permute.xlu1 %7018  ;;  %v7024_v14 = vpop.permute.xlu0 %7023  ;;  %v6235_v15 = vpack.c.bf16 %v1807_v63, %v1794_v62 }
 0x6a4   : > { %6250 = vmatpush1.bf16.msra.mxu1 %v6249_v47  ;;  %v7021_v16 = vunpack.i.h.bf16 %v7019_v7  ;;  %v7020_v21 = vunpack.i.l.bf16 %v7019_v7  ;;  %v7026_v26 = vunpack.i.h.bf16 %v7024_v14  ;;  %v7025_v27 = vunpack.i.l.bf16 %v7024_v14 }
 0x6a5   : > { %6236 = vmatprep.subr.bf16.mxu0 %v6235_v15 }
 0x6a6   : > { %v1793_v28 = vsel %vm1791_vm14, %v7011_v57, %v7021_v16  ;;  %v1795_v4 = vsel %vm1791_vm14, %v7020_v21, %v7010_v58  ;;  %v1806_v2 = vsel %vm10577_vm15, %v7016_v59, %v7026_v26  ;;  %v1808_v30 = vsel %vm10577_vm15, %v7025_v27, %v7015_v61 }
 0x6a7   : > { %v7029_v0 = vpop.permute.xlu1 %7028  ;;  %v7034_v31 = vpop.permute.xlu0 %7033  ;;  %v6237_v33 = vpack.c.bf16 %v1808_v30, %v1795_v4  ;;  %v1792_v35 = vsel %vm1791_vm14, %v7021_v16, %v7020_v21  ;;  %v1805_v41 = vsel %vm10577_vm15, %v7026_v26, %v7025_v27  ;;  %v6253_v42 = vpack.c.bf16 %v1806_v2, %v1793_v28 }
 0x6a8   : > { %v7031_v45 = vunpack.i.h.bf16 %v7029_v0  ;;  %v7030_v48 = vunpack.i.l.bf16 %v7029_v0  ;;  %v7036_v47 = vunpack.i.h.bf16 %v7034_v31  ;;  %v7035_v57 = vunpack.i.l.bf16 %v7034_v31 }
 0x6a9   : > { %6238 = vmatpush1.bf16.msra.mxu0 %v6237_v33  ;;  %v6251_v58 = vpack.c.bf16 %v1805_v41, %v1792_v35 }
 0x6aa   : > { %v1818_v59 = vsel %vm10573_vm10, %v7031_v45, %v7036_v47  ;;  %v1820_v61 = vsel %vm10573_vm10, %v7035_v57, %v7030_v48  ;;  %v1819_v6 = vsel %vm10573_vm10, %v7030_v48, %v7031_v45  ;;  %v1821_v62 = vsel %vm10573_vm10, %v7036_v47, %v7035_v57 }
 0x6ab   : > { %6252 = vmatprep.subr.bf16.mxu1 %v6251_v58  ;;  %v7039_v63 = vpop.permute.xlu1 %7038  ;;  %v7044_v7 = vpop.permute.xlu0 %7043  ;;  %v6239_v14 = vpack.c.bf16 %v1819_v6, %v8722_v53  ;;  %v6255_v15 = vpack.c.bf16 %v1821_v62, %v8730_v46  ;;  %v6241_v16 = vpack.c.bf16 %v1820_v61, %v8720_v51  ;;  %v6257_v21 = vpack.c.bf16 %v1818_v59, %v8728_v43 }
 0x6ac   : > { %6254 = vmatpush1.bf16.msra.mxu1 %v6253_v42  ;;  %v7041_v26 = vunpack.i.h.bf16 %v7039_v63  ;;  %v7040_v27 = vunpack.i.l.bf16 %v7039_v63  ;;  %v7046_v28 = vunpack.i.h.bf16 %v7044_v7  ;;  %v7045_v4 = vunpack.i.l.bf16 %v7044_v7 }
 0x6ad   : > { %6240 = vmatprep.subr.bf16.mxu0 %v6239_v14  ;;  %6256 = vmatprep.subr.bf16.mxu1 %v6255_v15  ;;  %vm10574_vm10 = vcmp.lt.s32.totalorder %v8418_v13, 86 }
 0x6ae   : > { %6242 = vmatpush1.bf16.msra.mxu0 %v6241_v16  ;;  %v1832_v2 = vsel %vm10576_vm11, %v7040_v27, %v7041_v26  ;;  %v1845_v30 = vsel %vm10575_vm13, %v7045_v4, %v7046_v28 }
 0x6af   : > { %v7049_v0 = vpop.permute.xlu1 %7048  ;;  %v7054_v31 = vpop.permute.xlu0 %7053  ;;  %v6243_v33 = vpack.c.bf16 %v1845_v30, %v1832_v2  ;;  %v1862_v2 = vld [vmem:[%s10651_s12 + $0x8] sm:$0xff]  ;;  %v1863_v30 = vld [vmem:[%s10651_s12 + $0x10] sm:$0xff] }
 0x6b0   : > { %6258 = vmatpush1.bf16.msra.mxu1 %v6257_v21  ;;  %v7051_v35 = vunpack.i.h.bf16 %v7049_v0  ;;  %v7050_v41 = vunpack.i.l.bf16 %v7049_v0  ;;  %v7056_v42 = vunpack.i.h.bf16 %v7054_v31  ;;  %v7055_v45 = vunpack.i.l.bf16 %v7054_v31 }
 0x6b1   : > { %6244 = vmatprep.subr.bf16.mxu0 %v6243_v33 }
 0x6b2   : > { %v1831_v48 = vsel %vm10576_vm11, %v7041_v26, %v7051_v35  ;;  %v1833_v47 = vsel %vm10576_vm11, %v7050_v41, %v7040_v27  ;;  %v1844_v57 = vsel %vm10575_vm13, %v7046_v28, %v7056_v42  ;;  %v1846_v58 = vsel %vm10575_vm13, %v7055_v45, %v7045_v4  ;;  %v1861_v26 = vld [vmem:[%s10651_s12] sm:$0xff] }
 0x6b3   : > { %v1851_v59 = vpop.permute.xlu1 %1850  ;;  %v1853_v61 = vpop.permute.xlu0 %1852  ;;  %v6245_v6 = vpack.c.bf16 %v1846_v58, %v1833_v47  ;;  %v1834_v62 = vsel %vm10576_vm11, %v7051_v35, %v7050_v41  ;;  %v1847_v63 = vsel %vm10575_vm13, %v7056_v42, %v7055_v45  ;;  %v6261_v7 = vpack.c.bf16 %v1844_v57, %v1831_v48 }
 0x6b4   : > { %v6259_v14 = vpack.c.bf16 %v1847_v63, %v1834_v62  ;;  %v1858_v15 = vsel %vm10574_vm10, %v1851_v59, %v1853_v61 }
 0x6b5   : > { %6246 = vmatpush1.bf16.msra.mxu0 %v6245_v6 }
 0x6b6   : > { %6260 = vmatprep.subr.bf16.mxu1 %v6259_v14  ;;  %1906 = vmatprep.subr.mxu0 %v1858_v15 }
 0x6b7   : > { %6262 = vmatpush1.bf16.msra.mxu1 %v6261_v7  ;;  %v1849_v16 = vpop.permute.xlu1 %1848  ;;  %v1855_v21 = vpop.permute.xlu0 %1854 }
 0x6b8   : > { %v1859_v27 = vsel %vm10574_vm10, %v1849_v16, %v1851_v59  ;;  %v1860_v28 = vsel %vm10574_vm10, %v1855_v21, %v1849_v16  ;;  %v1857_v4 = vsel %vm10574_vm10, %v1853_v61, %v1855_v21 }
 0x6b9   : > { %1907 = vmatpush1.msra.mxu0 %v1859_v27  ;;  %1987 = vmatprep.subr.mxu1 %v1860_v28 }
 0x6ba   : > { %6075 = vmatmul.mubr.msk.f32.vlgmr.msra.gmra.mrb[12].mxu0 %vm1118_vm8, %v1861_v26 }
 0x6bb   : > { %1988 = vmatpush1.msra.mxu1 %v1857_v4  ;;  %1960 = vmatprep.mubr.f32.mxu0 %v10584_v8 }
 0x6bc   : > { %6078 = vmatmul.mubr.msk.f32.vlgmr.msra.gmra.mrb[12].mxu1 %vm1118_vm8, %v1861_v26 }
 0x6bd   : > { %2041 = vmatprep.mubr.f32.mxu1 %v10584_v8 }
 0x6be   : > { %6076 = vmatmul.mubr.msk.f32.gmra.mrb[14].mxu0 %vm1118_vm8, %v1862_v2 }
 0x6bf   : > { %1964 = vmatprep.mubr.f32.mxu0 %v10584_v8 }
 0x6c0   : > { %6079 = vmatmul.mubr.msk.f32.gmra.mrb[14].mxu1 %vm1118_vm8, %v1862_v2 }
 0x6c1   : > { %2045 = vmatprep.mubr.f32.mxu1 %v10584_v8 }
 0x6c2   : > { %6077 = vmatmul.mubr.msk.f32.gmra.mrb[16].mxu0 %vm1118_vm8, %v1863_v30 }
 0x6c3   : > { %2301 = vmatprep.mubr.f32.mxu0 %v10584_v8 }
 0x6c4   : > { %6080 = vmatmul.mubr.msk.f32.gmra.mrb[16].mxu1 %vm1118_vm8, %v1863_v30 }
 0x6c5   : > { %2372 = vmatprep.mubr.f32.mxu1 %v10584_v8 }
 0x6c8   : > { %v1870_v0 = vpop.permute.xlu1 %1869  ;;  %v1879_v15 = vpop.permute.xlu0 %1878 }
 0x78d   : > { %v1956_v31 = vpop.f32.mrb[12].mxu0 }
 0x78e   : > { %v1957_v33 = vadd.f32 %v1956_v31, %v1870_v0  ;;  %v1958_v35 = vpop.f32.mrb[13].mxu0 }
 0x78f   : > { %v1959_v41 = vadd.f32 %v1958_v35, %v1870_v0  ;;  %v2037_v42 = vpop.f32.mrb[12].mxu1 }
 0x790   : > { %v6081_v45 = vmul.f32 -1.442695, %v1957_v33  ;;  %v2038_v48 = vadd.f32 %v2037_v42, %v1870_v0  ;;  %v2039_v47 = vpop.f32.mrb[13].mxu1 }
 0x791   : > { %v6082_v57 = vmul.f32 -1.442695, %v1959_v41  ;;  %v2040_v58 = vadd.f32 %v2039_v47, %v1870_v0  ;;  %v1962_v59 = vpop.f32.mrb[14].mxu0 }
 0x792   : > { %7953 = vpow2.f32 %v6081_v45  ;;  %v6083_v61 = vmul.f32 -1.442695, %v2038_v48  ;;  %v1963_v6 = vpop.f32.mrb[15].mxu0 }
 0x793   : > { %7955 = vpow2.f32 %v6082_v57  ;;  %v6084_v62 = vmul.f32 -1.442695, %v2040_v58  ;;  %v2043_v63 = vpop.f32.mrb[14].mxu1 }
 0x794   : > { %7957 = vpow2.f32 %v6083_v61  ;;  %v2044_v7 = vpop.f32.mrb[15].mxu1 }
 0x795   : > { %7959 = vpow2.f32 %v6084_v62  ;;  %v1966_v14 = vpop.f32.mrb[16].mxu0 }
 0x796   : > { %v1968_v16 = vpop.f32.mrb[17].mxu0  ;;  %v1967_v21 = vadd.f32 %v1966_v14, %v1879_v15 }
 0x797   : > { %v2047_v26 = vpop.f32.mrb[16].mxu1  ;;  %v1969_v27 = vadd.f32 %v1968_v16, %v1879_v15 }
 0x798   : > { %v2049_v28 = vpop.f32.mrb[17].mxu1  ;;  %v2048_v4 = vadd.f32 %v2047_v26, %v1879_v15  ;;  %7961 = vtanh.f32 %v1967_v21 }
 0x799   : > { %v2050_v2 = vadd.f32 %v2049_v28, %v1879_v15  ;;  %7963 = vtanh.f32 %v1969_v27 }
 0x79a   : > { %7965 = vtanh.f32 %v2048_v4 }
 0x79b   : > { %7967 = vtanh.f32 %v2050_v2 }
 0x79c   : > { %v7954_v30 = vpop.eup %7953 }
 0x79d   : > { %v7956_v0 = vpop.eup %7955  ;;  %v2064_v31 = vadd.f32 1.0, %v7954_v30  ;;  %v2094_v30 = vld [vmem:[%s8315_s30] sm:$0xff] }
 0x79e   : > { %v7958_v33 = vpop.eup %7957  ;;  %v2065_v35 = vadd.f32 1.0, %v7956_v0 }
 0x79f   : > { %v7960_v41 = vpop.eup %7959  ;;  %7969 = vrcp.f32 %v2064_v31  ;;  %v2066_v42 = vadd.f32 1.0, %v7958_v33 }
 0x7a0   : > { %7971 = vrcp.f32 %v2065_v35  ;;  %v2067_v45 = vadd.f32 1.0, %v7960_v41 }
 0x7a1   : > { %7973 = vrcp.f32 %v2066_v42 }
 0x7a2   : > { %7975 = vrcp.f32 %v2067_v45  ;;  %v7962_v48 = vpop.eup %7961 }
 0x7a3   : > { %v7964_v47 = vpop.eup %7963 }
 0x7a4   : > { %v7966_v57 = vpop.eup %7965 }
 0x7a5   : > { %v7968_v58 = vpop.eup %7967 }
 0x7a9   : > { %v7970_v59 = vpop.eup %7969 }
 0x7aa   : > { %v7972_v61 = vpop.eup %7971  ;;  %v2080_v6 = vmul.f32 %v7970_v59, %v7962_v48 }
 0x7ab   : > { %v7974_v62 = vpop.eup %7973  ;;  %v2081_v63 = vmul.f32 %v7972_v61, %v7964_v47 }
 0x7ac   : > { %v7976_v7 = vpop.eup %7975  ;;  %v2082_v14 = vmul.f32 %v7974_v62, %v7966_v57  ;;  %v2084_v15 = vmul.f32 %v2080_v6, %v8513_v32 }
 0x7ad   : > { %v2083_v16 = vmul.f32 %v7976_v7, %v7968_v58  ;;  %v2085_v21 = vmul.f32 %v2081_v63, %v8515_v34  ;;  %v2104_v58 = vld [vmem:[%s8320_s6] sm:$0xff] }
 0x7ae   : > { %v2086_v26 = vmul.f32 %v2082_v14, %v8517_v39 }
 0x7af   : > { %v2088_v27 = vadd.f32 %v2085_v21, %v2084_v15  ;;  %v2087_v28 = vmul.f32 %v2083_v16, %v8520_v44 }
 0x7b1   : > { %v2089_v4 = vadd.f32 %v2088_v27, %v2086_v26 }
 0x7b3   : > { %v2090_v2 = vadd.f32 %v2089_v4, %v2087_v28 }
 0x7b5   : > { %2091 = vadd.xlane.f32.xlu1 %v2090_v2 }
 0x842   : > { %v2092_v0 = vpop.xlane.xlu1 %2091 }
 0x843   : > { %v2093_v31 = vmul.f32 0.00390625, %v2092_v0 }
 0x845   : > { %v2095_v33 = vmul.f32 %v2094_v30, %v2093_v31 }
 0x847   : > { %v2096_v35 = vsel %vm1355_vm9, %v2095_v33, 0.0 }
 0x848   : > { %v2097_v41 = vrot.slane %v2096_v35, 4 }
 0x84a   : > { %v2098_v42 = vadd.f32 %v2097_v41, %v2096_v35 }
 0x84c   : > { %v2099_v45 = vrot.slane %v2098_v42, 2 }
 0x84e   : > { %v2100_v48 = vadd.f32 %v2099_v45, %v2098_v42 }
 0x850   : > { %v2101_v47 = vrot.slane %v2100_v48, 1 }
 0x852   : > { %v2102_v57 = vadd.f32 %v2101_v47, %v2100_v48  ;;  %v2228_v47 = vld [vmem:[%s10664_s0] sm:$0xff] }
 0x854   : > { %v2103_v59 = vmax.f32 %v2102_v57, 0.0 }
 0x856   : > { %v2105_v61 = vmul.f32 %v2104_v58, %v2103_v59 }
 0x858   : > { %v2106_v6 = vsel %vm1355_vm9, %v2105_v61, 0.0 }
 0x859   : > { %2107 = vadd.xlane.f32.xlu0 %v2106_v6 }
 0x8e6   : > { %v2108_v62 = vpop.xlane.xlu0 %2107 }
 0x8e7   : > { %v6085_v63 = vmul.f32 -1.442695, %v2108_v62 }
 0x8e9   : > { %7977 = vpow2.f32 %v6085_v63 }
 0x8f3   : > { %v7978_v7 = vpop.eup %7977 }
 0x8f4   : > { %v2112_v14 = vadd.f32 1.0, %v7978_v7 }
 0x8f6   : > { %7979 = vrcp.f32 %v2112_v14 }
 0x900   : > { %v7980_v16 = vpop.eup %7979 }
 0x901   : > { %v2115_v27 = vmul.f32 %v7980_v16, %v2084_v15  ;;  %v2116_v4 = vmul.f32 %v7980_v16, %v2085_v21  ;;  %v2117_v2 = vmul.f32 %v7980_v16, %v2086_v26  ;;  %v2118_v30 = vmul.f32 %v7980_v16, %v2087_v28 }
 0x903   : > { %vm2119_vm10 = vcmp.ge.f32.partialorder %v2115_v27, 0.0  ;;  %vm2120_vm13 = vcmp.ge.f32.partialorder %v2116_v4, 0.0  ;;  %v2123_v0 = vmul.f32 0.2, %v2115_v27  ;;  %v2124_v31 = vmul.f32 0.2, %v2116_v4 }
 0x904   : > { %v2125_v33 = vmul.f32 0.2, %v2117_v2  ;;  %vm2121_vm11 = vcmp.ge.f32.partialorder %v2117_v2, 0.0  ;;  %vm2122_vm15 = vcmp.ge.f32.partialorder %v2118_v30, 0.0  ;;  %v2126_v35 = vmul.f32 0.2, %v2118_v30 }
 0x905   : > { %v8875_v41 = vsel %vm2119_vm10, %v2115_v27, %v2123_v0  ;;  %v8877_v42 = vsel %vm2120_vm13, %v2116_v4, %v2124_v31 }
 0x906   : > { %10661 = vst [vmem:[#allocation28_spill] sm:$0xff] %v8875_v41  ;;  %10662 = vst [vmem:[#allocation29_spill] sm:$0xff] %v8877_v42  ;;  %v8881_v45 = vpack.i.bf16 %v8877_v42, %v8875_v41  ;;  %v8883_v15 = vsel %vm2121_vm11, %v2117_v2, %v2125_v33  ;;  %v8885_v21 = vsel %vm2122_vm15, %v2118_v30, %v2126_v35 }
 0x907   : > { %10663 = vst [vmem:[#allocation30_spill] sm:$0xff] %v8885_v21  ;;  %v7067_v26 = vpack.i.bf16 %v8883_v15, %v8885_v21  ;;  %v8903_v28 = vpack.i.bf16 %v8883_v15, %v8877_v42  ;;  %v8907_v48 = vpack.i.bf16 %v8885_v21, %v8875_v41 }
 0x908   : > { %7063 = vrot.lane.b32.xlu1 %v8881_v45, %s10610_s10  ;;  %7058 = vrot.lane.b32.xlu0 %v8881_v45, %s10594_s7 }
 0x909   : > { %10665 = vst [vmem:[#allocation31_spill] sm:$0xff] %v8903_v28  ;;  %10666 = vst [vmem:[#allocation32_spill] sm:$0xff] %v8907_v48 }
 0x90c   : > { %7068 = vrot.lane.b32.xlu1 %v7067_v26, %s10594_s7  ;;  %7073 = vrot.lane.b32.xlu0 %v7067_v26, %s10610_s10 }
 0x910   : > { %7078 = vrot.lane.b32.xlu1 %v8881_v45, %s10604_s15  ;;  %7083 = vrot.lane.b32.xlu0 %v8881_v45, %s10606_s11 }
 0x914   : > { %7088 = vrot.lane.b32.xlu1 %v7067_v26, %s10604_s15  ;;  %7093 = vrot.lane.b32.xlu0 %v7067_v26, %s10606_s11 }
 0x918   : > { %7098 = vrot.lane.b32.xlu1 %v8903_v28, %s10602_s16  ;;  %7103 = vrot.lane.b32.xlu0 %v8907_v48, %s10602_s16 }
 0x91c   : > { %7108 = vrot.lane.b32.xlu1 %v8903_v28, %s10588_s22  ;;  %7113 = vrot.lane.b32.xlu0 %v8903_v28, %s10667_s18 }
 0x920   : > { %7118 = vrot.lane.b32.xlu1 %v8907_v48, %s10588_s22  ;;  %7123 = vrot.lane.b32.xlu0 %v8907_v48, %s10667_s18  ;;  %s10671_s22 = sld [smem:[#allocation26_spill]] }
 0x924   : > { %2217 = vrot.lane.b32.xlu1 %v8877_v42, %s10668_s23  ;;  %2219 = vrot.lane.b32.xlu0 %v8883_v15, %s10668_s23 }
 0x928   : > { %2215 = vrot.lane.b32.xlu1 %v8875_v41, %s10668_s23  ;;  %2221 = vrot.lane.b32.xlu0 %v8885_v21, %s10668_s23 }
 0x92c   : > { %2231 = vperm.xlu1 %6916, %v2228_v47  }
 0x97a   : > { %v7064_v57 = vpop.permute.xlu1 %7063  ;;  %v7059_v58 = vpop.permute.xlu0 %7058 }
 0x97b   : > { %v7066_v59 = vunpack.i.h.bf16 %v7064_v57  ;;  %v7065_v61 = vunpack.i.l.bf16 %v7064_v57  ;;  %v7061_v6 = vunpack.i.h.bf16 %v7059_v58  ;;  %v7060_v62 = vunpack.i.l.bf16 %v7059_v58 }
 0x97d   : > { %v2141_v63 = vsel %vm1002_vm0, %v7060_v62, %v7061_v6  ;;  %v2153_v7 = vsel %vm1015_vm1, %v7065_v61, %v7066_v59 }
 0x97e   : > { %v7069_v14 = vpop.permute.xlu1 %7068  ;;  %v7074_v16 = vpop.permute.xlu0 %7073  ;;  %v6263_v27 = vpack.c.bf16 %v2153_v7, %v2141_v63 }
 0x97f   : > { %v7071_v4 = vunpack.i.h.bf16 %v7069_v14  ;;  %v7070_v2 = vunpack.i.l.bf16 %v7069_v14  ;;  %v7076_v30 = vunpack.i.h.bf16 %v7074_v16  ;;  %v7075_v0 = vunpack.i.l.bf16 %v7074_v16 }
 0x980   : > { %6264 = vmatprep.subr.bf16.mxu0 %v6263_v27 }
 0x981   : > { %v2140_v31 = vsel %vm1002_vm0, %v7061_v6, %v7071_v4  ;;  %v2142_v33 = vsel %vm1002_vm0, %v7070_v2, %v7060_v62  ;;  %v2152_v35 = vsel %vm1015_vm1, %v7066_v59, %v7076_v30  ;;  %v2154_v26 = vsel %vm1015_vm1, %v7075_v0, %v7065_v61 }
 0x982   : > { %v7079_v47 = vpop.permute.xlu1 %7078  ;;  %v7084_v57 = vpop.permute.xlu0 %7083  ;;  %v6265_v58 = vpack.c.bf16 %v2154_v26, %v2142_v33  ;;  %v2139_v63 = vsel %vm1002_vm0, %v7071_v4, %v7070_v2  ;;  %v2151_v7 = vsel %vm1015_vm1, %v7076_v30, %v7075_v0  ;;  %v6281_v14 = vpack.c.bf16 %v2152_v35, %v2140_v31 }
 0x983   : > { %v7081_v6 = vunpack.i.h.bf16 %v7079_v47  ;;  %v7080_v16 = vunpack.i.l.bf16 %v7079_v47  ;;  %v7086_v27 = vunpack.i.h.bf16 %v7084_v57  ;;  %v7085_v62 = vunpack.i.l.bf16 %v7084_v57 }
 0x984   : > { %6266 = vmatpush1.bf16.msra.mxu0 %v6265_v58  ;;  %v6279_v8 = vpack.c.bf16 %v2151_v7, %v2139_v63 }
 0x985   : > { %v2165_v59 = vsel %vm1028_vm2, %v7080_v16, %v7081_v6  ;;  %v2177_v61 = vsel %vm1041_vm3, %v7085_v62, %v7086_v27 }
 0x986   : > { %6280 = vmatprep.subr.bf16.mxu1 %v6279_v8  ;;  %v7089_v33 = vpop.permute.xlu1 %7088  ;;  %v7094_v26 = vpop.permute.xlu0 %7093  ;;  %v6267_v4 = vpack.c.bf16 %v2177_v61, %v2165_v59 }
 0x987   : > { %6282 = vmatpush1.bf16.msra.mxu1 %v6281_v14  ;;  %v7091_v2 = vunpack.i.h.bf16 %v7089_v33  ;;  %v7090_v30 = vunpack.i.l.bf16 %v7089_v33  ;;  %v7096_v0 = vunpack.i.h.bf16 %v7094_v26  ;;  %v7095_v31 = vunpack.i.l.bf16 %v7094_v26 }
 0x988   : > { %6268 = vmatprep.subr.bf16.mxu0 %v6267_v4 }
 0x989   : > { %v2164_v35 = vsel %vm1028_vm2, %v7081_v6, %v7091_v2  ;;  %v2166_v47 = vsel %vm1028_vm2, %v7090_v30, %v7080_v16  ;;  %v2176_v57 = vsel %vm1041_vm3, %v7086_v27, %v7096_v0  ;;  %v2178_v8 = vsel %vm1041_vm3, %v7095_v31, %v7085_v62 }
 0x98a   : > { %v7099_v58 = vpop.permute.xlu1 %7098  ;;  %v7104_v63 = vpop.permute.xlu0 %7103  ;;  %v6269_v7 = vpack.c.bf16 %v2178_v8, %v2166_v47  ;;  %v2163_v14 = vsel %vm1028_vm2, %v7091_v2, %v7090_v30  ;;  %v2175_v59 = vsel %vm1041_vm3, %v7096_v0, %v7095_v31  ;;  %v6285_v61 = vpack.c.bf16 %v2176_v57, %v2164_v35 }
 0x98b   : > { %v7101_v6 = vunpack.i.h.bf16 %v7099_v58  ;;  %v7100_v33 = vunpack.i.l.bf16 %v7099_v58  ;;  %v7106_v26 = vunpack.i.h.bf16 %v7104_v63  ;;  %v7105_v16 = vunpack.i.l.bf16 %v7104_v63 }
 0x98c   : > { %6270 = vmatpush1.bf16.msra.mxu0 %v6269_v7  ;;  %v6283_v4 = vpack.c.bf16 %v2175_v59, %v2163_v14 }
 0x98d   : > { %v2187_v27 = vsel %vm1054_vm4, %v7101_v6, %v7106_v26  ;;  %v2189_v62 = vsel %vm1054_vm4, %v7105_v16, %v7100_v33  ;;  %v2188_v47 = vsel %vm1054_vm4, %v7100_v33, %v7101_v6  ;;  %v2190_v2 = vsel %vm1054_vm4, %v7106_v26, %v7105_v16 }
 0x98e   : > { %6284 = vmatprep.subr.bf16.mxu1 %v6283_v4  ;;  %v7109_v30 = vpop.permute.xlu1 %7108  ;;  %v7114_v0 = vpop.permute.xlu0 %7113  ;;  %v6271_v31 = vpack.c.bf16 %v2188_v47, %v8877_v42  ;;  %v6287_v35 = vpack.c.bf16 %v2190_v2, %v8885_v21  ;;  %v6273_v57 = vpack.c.bf16 %v2189_v62, %v8875_v41  ;;  %v6289_v8 = vpack.c.bf16 %v2187_v27, %v8883_v15  ;;  %v2399_v41 = vld [vmem:[%s8340_s25] sm:$0xff] }
 0x98f   : > { %6286 = vmatpush1.bf16.msra.mxu1 %v6285_v61  ;;  %v7111_v58 = vunpack.i.h.bf16 %v7109_v30  ;;  %v7110_v63 = vunpack.i.l.bf16 %v7109_v30  ;;  %v7116_v7 = vunpack.i.h.bf16 %v7114_v0  ;;  %v7115_v14 = vunpack.i.l.bf16 %v7114_v0 }
 0x990   : > { %6272 = vmatprep.subr.bf16.mxu0 %v6271_v31  ;;  %6288 = vmatprep.subr.bf16.mxu1 %v6287_v35 }
 0x991   : > { %6274 = vmatpush1.bf16.msra.mxu0 %v6273_v57  ;;  %v2200_v59 = vsel %vm1067_vm5, %v7110_v63, %v7111_v58  ;;  %v2212_v6 = vsel %vm10622_vm6, %v7115_v14, %v7116_v7 }
 0x992   : > { %v7119_v33 = vpop.permute.xlu1 %7118  ;;  %v7124_v26 = vpop.permute.xlu0 %7123  ;;  %v6275_v16 = vpack.c.bf16 %v2212_v6, %v2200_v59 }
 0x993   : > { %6290 = vmatpush1.bf16.msra.mxu1 %v6289_v8  ;;  %v7121_v4 = vunpack.i.h.bf16 %v7119_v33  ;;  %v7120_v27 = vunpack.i.l.bf16 %v7119_v33  ;;  %v7126_v61 = vunpack.i.h.bf16 %v7124_v26  ;;  %v7125_v62 = vunpack.i.l.bf16 %v7124_v26  ;;  %v2227_v33 = vld [vmem:[%s10669_s26] sm:$0xff] }
 0x994   : > { %6276 = vmatprep.subr.bf16.mxu0 %v6275_v16 }
 0x995   : > { %v2199_v47 = vsel %vm1067_vm5, %v7111_v58, %v7121_v4  ;;  %v2201_v2 = vsel %vm1067_vm5, %v7120_v27, %v7110_v63  ;;  %v2211_v30 = vsel %vm10622_vm6, %v7116_v7, %v7126_v61  ;;  %v2213_v0 = vsel %vm10622_vm6, %v7125_v62, %v7115_v14 }
 0x996   : > { %v2218_v31 = vpop.permute.xlu1 %2217  ;;  %v2220_v35 = vpop.permute.xlu0 %2219  ;;  %v6277_v57 = vpack.c.bf16 %v2213_v0, %v2201_v2  ;;  %v2202_v8 = vsel %vm1067_vm5, %v7121_v4, %v7120_v27  ;;  %v2214_v59 = vsel %vm10622_vm6, %v7126_v61, %v7125_v62  ;;  %v6293_v58 = vpack.c.bf16 %v2211_v30, %v2199_v47 }
 0x997   : > { %v6291_v6 = vpack.c.bf16 %v2214_v59, %v2202_v8  ;;  %v2224_v63 = vsel %vm10621_vm7, %v2218_v31, %v2220_v35  ;;  %v10670_v27 = vmov 0.0  }
 0x998   : > { %6278 = vmatpush1.bf16.msra.mxu0 %v6277_v57 }
 0x999   : > { %6292 = vmatprep.subr.bf16.mxu1 %v6291_v6  ;;  %2253 = vmatprep.subr.mxu0 %v2224_v63 }
 0x99a   : > { %6294 = vmatpush1.bf16.msra.mxu1 %v6293_v58  ;;  %v2216_v7 = vpop.permute.xlu1 %2215  ;;  %v2222_v14 = vpop.permute.xlu0 %2221 }
 0x99b   : > { %v2225_v26 = vsel %vm10621_vm7, %v2216_v7, %v2218_v31  ;;  %v2226_v16 = vsel %vm10621_vm7, %v2222_v14, %v2216_v7  ;;  %v2223_v4 = vsel %vm10621_vm7, %v2220_v35, %v2222_v14 }
 0x99c   : > { %2254 = vmatpush1.msra.mxu0 %v2225_v26  ;;  %2324 = vmatprep.subr.mxu1 %v2226_v16 }
 0x99d   : > { %6086 = vmatmul.mubr.msk.f32.vlgmr.msra.gmra.mrb[18].mxu0 %vm1118_vm8, %v2227_v33 }
 0x99e   : > { %2325 = vmatpush1.msra.mxu1 %v2223_v4  ;;  %2596 = vmatprep.mubr.f32.mxu0 %v10670_v27 }
 0x99f   : > { %6087 = vmatmul.mubr.msk.f32.vlgmr.msra.gmra.mrb[18].mxu1 %vm1118_vm8, %v2227_v33  ;;  %v2389_v33 = vld [vmem:[%s10671_s22] sm:$0xff] }
 0x9a0   : > { %2667 = vmatprep.mubr.f32.mxu1 %v10670_v27 }
 0x9ab   : > { %v2232_v61 = vpop.permute.xlu1 %2231 }
 0xa70   : > { %v2303_v62 = vpop.f32.mrb[18].mxu0 }
 0xa71   : > { %v2304_v47 = vadd.f32 %v2303_v62, %v2232_v61  ;;  %v2305_v2 = vpop.f32.mrb[19].mxu0 }
 0xa72   : > { %v2306_v30 = vadd.f32 %v2305_v2, %v2232_v61  ;;  %v2374_v0 = vpop.f32.mrb[18].mxu1 }
 0xa73   : > { %v2379_v31 = vmul.f32 %v2304_v47, %v8513_v32  ;;  %v2375_v35 = vadd.f32 %v2374_v0, %v2232_v61  ;;  %v2376_v57 = vpop.f32.mrb[19].mxu1 }
 0xa74   : > { %v2380_v8 = vmul.f32 %v2306_v30, %v8515_v34  ;;  %v2377_v59 = vadd.f32 %v2376_v57, %v2232_v61 }
 0xa75   : > { %v2381_v6 = vmul.f32 %v2375_v35, %v8517_v39 }
 0xa76   : > { %v2383_v58 = vadd.f32 %v2380_v8, %v2379_v31  ;;  %v2382_v63 = vmul.f32 %v2377_v59, %v8520_v44 }
 0xa78   : > { %v2384_v7 = vadd.f32 %v2383_v58, %v2381_v6 }
 0xa7a   : > { %v2385_v14 = vadd.f32 %v2384_v7, %v2382_v63 }
 0xa7c   : > { %2386 = vadd.xlane.f32.xlu0 %v2385_v14 }
 0xb09   : > { %v2387_v26 = vpop.xlane.xlu0 %2386 }
 0xb0a   : > { %v2388_v16 = vmul.f32 0.00390625, %v2387_v26 }
 0xb0c   : > { %v2390_v4 = vmul.f32 %v2389_v33, %v2388_v16 }
 0xb0e   : > { %v2391_v62 = vsel %vm1355_vm9, %v2390_v4, 0.0 }
 0xb0f   : > { %v2392_v47 = vrot.slane %v2391_v62, 4 }
 0xb11   : > { %v2393_v2 = vadd.f32 %v2392_v47, %v2391_v62 }
 0xb13   : > { %v2394_v0 = vrot.slane %v2393_v2, 2 }
 0xb15   : > { %v2395_v30 = vadd.f32 %v2394_v0, %v2393_v2 }
 0xb17   : > { %v2396_v61 = vrot.slane %v2395_v30, 1 }
 0xb19   : > { %v2397_v57 = vadd.f32 %v2396_v61, %v2395_v30 }
 0xb1b   : > { %v2398_v35 = vmax.f32 %v2397_v57, 0.0 }
 0xb1d   : > { %v2400_v42 = vmul.f32 %v2399_v41, %v2398_v35 }
 0xb1f   : > { %v2401_v59 = vsel %vm1355_vm9, %v2400_v42, 0.0 }
 0xb20   : > { %2402 = vadd.xlane.f32.xlu1 %v2401_v59  ;;  %v2523_v59 = vld [vmem:[%s8350_s3] sm:$0xff] }
 0xbad   : > { %v2403_v58 = vpop.xlane.xlu1 %2402 }
 0xbae   : > { %v6088_v7 = vmul.f32 -1.442695, %v2403_v58 }
 0xbb0   : > { %7981 = vpow2.f32 %v6088_v7 }
 0xbba   : > { %v7982_v14 = vpop.eup %7981 }
 0xbbb   : > { %v2407_v26 = vadd.f32 1.0, %v7982_v14 }
 0xbbd   : > { %7983 = vrcp.f32 %v2407_v26 }
 0xbc7   : > { %v7984_v33 = vpop.eup %7983 }
 0xbc8   : > { %v2410_v16 = vmul.f32 %v7984_v33, %v2379_v31  ;;  %v2411_v4 = vmul.f32 %v7984_v33, %v2380_v8  ;;  %v2412_v62 = vmul.f32 %v7984_v33, %v2381_v6  ;;  %v2413_v47 = vmul.f32 %v7984_v33, %v2382_v63 }
 0xbca   : > { %vm2414_vm13 = vcmp.ge.f32.partialorder %v2410_v16, 0.0  ;;  %vm2415_vm15 = vcmp.ge.f32.partialorder %v2411_v4, 0.0  ;;  %v2418_v2 = vmul.f32 0.2, %v2410_v16  ;;  %v2419_v0 = vmul.f32 0.2, %v2411_v4 }
 0xbcb   : > { %vm2416_vm10 = vcmp.ge.f32.partialorder %v2412_v62, 0.0  ;;  %vm2417_vm11 = vcmp.ge.f32.partialorder %v2413_v47, 0.0  ;;  %v2420_v41 = vmul.f32 0.2, %v2412_v62  ;;  %v2421_v42 = vmul.f32 0.2, %v2413_v47 }
 0xbcc   : > { %v9011_v30 = vsel %vm2414_vm13, %v2410_v16, %v2418_v2  ;;  %v9013_v61 = vsel %vm2415_vm15, %v2411_v4, %v2419_v0 }
 0xbcd   : > { %v7132_v57 = vpack.i.bf16 %v9013_v61, %v9011_v30  ;;  %v9017_v35 = vsel %vm2416_vm10, %v2412_v62, %v2420_v41  ;;  %v9019_v31 = vsel %vm2417_vm11, %v2413_v47, %v2421_v42 }
 0xbce   : > { %v7142_v8 = vpack.i.bf16 %v9019_v31, %v9017_v35  ;;  %v7172_v6 = vpack.i.bf16 %v9019_v31, %v9011_v30  ;;  %v7167_v63 = vpack.i.bf16 %v9017_v35, %v9013_v61 }
 0xbcf   : > { %7133 = vrot.lane.b32.xlu1 %v7132_v57, %s10610_s10  ;;  %7128 = vrot.lane.b32.xlu0 %v7132_v57, %s10594_s7 }
 0xbd3   : > { %7143 = vrot.lane.b32.xlu1 %v7142_v8, %s10610_s10  ;;  %7138 = vrot.lane.b32.xlu0 %v7142_v8, %s10594_s7  ;;  %s10672_s7 = smov 109  }
 0xbd7   : > { %7153 = vrot.lane.b32.xlu1 %v7132_v57, %s10606_s11  ;;  %7148 = vrot.lane.b32.xlu0 %v7132_v57, %s10604_s15 }
 0xbdb   : > { %7163 = vrot.lane.b32.xlu1 %v7142_v8, %s10606_s11  ;;  %7158 = vrot.lane.b32.xlu0 %v7142_v8, %s10604_s15 }
 0xbdf   : > { %7173 = vrot.lane.b32.xlu1 %v7172_v6, %s10602_s16  ;;  %7168 = vrot.lane.b32.xlu0 %v7167_v63, %s10602_s16  ;;  %s6166_s16 = sshll.u32 %s10793_s1, 6  ;;  %s10674_s1 = smov 21  }
 0xbe0   : > { %s9127_s15 = scalar_lea.vmem %s10673_s21, %s6166_s16  ;;  %s10675_s16 = smov 19  }
 0xbe1   : > { %s10695_s21 = smov 86  }
 0xbe3   : > { %7183 = vrot.lane.b32.xlu1 %v7167_v63, %s10667_s18  ;;  %7178 = vrot.lane.b32.xlu0 %v7167_v63, %s10672_s7 }
 0xbe7   : > { %7193 = vrot.lane.b32.xlu1 %v7172_v6, %s10667_s18  ;;  %7188 = vrot.lane.b32.xlu0 %v7172_v6, %s10672_s7 }
 0xbeb   : > { %2514 = vrot.lane.b32.xlu1 %v9017_v35, %s10668_s23  ;;  %2512 = vrot.lane.b32.xlu0 %v9013_v61, %s10668_s23 }
 0xbef   : > { %2516 = vrot.lane.b32.xlu1 %v9019_v31, %s10668_s23  ;;  %2510 = vrot.lane.b32.xlu0 %v9011_v30, %s10668_s23 }
 0xbf3   : > { %2526 = vperm.xlu0 %6915, %v2523_v59  }
 0xc41   : > { %v7134_v58 = vpop.permute.xlu1 %7133  ;;  %v7129_v7 = vpop.permute.xlu0 %7128 }
 0xc42   : > { %v7136_v14 = vunpack.i.h.bf16 %v7134_v58  ;;  %v7135_v26 = vunpack.i.l.bf16 %v7134_v58  ;;  %v7131_v33 = vunpack.i.h.bf16 %v7129_v7  ;;  %v7130_v16 = vunpack.i.l.bf16 %v7129_v7 }
 0xc44   : > { %v2436_v4 = vsel %vm1002_vm0, %v7130_v16, %v7131_v33  ;;  %v2448_v62 = vsel %vm1015_vm1, %v7135_v26, %v7136_v14 }
 0xc45   : > { %v7144_v47 = vpop.permute.xlu1 %7143  ;;  %v7139_v2 = vpop.permute.xlu0 %7138  ;;  %v6295_v0 = vpack.c.bf16 %v2448_v62, %v2436_v4 }
 0xc46   : > { %v7146_v41 = vunpack.i.h.bf16 %v7144_v47  ;;  %v7145_v42 = vunpack.i.l.bf16 %v7144_v47  ;;  %v7141_v57 = vunpack.i.h.bf16 %v7139_v2  ;;  %v7140_v8 = vunpack.i.l.bf16 %v7139_v2 }
 0xc47   : > { %6296 = vmatprep.subr.bf16.mxu0 %v6295_v0 }
 0xc48   : > { %v2447_v6 = vsel %vm1015_vm1, %v7136_v14, %v7145_v42  ;;  %v2449_v63 = vsel %vm1015_vm1, %v7146_v41, %v7135_v26  ;;  %v2435_v59 = vsel %vm1002_vm0, %v7131_v33, %v7140_v8  ;;  %v2437_v58 = vsel %vm1002_vm0, %v7141_v57, %v7130_v16 }
 0xc49   : > { %v7154_v7 = vpop.permute.xlu1 %7153  ;;  %v7149_v48 = vpop.permute.xlu0 %7148  ;;  %v6297_v4 = vpack.c.bf16 %v2449_v63, %v2437_v58  ;;  %v2434_v62 = vsel %vm1002_vm0, %v7140_v8, %v7141_v57  ;;  %v2446_v47 = vsel %vm1015_vm1, %v7145_v42, %v7146_v41  ;;  %v6313_v2 = vpack.c.bf16 %v2447_v6, %v2435_v59 }
 0xc4a   : > { %v7156_v14 = vunpack.i.h.bf16 %v7154_v7  ;;  %v7155_v0 = vunpack.i.l.bf16 %v7154_v7  ;;  %v7151_v28 = vunpack.i.h.bf16 %v7149_v48  ;;  %v7150_v26 = vunpack.i.l.bf16 %v7149_v48 }
 0xc4b   : > { %6298 = vmatpush1.bf16.msra.mxu0 %v6297_v4  ;;  %v6311_v21 = vpack.c.bf16 %v2446_v47, %v2434_v62 }
 0xc4c   : > { %v2460_v33 = vsel %vm1028_vm2, %v7150_v26, %v7151_v28  ;;  %v2472_v16 = vsel %vm1041_vm3, %v7155_v0, %v7156_v14 }
 0xc4d   : > { %6312 = vmatprep.subr.bf16.mxu1 %v6311_v21  ;;  %v7164_v63 = vpop.permute.xlu1 %7163  ;;  %v7159_v58 = vpop.permute.xlu0 %7158  ;;  %v6299_v57 = vpack.c.bf16 %v2472_v16, %v2460_v33 }
 0xc4e   : > { %6314 = vmatpush1.bf16.msra.mxu1 %v6313_v2  ;;  %v7166_v8 = vunpack.i.h.bf16 %v7164_v63  ;;  %v7165_v41 = vunpack.i.l.bf16 %v7164_v63  ;;  %v7161_v42 = vunpack.i.h.bf16 %v7159_v58  ;;  %v7160_v6 = vunpack.i.l.bf16 %v7159_v58 }
 0xc4f   : > { %6300 = vmatprep.subr.bf16.mxu0 %v6299_v57 }
 0xc50   : > { %v2471_v48 = vsel %vm1041_vm3, %v7156_v14, %v7165_v41  ;;  %v2473_v59 = vsel %vm1041_vm3, %v7166_v8, %v7155_v0  ;;  %v2459_v7 = vsel %vm1028_vm2, %v7151_v28, %v7160_v6  ;;  %v2461_v21 = vsel %vm1028_vm2, %v7161_v42, %v7150_v26 }
 0xc51   : > { %v7174_v4 = vpop.permute.xlu1 %7173  ;;  %v7169_v62 = vpop.permute.xlu0 %7168  ;;  %v6301_v47 = vpack.c.bf16 %v2473_v59, %v2461_v21  ;;  %v2458_v2 = vsel %vm1028_vm2, %v7160_v6, %v7161_v42  ;;  %v2470_v33 = vsel %vm1041_vm3, %v7165_v41, %v7166_v8  ;;  %v6317_v16 = vpack.c.bf16 %v2471_v48, %v2459_v7 }
 0xc52   : > { %v7176_v14 = vunpack.i.h.bf16 %v7174_v4  ;;  %v7175_v63 = vunpack.i.l.bf16 %v7174_v4  ;;  %v7171_v58 = vunpack.i.h.bf16 %v7169_v62  ;;  %v7170_v0 = vunpack.i.l.bf16 %v7169_v62 }
 0xc53   : > { %6302 = vmatpush1.bf16.msra.mxu0 %v6301_v47  ;;  %v6315_v57 = vpack.c.bf16 %v2470_v33, %v2458_v2 }
 0xc54   : > { %v2482_v28 = vsel %vm1054_vm4, %v7171_v58, %v7176_v14  ;;  %v2484_v26 = vsel %vm1054_vm4, %v7175_v63, %v7170_v0  ;;  %v2483_v59 = vsel %vm1054_vm4, %v7170_v0, %v7171_v58  ;;  %v2485_v42 = vsel %vm1054_vm4, %v7176_v14, %v7175_v63 }
 0xc55   : > { %6316 = vmatprep.subr.bf16.mxu1 %v6315_v57  ;;  %v7184_v8 = vpop.permute.xlu1 %7183  ;;  %v7179_v41 = vpop.permute.xlu0 %7178  ;;  %v6303_v6 = vpack.c.bf16 %v2483_v59, %v9013_v61  ;;  %v6319_v48 = vpack.c.bf16 %v2485_v42, %v9019_v31  ;;  %v6305_v7 = vpack.c.bf16 %v2484_v26, %v9011_v30  ;;  %v6321_v21 = vpack.c.bf16 %v2482_v28, %v9017_v35 }
 0xc56   : > { %6318 = vmatpush1.bf16.msra.mxu1 %v6317_v16  ;;  %v7186_v4 = vunpack.i.h.bf16 %v7184_v8  ;;  %v7185_v62 = vunpack.i.l.bf16 %v7184_v8  ;;  %v7181_v47 = vunpack.i.h.bf16 %v7179_v41  ;;  %v7180_v2 = vunpack.i.l.bf16 %v7179_v41 }
 0xc57   : > { %6304 = vmatprep.subr.bf16.mxu0 %v6303_v6  ;;  %6320 = vmatprep.subr.bf16.mxu1 %v6319_v48 }
 0xc58   : > { %6306 = vmatpush1.bf16.msra.mxu0 %v6305_v7  ;;  %v2495_v33 = vsel %vm1067_vm5, %v7180_v2, %v7181_v47  ;;  %v2507_v61 = vsel %vm10622_vm6, %v7185_v62, %v7186_v4 }
 0xc59   : > { %v7194_v14 = vpop.permute.xlu1 %7193  ;;  %v7189_v31 = vpop.permute.xlu0 %7188  ;;  %v6307_v63 = vpack.c.bf16 %v2507_v61, %v2495_v33 }
 0xc5a   : > { %6322 = vmatpush1.bf16.msra.mxu1 %v6321_v21  ;;  %v7196_v30 = vunpack.i.h.bf16 %v7194_v14  ;;  %v7195_v35 = vunpack.i.l.bf16 %v7194_v14  ;;  %v7191_v16 = vunpack.i.h.bf16 %v7189_v31  ;;  %v7190_v58 = vunpack.i.l.bf16 %v7189_v31 }
 0xc5b   : > { %6308 = vmatprep.subr.bf16.mxu0 %v6307_v63 }
 0xc5c   : > { %v2506_v0 = vsel %vm10622_vm6, %v7186_v4, %v7196_v30  ;;  %v2508_v57 = vsel %vm10622_vm6, %v7195_v35, %v7185_v62  ;;  %v2494_v28 = vsel %vm1067_vm5, %v7181_v47, %v7191_v16  ;;  %v2496_v26 = vsel %vm1067_vm5, %v7190_v58, %v7180_v2  ;;  %v2522_v47 = vld [vmem:[%s8345_s29] sm:$0xff] }
 0xc5d   : > { %v2515_v59 = vpop.permute.xlu1 %2514  ;;  %v2513_v42 = vpop.permute.xlu0 %2512  ;;  %v6309_v8 = vpack.c.bf16 %v2508_v57, %v2496_v26  ;;  %v2497_v41 = vsel %vm1067_vm5, %v7191_v16, %v7190_v58  ;;  %v2509_v6 = vsel %vm10622_vm6, %v7196_v30, %v7195_v35  ;;  %v6325_v48 = vpack.c.bf16 %v2506_v0, %v2494_v28 }
 0xc5e   : > { %v6323_v7 = vpack.c.bf16 %v2509_v6, %v2497_v41  ;;  %v2519_v21 = vsel %vm10621_vm7, %v2513_v42, %v2515_v59  ;;  %v8122_v41 = vld [vmem:[%s8369_s2 + $0x8] sm:$0xff] }
 0xc5f   : > { %6310 = vmatpush1.bf16.msra.mxu0 %v6309_v8 }
 0xc60   : > { %6324 = vmatprep.subr.bf16.mxu1 %v6323_v7  ;;  %2548 = vmatprep.subr.mxu0 %v2519_v21  ;;  %v8123_v7 = vld [vmem:[%s8369_s2 + $0x10] sm:$0xff] }
 0xc61   : > { %6326 = vmatpush1.bf16.msra.mxu1 %v6325_v48  ;;  %v2517_v4 = vpop.permute.xlu1 %2516  ;;  %v2511_v62 = vpop.permute.xlu0 %2510 }
 0xc62   : > { %v2520_v2 = vsel %vm10621_vm7, %v2511_v62, %v2513_v42  ;;  %v2521_v33 = vsel %vm10621_vm7, %v2517_v4, %v2511_v62  ;;  %v2518_v61 = vsel %vm10621_vm7, %v2515_v59, %v2517_v4  ;;  %v8121_v59 = vld [vmem:[%s8369_s2] sm:$0xff]  ;;  %v8124_v4 = vld [vmem:[%s8369_s2 + $0x18] sm:$0xff] }
 0xc63   : > { %2549 = vmatpush1.msra.mxu0 %v2520_v2  ;;  %2619 = vmatprep.subr.mxu1 %v2521_v33 }
 0xc64   : > { %6089 = vmatmul.mubr.msk.f32.vlgmr.msra.gmra.mrb[20].mxu0 %vm1118_vm8, %v2522_v47 }
 0xc65   : > { %2620 = vmatpush1.msra.mxu1 %v2518_v61  ;;  %2876 = vmatprep.mubr.f32.mxu0 %v10670_v27 }
 0xc66   : > { %6090 = vmatmul.mubr.msk.f32.vlgmr.msra.gmra.mrb[20].mxu1 %vm1118_vm8, %v2522_v47 }
 0xc67   : > { %2959 = vmatprep.mubr.f32.mxu1 %v10670_v27 }
 0xc72   : > { %v2527_v14 = vpop.permute.xlu0 %2526 }
 0xd37   : > { %v2598_v31 = vpop.f32.mrb[20].mxu0 }
 0xd38   : > { %v2599_v63 = vadd.f32 %v2598_v31, %v2527_v14  ;;  %v2600_v30 = vpop.f32.mrb[21].mxu0  ;;  %v2786_v31 = vld [vmem:[%s10654_s17 + $0x8] sm:$0xff] }
 0xd39   : > { %v2601_v35 = vadd.f32 %v2600_v30, %v2527_v14  ;;  %v2669_v16 = vpop.f32.mrb[20].mxu1 }
 0xd3a   : > { %v2674_v58 = vmul.f32 %v2599_v63, %v8513_v32  ;;  %v2670_v0 = vadd.f32 %v2669_v16, %v2527_v14  ;;  %v2671_v57 = vpop.f32.mrb[21].mxu1 }
 0xd3b   : > { %v2675_v28 = vmul.f32 %v2601_v35, %v8515_v34  ;;  %v2672_v26 = vadd.f32 %v2671_v57, %v2527_v14  ;;  %v2981_v14 = vld [vmem:[%s10676_s5 + $0x8] sm:$0xff] }
 0xd3c   : > { %v9130_v42 = vsub.f32 %v8121_v59, %v2674_v58  ;;  %v2676_v8 = vmul.f32 %v2670_v0, %v8517_v39 }
 0xd3d   : > { %v9134_v6 = vsub.f32 %v8122_v41, %v2675_v28  ;;  %v2677_v48 = vmul.f32 %v2672_v26, %v8520_v44 }
 0xd3e   : > { %v9138_v21 = vsub.f32 %v8123_v7, %v2676_v8  ;;  %2682 = vst [vmem:[%s9127_s15] sm:$0xff] %v9130_v42 }
 0xd3f   : > { %v9143_v62 = vsub.f32 %v8124_v4, %v2677_v48  ;;  %v7202_v47 = vpack.i.bf16 %v9134_v6, %v9130_v42  ;;  %2683 = vst [vmem:[%s9127_s15 + $0x8] sm:$0xff] %v9134_v6 }
 0xd40   : > { %2684 = vst [vmem:[%s9127_s15 + $0x10] sm:$0xff] %v9138_v21  ;;  %v7237_v61 = vpack.i.bf16 %v9138_v21, %v9134_v6 }
 0xd41   : > { %7203 = vrot.lane.b32.xlu0 %v7202_v47, %s10610_s10  ;;  %7198 = vrot.lane.b32.xlu1 %v7202_v47, %s10674_s1  ;;  %2685 = vst [vmem:[%s9127_s15 + $0x18] sm:$0xff] %v9143_v62  ;;  %v7212_v2 = vpack.i.bf16 %v9143_v62, %v9138_v21  ;;  %v7242_v33 = vpack.i.bf16 %v9143_v62, %v9130_v42 }
 0xd45   : > { %7213 = vrot.lane.b32.xlu0 %v7212_v2, %s10610_s10  ;;  %7208 = vrot.lane.b32.xlu1 %v7212_v2, %s10674_s1 }
 0xd49   : > { %7223 = vrot.lane.b32.xlu0 %v7202_v47, %s10606_s11  ;;  %7218 = vrot.lane.b32.xlu1 %v7202_v47, %s10675_s16 }
 0xd4d   : > { %7233 = vrot.lane.b32.xlu0 %v7212_v2, %s10606_s11  ;;  %7228 = vrot.lane.b32.xlu1 %v7212_v2, %s10675_s16  ;;  %s10678_s11 = sld [smem:[#allocation6_spill]] }
 0xd51   : > { %7243 = vrot.lane.b32.xlu0 %v7242_v33, %s10677_s9  ;;  %7238 = vrot.lane.b32.xlu1 %v7237_v61, %s10677_s9 }
 0xd55   : > { %7253 = vrot.lane.b32.xlu0 %v7237_v61, %s10667_s18  ;;  %7248 = vrot.lane.b32.xlu1 %v7237_v61, %s10672_s7 }
 0xd59   : > { %7263 = vrot.lane.b32.xlu0 %v7242_v33, %s10667_s18  ;;  %7258 = vrot.lane.b32.xlu1 %v7242_v33, %s10672_s7 }
 0xd5d   : > { %2774 = vrot.lane.b32.xlu0 %v9138_v21, %s10668_s23  ;;  %2772 = vrot.lane.b32.xlu1 %v9134_v6, %s10668_s23 }
 0xd61   : > { %2776 = vrot.lane.b32.xlu0 %v9143_v62, %s10668_s23  ;;  %2770 = vrot.lane.b32.xlu1 %v9130_v42, %s10668_s23 }
 0xd65   : > { %2989 = vperm.xlu0 %6915, %v2981_v14   ;;  %2795 = vperm.xlu1 %6916, %v2786_v31  }
 0xdb3   : > { %v7204_v63 = vpop.permute.xlu0 %7203  ;;  %v7199_v30 = vpop.permute.xlu1 %7198 }
 0xdb4   : > { %v7206_v35 = vunpack.i.h.bf16 %v7204_v63  ;;  %v7205_v16 = vunpack.i.l.bf16 %v7204_v63  ;;  %v7201_v58 = vunpack.i.h.bf16 %v7199_v30  ;;  %v7200_v0 = vunpack.i.l.bf16 %v7199_v30 }
 0xdb6   : > { %v2696_v57 = vsel %vm1002_vm0, %v7200_v0, %v7201_v58  ;;  %v2708_v28 = vsel %vm1015_vm1, %v7205_v16, %v7206_v35 }
 0xdb7   : > { %v7214_v26 = vpop.permute.xlu0 %7213  ;;  %v7209_v59 = vpop.permute.xlu1 %7208  ;;  %v6327_v8 = vpack.c.bf16 %v2708_v28, %v2696_v57 }
 0xdb8   : > { %v7216_v41 = vunpack.i.h.bf16 %v7214_v26  ;;  %v7215_v48 = vunpack.i.l.bf16 %v7214_v26  ;;  %v7211_v7 = vunpack.i.h.bf16 %v7209_v59  ;;  %v7210_v4 = vunpack.i.l.bf16 %v7209_v59 }
 0xdb9   : > { %6328 = vmatprep.subr.bf16.mxu0 %v6327_v8 }
 0xdba   : > { %v2707_v47 = vsel %vm1015_vm1, %v7206_v35, %v7215_v48  ;;  %v2709_v2 = vsel %vm1015_vm1, %v7216_v41, %v7205_v16  ;;  %v2695_v33 = vsel %vm1002_vm0, %v7201_v58, %v7210_v4  ;;  %v2697_v61 = vsel %vm1002_vm0, %v7211_v7, %v7200_v0 }
 0xdbb   : > { %v7224_v14 = vpop.permute.xlu0 %7223  ;;  %v7219_v31 = vpop.permute.xlu1 %7218  ;;  %v6329_v63 = vpack.c.bf16 %v2709_v2, %v2697_v61  ;;  %v2694_v30 = vsel %vm1002_vm0, %v7210_v4, %v7211_v7  ;;  %v2706_v57 = vsel %vm1015_vm1, %v7215_v48, %v7216_v41  ;;  %v6345_v28 = vpack.c.bf16 %v2707_v47, %v2695_v33 }
 0xdbc   : > { %v7226_v35 = vunpack.i.h.bf16 %v7224_v14  ;;  %v7225_v26 = vunpack.i.l.bf16 %v7224_v14  ;;  %v7221_v59 = vunpack.i.h.bf16 %v7219_v31  ;;  %v7220_v16 = vunpack.i.l.bf16 %v7219_v31 }
 0xdbd   : > { %6330 = vmatpush1.bf16.msra.mxu0 %v6329_v63  ;;  %v6343_v8 = vpack.c.bf16 %v2706_v57, %v2694_v30 }
 0xdbe   : > { %v2720_v58 = vsel %vm1028_vm2, %v7220_v16, %v7221_v59  ;;  %v2732_v0 = vsel %vm1041_vm3, %v7225_v26, %v7226_v35 }
 0xdbf   : > { %6344 = vmatprep.subr.bf16.mxu1 %v6343_v8  ;;  %v7234_v2 = vpop.permute.xlu0 %7233  ;;  %v7229_v61 = vpop.permute.xlu1 %7228  ;;  %v6331_v7 = vpack.c.bf16 %v2732_v0, %v2720_v58 }
 0xdc0   : > { %6346 = vmatpush1.bf16.msra.mxu1 %v6345_v28  ;;  %v7236_v4 = vunpack.i.h.bf16 %v7234_v2  ;;  %v7235_v41 = vunpack.i.l.bf16 %v7234_v2  ;;  %v7231_v48 = vunpack.i.h.bf16 %v7229_v61  ;;  %v7230_v47 = vunpack.i.l.bf16 %v7229_v61 }
 0xdc1   : > { %6332 = vmatprep.subr.bf16.mxu0 %v6331_v7 }
 0xdc2   : > { %v2731_v33 = vsel %vm1041_vm3, %v7226_v35, %v7235_v41  ;;  %v2733_v14 = vsel %vm1041_vm3, %v7236_v4, %v7225_v26  ;;  %v2719_v31 = vsel %vm1028_vm2, %v7221_v59, %v7230_v47  ;;  %v2721_v63 = vsel %vm1028_vm2, %v7231_v48, %v7220_v16 }
 0xdc3   : > { %v7244_v30 = vpop.permute.xlu0 %7243  ;;  %v7239_v57 = vpop.permute.xlu1 %7238  ;;  %v6333_v28 = vpack.c.bf16 %v2733_v14, %v2721_v63  ;;  %v2718_v8 = vsel %vm1028_vm2, %v7230_v47, %v7231_v48  ;;  %v2730_v58 = vsel %vm1041_vm3, %v7235_v41, %v7236_v4  ;;  %v6349_v0 = vpack.c.bf16 %v2731_v33, %v2719_v31 }
 0xdc4   : > { %v7246_v35 = vunpack.i.h.bf16 %v7244_v30  ;;  %v7245_v2 = vunpack.i.l.bf16 %v7244_v30  ;;  %v7241_v61 = vunpack.i.h.bf16 %v7239_v57  ;;  %v7240_v26 = vunpack.i.l.bf16 %v7239_v57 }
 0xdc5   : > { %6334 = vmatpush1.bf16.msra.mxu0 %v6333_v28  ;;  %v6347_v7 = vpack.c.bf16 %v2730_v58, %v2718_v8 }
 0xdc6   : > { %v2742_v59 = vsel %vm1054_vm4, %v7241_v61, %v7246_v35  ;;  %v2744_v16 = vsel %vm1054_vm4, %v7245_v2, %v7240_v26  ;;  %v2743_v14 = vsel %vm1054_vm4, %v7240_v26, %v7241_v61  ;;  %v2745_v48 = vsel %vm1054_vm4, %v7246_v35, %v7245_v2 }
 0xdc7   : > { %6348 = vmatprep.subr.bf16.mxu1 %v6347_v7  ;;  %v7254_v4 = vpop.permute.xlu0 %7253  ;;  %v7249_v41 = vpop.permute.xlu1 %7248  ;;  %v6335_v47 = vpack.c.bf16 %v2743_v14, %v9134_v6  ;;  %v6351_v33 = vpack.c.bf16 %v2745_v48, %v9143_v62  ;;  %v6337_v31 = vpack.c.bf16 %v2744_v16, %v9130_v42  ;;  %v6353_v63 = vpack.c.bf16 %v2742_v59, %v9138_v21 }
 0xdc8   : > { %6350 = vmatpush1.bf16.msra.mxu1 %v6349_v0  ;;  %v7256_v30 = vunpack.i.h.bf16 %v7254_v4  ;;  %v7255_v57 = vunpack.i.l.bf16 %v7254_v4  ;;  %v7251_v28 = vunpack.i.h.bf16 %v7249_v41  ;;  %v7250_v8 = vunpack.i.l.bf16 %v7249_v41 }
 0xdc9   : > { %6336 = vmatprep.subr.bf16.mxu0 %v6335_v47  ;;  %6352 = vmatprep.subr.bf16.mxu1 %v6351_v33 }
 0xdca   : > { %6338 = vmatpush1.bf16.msra.mxu0 %v6337_v31  ;;  %v2755_v58 = vsel %vm1067_vm5, %v7250_v8, %v7251_v28  ;;  %v2767_v6 = vsel %vm10622_vm6, %v7255_v57, %v7256_v30 }
 0xdcb   : > { %v7264_v35 = vpop.permute.xlu0 %7263  ;;  %v7259_v62 = vpop.permute.xlu1 %7258  ;;  %v6339_v2 = vpack.c.bf16 %v2767_v6, %v2755_v58 }
 0xdcc   : > { %6354 = vmatpush1.bf16.msra.mxu1 %v6353_v63  ;;  %v7266_v42 = vunpack.i.h.bf16 %v7264_v35  ;;  %v7265_v21 = vunpack.i.l.bf16 %v7264_v35  ;;  %v7261_v0 = vunpack.i.h.bf16 %v7259_v62  ;;  %v7260_v61 = vunpack.i.l.bf16 %v7259_v62  ;;  %v2783_v35 = vld [vmem:[%s10658_s13 + $0x8] sm:$0xff] }
 0xdcd   : > { %6340 = vmatprep.subr.bf16.mxu0 %v6339_v2 }
 0xdce   : > { %v2766_v26 = vsel %vm10622_vm6, %v7256_v30, %v7266_v42  ;;  %v2768_v7 = vsel %vm10622_vm6, %v7265_v21, %v7255_v57  ;;  %v2754_v59 = vsel %vm1067_vm5, %v7251_v28, %v7261_v0  ;;  %v2756_v16 = vsel %vm1067_vm5, %v7260_v61, %v7250_v8  ;;  %v2782_v28 = vld [vmem:[%s10658_s13] sm:$0xff] }
 0xdcf   : > { %v2775_v14 = vpop.permute.xlu0 %2774  ;;  %v2773_v48 = vpop.permute.xlu1 %2772  ;;  %v6341_v4 = vpack.c.bf16 %v2768_v7, %v2756_v16  ;;  %v2757_v41 = vsel %vm1067_vm5, %v7261_v0, %v7260_v61  ;;  %v2769_v47 = vsel %vm10622_vm6, %v7266_v42, %v7265_v21  ;;  %v6357_v33 = vpack.c.bf16 %v2766_v26, %v2754_v59 }
 0xdd0   : > { %v6355_v31 = vpack.c.bf16 %v2769_v47, %v2757_v41  ;;  %v2779_v63 = vsel %vm10621_vm7, %v2773_v48, %v2775_v14 }
 0xdd1   : > { %6342 = vmatpush1.bf16.msra.mxu0 %v6341_v4 }
 0xdd2   : > { %6356 = vmatprep.subr.bf16.mxu1 %v6355_v31  ;;  %2828 = vmatprep.subr.mxu0 %v2779_v63 }
 0xdd3   : > { %6358 = vmatpush1.bf16.msra.mxu1 %v6357_v33  ;;  %v2777_v30 = vpop.permute.xlu0 %2776  ;;  %v2771_v57 = vpop.permute.xlu1 %2770 }
 0xdd4   : > { %v2780_v8 = vsel %vm10621_vm7, %v2771_v57, %v2773_v48  ;;  %v2781_v58 = vsel %vm10621_vm7, %v2777_v30, %v2771_v57  ;;  %v2778_v6 = vsel %vm10621_vm7, %v2775_v14, %v2777_v30 }
 0xdd5   : > { %2829 = vmatpush1.msra.mxu0 %v2780_v8  ;;  %2911 = vmatprep.subr.mxu1 %v2781_v58  ;;  %v2980_v58 = vld [vmem:[%s10676_s5] sm:$0xff]  ;;  %s10684_s5 = smov 20  }
 0xdd6   : > { %6360 = vmatprep.subr.bf16.mxu0 %v8573_v40  ;;  %6091 = vmatmul.mubr.msk.f32.vlgmr.msra.gmra.mrb[22].mxu0 %vm1118_vm8, %v2782_v28  ;;  %v2784_v40 = vld [vmem:[%s10658_s13 + $0x10] sm:$0xff]  ;;  %s10680_s13 = sld [smem:[#allocation9_spill]] }
 0xdd7   : > { %2912 = vmatpush1.msra.mxu1 %v2778_v6  ;;  %6362 = vmatpush1.bf16.msra.mxu0 %v8584_v52  ;;  %v2978_v52 = vld [vmem:[%s10678_s11] sm:$0xff] }
 0xdd8   : > { %6376 = vmatprep.subr.bf16.mxu1 %v8593_v60  ;;  %6094 = vmatmul.mubr.msk.f32.vlgmr.msra.gmra.mrb[22].mxu1 %vm1118_vm8, %v2782_v28  ;;  %v2785_v6 = vld [vmem:[%s10654_s17] sm:$0xff] }
 0xdd9   : > { %6364 = vmatprep.subr.bf16.mxu0 %v8600_v5  ;;  %6378 = vmatpush1.bf16.msra.mxu1 %v8590_v55  ;;  %v2979_v55 = vld [vmem:[%s10678_s11 + $0x8] sm:$0xff]  ;;  %s10679_s11 = smov 1  }
 0xdda   : > { %6380 = vmatprep.subr.bf16.mxu1 %v8621_v29  ;;  %2882 = vmatprep.mubr.f32.mxu0 %v10670_v27 }
 0xddb   : > { %6366 = vmatpush1.bf16.msra.mxu0 %v8612_v19  ;;  %2965 = vmatprep.mubr.f32.mxu1 %v10670_v27 }
 0xddc   : > { %6368 = vmatprep.subr.bf16.mxu0 %v8633_v36  ;;  %6092 = vmatmul.mubr.msk.f32.gmra.mrb[24].mxu0 %vm1118_vm8, %v2783_v35 }
 0xddd   : > { %6382 = vmatpush1.bf16.msra.mxu1 %v8618_v24  ;;  %2888 = vmatprep.mubr.f32.mxu0 %v10670_v27 }
 0xdde   : > { %6384 = vmatprep.subr.bf16.mxu1 %v8636_v37  ;;  %6095 = vmatmul.mubr.msk.f32.gmra.mrb[24].mxu1 %vm1118_vm8, %v2783_v35  ;;  %v3309_v35 = vld [vmem:[%s10680_s13] sm:$0xff]  ;;  %s10681_s13 = sld [smem:[#allocation8_spill]] }
 0xddf   : > { %6370 = vmatpush1.bf16.msra.mxu0 %v8639_v12  ;;  %2971 = vmatprep.mubr.f32.mxu1 %v10670_v27 }
 0xde0   : > { %6372 = vmatprep.subr.bf16.mxu0 %v8652_v50  ;;  %6093 = vmatmul.mubr.msk.f32.gmra.mrb[26].mxu0 %vm1118_vm8, %v2784_v40 }
 0xde1   : > { %6386 = vmatpush1.bf16.msra.mxu1 %v8642_v38  ;;  %3062 = vmatprep.mubr.f32.mxu0 %v10670_v27 }
 0xde2   : > { %6388 = vmatprep.subr.bf16.mxu1 %v8672_v10  ;;  %6096 = vmatmul.mubr.msk.f32.gmra.mrb[26].mxu1 %vm1118_vm8, %v2784_v40  ;;  %v2787_v40 = vld [vmem:[%s10654_s17 + $0x10] sm:$0xff]  ;;  %s10693_s17 = smov 90  }
 0xde3   : > { %6374 = vmatpush1.bf16.msra.mxu0 %v8664_v3  ;;  %3139 = vmatprep.mubr.f32.mxu1 %v10670_v27 }
 0xde4   : > { %3014 = vmatprep.subr.mxu0 %v8676_v11  ;;  %v2990_v60 = vpop.permute.xlu0 %2989  ;;  %v2796_v5 = vpop.permute.xlu1 %2795 }
 0xde5   : > { %6390 = vmatpush1.bf16.msra.mxu1 %v8670_v9  ;;  %v6683_v36 = vadd.f32 %v2990_v60, %v2796_v5 }
 0xde6   : > { %3091 = vmatprep.subr.mxu1 %v8689_v18 }
 0xde7   : > { %3015 = vmatpush1.msra.mxu0 %v8685_v17 }
 0xde8   : > { %6097 = vmatmul.mubr.msk.f32.vlgmr.msra.gmra.mrb[22].mxu0 %vm1118_vm8, %v2978_v52 }
 0xde9   : > { %3092 = vmatpush1.msra.mxu1 %v8693_v20  ;;  %3068 = vmatprep.mubr.f32.mxu0 %v10670_v27 }
 0xdea   : > { %6099 = vmatmul.mubr.msk.f32.vlgmr.msra.gmra.mrb[22].mxu1 %vm1118_vm8, %v2978_v52 }
 0xdeb   : > { %3145 = vmatprep.mubr.f32.mxu1 %v10670_v27 }
 0xdec   : > { %6098 = vmatmul.mubr.msk.f32.gmra.mrb[24].mxu0 %vm1118_vm8, %v2979_v55 }
 0xded   : > { %3382 = vmatprep.mubr.f32.mxu0 %v10670_v27 }
 0xdee   : > { %6100 = vmatmul.mubr.msk.f32.gmra.mrb[24].mxu1 %vm1118_vm8, %v2979_v55 }
 0xdef   : > { %3453 = vmatprep.mubr.f32.mxu1 %v10670_v27 }
 0xebb   : > { %v9296_v19 = vpop.f32.mrb[22].mxu0 }
 0xebc   : > { %v9298_v24 = vpop.f32.mrb[23].mxu0 }
 0xebd   : > { %v9300_v29 = vpop.f32.mrb[22].mxu1 }
 0xebe   : > { %v9302_v37 = vpop.f32.mrb[23].mxu1 }
 0xebf   : > { %v3070_v12 = vpop.f32.mrb[24].mxu0 }
 0xec0   : > { %v6684_v38 = vadd.f32 %v6683_v36, %v3070_v12  ;;  %v3072_v50 = vpop.f32.mrb[25].mxu0 }
 0xec1   : > { %v6686_v3 = vadd.f32 %v6683_v36, %v3072_v50  ;;  %v3147_v9 = vpop.f32.mrb[24].mxu1 }
 0xec2   : > { %v6105_v10 = vmul.f32 -1.442695, %v6684_v38  ;;  %v6696_v11 = vadd.f32 %v6683_v36, %v3147_v9  ;;  %v3149_v17 = vpop.f32.mrb[25].mxu1 }
 0xec3   : > { %v6106_v18 = vmul.f32 -1.442695, %v6686_v3  ;;  %v6698_v20 = vadd.f32 %v6683_v36, %v3149_v17 }
 0xec4   : > { %7985 = vpow2.f32 %v6105_v10  ;;  %v6107_v62 = vmul.f32 -1.442695, %v6696_v11 }
 0xec5   : > { %7987 = vpow2.f32 %v6106_v18  ;;  %v6108_v2 = vmul.f32 -1.442695, %v6698_v20 }
 0xec6   : > { %7989 = vpow2.f32 %v6107_v62 }
 0xec7   : > { %7991 = vpow2.f32 %v6108_v2 }
 0xece   : > { %v7986_v42 = vpop.eup %7985 }
 0xecf   : > { %v7988_v21 = vpop.eup %7987  ;;  %v3196_v0 = vadd.f32 1.0, %v7986_v42 }
 0xed0   : > { %v7990_v61 = vpop.eup %7989  ;;  %v3197_v26 = vadd.f32 1.0, %v7988_v21 }
 0xed1   : > { %v7992_v7 = vpop.eup %7991  ;;  %7993 = vrcp.f32 %v3196_v0  ;;  %v3198_v59 = vadd.f32 1.0, %v7990_v61 }
 0xed2   : > { %7995 = vrcp.f32 %v3197_v26  ;;  %v3199_v16 = vadd.f32 1.0, %v7992_v7 }
 0xed3   : > { %7997 = vrcp.f32 %v3198_v59 }
 0xed4   : > { %7999 = vrcp.f32 %v3199_v16 }
 0xedb   : > { %v7994_v14 = vpop.eup %7993 }
 0xedc   : > { %v7996_v48 = vpop.eup %7995  ;;  %v9305_v4 = vmul.f32 %v7994_v14, %v8529_v22 }
 0xedd   : > { %v7998_v41 = vpop.eup %7997  ;;  %v9308_v47 = vmul.f32 %v7996_v48, %v8531_v23 }
 0xede   : > { %v8000_v33 = vpop.eup %7999  ;;  %v9311_v31 = vmul.f32 %v7998_v41, %v8535_v1 }
 0xedf   : > { %v9314_v63 = vmul.f32 %v8000_v33, %v8537_v25  ;;  %v7272_v30 = vpack.i.bf16 %v9308_v47, %v9305_v4 }
 0xee0   : > { %v7307_v8 = vpack.i.bf16 %v9311_v31, %v9308_v47 }
 0xee1   : > { %7273 = vrot.lane.b32.xlu0 %v7272_v30, %s10610_s10  ;;  %7268 = vrot.lane.b32.xlu1 %v7272_v30, %s10674_s1  ;;  %v7282_v57 = vpack.i.bf16 %v9311_v31, %v9314_v63  ;;  %v7312_v28 = vpack.i.bf16 %v9314_v63, %v9305_v4 }
 0xee5   : > { %7283 = vrot.lane.b32.xlu0 %v7282_v57, %s10610_s10  ;;  %7278 = vrot.lane.b32.xlu1 %v7282_v57, %s10674_s1 }
 0xee9   : > { %7293 = vrot.lane.b32.xlu0 %v7272_v30, %s10679_s11  ;;  %7288 = vrot.lane.b32.xlu1 %v7272_v30, %s10675_s16 }
 0xeed   : > { %7303 = vrot.lane.b32.xlu0 %v7282_v57, %s10679_s11  ;;  %7298 = vrot.lane.b32.xlu1 %v7282_v57, %s10675_s16 }
 0xef1   : > { %7313 = vrot.lane.b32.xlu0 %v7312_v28, %s10677_s9  ;;  %7308 = vrot.lane.b32.xlu1 %v7307_v8, %s10677_s9 }
 0xef5   : > { %7323 = vrot.lane.b32.xlu0 %v7307_v8, %s10667_s18  ;;  %7318 = vrot.lane.b32.xlu1 %v7307_v8, %s10672_s7 }
 0xef9   : > { %7333 = vrot.lane.b32.xlu0 %v7312_v28, %s10667_s18  ;;  %7328 = vrot.lane.b32.xlu1 %v7312_v28, %s10672_s7 }
 0xefd   : > { %3300 = vrot.lane.b32.xlu0 %v9311_v31, %s10668_s23  ;;  %3298 = vrot.lane.b32.xlu1 %v9308_v47, %s10668_s23 }
 0xf01   : > { %3302 = vrot.lane.b32.xlu0 %v9314_v63, %s10668_s23  ;;  %3296 = vrot.lane.b32.xlu1 %v9305_v4, %s10668_s23 }
 0xf05   : > { %2984 = vperm.xlu0 %6915, %v2980_v58   ;;  %2790 = vperm.xlu1 %6916, %v2785_v6  }
 0xf09   : > { %3312 = vperm.xlu0 %6915, %v3309_v35   ;;  %2800 = vperm.xlu1 %6916, %v2787_v40  }
 0xf53   : > { %v7274_v52 = vpop.permute.xlu0 %7273  ;;  %v7269_v55 = vpop.permute.xlu1 %7268 }
 0xf54   : > { %v7276_v60 = vunpack.i.h.bf16 %v7274_v52  ;;  %v7275_v5 = vunpack.i.l.bf16 %v7274_v52  ;;  %v7271_v36 = vunpack.i.h.bf16 %v7269_v55  ;;  %v7270_v12 = vunpack.i.l.bf16 %v7269_v55 }
 0xf56   : > { %v3222_v38 = vsel %vm1002_vm0, %v7270_v12, %v7271_v36  ;;  %v3234_v50 = vsel %vm1015_vm1, %v7275_v5, %v7276_v60 }
 0xf57   : > { %v7284_v3 = vpop.permute.xlu0 %7283  ;;  %v7279_v9 = vpop.permute.xlu1 %7278  ;;  %v6391_v10 = vpack.c.bf16 %v3234_v50, %v3222_v38 }
 0xf58   : > { %v7286_v11 = vunpack.i.h.bf16 %v7284_v3  ;;  %v7285_v17 = vunpack.i.l.bf16 %v7284_v3  ;;  %v7281_v18 = vunpack.i.h.bf16 %v7279_v9  ;;  %v7280_v20 = vunpack.i.l.bf16 %v7279_v9 }
 0xf59   : > { %6392 = vmatprep.subr.bf16.mxu0 %v6391_v10 }
 0xf5a   : > { %v3233_v62 = vsel %vm1015_vm1, %v7276_v60, %v7286_v11  ;;  %v3235_v2 = vsel %vm1015_vm1, %v7285_v17, %v7275_v5  ;;  %v3221_v42 = vsel %vm1002_vm0, %v7271_v36, %v7281_v18  ;;  %v3223_v21 = vsel %vm1002_vm0, %v7280_v20, %v7270_v12 }
 0xf5b   : > { %v7294_v0 = vpop.permute.xlu0 %7293  ;;  %v7289_v61 = vpop.permute.xlu1 %7288  ;;  %v6393_v26 = vpack.c.bf16 %v3235_v2, %v3223_v21  ;;  %v3220_v7 = vsel %vm1002_vm0, %v7281_v18, %v7280_v20  ;;  %v3232_v59 = vsel %vm1015_vm1, %v7286_v11, %v7285_v17  ;;  %v6409_v16 = vpack.c.bf16 %v3233_v62, %v3221_v42 }
 0xf5c   : > { %v7296_v14 = vunpack.i.h.bf16 %v7294_v0  ;;  %v7295_v48 = vunpack.i.l.bf16 %v7294_v0  ;;  %v7291_v41 = vunpack.i.h.bf16 %v7289_v61  ;;  %v7290_v33 = vunpack.i.l.bf16 %v7289_v61 }
 0xf5d   : > { %6394 = vmatpush1.bf16.msra.mxu0 %v6393_v26  ;;  %v6407_v30 = vpack.c.bf16 %v3232_v59, %v3220_v7 }
 0xf5e   : > { %v3246_v57 = vsel %vm1028_vm2, %v7290_v33, %v7291_v41  ;;  %v3258_v28 = vsel %vm1041_vm3, %v7295_v48, %v7296_v14 }
 0xf5f   : > { %6408 = vmatprep.subr.bf16.mxu1 %v6407_v30  ;;  %v7304_v8 = vpop.permute.xlu0 %7303  ;;  %v7299_v58 = vpop.permute.xlu1 %7298  ;;  %v6395_v6 = vpack.c.bf16 %v3258_v28, %v3246_v57 }
 0xf60   : > { %6410 = vmatpush1.bf16.msra.mxu1 %v6409_v16  ;;  %v7306_v35 = vunpack.i.h.bf16 %v7304_v8  ;;  %v7305_v40 = vunpack.i.l.bf16 %v7304_v8  ;;  %v7301_v52 = vunpack.i.h.bf16 %v7299_v58  ;;  %v7300_v55 = vunpack.i.l.bf16 %v7299_v58 }
 0xf61   : > { %6396 = vmatprep.subr.bf16.mxu0 %v6395_v6 }
 0xf62   : > { %v3257_v60 = vsel %vm1041_vm3, %v7296_v14, %v7306_v35  ;;  %v3259_v5 = vsel %vm1041_vm3, %v7305_v40, %v7295_v48  ;;  %v3245_v36 = vsel %vm1028_vm2, %v7291_v41, %v7301_v52  ;;  %v3247_v12 = vsel %vm1028_vm2, %v7300_v55, %v7290_v33 }
 0xf63   : > { %v7314_v38 = vpop.permute.xlu0 %7313  ;;  %v7309_v50 = vpop.permute.xlu1 %7308  ;;  %v6397_v3 = vpack.c.bf16 %v3259_v5, %v3247_v12  ;;  %v3244_v9 = vsel %vm1028_vm2, %v7301_v52, %v7300_v55  ;;  %v3256_v10 = vsel %vm1041_vm3, %v7306_v35, %v7305_v40  ;;  %v6413_v11 = vpack.c.bf16 %v3257_v60, %v3245_v36 }
 0xf64   : > { %v7316_v17 = vunpack.i.h.bf16 %v7314_v38  ;;  %v7315_v18 = vunpack.i.l.bf16 %v7314_v38  ;;  %v7311_v20 = vunpack.i.h.bf16 %v7309_v50  ;;  %v7310_v62 = vunpack.i.l.bf16 %v7309_v50 }
 0xf65   : > { %6398 = vmatpush1.bf16.msra.mxu0 %v6397_v3  ;;  %v6411_v2 = vpack.c.bf16 %v3256_v10, %v3244_v9 }
 0xf66   : > { %v3268_v42 = vsel %vm1054_vm4, %v7311_v20, %v7316_v17  ;;  %v3270_v21 = vsel %vm1054_vm4, %v7315_v18, %v7310_v62  ;;  %v3269_v0 = vsel %vm1054_vm4, %v7310_v62, %v7311_v20  ;;  %v3271_v61 = vsel %vm1054_vm4, %v7316_v17, %v7315_v18  ;;  %v3308_v18 = vld [vmem:[%s10681_s13] sm:$0xff]  ;;  %s10682_s13 = sld [smem:[#allocation15_spill]] }
 0xf67   : > { %6412 = vmatprep.subr.bf16.mxu1 %v6411_v2  ;;  %v7324_v26 = vpop.permute.xlu0 %7323  ;;  %v7319_v7 = vpop.permute.xlu1 %7318  ;;  %v6399_v59 = vpack.c.bf16 %v3269_v0, %v9308_v47  ;;  %v6415_v16 = vpack.c.bf16 %v3271_v61, %v9314_v63  ;;  %v6401_v14 = vpack.c.bf16 %v3270_v21, %v9305_v4  ;;  %v6417_v48 = vpack.c.bf16 %v3268_v42, %v9311_v31 }
 0xf68   : > { %6414 = vmatpush1.bf16.msra.mxu1 %v6413_v11  ;;  %v7326_v41 = vunpack.i.h.bf16 %v7324_v26  ;;  %v7325_v33 = vunpack.i.l.bf16 %v7324_v26  ;;  %v7321_v30 = vunpack.i.h.bf16 %v7319_v7  ;;  %v7320_v57 = vunpack.i.l.bf16 %v7319_v7 }
 0xf69   : > { %6400 = vmatprep.subr.bf16.mxu0 %v6399_v59  ;;  %6416 = vmatprep.subr.bf16.mxu1 %v6415_v16 }
 0xf6a   : > { %6402 = vmatpush1.bf16.msra.mxu0 %v6401_v14  ;;  %v3281_v28 = vsel %vm1067_vm5, %v7320_v57, %v7321_v30  ;;  %v3293_v47 = vsel %vm10622_vm6, %v7325_v33, %v7326_v41 }
 0xf6b   : > { %v7334_v8 = vpop.permute.xlu0 %7333  ;;  %v7329_v63 = vpop.permute.xlu1 %7328  ;;  %v6403_v58 = vpack.c.bf16 %v3293_v47, %v3281_v28 }
 0xf6c   : > { %6418 = vmatpush1.bf16.msra.mxu1 %v6417_v48  ;;  %v7336_v4 = vunpack.i.h.bf16 %v7334_v8  ;;  %v7335_v31 = vunpack.i.l.bf16 %v7334_v8  ;;  %v7331_v6 = vunpack.i.h.bf16 %v7329_v63  ;;  %v7330_v35 = vunpack.i.l.bf16 %v7329_v63 }
 0xf6d   : > { %6404 = vmatprep.subr.bf16.mxu0 %v6403_v58 }
 0xf6e   : > { %v3292_v40 = vsel %vm10622_vm6, %v7326_v41, %v7336_v4  ;;  %v3294_v52 = vsel %vm10622_vm6, %v7335_v31, %v7325_v33  ;;  %v3280_v55 = vsel %vm1067_vm5, %v7321_v30, %v7331_v6  ;;  %v3282_v60 = vsel %vm1067_vm5, %v7330_v35, %v7320_v57 }
 0xf6f   : > { %v3301_v5 = vpop.permute.xlu0 %3300  ;;  %v3299_v36 = vpop.permute.xlu1 %3298  ;;  %v6405_v12 = vpack.c.bf16 %v3294_v52, %v3282_v60  ;;  %v3283_v38 = vsel %vm1067_vm5, %v7331_v6, %v7330_v35  ;;  %v3295_v50 = vsel %vm10622_vm6, %v7336_v4, %v7335_v31  ;;  %v6421_v3 = vpack.c.bf16 %v3292_v40, %v3280_v55 }
 0xf70   : > { %v6419_v9 = vpack.c.bf16 %v3295_v50, %v3283_v38  ;;  %v3305_v10 = vsel %vm10621_vm7, %v3299_v36, %v3301_v5 }
 0xf71   : > { %6406 = vmatpush1.bf16.msra.mxu0 %v6405_v12 }
 0xf72   : > { %6420 = vmatprep.subr.bf16.mxu1 %v6419_v9  ;;  %3334 = vmatprep.subr.mxu0 %v3305_v10 }
 0xf73   : > { %6422 = vmatpush1.bf16.msra.mxu1 %v6421_v3  ;;  %v3303_v11 = vpop.permute.xlu0 %3302  ;;  %v3297_v17 = vpop.permute.xlu1 %3296 }
 0xf74   : > { %v3306_v20 = vsel %vm10621_vm7, %v3297_v17, %v3299_v36  ;;  %v3307_v62 = vsel %vm10621_vm7, %v3303_v11, %v3297_v17  ;;  %v3304_v2 = vsel %vm10621_vm7, %v3301_v5, %v3303_v11 }
 0xf75   : > { %3335 = vmatpush1.msra.mxu0 %v3306_v20  ;;  %3405 = vmatprep.subr.mxu1 %v3307_v62 }
 0xf76   : > { %6109 = vmatmul.mubr.msk.f32.vlgmr.msra.gmra.mrb[26].mxu0 %vm1118_vm8, %v3308_v18 }
 0xf77   : > { %3406 = vmatpush1.msra.mxu1 %v3304_v2  ;;  %3717 = vmatprep.mubr.f32.mxu0 %v10670_v27 }
 0xf78   : > { %6110 = vmatmul.mubr.msk.f32.vlgmr.msra.gmra.mrb[26].mxu1 %vm1118_vm8, %v3308_v18 }
 0xf79   : > { %3800 = vmatprep.mubr.f32.mxu1 %v10670_v27 }
 0xf84   : > { %v2985_v42 = vpop.permute.xlu0 %2984  ;;  %v2791_v21 = vpop.permute.xlu1 %2790 }
 0xf85   : > { %v6679_v0 = vadd.f32 %v2985_v42, %v2791_v21 }
 0xf87   : > { %v6680_v61 = vadd.f32 %v6679_v0, %v9296_v19  ;;  %v6682_v26 = vadd.f32 %v6679_v0, %v9298_v24  ;;  %v6692_v16 = vadd.f32 %v6679_v0, %v9300_v29  ;;  %v6694_v14 = vadd.f32 %v6679_v0, %v9302_v37 }
 0xf88   : > { %v3313_v57 = vpop.permute.xlu0 %3312  ;;  %v2801_v28 = vpop.permute.xlu1 %2800 }
 0xf89   : > { %v6101_v7 = vmul.f32 -1.442695, %v6680_v61  ;;  %v6102_v59 = vmul.f32 -1.442695, %v6682_v26  ;;  %v6103_v48 = vmul.f32 -1.442695, %v6692_v16  ;;  %v6687_v8 = vadd.f32 %v3313_v57, %v2801_v28 }
 0xf8a   : > { %v6104_v41 = vmul.f32 -1.442695, %v6694_v14 }
 0xf8b   : > { %8001 = vpow2.f32 %v6101_v7 }
 0xf8c   : > { %8003 = vpow2.f32 %v6102_v59 }
 0xf8d   : > { %8005 = vpow2.f32 %v6103_v48 }
 0xf8e   : > { %8007 = vpow2.f32 %v6104_v41 }
 0xf95   : > { %v8002_v33 = vpop.eup %8001 }
 0xf96   : > { %v8004_v30 = vpop.eup %8003  ;;  %v3168_v47 = vadd.f32 1.0, %v8002_v33 }
 0xf97   : > { %v3169_v19 = vadd.f32 1.0, %v8004_v30  ;;  %v8006_v24 = vpop.eup %8005 }
 0xf98   : > { %v8008_v58 = vpop.eup %8007  ;;  %8009 = vrcp.f32 %v3168_v47  ;;  %v3170_v6 = vadd.f32 1.0, %v8006_v24 }
 0xf99   : > { %8011 = vrcp.f32 %v3169_v19  ;;  %v3171_v52 = vadd.f32 1.0, %v8008_v58  ;;  %v3500_v58 = vld [vmem:[%s10656_s14] sm:$0xff]  ;;  %s10691_s14 = smov 2  }
 0xfa2   : > { %v8010_v60 = vpop.eup %8009 }
 0xfa3   : > { %v8012_v5 = vpop.eup %8011 }
0x1049   : > { %v3384_v63 = vpop.f32.mrb[26].mxu0 }
0x104a   : > { %v6688_v29 = vadd.f32 %v6687_v8, %v3384_v63  ;;  %v3386_v4 = vpop.f32.mrb[27].mxu0 }
0x104b   : > { %v6690_v37 = vadd.f32 %v6687_v8, %v3386_v4  ;;  %v3455_v31 = vpop.f32.mrb[26].mxu1 }
0x104c   : > { %8013 = vtanh.f32 %v6688_v29  ;;  %v6700_v35 = vadd.f32 %v6687_v8, %v3455_v31  ;;  %v3457_v40 = vpop.f32.mrb[27].mxu1 }
0x104d   : > { %8015 = vtanh.f32 %v6690_v37  ;;  %v6702_v55 = vadd.f32 %v6687_v8, %v3457_v40 }
0x104e   : > { %8017 = vtanh.f32 %v6700_v35 }
0x104f   : > { %8019 = vtanh.f32 %v6702_v55 }
0x1050   : > { %8021 = vrcp.f32 %v3170_v6 }
0x1051   : > { %8023 = vrcp.f32 %v3171_v52 }
0x1056   : > { %v8014_v36 = vpop.eup %8013 }
0x1057   : > { %v8016_v12 = vpop.eup %8015  ;;  %v3468_v38 = vsub.f32 %v8014_v36, %v8529_v22 }
0x1058   : > { %v8018_v50 = vpop.eup %8017  ;;  %v3469_v3 = vsub.f32 %v8016_v12, %v8531_v23 }
0x1059   : > { %v8020_v9 = vpop.eup %8019  ;;  %v3470_v10 = vsub.f32 %v8018_v50, %v8535_v1  ;;  %v3472_v11 = vmul.f32 %v8010_v60, %v3468_v38 }
0x105a   : > { %v8022_v17 = vpop.eup %8021  ;;  %v3471_v18 = vsub.f32 %v8020_v9, %v8537_v25  ;;  %v3473_v20 = vmul.f32 %v8012_v5, %v3469_v3 }
0x105b   : > { %v8024_v62 = vpop.eup %8023  ;;  %v3474_v2 = vmul.f32 %v8022_v17, %v3470_v10  ;;  %v3476_v42 = vadd.f32 %v3472_v11, %v8529_v22  ;;  %v7347_v22 = vpack.i.bf16 %v8730_v46, %v8728_v43 }
0x105c   : > { %v3475_v21 = vmul.f32 %v8024_v62, %v3471_v18  ;;  %v3477_v0 = vadd.f32 %v3473_v20, %v8531_v23  ;;  %v3490_v23 = vld [vmem:[%s10657_s8] sm:$0xff]  ;;  %s10685_s8 = sld [smem:[#allocation17_spill]] }
0x105d   : > { %v3478_v61 = vadd.f32 %v3474_v2, %v8535_v1  ;;  %v3480_v26 = vmul.f32 %v3476_v42, %v8513_v32  ;;  %v3627_v2 = vld [vmem:[%s10652_s24 + $0x8] sm:$0xff] }
0x105e   : > { %v3479_v7 = vadd.f32 %v3475_v21, %v8537_v25  ;;  %v3481_v59 = vmul.f32 %v3477_v0, %v8515_v34 }
0x105f   : > { %v3482_v16 = vmul.f32 %v3478_v61, %v8517_v39 }
0x1060   : > { %v3484_v14 = vadd.f32 %v3481_v59, %v3480_v26  ;;  %v3483_v48 = vmul.f32 %v3479_v7, %v8520_v44 }
0x1062   : > { %v3485_v41 = vadd.f32 %v3484_v14, %v3482_v16 }
0x1064   : > { %v3486_v33 = vadd.f32 %v3485_v41, %v3483_v48 }
0x1066   : > { %3487 = vadd.xlane.f32.xlu1 %v3486_v33 }
0x1077   : > { %7338 = vrot.lane.b32.xlu1 %v8726_v54, %s10674_s1 }
0x107b   : > { %7348 = vrot.lane.b32.xlu1 %v7347_v22, %s10674_s1 }
0x107f   : > { %7358 = vrot.lane.b32.xlu1 %v8726_v54, %s10675_s16 }
0x1083   : > { %7368 = vrot.lane.b32.xlu1 %v7347_v22, %s10675_s16 }
0x10f3   : > { %v3488_v1 = vpop.xlane.xlu1 %3487 }
0x10f4   : > { %v3489_v25 = vmul.f32 0.00390625, %v3488_v1 }
0x10f6   : > { %v3491_v30 = vmul.f32 %v3490_v23, %v3489_v25 }
0x10f7   : > { %v9517_v42 = vpop.permute.xlu1 %7338 }
0x10f8   : > { %v3492_v57 = vsel %vm1355_vm9, %v3491_v30, 0.0 }
0x10f9   : > { %v3493_v28 = vrot.slane %v3492_v57, 4 }
0x10fb   : > { %v3494_v47 = vadd.f32 %v3493_v28, %v3492_v57 }
0x10fd   : > { %v3495_v19 = vrot.slane %v3494_v47, 2 }
0x10ff   : > { %v3496_v8 = vadd.f32 %v3495_v19, %v3494_v47 }
0x1101   : > { %v3497_v24 = vrot.slane %v3496_v8, 1 }
0x1103   : > { %v3498_v63 = vadd.f32 %v3497_v24, %v3496_v8 }
0x1105   : > { %v3499_v29 = vmax.f32 %v3498_v63, 0.0 }
0x1107   : > { %v3501_v4 = vmul.f32 %v3500_v58, %v3499_v29 }
0x1109   : > { %v3502_v37 = vsel %vm1355_vm9, %v3501_v4, 0.0 }
0x110a   : > { %3503 = vadd.xlane.f32.xlu0 %v3502_v37 }
0x1120   : > { %7343 = vrot.lane.b32.xlu0 %v8726_v54, %s10610_s10 }
0x1124   : > { %7353 = vrot.lane.b32.xlu0 %v7347_v22, %s10610_s10 }
0x1128   : > { %7363 = vrot.lane.b32.xlu0 %v8726_v54, %s10679_s11 }
0x112c   : > { %7373 = vrot.lane.b32.xlu0 %v7347_v22, %s10679_s11 }
0x1197   : > { %v3504_v31 = vpop.xlane.xlu0 %3503 }
0x1198   : > { %v6111_v6 = vmul.f32 -1.442695, %v3504_v31 }
0x119a   : > { %8025 = vpow2.f32 %v6111_v6 }
0x119b   : > { %v9519_v21 = vpop.permute.xlu0 %7343 }
0x119f   : > { %v9523_v0 = vpop.permute.xlu0 %7353 }
0x11a4   : > { %v8026_v35 = vpop.eup %8025 }
0x11a5   : > { %v3508_v40 = vadd.f32 1.0, %v8026_v35 }
0x11a7   : > { %8027 = vrcp.f32 %v3508_v40 }
0x11b1   : > { %v8028_v52 = vpop.eup %8027 }
0x11b2   : > { %v3511_v55 = vmul.f32 %v8028_v52, %v3480_v26  ;;  %v3512_v60 = vmul.f32 %v8028_v52, %v3481_v59  ;;  %v3513_v5 = vmul.f32 %v8028_v52, %v3482_v16  ;;  %v3514_v36 = vmul.f32 %v8028_v52, %v3483_v48  ;;  %v9527_v26 = vpop.permute.xlu0 %7363 }
0x11b4   : > { %vm3515_vm13 = vcmp.ge.f32.partialorder %v3511_v55, 0.0  ;;  %vm3516_vm15 = vcmp.ge.f32.partialorder %v3512_v60, 0.0  ;;  %v3519_v12 = vmul.f32 0.2, %v3511_v55  ;;  %v3520_v38 = vmul.f32 0.2, %v3512_v60 }
0x11b5   : > { %vm3517_vm10 = vcmp.ge.f32.partialorder %v3513_v5, 0.0  ;;  %vm3518_vm11 = vcmp.ge.f32.partialorder %v3514_v36, 0.0  ;;  %v3521_v54 = vmul.f32 0.2, %v3513_v5  ;;  %v3522_v50 = vmul.f32 0.2, %v3514_v36 }
0x11b6   : > { %v9457_v3 = vsel %vm3515_vm13, %v3511_v55, %v3519_v12  ;;  %v9459_v9 = vsel %vm3516_vm15, %v3512_v60, %v3520_v38  ;;  %v9531_v59 = vpop.permute.xlu0 %7373 }
0x11b7   : > { %v7382_v10 = vpack.i.bf16 %v9459_v9, %v9457_v3  ;;  %v9463_v11 = vsel %vm3517_vm10, %v3513_v5, %v3521_v54  ;;  %v9465_v17 = vsel %vm3518_vm11, %v3514_v36, %v3522_v50 }
0x11b8   : > { %v7387_v18 = vpack.i.bf16 %v9465_v17, %v9463_v11  ;;  %v7417_v20 = vpack.i.bf16 %v9463_v11, %v9459_v9  ;;  %v7422_v62 = vpack.i.bf16 %v9465_v17, %v9457_v3 }
0x11b9   : > { %7383 = vrot.lane.b32.xlu1 %v7382_v10, %s10610_s10  ;;  %7378 = vrot.lane.b32.xlu0 %v7382_v10, %s10674_s1 }
0x11bd   : > { %7388 = vrot.lane.b32.xlu1 %v7387_v18, %s10674_s1  ;;  %7393 = vrot.lane.b32.xlu0 %v7387_v18, %s10610_s10  ;;  %s10683_s10 = sld [smem:[#allocation14_spill]] }
0x11c1   : > { %7398 = vrot.lane.b32.xlu1 %v7382_v10, %s10675_s16  ;;  %7403 = vrot.lane.b32.xlu0 %v7382_v10, %s10679_s11 }
0x11c5   : > { %7408 = vrot.lane.b32.xlu1 %v7387_v18, %s10675_s16  ;;  %7413 = vrot.lane.b32.xlu0 %v7387_v18, %s10679_s11 }
0x11c9   : > { %7418 = vrot.lane.b32.xlu1 %v7417_v20, %s10677_s9  ;;  %7423 = vrot.lane.b32.xlu0 %v7422_v62, %s10677_s9 }
0x11cd   : > { %7428 = vrot.lane.b32.xlu1 %v7417_v20, %s10672_s7  ;;  %7433 = vrot.lane.b32.xlu0 %v7417_v20, %s10667_s18 }
0x11d1   : > { %7438 = vrot.lane.b32.xlu1 %v7422_v62, %s10672_s7  ;;  %7443 = vrot.lane.b32.xlu0 %v7422_v62, %s10667_s18 }
0x11d5   : > { %3613 = vrot.lane.b32.xlu1 %v9459_v9, %s10668_s23  ;;  %3615 = vrot.lane.b32.xlu0 %v9463_v11, %s10668_s23 }
0x11d9   : > { %3611 = vrot.lane.b32.xlu1 %v9457_v3, %s10668_s23  ;;  %3617 = vrot.lane.b32.xlu0 %v9465_v17, %s10668_s23 }
0x11dd   : > { %7448 = vrot.lane.b32.xlu1 %v8748_v49, %s10677_s9  ;;  %7453 = vrot.lane.b32.xlu0 %v8752_v56, %s10677_s9 }
0x11e1   : > { %7458 = vrot.lane.b32.xlu1 %v8748_v49, %s10672_s7  ;;  %7463 = vrot.lane.b32.xlu0 %v8748_v49, %s10667_s18  ;;  %v3918_v49 = vld [vmem:[%s10682_s13 + $0x8] sm:$0xff] }
0x11e5   : > { %7468 = vrot.lane.b32.xlu1 %v8752_v56, %s10672_s7  ;;  %7473 = vrot.lane.b32.xlu0 %v8752_v56, %s10667_s18  ;;  %v9521_v56 = vpop.permute.xlu1 %7348 }
0x11e9   : > { %3905 = vrot.lane.b32.xlu1 %v8722_v53, %s10668_s23  ;;  %3907 = vrot.lane.b32.xlu0 %v8728_v43, %s10668_s23  ;;  %v9525_v61 = vpop.permute.xlu1 %7358 }
0x11ed   : > { %3903 = vrot.lane.b32.xlu1 %v8720_v51, %s10668_s23  ;;  %3909 = vrot.lane.b32.xlu0 %v8730_v46, %s10668_s23  ;;  %v9529_v7 = vpop.permute.xlu1 %7368 }
0x11f1   : > { %3636 = vperm.xlu1 %6916, %v3627_v2   ;;  %3926 = vperm.xlu0 %6915, %v3918_v49   ;;  %v7341_v49 = vunpack.i.h.bf16 %v9517_v42 }
0x122b   : > { %v7379_v16 = vpop.permute.xlu0 %7378  ;;  %v7384_v14 = vpop.permute.xlu1 %7383 }
0x122c   : > { %v7381_v48 = vunpack.i.h.bf16 %v7379_v16  ;;  %v7380_v41 = vunpack.i.l.bf16 %v7379_v16  ;;  %v7386_v33 = vunpack.i.h.bf16 %v7384_v14  ;;  %v7385_v22 = vunpack.i.l.bf16 %v7384_v14 }
0x122e   : > { %v3537_v23 = vsel %vm1002_vm0, %v7380_v41, %v7381_v48  ;;  %v3549_v1 = vsel %vm1015_vm1, %v7385_v22, %v7386_v33 }
0x122f   : > { %v7394_v25 = vpop.permute.xlu0 %7393  ;;  %v7389_v30 = vpop.permute.xlu1 %7388  ;;  %v6423_v57 = vpack.c.bf16 %v3549_v1, %v3537_v23 }
0x1230   : > { %v7396_v28 = vunpack.i.h.bf16 %v7394_v25  ;;  %v7395_v47 = vunpack.i.l.bf16 %v7394_v25  ;;  %v7391_v19 = vunpack.i.h.bf16 %v7389_v30  ;;  %v7390_v8 = vunpack.i.l.bf16 %v7389_v30 }
0x1231   : > { %6424 = vmatprep.subr.bf16.mxu0 %v6423_v57 }
0x1232   : > { %v3548_v24 = vsel %vm1015_vm1, %v7386_v33, %v7395_v47  ;;  %v3550_v63 = vsel %vm1015_vm1, %v7396_v28, %v7385_v22  ;;  %v3538_v58 = vsel %vm1002_vm0, %v7391_v19, %v7380_v41  ;;  %v3536_v29 = vsel %vm1002_vm0, %v7381_v48, %v7390_v8 }
0x1233   : > { %v7404_v4 = vpop.permute.xlu0 %7403  ;;  %v7399_v37 = vpop.permute.xlu1 %7398  ;;  %v6425_v31 = vpack.c.bf16 %v3550_v63, %v3538_v58  ;;  %v3535_v6 = vsel %vm1002_vm0, %v7390_v8, %v7391_v19  ;;  %v3547_v35 = vsel %vm1015_vm1, %v7395_v47, %v7396_v28  ;;  %v6441_v40 = vpack.c.bf16 %v3548_v24, %v3536_v29 }
0x1234   : > { %v7406_v52 = vunpack.i.h.bf16 %v7404_v4  ;;  %v7405_v55 = vunpack.i.l.bf16 %v7404_v4  ;;  %v7401_v60 = vunpack.i.h.bf16 %v7399_v37  ;;  %v7400_v5 = vunpack.i.l.bf16 %v7399_v37 }
0x1235   : > { %6426 = vmatpush1.bf16.msra.mxu0 %v6425_v31  ;;  %v6439_v36 = vpack.c.bf16 %v3547_v35, %v3535_v6  ;;  %v7340_v8 = vunpack.i.l.bf16 %v9517_v42  ;;  %v7346_v24 = vunpack.i.h.bf16 %v9519_v21  ;;  %v7345_v63 = vunpack.i.l.bf16 %v9519_v21 }
0x1236   : > { %v3561_v12 = vsel %vm1028_vm2, %v7400_v5, %v7401_v60  ;;  %v3573_v38 = vsel %vm1041_vm3, %v7405_v55, %v7406_v52 }
0x1237   : > { %6440 = vmatprep.subr.bf16.mxu1 %v6439_v36  ;;  %v7414_v54 = vpop.permute.xlu0 %7413  ;;  %v7409_v50 = vpop.permute.xlu1 %7408  ;;  %v6427_v10 = vpack.c.bf16 %v3573_v38, %v3561_v12 }
0x1238   : > { %6442 = vmatpush1.bf16.msra.mxu1 %v6441_v40  ;;  %v7416_v18 = vunpack.i.h.bf16 %v7414_v54  ;;  %v7415_v20 = vunpack.i.l.bf16 %v7414_v54  ;;  %v7411_v62 = vunpack.i.h.bf16 %v7409_v50  ;;  %v7410_v2 = vunpack.i.l.bf16 %v7409_v50 }
0x1239   : > { %6428 = vmatprep.subr.bf16.mxu0 %v6427_v10  ;;  %v9585_v54 = vsel %vm1002_vm0, %v7340_v8, %v7341_v49  ;;  %v7361_v50 = vunpack.i.h.bf16 %v9525_v61  ;;  %v7360_v10 = vunpack.i.l.bf16 %v9525_v61 }
0x123a   : > { %v3572_v16 = vsel %vm1041_vm3, %v7406_v52, %v7415_v20  ;;  %v3574_v14 = vsel %vm1041_vm3, %v7416_v18, %v7405_v55  ;;  %v3560_v48 = vsel %vm1028_vm2, %v7401_v60, %v7410_v2  ;;  %v3562_v41 = vsel %vm1028_vm2, %v7411_v62, %v7400_v5 }
0x123b   : > { %v7424_v33 = vpop.permute.xlu0 %7423  ;;  %v7419_v22 = vpop.permute.xlu1 %7418  ;;  %v6429_v23 = vpack.c.bf16 %v3574_v14, %v3562_v41  ;;  %v3559_v1 = vsel %vm1028_vm2, %v7410_v2, %v7411_v62  ;;  %v3571_v25 = vsel %vm1041_vm3, %v7415_v20, %v7416_v18  ;;  %v6445_v30 = vpack.c.bf16 %v3572_v16, %v3560_v48 }
0x123c   : > { %v7426_v57 = vunpack.i.h.bf16 %v7424_v33  ;;  %v7425_v28 = vunpack.i.l.bf16 %v7424_v33  ;;  %v7421_v47 = vunpack.i.h.bf16 %v7419_v22  ;;  %v7420_v19 = vunpack.i.l.bf16 %v7419_v22 }
0x123d   : > { %6430 = vmatpush1.bf16.msra.mxu0 %v6429_v23  ;;  %v6443_v58 = vpack.c.bf16 %v3571_v25, %v3559_v1  ;;  %v7356_v41 = vunpack.i.h.bf16 %v9523_v0  ;;  %v7355_v33 = vunpack.i.l.bf16 %v9523_v0  ;;  %v7366_v22 = vunpack.i.h.bf16 %v9527_v26 }
0x123e   : > { %v3583_v29 = vsel %vm1054_vm4, %v7421_v47, %v7426_v57  ;;  %v3585_v4 = vsel %vm1054_vm4, %v7425_v28, %v7420_v19  ;;  %v3584_v37 = vsel %vm1054_vm4, %v7420_v19, %v7421_v47  ;;  %v3586_v31 = vsel %vm1054_vm4, %v7426_v57, %v7425_v28 }
0x123f   : > { %6444 = vmatprep.subr.bf16.mxu1 %v6443_v58  ;;  %v7434_v6 = vpop.permute.xlu0 %7433  ;;  %v7429_v35 = vpop.permute.xlu1 %7428  ;;  %v6431_v40 = vpack.c.bf16 %v3584_v37, %v9459_v9  ;;  %v6447_v52 = vpack.c.bf16 %v3586_v31, %v9465_v17  ;;  %v6433_v55 = vpack.c.bf16 %v3585_v4, %v9457_v3  ;;  %v6449_v60 = vpack.c.bf16 %v3583_v29, %v9463_v11 }
0x1240   : > { %6446 = vmatpush1.bf16.msra.mxu1 %v6445_v30  ;;  %v7436_v5 = vunpack.i.h.bf16 %v7434_v6  ;;  %v7435_v36 = vunpack.i.l.bf16 %v7434_v6  ;;  %v7431_v12 = vunpack.i.h.bf16 %v7429_v35  ;;  %v7430_v38 = vunpack.i.l.bf16 %v7429_v35 }
0x1241   : > { %6432 = vmatprep.subr.bf16.mxu0 %v6431_v40  ;;  %6448 = vmatprep.subr.bf16.mxu1 %v6447_v52  ;;  %v7351_v9 = vunpack.i.h.bf16 %v9521_v56  ;;  %v7350_v17 = vunpack.i.l.bf16 %v9521_v56  ;;  %v3841_v56 = vsel %vm1015_vm1, %v7345_v63, %v7346_v24  ;;  %v7365_v23 = vunpack.i.l.bf16 %v9527_v26 }
0x1242   : > { %6434 = vmatpush1.bf16.msra.mxu0 %v6433_v55  ;;  %v3596_v3 = vsel %vm1067_vm5, %v7430_v38, %v7431_v12  ;;  %v3608_v11 = vsel %vm10622_vm6, %v7435_v36, %v7436_v5  ;;  %v7376_v29 = vunpack.i.h.bf16 %v9531_v59  ;;  %v7375_v4 = vunpack.i.l.bf16 %v9531_v59 }
0x1243   : > { %v7444_v18 = vpop.permute.xlu0 %7443  ;;  %v7439_v20 = vpop.permute.xlu1 %7438  ;;  %v6435_v62 = vpack.c.bf16 %v3608_v11, %v3596_v3  ;;  %v3828_v6 = vsel %vm1002_vm0, %v7341_v49, %v7350_v17  ;;  %v3830_v35 = vsel %vm1002_vm0, %v7351_v9, %v7340_v8  ;;  %v7371_v40 = vunpack.i.h.bf16 %v9529_v7 }
0x1244   : > { %6450 = vmatpush1.bf16.msra.mxu1 %v6449_v60  ;;  %v7446_v2 = vunpack.i.h.bf16 %v7444_v18  ;;  %v7445_v16 = vunpack.i.l.bf16 %v7444_v18  ;;  %v7441_v14 = vunpack.i.h.bf16 %v7439_v20  ;;  %v7440_v48 = vunpack.i.l.bf16 %v7439_v20  ;;  %v3623_v60 = vld [vmem:[%s10653_s19] sm:$0xff] }
0x1245   : > { %6436 = vmatprep.subr.bf16.mxu0 %v6435_v62  ;;  %v7370_v52 = vunpack.i.l.bf16 %v9529_v7  ;;  %v3842_v59 = vsel %vm1015_vm1, %v7356_v41, %v7345_v63  ;;  %v3827_v42 = vsel %vm1002_vm0, %v7350_v17, %v7351_v9  ;;  %v3853_v49 = vsel %vm1028_vm2, %v7360_v10, %v7361_v50 }
0x1246   : > { %v3607_v1 = vsel %vm10622_vm6, %v7436_v5, %v7446_v2  ;;  %v3609_v25 = vsel %vm10622_vm6, %v7445_v16, %v7435_v36  ;;  %v3595_v30 = vsel %vm1067_vm5, %v7431_v12, %v7441_v14  ;;  %v3597_v57 = vsel %vm1067_vm5, %v7440_v48, %v7430_v38 }
0x1247   : > { %v3616_v28 = vpop.permute.xlu0 %3615  ;;  %v3614_v47 = vpop.permute.xlu1 %3613  ;;  %v6437_v0 = vpack.c.bf16 %v3609_v25, %v3597_v57  ;;  %v3598_v19 = vsel %vm1067_vm5, %v7441_v14, %v7440_v48  ;;  %v3610_v26 = vsel %vm10622_vm6, %v7446_v2, %v7445_v16  ;;  %v6453_v58 = vpack.c.bf16 %v3607_v1, %v3595_v30 }
0x1248   : > { %v6451_v37 = vpack.c.bf16 %v3610_v26, %v3598_v19  ;;  %v3620_v31 = vsel %vm10621_vm7, %v3614_v47, %v3616_v28  ;;  %v3840_v7 = vsel %vm1015_vm1, %v7346_v24, %v7355_v33  ;;  %v6455_v63 = vpack.c.bf16 %v3841_v56, %v9585_v54 }
0x1249   : > { %6438 = vmatpush1.bf16.msra.mxu0 %v6437_v0  ;;  %v3839_v5 = vsel %vm1015_vm1, %v7355_v33, %v7356_v41  ;;  %v3865_v36 = vsel %vm1041_vm3, %v7365_v23, %v7366_v22  ;;  %v3863_v38 = vsel %vm1041_vm3, %v7375_v4, %v7376_v29  ;;  %v3854_v54 = vsel %vm1028_vm2, %v7371_v40, %v7360_v10  ;;  %v3624_v0 = vld [vmem:[%s10653_s19 + $0x8] sm:$0xff] }
0x124a   : > { %6452 = vmatprep.subr.bf16.mxu1 %v6451_v37  ;;  %3669 = vmatprep.subr.mxu0 %v3620_v31  ;;  %v6457_v9 = vpack.c.bf16 %v3842_v59, %v3830_v35  ;;  %v3851_v17 = vsel %vm1028_vm2, %v7370_v52, %v7371_v40  ;;  %v3866_v3 = vsel %vm1041_vm3, %v7376_v29, %v7365_v23  ;;  %v3625_v59 = vld [vmem:[%s10653_s19 + $0x10] sm:$0xff]  ;;  %s10694_s19 = smov 88  }
0x124b   : > { %6454 = vmatpush1.bf16.msra.mxu1 %v6453_v58  ;;  %v3618_v8 = vpop.permute.xlu0 %3617  ;;  %v3612_v55 = vpop.permute.xlu1 %3611  ;;  %v6471_v11 = vpack.c.bf16 %v3839_v5, %v3827_v42  ;;  %v6473_v18 = vpack.c.bf16 %v3840_v7, %v3828_v6  ;;  %v3864_v20 = vsel %vm1041_vm3, %v7366_v22, %v7375_v4  ;;  %v6459_v56 = vpack.c.bf16 %v3865_v36, %v3853_v49 }
0x124c   : > { %v3621_v12 = vsel %vm10621_vm7, %v3612_v55, %v3614_v47  ;;  %v3622_v21 = vsel %vm10621_vm7, %v3618_v8, %v3612_v55  ;;  %v3619_v24 = vsel %vm10621_vm7, %v3616_v28, %v3618_v8  ;;  %v6475_v2 = vpack.c.bf16 %v3863_v38, %v3851_v17 }
0x124d   : > { %3670 = vmatpush1.msra.mxu0 %v3621_v12  ;;  %3752 = vmatprep.subr.mxu1 %v3622_v21  ;;  %v6461_v33 = vpack.c.bf16 %v3866_v3, %v3854_v54  ;;  %v3852_v22 = vsel %vm1028_vm2, %v7361_v50, %v7370_v52 }
0x124e   : > { %6456 = vmatprep.subr.bf16.mxu0 %v6455_v63  ;;  %6112 = vmatmul.mubr.msk.f32.vlgmr.msra.gmra.mrb[28].mxu0 %vm1118_vm8, %v3623_v60  ;;  %v6477_v61 = vpack.c.bf16 %v3864_v20, %v3852_v22 }
0x124f   : > { %3753 = vmatpush1.msra.mxu1 %v3619_v24  ;;  %v7454_v62 = vpop.permute.xlu0 %7453  ;;  %v7449_v10 = vpop.permute.xlu1 %7448  ;;  %6458 = vmatpush1.bf16.msra.mxu0 %v6457_v9 }
0x1250   : > { %v7456_v16 = vunpack.i.h.bf16 %v7454_v62  ;;  %v7455_v14 = vunpack.i.l.bf16 %v7454_v62  ;;  %v7451_v48 = vunpack.i.h.bf16 %v7449_v10  ;;  %v7450_v41 = vunpack.i.l.bf16 %v7449_v10  ;;  %6472 = vmatprep.subr.bf16.mxu1 %v6471_v11  ;;  %6115 = vmatmul.mubr.msk.f32.vlgmr.msra.gmra.mrb[28].mxu1 %vm1118_vm8, %v3623_v60 }
0x1251   : > { %6460 = vmatprep.subr.bf16.mxu0 %v6459_v56  ;;  %6474 = vmatpush1.bf16.msra.mxu1 %v6473_v18  ;;  %v3915_v18 = vld [vmem:[%s10683_s10] sm:$0xff]  ;;  %v3916_v56 = vld [vmem:[%s10683_s10 + $0x8] sm:$0xff]  ;;  %s10689_s10 = smov 38  }
0x1252   : > { %v3877_v23 = vsel %vm1054_vm4, %v7455_v14, %v7450_v41  ;;  %6476 = vmatprep.subr.bf16.mxu1 %v6475_v2  ;;  %v3876_v1 = vsel %vm1054_vm4, %v7450_v41, %v7451_v48  ;;  %v3878_v25 = vsel %vm1054_vm4, %v7456_v16, %v7455_v14  ;;  %v3875_v30 = vsel %vm1054_vm4, %v7451_v48, %v7456_v16 }
0x1253   : > { %v7464_v57 = vpop.permute.xlu0 %7463  ;;  %v7459_v28 = vpop.permute.xlu1 %7458  ;;  %6462 = vmatpush1.bf16.msra.mxu0 %v6461_v33  ;;  %v6463_v47 = vpack.c.bf16 %v3876_v1, %v8722_v53  ;;  %v6479_v50 = vpack.c.bf16 %v3878_v25, %v8730_v46  ;;  %3723 = vmatprep.mubr.f32.mxu0 %v10670_v27  ;;  %v6465_v4 = vpack.c.bf16 %v3877_v23, %v8720_v51 }
0x1254   : > { %v7466_v19 = vunpack.i.h.bf16 %v7464_v57  ;;  %v7465_v26 = vunpack.i.l.bf16 %v7464_v57  ;;  %v7461_v58 = vunpack.i.h.bf16 %v7459_v28  ;;  %v7460_v29 = vunpack.i.l.bf16 %v7459_v28  ;;  %3806 = vmatprep.mubr.f32.mxu1 %v10670_v27  ;;  %6113 = vmatmul.mubr.msk.f32.gmra.mrb[30].mxu0 %vm1118_vm8, %v3624_v0 }
0x1255   : > { %6478 = vmatpush1.bf16.msra.mxu1 %v6477_v61  ;;  %6464 = vmatprep.subr.bf16.mxu0 %v6463_v47  ;;  %v6481_v40 = vpack.c.bf16 %v3875_v30, %v8728_v43 }
0x1256   : > { %6480 = vmatprep.subr.bf16.mxu1 %v6479_v50  ;;  %v3888_v37 = vsel %vm1067_vm5, %v7460_v29, %v7461_v58  ;;  %v3900_v31 = vsel %vm10622_vm6, %v7465_v26, %v7466_v19  ;;  %6116 = vmatmul.mubr.msk.f32.gmra.mrb[30].mxu1 %vm1118_vm8, %v3624_v0 }
0x1257   : > { %v7474_v6 = vpop.permute.xlu0 %7473  ;;  %v7469_v35 = vpop.permute.xlu1 %7468  ;;  %6466 = vmatpush1.bf16.msra.mxu0 %v6465_v4  ;;  %v6467_v52 = vpack.c.bf16 %v3900_v31, %v3888_v37  ;;  %3729 = vmatprep.mubr.f32.mxu0 %v10670_v27 }
0x1258   : > { %v7476_v42 = vunpack.i.h.bf16 %v7474_v6  ;;  %v7475_v49 = vunpack.i.l.bf16 %v7474_v6  ;;  %v7471_v7 = vunpack.i.h.bf16 %v7469_v35  ;;  %v7470_v8 = vunpack.i.l.bf16 %v7469_v35  ;;  %3812 = vmatprep.mubr.f32.mxu1 %v10670_v27  ;;  %6114 = vmatmul.mubr.msk.f32.gmra.mrb[32].mxu0 %vm1118_vm8, %v3625_v59 }
0x1259   : > { %6482 = vmatpush1.bf16.msra.mxu1 %v6481_v40  ;;  %6468 = vmatprep.subr.bf16.mxu0 %v6467_v52 }
0x125a   : > { %v3899_v55 = vsel %vm10622_vm6, %v7466_v19, %v7476_v42  ;;  %v3901_v63 = vsel %vm10622_vm6, %v7475_v49, %v7465_v26  ;;  %v3887_v60 = vsel %vm1067_vm5, %v7461_v58, %v7471_v7  ;;  %v3889_v5 = vsel %vm1067_vm5, %v7470_v8, %v7460_v29  ;;  %6117 = vmatmul.mubr.msk.f32.gmra.mrb[32].mxu1 %vm1118_vm8, %v3625_v59 }
0x125b   : > { %v3908_v36 = vpop.permute.xlu0 %3907  ;;  %v3906_v12 = vpop.permute.xlu1 %3905  ;;  %v6469_v21 = vpack.c.bf16 %v3901_v63, %v3889_v5  ;;  %v3890_v24 = vsel %vm1067_vm5, %v7471_v7, %v7470_v8  ;;  %v3902_v38 = vsel %vm10622_vm6, %v7476_v42, %v7475_v49  ;;  %v6485_v54 = vpack.c.bf16 %v3899_v55, %v3887_v60  ;;  %3999 = vmatprep.mubr.f32.mxu0 %v10670_v27 }
0x125c   : > { %v6483_v9 = vpack.c.bf16 %v3902_v38, %v3890_v24  ;;  %v3912_v17 = vsel %vm10621_vm7, %v3906_v12, %v3908_v36  ;;  %4076 = vmatprep.mubr.f32.mxu1 %v10670_v27  ;;  %v3626_v24 = vld [vmem:[%s10652_s24] sm:$0xff] }
0x125d   : > { %6470 = vmatpush1.bf16.msra.mxu0 %v6469_v21  ;;  %v3917_v21 = vld [vmem:[%s10682_s13] sm:$0xff]  ;;  %s10690_s13 = smov 40  }
0x125e   : > { %6484 = vmatprep.subr.bf16.mxu1 %v6483_v9  ;;  %3951 = vmatprep.subr.mxu0 %v3912_v17  ;;  %v4246_v38 = vld [vmem:[%s10685_s8] sm:$0xff]  ;;  %s10686_s8 = sld [smem:[#allocation16_spill]] }
0x125f   : > { %6486 = vmatpush1.bf16.msra.mxu1 %v6485_v54  ;;  %v3910_v3 = vpop.permute.xlu0 %3909  ;;  %v3904_v11 = vpop.permute.xlu1 %3903  ;;  %v3628_v54 = vld [vmem:[%s10652_s24 + $0x10] sm:$0xff]  ;;  %s10696_s24 = sld [smem:[#allocation21_spill]] }
0x1260   : > { %v3913_v20 = vsel %vm10621_vm7, %v3904_v11, %v3906_v12  ;;  %v3914_v62 = vsel %vm10621_vm7, %v3910_v3, %v3904_v11  ;;  %v3911_v10 = vsel %vm10621_vm7, %v3908_v36, %v3910_v3 }
0x1261   : > { %3952 = vmatpush1.msra.mxu0 %v3913_v20  ;;  %4028 = vmatprep.subr.mxu1 %v3914_v62 }
0x1262   : > { %6118 = vmatmul.mubr.msk.f32.vlgmr.msra.gmra.mrb[28].mxu0 %vm1118_vm8, %v3915_v18 }
0x1263   : > { %4029 = vmatpush1.msra.mxu1 %v3911_v10  ;;  %4005 = vmatprep.mubr.f32.mxu0 %v10670_v27 }
0x1264   : > { %6120 = vmatmul.mubr.msk.f32.vlgmr.msra.gmra.mrb[28].mxu1 %vm1118_vm8, %v3915_v18 }
0x1265   : > { %4082 = vmatprep.mubr.f32.mxu1 %v10670_v27 }
0x1266   : > { %6119 = vmatmul.mubr.msk.f32.gmra.mrb[30].mxu0 %vm1118_vm8, %v3916_v56 }
0x1267   : > { %4319 = vmatprep.mubr.f32.mxu0 %v10670_v27 }
0x1268   : > { %6121 = vmatmul.mubr.msk.f32.gmra.mrb[30].mxu1 %vm1118_vm8, %v3916_v56 }
0x1269   : > { %4390 = vmatprep.mubr.f32.mxu1 %v10670_v27 }
0x1270   : > { %v3927_v2 = vpop.permute.xlu0 %3926  ;;  %v3637_v16 = vpop.permute.xlu1 %3636 }
0x1271   : > { %v6707_v33 = vadd.f32 %v3927_v2, %v3637_v16 }
0x1335   : > { %v9729_v14 = vpop.f32.mrb[28].mxu0 }
0x1336   : > { %v9731_v48 = vpop.f32.mrb[29].mxu0 }
0x1337   : > { %v9733_v41 = vpop.f32.mrb[28].mxu1 }
0x1338   : > { %v9735_v22 = vpop.f32.mrb[29].mxu1 }
0x1339   : > { %v4007_v23 = vpop.f32.mrb[30].mxu0 }
0x133a   : > { %v6708_v1 = vadd.f32 %v6707_v33, %v4007_v23  ;;  %v4009_v25 = vpop.f32.mrb[31].mxu0 }
0x133b   : > { %v6710_v30 = vadd.f32 %v6707_v33, %v4009_v25  ;;  %v4084_v57 = vpop.f32.mrb[30].mxu1 }
0x133c   : > { %v6126_v28 = vmul.f32 -1.442695, %v6708_v1  ;;  %v6720_v61 = vadd.f32 %v6707_v33, %v4084_v57  ;;  %v4086_v47 = vpop.f32.mrb[31].mxu1 }
0x133d   : > { %v6127_v50 = vmul.f32 -1.442695, %v6710_v30  ;;  %v6722_v0 = vadd.f32 %v6707_v33, %v4086_v47 }
0x133e   : > { %8029 = vpow2.f32 %v6126_v28  ;;  %v6128_v19 = vmul.f32 -1.442695, %v6720_v61 }
0x133f   : > { %8031 = vpow2.f32 %v6127_v50  ;;  %v6129_v26 = vmul.f32 -1.442695, %v6722_v0 }
0x1340   : > { %8033 = vpow2.f32 %v6128_v19 }
0x1341   : > { %8035 = vpow2.f32 %v6129_v26 }
0x1348   : > { %v8030_v58 = vpop.eup %8029 }
0x1349   : > { %v8032_v29 = vpop.eup %8031  ;;  %v4133_v4 = vadd.f32 1.0, %v8030_v58 }
0x134a   : > { %v8034_v37 = vpop.eup %8033  ;;  %v4134_v31 = vadd.f32 1.0, %v8032_v29 }
0x134b   : > { %v8036_v6 = vpop.eup %8035  ;;  %8037 = vrcp.f32 %v4133_v4  ;;  %v4135_v35 = vadd.f32 1.0, %v8034_v37 }
0x134c   : > { %8039 = vrcp.f32 %v4134_v31  ;;  %v4136_v40 = vadd.f32 1.0, %v8036_v6 }
0x134d   : > { %8041 = vrcp.f32 %v4135_v35 }
0x134e   : > { %8043 = vrcp.f32 %v4136_v40 }
0x1355   : > { %v8038_v52 = vpop.eup %8037 }
0x1356   : > { %v8040_v59 = vpop.eup %8039  ;;  %v9738_v42 = vmul.f32 %v8038_v52, %v8720_v51 }
0x1357   : > { %v8042_v49 = vpop.eup %8041  ;;  %v9741_v7 = vmul.f32 %v8040_v59, %v8722_v53 }
0x1358   : > { %v8044_v8 = vpop.eup %8043  ;;  %v9744_v55 = vmul.f32 %v8042_v49, %v8728_v43 }
0x1359   : > { %v9747_v63 = vmul.f32 %v8044_v8, %v8730_v46  ;;  %v7482_v60 = vpack.i.bf16 %v9741_v7, %v9738_v42 }
0x135a   : > { %v7517_v12 = vpack.i.bf16 %v9744_v55, %v9741_v7 }
0x135b   : > { %7483 = vrot.lane.b32.xlu0 %v7482_v60, %s10684_s5  ;;  %7478 = vrot.lane.b32.xlu1 %v7482_v60, %s10674_s1  ;;  %v7492_v5 = vpack.i.bf16 %v9744_v55, %v9747_v63  ;;  %v7522_v36 = vpack.i.bf16 %v9747_v63, %v9738_v42 }
0x135f   : > { %7493 = vrot.lane.b32.xlu0 %v7492_v5, %s10684_s5  ;;  %7488 = vrot.lane.b32.xlu1 %v7492_v5, %s10674_s1 }
0x1363   : > { %7503 = vrot.lane.b32.xlu0 %v7482_v60, %s10679_s11  ;;  %7498 = vrot.lane.b32.xlu1 %v7482_v60, %s10675_s16 }
0x1367   : > { %7513 = vrot.lane.b32.xlu0 %v7492_v5, %s10679_s11  ;;  %7508 = vrot.lane.b32.xlu1 %v7492_v5, %s10675_s16 }
0x136b   : > { %7523 = vrot.lane.b32.xlu0 %v7522_v36, %s10677_s9  ;;  %7518 = vrot.lane.b32.xlu1 %v7517_v12, %s10677_s9 }
0x136f   : > { %7533 = vrot.lane.b32.xlu0 %v7517_v12, %s10667_s18  ;;  %7528 = vrot.lane.b32.xlu1 %v7517_v12, %s10672_s7 }
0x1373   : > { %7543 = vrot.lane.b32.xlu0 %v7522_v36, %s10667_s18  ;;  %7538 = vrot.lane.b32.xlu1 %v7522_v36, %s10672_s7 }
0x1377   : > { %4237 = vrot.lane.b32.xlu0 %v9744_v55, %s10668_s23  ;;  %4235 = vrot.lane.b32.xlu1 %v9741_v7, %s10668_s23 }
0x137b   : > { %4239 = vrot.lane.b32.xlu0 %v9747_v63, %s10668_s23  ;;  %4233 = vrot.lane.b32.xlu1 %v9738_v42, %s10668_s23 }
0x137f   : > { %3921 = vperm.xlu0 %6915, %v3917_v21   ;;  %3631 = vperm.xlu1 %6916, %v3626_v24  }
0x1383   : > { %4249 = vperm.xlu0 %6915, %v4246_v38   ;;  %3641 = vperm.xlu1 %6916, %v3628_v54  }
0x13cd   : > { %v7484_v9 = vpop.permute.xlu0 %7483  ;;  %v7479_v17 = vpop.permute.xlu1 %7478 }
0x13ce   : > { %v7486_v3 = vunpack.i.h.bf16 %v7484_v9  ;;  %v7485_v11 = vunpack.i.l.bf16 %v7484_v9  ;;  %v7481_v18 = vunpack.i.h.bf16 %v7479_v17  ;;  %v7480_v20 = vunpack.i.l.bf16 %v7479_v17 }
0x13d0   : > { %v4159_v62 = vsel %vm1002_vm0, %v7480_v20, %v7481_v18  ;;  %v4171_v10 = vsel %vm1015_vm1, %v7485_v11, %v7486_v3 }
0x13d1   : > { %v7494_v56 = vpop.permute.xlu0 %7493  ;;  %v7489_v2 = vpop.permute.xlu1 %7488  ;;  %v6487_v16 = vpack.c.bf16 %v4171_v10, %v4159_v62 }
0x13d2   : > { %v7496_v33 = vunpack.i.h.bf16 %v7494_v56  ;;  %v7495_v23 = vunpack.i.l.bf16 %v7494_v56  ;;  %v7491_v1 = vunpack.i.h.bf16 %v7489_v2  ;;  %v7490_v25 = vunpack.i.l.bf16 %v7489_v2 }
0x13d3   : > { %6488 = vmatprep.subr.bf16.mxu0 %v6487_v16 }
0x13d4   : > { %v4170_v30 = vsel %vm1015_vm1, %v7486_v3, %v7496_v33  ;;  %v4172_v57 = vsel %vm1015_vm1, %v7495_v23, %v7485_v11  ;;  %v4158_v28 = vsel %vm1002_vm0, %v7481_v18, %v7491_v1  ;;  %v4160_v61 = vsel %vm1002_vm0, %v7490_v25, %v7480_v20 }
0x13d5   : > { %v7504_v47 = vpop.permute.xlu0 %7503  ;;  %v7499_v50 = vpop.permute.xlu1 %7498  ;;  %v6489_v0 = vpack.c.bf16 %v4172_v57, %v4160_v61  ;;  %v4157_v19 = vsel %vm1002_vm0, %v7491_v1, %v7490_v25  ;;  %v4169_v26 = vsel %vm1015_vm1, %v7496_v33, %v7495_v23  ;;  %v6505_v58 = vpack.c.bf16 %v4170_v30, %v4158_v28 }
0x13d6   : > { %v7506_v29 = vunpack.i.h.bf16 %v7504_v47  ;;  %v7505_v4 = vunpack.i.l.bf16 %v7504_v47  ;;  %v7501_v37 = vunpack.i.h.bf16 %v7499_v50  ;;  %v7500_v31 = vunpack.i.l.bf16 %v7499_v50 }
0x13d7   : > { %6490 = vmatpush1.bf16.msra.mxu0 %v6489_v0  ;;  %v6503_v6 = vpack.c.bf16 %v4169_v26, %v4157_v19 }
0x13d8   : > { %v4183_v35 = vsel %vm1028_vm2, %v7500_v31, %v7501_v37  ;;  %v4195_v40 = vsel %vm1041_vm3, %v7505_v4, %v7506_v29 }
0x13d9   : > { %6504 = vmatprep.subr.bf16.mxu1 %v6503_v6  ;;  %v7514_v52 = vpop.permute.xlu0 %7513  ;;  %v7509_v59 = vpop.permute.xlu1 %7508  ;;  %v6491_v49 = vpack.c.bf16 %v4195_v40, %v4183_v35 }
0x13da   : > { %6506 = vmatpush1.bf16.msra.mxu1 %v6505_v58  ;;  %v7516_v8 = vunpack.i.h.bf16 %v7514_v52  ;;  %v7515_v60 = vunpack.i.l.bf16 %v7514_v52  ;;  %v7511_v5 = vunpack.i.h.bf16 %v7509_v59  ;;  %v7510_v36 = vunpack.i.l.bf16 %v7509_v59 }
0x13db   : > { %6492 = vmatprep.subr.bf16.mxu0 %v6491_v49 }
0x13dc   : > { %v4194_v12 = vsel %vm1041_vm3, %v7506_v29, %v7516_v8  ;;  %v4196_v21 = vsel %vm1041_vm3, %v7515_v60, %v7505_v4  ;;  %v4182_v24 = vsel %vm1028_vm2, %v7501_v37, %v7511_v5  ;;  %v4184_v38 = vsel %vm1028_vm2, %v7510_v36, %v7500_v31 }
0x13dd   : > { %v7524_v54 = vpop.permute.xlu0 %7523  ;;  %v7519_v9 = vpop.permute.xlu1 %7518  ;;  %v6493_v17 = vpack.c.bf16 %v4196_v21, %v4184_v38  ;;  %v4181_v3 = vsel %vm1028_vm2, %v7511_v5, %v7510_v36  ;;  %v4193_v11 = vsel %vm1041_vm3, %v7516_v8, %v7515_v60  ;;  %v6509_v18 = vpack.c.bf16 %v4194_v12, %v4182_v24 }
0x13de   : > { %v7526_v20 = vunpack.i.h.bf16 %v7524_v54  ;;  %v7525_v62 = vunpack.i.l.bf16 %v7524_v54  ;;  %v7521_v10 = vunpack.i.h.bf16 %v7519_v9  ;;  %v7520_v56 = vunpack.i.l.bf16 %v7519_v9  ;;  %v4245_v54 = vld [vmem:[%s10686_s8] sm:$0xff]  ;;  %s10687_s8 = smov 42  }
0x13df   : > { %6494 = vmatpush1.bf16.msra.mxu0 %v6493_v17  ;;  %v6507_v2 = vpack.c.bf16 %v4193_v11, %v4181_v3 }
0x13e0   : > { %v4205_v16 = vsel %vm1054_vm4, %v7521_v10, %v7526_v20  ;;  %v4207_v33 = vsel %vm1054_vm4, %v7525_v62, %v7520_v56  ;;  %v4206_v23 = vsel %vm1054_vm4, %v7520_v56, %v7521_v10  ;;  %v4208_v1 = vsel %vm1054_vm4, %v7526_v20, %v7525_v62 }
0x13e1   : > { %6508 = vmatprep.subr.bf16.mxu1 %v6507_v2  ;;  %v7534_v25 = vpop.permute.xlu0 %7533  ;;  %v7529_v30 = vpop.permute.xlu1 %7528  ;;  %v6495_v57 = vpack.c.bf16 %v4206_v23, %v9741_v7  ;;  %v6511_v28 = vpack.c.bf16 %v4208_v1, %v9747_v63  ;;  %v6497_v61 = vpack.c.bf16 %v4207_v33, %v9738_v42  ;;  %v6513_v47 = vpack.c.bf16 %v4205_v16, %v9744_v55 }
0x13e2   : > { %6510 = vmatpush1.bf16.msra.mxu1 %v6509_v18  ;;  %v7536_v50 = vunpack.i.h.bf16 %v7534_v25  ;;  %v7535_v0 = vunpack.i.l.bf16 %v7534_v25  ;;  %v7531_v19 = vunpack.i.h.bf16 %v7529_v30  ;;  %v7530_v26 = vunpack.i.l.bf16 %v7529_v30 }
0x13e3   : > { %6496 = vmatprep.subr.bf16.mxu0 %v6495_v57  ;;  %6512 = vmatprep.subr.bf16.mxu1 %v6511_v28 }
0x13e4   : > { %6498 = vmatpush1.bf16.msra.mxu0 %v6497_v61  ;;  %v4218_v58 = vsel %vm1067_vm5, %v7530_v26, %v7531_v19  ;;  %v4230_v7 = vsel %vm10622_vm6, %v7535_v0, %v7536_v50 }
0x13e5   : > { %v7544_v29 = vpop.permute.xlu0 %7543  ;;  %v7539_v63 = vpop.permute.xlu1 %7538  ;;  %v6499_v4 = vpack.c.bf16 %v4230_v7, %v4218_v58 }
0x13e6   : > { %6514 = vmatpush1.bf16.msra.mxu1 %v6513_v47  ;;  %v7546_v42 = vunpack.i.h.bf16 %v7544_v29  ;;  %v7545_v55 = vunpack.i.l.bf16 %v7544_v29  ;;  %v7541_v37 = vunpack.i.h.bf16 %v7539_v63  ;;  %v7540_v31 = vunpack.i.l.bf16 %v7539_v63 }
0x13e7   : > { %6500 = vmatprep.subr.bf16.mxu0 %v6499_v4 }
0x13e8   : > { %v4229_v6 = vsel %vm10622_vm6, %v7536_v50, %v7546_v42  ;;  %v4231_v35 = vsel %vm10622_vm6, %v7545_v55, %v7535_v0  ;;  %v4217_v40 = vsel %vm1067_vm5, %v7531_v19, %v7541_v37  ;;  %v4219_v52 = vsel %vm1067_vm5, %v7540_v31, %v7530_v26 }
0x13e9   : > { %v4238_v59 = vpop.permute.xlu0 %4237  ;;  %v4236_v49 = vpop.permute.xlu1 %4235  ;;  %v6501_v8 = vpack.c.bf16 %v4231_v35, %v4219_v52  ;;  %v4220_v60 = vsel %vm1067_vm5, %v7541_v37, %v7540_v31  ;;  %v4232_v5 = vsel %vm10622_vm6, %v7546_v42, %v7545_v55  ;;  %v6517_v36 = vpack.c.bf16 %v4229_v6, %v4217_v40 }
0x13ea   : > { %v6515_v12 = vpack.c.bf16 %v4232_v5, %v4220_v60  ;;  %v4242_v21 = vsel %vm10621_vm7, %v4236_v49, %v4238_v59 }
0x13eb   : > { %6502 = vmatpush1.bf16.msra.mxu0 %v6501_v8 }
0x13ec   : > { %6516 = vmatprep.subr.bf16.mxu1 %v6515_v12  ;;  %4271 = vmatprep.subr.mxu0 %v4242_v21 }
0x13ed   : > { %6518 = vmatpush1.bf16.msra.mxu1 %v6517_v36  ;;  %v4240_v24 = vpop.permute.xlu0 %4239  ;;  %v4234_v38 = vpop.permute.xlu1 %4233 }
0x13ee   : > { %v4243_v9 = vsel %vm10621_vm7, %v4234_v38, %v4236_v49  ;;  %v4244_v17 = vsel %vm10621_vm7, %v4240_v24, %v4234_v38  ;;  %v4241_v3 = vsel %vm10621_vm7, %v4238_v59, %v4240_v24 }
0x13ef   : > { %4272 = vmatpush1.msra.mxu0 %v4243_v9  ;;  %4342 = vmatprep.subr.mxu1 %v4244_v17 }
0x13f0   : > { %6130 = vmatmul.mubr.msk.f32.vlgmr.msra.gmra.mrb[32].mxu0 %vm1118_vm8, %v4245_v54 }
0x13f1   : > { %4343 = vmatpush1.msra.mxu1 %v4241_v3  ;;  %4654 = vmatprep.mubr.f32.mxu0 %v10670_v27 }
0x13f2   : > { %6131 = vmatmul.mubr.msk.f32.vlgmr.msra.gmra.mrb[32].mxu1 %vm1118_vm8, %v4245_v54 }
0x13f3   : > { %4737 = vmatprep.mubr.f32.mxu1 %v10670_v27 }
0x13fe   : > { %v3922_v11 = vpop.permute.xlu0 %3921  ;;  %v3632_v18 = vpop.permute.xlu1 %3631 }
0x13ff   : > { %v6703_v20 = vadd.f32 %v3922_v11, %v3632_v18 }
0x1401   : > { %v6704_v62 = vadd.f32 %v6703_v20, %v9729_v14  ;;  %v6706_v10 = vadd.f32 %v6703_v20, %v9731_v48  ;;  %v6716_v16 = vadd.f32 %v6703_v20, %v9733_v41  ;;  %v6718_v33 = vadd.f32 %v6703_v20, %v9735_v22 }
0x1402   : > { %v4250_v57 = vpop.permute.xlu0 %4249  ;;  %v3642_v28 = vpop.permute.xlu1 %3641 }
0x1403   : > { %v6122_v56 = vmul.f32 -1.442695, %v6704_v62  ;;  %v6123_v2 = vmul.f32 -1.442695, %v6706_v10  ;;  %v6124_v23 = vmul.f32 -1.442695, %v6716_v16  ;;  %v6711_v47 = vadd.f32 %v4250_v57, %v3642_v28 }
0x1404   : > { %v6125_v1 = vmul.f32 -1.442695, %v6718_v33  ;;  %v4437_v28 = vld [vmem:[%s10655_s4] sm:$0xff]  ;;  %s10692_s4 = smov 126  }
0x1405   : > { %8045 = vpow2.f32 %v6122_v56 }
0x1406   : > { %8047 = vpow2.f32 %v6123_v2 }
0x1407   : > { %8049 = vpow2.f32 %v6124_v23 }
0x1408   : > { %8051 = vpow2.f32 %v6125_v1 }
0x140f   : > { %v8046_v25 = vpop.eup %8045 }
0x1410   : > { %v8048_v30 = vpop.eup %8047  ;;  %v4105_v61 = vadd.f32 1.0, %v8046_v25 }
0x1411   : > { %v4106_v14 = vadd.f32 1.0, %v8048_v30  ;;  %v8050_v48 = vpop.eup %8049 }
0x1412   : > { %v8052_v0 = vpop.eup %8051  ;;  %8053 = vrcp.f32 %v4105_v61  ;;  %v4107_v58 = vadd.f32 1.0, %v8050_v48 }
0x1413   : > { %8055 = vrcp.f32 %v4106_v14  ;;  %v4108_v63 = vadd.f32 1.0, %v8052_v0 }
0x141c   : > { %v8054_v42 = vpop.eup %8053 }
0x141d   : > { %v8056_v55 = vpop.eup %8055 }
0x14c3   : > { %v4321_v50 = vpop.f32.mrb[32].mxu0 }
0x14c4   : > { %v6712_v41 = vadd.f32 %v6711_v47, %v4321_v50  ;;  %v4323_v19 = vpop.f32.mrb[33].mxu0 }
0x14c5   : > { %v6714_v22 = vadd.f32 %v6711_v47, %v4323_v19  ;;  %v4392_v26 = vpop.f32.mrb[32].mxu1 }
0x14c6   : > { %8057 = vtanh.f32 %v6712_v41  ;;  %v6724_v7 = vadd.f32 %v6711_v47, %v4392_v26  ;;  %v4394_v29 = vpop.f32.mrb[33].mxu1 }
0x14c7   : > { %8059 = vtanh.f32 %v6714_v22  ;;  %v6726_v4 = vadd.f32 %v6711_v47, %v4394_v29 }
0x14c8   : > { %8061 = vtanh.f32 %v6724_v7 }
0x14c9   : > { %8063 = vtanh.f32 %v6726_v4 }
0x14ca   : > { %8065 = vrcp.f32 %v4107_v58 }
0x14cb   : > { %8067 = vrcp.f32 %v4108_v63 }
0x14d0   : > { %v8058_v37 = vpop.eup %8057 }
0x14d1   : > { %v8060_v31 = vpop.eup %8059  ;;  %v4405_v6 = vsub.f32 %v8058_v37, %v8720_v51 }
0x14d2   : > { %v8062_v35 = vpop.eup %8061  ;;  %v4406_v40 = vsub.f32 %v8060_v31, %v8722_v53 }
0x14d3   : > { %v8064_v52 = vpop.eup %8063  ;;  %v4407_v59 = vsub.f32 %v8062_v35, %v8728_v43  ;;  %v4409_v49 = vmul.f32 %v8054_v42, %v4405_v6 }
0x14d4   : > { %v8066_v8 = vpop.eup %8065  ;;  %v4408_v60 = vsub.f32 %v8064_v52, %v8730_v46  ;;  %v4410_v5 = vmul.f32 %v8056_v55, %v4406_v40 }
0x14d5   : > { %v8068_v36 = vpop.eup %8067  ;;  %v4411_v12 = vmul.f32 %v8066_v8, %v4407_v59  ;;  %v4413_v21 = vadd.f32 %v4409_v49, %v8720_v51  ;;  %v10688_v51 = vld [vmem:[#allocation30_spill] sm:$0xff]  ;;  %v10697_v59 = vld [vmem:[#allocation31_spill] sm:$0xff]  ;;  %v10698_v49 = vld [vmem:[#allocation32_spill] sm:$0xff] }
0x14d6   : > { %v4412_v24 = vmul.f32 %v8068_v36, %v4408_v60  ;;  %v4414_v38 = vadd.f32 %v4410_v5, %v8722_v53  ;;  %v7557_v53 = vpack.i.bf16 %v10688_v51, %v8883_v15  ;;  %v10699_v8 = vld [vmem:[#allocation29_spill] sm:$0xff]  ;;  %v10700_v60 = vld [vmem:[#allocation28_spill] sm:$0xff] }
0x14d7   : > { %v4415_v54 = vadd.f32 %v4411_v12, %v8728_v43  ;;  %v4417_v9 = vmul.f32 %v4413_v21, %v8513_v32  ;;  %v4427_v43 = vld [vmem:[%s8275_s27] sm:$0xff]  ;;  %v4564_v5 = vld [vmem:[%s8290_s20 + $0x8] sm:$0xff] }
0x14d8   : > { %v4416_v17 = vadd.f32 %v4412_v24, %v8730_v46  ;;  %v4418_v3 = vmul.f32 %v4414_v38, %v8515_v34  ;;  %v4855_v36 = vld [vmem:[%s10696_s24 + $0x8] sm:$0xff] }
0x14d9   : > { %v4419_v11 = vmul.f32 %v4415_v54, %v8517_v39 }
0x14da   : > { %v4421_v18 = vadd.f32 %v4418_v3, %v4417_v9  ;;  %v4420_v20 = vmul.f32 %v4416_v17, %v8520_v44 }
0x14dc   : > { %v4422_v62 = vadd.f32 %v4421_v18, %v4419_v11 }
0x14de   : > { %v4423_v10 = vadd.f32 %v4422_v62, %v4420_v20 }
0x14e0   : > { %4424 = vadd.xlane.f32.xlu1 %v4423_v10 }
0x14f1   : > { %7548 = vrot.lane.b32.xlu1 %v8881_v45, %s10687_s8 }
0x14f5   : > { %7558 = vrot.lane.b32.xlu1 %v7557_v53, %s10687_s8 }
0x14f9   : > { %7568 = vrot.lane.b32.xlu1 %v8881_v45, %s10689_s10 }
0x14fd   : > { %7578 = vrot.lane.b32.xlu1 %v7557_v53, %s10689_s10 }
0x156d   : > { %v4425_v46 = vpop.xlane.xlu1 %4424 }
0x156e   : > { %v4426_v56 = vmul.f32 0.00390625, %v4425_v46 }
0x1570   : > { %v4428_v2 = vmul.f32 %v4427_v43, %v4426_v56 }
0x1571   : > { %v9950_v12 = vpop.permute.xlu1 %7548 }
0x1572   : > { %v4429_v16 = vsel %vm1355_vm9, %v4428_v2, 0.0 }
0x1573   : > { %v4430_v33 = vrot.slane %v4429_v16, 4 }
0x1575   : > { %v4431_v23 = vadd.f32 %v4430_v33, %v4429_v16  ;;  %v9954_v24 = vpop.permute.xlu1 %7558 }
0x1577   : > { %v4432_v1 = vrot.slane %v4431_v23, 2 }
0x1579   : > { %v4433_v25 = vadd.f32 %v4432_v1, %v4431_v23  ;;  %v9958_v54 = vpop.permute.xlu1 %7568 }
0x157b   : > { %v4434_v30 = vrot.slane %v4433_v25, 1 }
0x157d   : > { %v4435_v57 = vadd.f32 %v4434_v30, %v4433_v25  ;;  %v9962_v17 = vpop.permute.xlu1 %7578 }
0x157f   : > { %v4436_v61 = vmax.f32 %v4435_v57, 0.0 }
0x1581   : > { %v4438_v14 = vmul.f32 %v4437_v28, %v4436_v61 }
0x1583   : > { %v4439_v47 = vsel %vm1355_vm9, %v4438_v14, 0.0 }
0x1584   : > { %4440 = vadd.xlane.f32.xlu0 %v4439_v47 }
0x159a   : > { %7553 = vrot.lane.b32.xlu0 %v8881_v45, %s10690_s13 }
0x159e   : > { %7563 = vrot.lane.b32.xlu0 %v7557_v53, %s10690_s13 }
0x15a2   : > { %7573 = vrot.lane.b32.xlu0 %v8881_v45, %s10691_s14 }
0x15a6   : > { %7583 = vrot.lane.b32.xlu0 %v7557_v53, %s10691_s14 }
0x1611   : > { %v4441_v48 = vpop.xlane.xlu0 %4440 }
0x1612   : > { %v6132_v50 = vmul.f32 -1.442695, %v4441_v48 }
0x1614   : > { %8069 = vpow2.f32 %v6132_v50 }
0x1615   : > { %v9952_v21 = vpop.permute.xlu0 %7553 }
0x1619   : > { %v9956_v38 = vpop.permute.xlu0 %7563 }
0x161e   : > { %v8070_v0 = vpop.eup %8069 }
0x161f   : > { %v4445_v41 = vadd.f32 1.0, %v8070_v0 }
0x1621   : > { %8071 = vrcp.f32 %v4445_v41 }
0x162b   : > { %v8072_v19 = vpop.eup %8071 }
0x162c   : > { %v4448_v22 = vmul.f32 %v8072_v19, %v4417_v9  ;;  %v4449_v26 = vmul.f32 %v8072_v19, %v4418_v3  ;;  %v4450_v58 = vmul.f32 %v8072_v19, %v4419_v11  ;;  %v4451_v7 = vmul.f32 %v8072_v19, %v4420_v20  ;;  %v9960_v9 = vpop.permute.xlu0 %7573 }
0x162e   : > { %vm4452_vm13 = vcmp.ge.f32.partialorder %v4448_v22, 0.0  ;;  %vm4453_vm15 = vcmp.ge.f32.partialorder %v4449_v26, 0.0  ;;  %v4456_v29 = vmul.f32 0.2, %v4448_v22  ;;  %v4457_v63 = vmul.f32 0.2, %v4449_v26 }
0x162f   : > { %vm4454_vm10 = vcmp.ge.f32.partialorder %v4450_v58, 0.0  ;;  %vm4455_vm11 = vcmp.ge.f32.partialorder %v4451_v7, 0.0  ;;  %v4458_v45 = vmul.f32 0.2, %v4450_v58  ;;  %v4459_v4 = vmul.f32 0.2, %v4451_v7 }
0x1630   : > { %v9890_v42 = vsel %vm4452_vm13, %v4448_v22, %v4456_v29  ;;  %v9892_v55 = vsel %vm4453_vm15, %v4449_v26, %v4457_v63  ;;  %v9964_v3 = vpop.permute.xlu0 %7583  ;;  %vm10701_vm13 = vcmp.lt.s32.totalorder %v8418_v13, 40 }
0x1631   : > { %v7592_v37 = vpack.i.bf16 %v9892_v55, %v9890_v42  ;;  %v9896_v31 = vsel %vm4454_vm10, %v4450_v58, %v4458_v45  ;;  %v9898_v6 = vsel %vm4455_vm11, %v4451_v7, %v4459_v4  ;;  %vm10702_vm15 = vmmov %vm10701_vm13 }
0x1632   : > { %v7597_v35 = vpack.i.bf16 %v9898_v6, %v9896_v31  ;;  %v7627_v40 = vpack.i.bf16 %v9896_v31, %v9892_v55  ;;  %v7632_v52 = vpack.i.bf16 %v9898_v6, %v9890_v42  ;;  %vm10703_vm10 = vmmov %vm10701_vm13 }
0x1633   : > { %7593 = vrot.lane.b32.xlu1 %v7592_v37, %s10690_s13  ;;  %7588 = vrot.lane.b32.xlu0 %v7592_v37, %s10687_s8  ;;  %vm10704_vm11 = vmmov %vm10703_vm10 }
0x1637   : > { %7598 = vrot.lane.b32.xlu1 %v7597_v35, %s10687_s8  ;;  %7603 = vrot.lane.b32.xlu0 %v7597_v35, %s10690_s13 }
0x163b   : > { %7608 = vrot.lane.b32.xlu1 %v7592_v37, %s10689_s10  ;;  %7613 = vrot.lane.b32.xlu0 %v7592_v37, %s10691_s14 }
0x163f   : > { %7618 = vrot.lane.b32.xlu1 %v7597_v35, %s10689_s10  ;;  %7623 = vrot.lane.b32.xlu0 %v7597_v35, %s10691_s14 }
0x1643   : > { %7628 = vrot.lane.b32.xlu1 %v7627_v40, %s10692_s4  ;;  %7633 = vrot.lane.b32.xlu0 %v7632_v52, %s10692_s4 }
0x1647   : > { %7638 = vrot.lane.b32.xlu1 %v7627_v40, %s10693_s17  ;;  %7643 = vrot.lane.b32.xlu0 %v7627_v40, %s10694_s19 }
0x164b   : > { %7648 = vrot.lane.b32.xlu1 %v7632_v52, %s10693_s17  ;;  %7653 = vrot.lane.b32.xlu0 %v7632_v52, %s10694_s19 }
0x164f   : > { %4550 = vrot.lane.b32.xlu1 %v9892_v55, %s10695_s21  ;;  %4552 = vrot.lane.b32.xlu0 %v9896_v31, %s10695_s21 }
0x1653   : > { %4548 = vrot.lane.b32.xlu1 %v9890_v42, %s10695_s21  ;;  %4554 = vrot.lane.b32.xlu0 %v9898_v6, %s10695_s21 }
0x1657   : > { %7658 = vrot.lane.b32.xlu1 %v10697_v59, %s10692_s4  ;;  %7663 = vrot.lane.b32.xlu0 %v10698_v49, %s10692_s4 }
0x165b   : > { %7668 = vrot.lane.b32.xlu1 %v10697_v59, %s10693_s17  ;;  %7673 = vrot.lane.b32.xlu0 %v10697_v59, %s10694_s19 }
0x165f   : > { %7678 = vrot.lane.b32.xlu1 %v10698_v49, %s10693_s17  ;;  %7683 = vrot.lane.b32.xlu0 %v10698_v49, %s10694_s19  ;;  %v7551_v49 = vunpack.i.h.bf16 %v9950_v12 }
0x1663   : > { %4842 = vrot.lane.b32.xlu1 %v10699_v8, %s10695_s21  ;;  %4844 = vrot.lane.b32.xlu0 %v8883_v15, %s10695_s21 }
0x1667   : > { %4840 = vrot.lane.b32.xlu1 %v10700_v60, %s10695_s21  ;;  %4846 = vrot.lane.b32.xlu0 %v10688_v51, %s10695_s21 }
0x166b   : > { %4573 = vperm.xlu1 %6916, %v4564_v5   ;;  %4863 = vperm.xlu0 %6915, %v4855_v36  }
0x16a5   : > { %v7589_v11 = vpop.permute.xlu0 %7588  ;;  %v7594_v18 = vpop.permute.xlu1 %7593 }
0x16a6   : > { %v7591_v20 = vunpack.i.h.bf16 %v7589_v11  ;;  %v7590_v62 = vunpack.i.l.bf16 %v7589_v11  ;;  %v7596_v10 = vunpack.i.h.bf16 %v7594_v18  ;;  %v7595_v53 = vunpack.i.l.bf16 %v7594_v18 }
0x16a8   : > { %v4474_v43 = vsel %vm1765_vm12, %v7590_v62, %v7591_v20  ;;  %v4486_v46 = vsel %vm10701_vm13, %v7595_v53, %v7596_v10  ;;  %vm10705_vm13 = vcmp.lt.s32.totalorder %v8418_v13, 2 }
0x16a9   : > { %v7604_v56 = vpop.permute.xlu0 %7603  ;;  %v7599_v2 = vpop.permute.xlu1 %7598  ;;  %v6519_v16 = vpack.c.bf16 %v4486_v46, %v4474_v43 }
0x16aa   : > { %v7606_v33 = vunpack.i.h.bf16 %v7604_v56  ;;  %v7605_v23 = vunpack.i.l.bf16 %v7604_v56  ;;  %v7601_v1 = vunpack.i.h.bf16 %v7599_v2  ;;  %v7600_v25 = vunpack.i.l.bf16 %v7599_v2 }
0x16ab   : > { %6520 = vmatprep.subr.bf16.mxu0 %v6519_v16 }
0x16ac   : > { %v4485_v30 = vsel %vm10702_vm15, %v7596_v10, %v7605_v23  ;;  %v4487_v57 = vsel %vm10703_vm10, %v7606_v33, %v7595_v53  ;;  %v4475_v28 = vsel %vm1765_vm12, %v7601_v1, %v7590_v62  ;;  %v4473_v61 = vsel %vm1765_vm12, %v7591_v20, %v7600_v25  ;;  %vm10706_vm15 = vmmov %vm10705_vm13 }
0x16ad   : > { %v6521_v14 = vpack.c.bf16 %v4487_v57, %v4475_v28  ;;  %v6537_v47 = vpack.c.bf16 %v4485_v30, %v4473_v61  ;;  %v7614_v48 = vpop.permute.xlu0 %7613  ;;  %v7609_v50 = vpop.permute.xlu1 %7608  ;;  %v4472_v0 = vsel %vm1765_vm12, %v7600_v25, %v7601_v1  ;;  %v4484_v41 = vsel %vm10704_vm11, %v7605_v23, %v7606_v33  ;;  %vm10707_vm10 = vmmov %vm10705_vm13 }
0x16ae   : > { %v7616_v19 = vunpack.i.h.bf16 %v7614_v48  ;;  %v7615_v22 = vunpack.i.l.bf16 %v7614_v48  ;;  %v7611_v26 = vunpack.i.h.bf16 %v7609_v50  ;;  %v7610_v58 = vunpack.i.l.bf16 %v7609_v50  ;;  %vm10708_vm11 = vmmov %vm10707_vm10 }
0x16af   : > { %6522 = vmatpush1.bf16.msra.mxu0 %v6521_v14  ;;  %v6535_v7 = vpack.c.bf16 %v4484_v41, %v4472_v0  ;;  %v7550_v23 = vunpack.i.l.bf16 %v9950_v12  ;;  %v7556_v1 = vunpack.i.h.bf16 %v9952_v21  ;;  %v7555_v25 = vunpack.i.l.bf16 %v9952_v21 }
0x16b0   : > { %v4498_v29 = vsel %vm1791_vm14, %v7610_v58, %v7611_v26  ;;  %v4510_v63 = vsel %vm10705_vm13, %v7615_v22, %v7616_v19  ;;  %vm10709_vm13 = vcmp.lt.s32.totalorder %v8418_v13, 126 }
0x16b1   : > { %6536 = vmatprep.subr.bf16.mxu1 %v6535_v7  ;;  %v7624_v45 = vpop.permute.xlu0 %7623  ;;  %v7619_v4 = vpop.permute.xlu1 %7618  ;;  %v6523_v37 = vpack.c.bf16 %v4510_v63, %v4498_v29  ;;  %v7560_v29 = vunpack.i.l.bf16 %v9954_v24  ;;  %v7571_v63 = vunpack.i.h.bf16 %v9958_v54 }
0x16b2   : > { %6538 = vmatpush1.bf16.msra.mxu1 %v6537_v47  ;;  %v7626_v35 = vunpack.i.h.bf16 %v7624_v45  ;;  %v7625_v40 = vunpack.i.l.bf16 %v7624_v45  ;;  %v7621_v52 = vunpack.i.h.bf16 %v7619_v4  ;;  %v7620_v59 = vunpack.i.l.bf16 %v7619_v4 }
0x16b3   : > { %6524 = vmatprep.subr.bf16.mxu0 %v6523_v37  ;;  %v7570_v45 = vunpack.i.l.bf16 %v9958_v54 }
0x16b4   : > { %v4509_v5 = vsel %vm10706_vm15, %v7616_v19, %v7625_v40  ;;  %v4511_v36 = vsel %vm10707_vm10, %v7626_v35, %v7615_v22  ;;  %v4497_v11 = vsel %vm1791_vm14, %v7611_v26, %v7620_v59  ;;  %v4499_v18 = vsel %vm1791_vm14, %v7621_v52, %v7610_v58  ;;  %vm10710_vm15 = vmmov %vm10709_vm13 }
0x16b5   : > { %v6525_v20 = vpack.c.bf16 %v4511_v36, %v4499_v18  ;;  %v6541_v62 = vpack.c.bf16 %v4509_v5, %v4497_v11  ;;  %v7634_v10 = vpop.permute.xlu0 %7633  ;;  %v7629_v53 = vpop.permute.xlu1 %7628  ;;  %v4496_v43 = vsel %vm1791_vm14, %v7620_v59, %v7621_v52  ;;  %v4508_v46 = vsel %vm10708_vm11, %v7625_v40, %v7626_v35  ;;  %vm10711_vm10 = vmmov %vm10709_vm13 }
0x16b6   : > { %v7636_v56 = vunpack.i.h.bf16 %v7634_v10  ;;  %v7635_v2 = vunpack.i.l.bf16 %v7634_v10  ;;  %v7631_v16 = vunpack.i.h.bf16 %v7629_v53  ;;  %v7630_v33 = vunpack.i.l.bf16 %v7629_v53  ;;  %vm10712_vm11 = vmmov %vm10711_vm10 }
0x16b7   : > { %6526 = vmatpush1.bf16.msra.mxu0 %v6525_v20  ;;  %v6539_v30 = vpack.c.bf16 %v4508_v46, %v4496_v43  ;;  %v7566_v36 = vunpack.i.h.bf16 %v9956_v38  ;;  %v7565_v11 = vunpack.i.l.bf16 %v9956_v38  ;;  %v7576_v18 = vunpack.i.h.bf16 %v9960_v9 }
0x16b8   : > { %v4520_v57 = vsel %vm10709_vm13, %v7631_v16, %v7636_v56  ;;  %v4522_v28 = vsel %vm10710_vm15, %v7635_v2, %v7630_v33  ;;  %v4521_v61 = vsel %vm10711_vm10, %v7630_v33, %v7631_v16  ;;  %v4523_v14 = vsel %vm10712_vm11, %v7636_v56, %v7635_v2 }
0x16b9   : > { %v6545_v47 = vpack.c.bf16 %v4520_v57, %v9896_v31  ;;  %v6529_v48 = vpack.c.bf16 %v4522_v28, %v9890_v42  ;;  %6540 = vmatprep.subr.bf16.mxu1 %v6539_v30  ;;  %v7644_v50 = vpop.permute.xlu0 %7643  ;;  %v7639_v0 = vpop.permute.xlu1 %7638  ;;  %v6527_v41 = vpack.c.bf16 %v4521_v61, %v9892_v55  ;;  %v6543_v19 = vpack.c.bf16 %v4523_v14, %v9898_v6 }
0x16ba   : > { %6542 = vmatpush1.bf16.msra.mxu1 %v6541_v62  ;;  %v7646_v22 = vunpack.i.h.bf16 %v7644_v50  ;;  %v7645_v26 = vunpack.i.l.bf16 %v7644_v50  ;;  %v7641_v58 = vunpack.i.h.bf16 %v7639_v0  ;;  %v7640_v7 = vunpack.i.l.bf16 %v7639_v0  ;;  %v4560_v0 = vld [vmem:[%s10651_s12] sm:$0xff] }
0x16bb   : > { %6528 = vmatprep.subr.bf16.mxu0 %v6527_v41  ;;  %6544 = vmatprep.subr.bf16.mxu1 %v6543_v19  ;;  %v10018_v31 = vsel %vm1765_vm12, %v7550_v23, %v7551_v49  ;;  %v7561_v42 = vunpack.i.h.bf16 %v9954_v24  ;;  %vm10713_vm13 = vcmp.lt.s32.totalorder %v8418_v13, 90  ;;  %vm10714_vm15 = vcmp.lt.s32.totalorder %v8418_v13, 88 }
0x16bc   : > { %6530 = vmatpush1.bf16.msra.mxu0 %v6529_v48  ;;  %v4533_v55 = vsel %vm10713_vm13, %v7640_v7, %v7641_v58  ;;  %v4545_v6 = vsel %vm10714_vm15, %v7645_v26, %v7646_v22  ;;  %vm10715_vm10 = vcmp.lt.s32.totalorder %v8418_v13, 40  ;;  %v7575_v20 = vunpack.i.l.bf16 %v9960_v9  ;;  %vm10716_vm11 = vmmov %vm10714_vm15 }
0x16bd   : > { %v7654_v4 = vpop.permute.xlu0 %7653  ;;  %v7649_v37 = vpop.permute.xlu1 %7648  ;;  %v6531_v35 = vpack.c.bf16 %v4545_v6, %v4533_v55  ;;  %v4778_v24 = vsel %vm10715_vm10, %v7555_v25, %v7556_v1  ;;  %vm10717_vm13 = vmmov %vm10716_vm11  ;;  %vm10718_vm15 = vcmp.lt.s32.totalorder %v8418_v13, 90  ;;  %v7586_v33 = vunpack.i.h.bf16 %v9964_v3 }
0x16be   : > { %6546 = vmatpush1.bf16.msra.mxu1 %v6545_v47  ;;  %v7656_v40 = vunpack.i.h.bf16 %v7654_v4  ;;  %v7655_v52 = vunpack.i.l.bf16 %v7654_v4  ;;  %v7651_v59 = vunpack.i.h.bf16 %v7649_v37  ;;  %v7650_v5 = vunpack.i.l.bf16 %v7649_v37  ;;  %vm10719_vm10 = vmmov %vm10718_vm15 }
0x16bf   : > { %6532 = vmatprep.subr.bf16.mxu0 %v6531_v35  ;;  %vm10720_vm7 = vmmov %vm10719_vm10  ;;  %v7585_v30 = vunpack.i.l.bf16 %v9964_v3  ;;  %v4765_v61 = vsel %vm1765_vm12, %v7551_v49, %v7560_v29  ;;  %v4767_v14 = vsel %vm1765_vm12, %v7561_v42, %v7550_v23  ;;  %v7581_v47 = vunpack.i.h.bf16 %v9962_v17 }
0x16c0   : > { %v4544_v62 = vsel %vm10716_vm11, %v7646_v22, %v7656_v40  ;;  %v4546_v10 = vsel %vm10717_vm13, %v7655_v52, %v7645_v26  ;;  %v4532_v53 = vsel %vm10718_vm15, %v7641_v58, %v7651_v59  ;;  %v4534_v43 = vsel %vm10719_vm10, %v7650_v5, %v7640_v7  ;;  %vm10721_vm6 = vmmov %vm10716_vm11 }
0x16c1   : > { %v6533_v46 = vpack.c.bf16 %v4546_v10, %v4534_v43  ;;  %v6549_v56 = vpack.c.bf16 %v4544_v62, %v4532_v53  ;;  %v4553_v38 = vpop.permute.xlu0 %4552  ;;  %v4551_v2 = vpop.permute.xlu1 %4550  ;;  %v4535_v9 = vsel %vm10720_vm7, %v7651_v59, %v7650_v5  ;;  %v4547_v16 = vsel %vm10721_vm6, %v7656_v40, %v7655_v52 }
0x16c2   : > { %v6547_v57 = vpack.c.bf16 %v4547_v16, %v4535_v9  ;;  %vm10722_vm11 = vcmp.lt.s32.totalorder %v8418_v13, 86  ;;  %v7580_v48 = vunpack.i.l.bf16 %v9962_v17  ;;  %vm10723_vm6 = vcmp.lt.s32.totalorder %v8418_v13, 40 }
0x16c3   : > { %v4557_v28 = vsel %vm10722_vm11, %v4551_v2, %v4553_v38  ;;  %6534 = vmatpush1.bf16.msra.mxu0 %v6533_v46  ;;  %v4779_v3 = vsel %vm10723_vm6, %v7566_v36, %v7555_v25  ;;  %v4764_v12 = vsel %vm1765_vm12, %v7560_v29, %v7561_v42  ;;  %v4790_v49 = vsel %vm1791_vm14, %v7570_v45, %v7571_v63  ;;  %vm10724_vm7 = vmmov %vm10723_vm6  ;;  %v4561_v46 = vld [vmem:[%s10651_s12 + $0x8] sm:$0xff] }
0x16c4   : > { %6548 = vmatprep.subr.bf16.mxu1 %v6547_v57  ;;  %4606 = vmatprep.subr.mxu0 %v4557_v28  ;;  %v4777_v17 = vsel %vm10724_vm7, %v7556_v1, %v7565_v11  ;;  %v6551_v25 = vpack.c.bf16 %v4778_v24, %v10018_v31  ;;  %vm10725_vm13 = vmmov %vm10723_vm6  ;;  %vm10726_vm15 = vcmp.lt.s32.totalorder %v8418_v13, 2  ;;  %v4791_v58 = vsel %vm1791_vm14, %v7581_v47, %v7570_v45 }
0x16c5   : > { %6550 = vmatpush1.bf16.msra.mxu1 %v6549_v56  ;;  %v4555_v23 = vpop.permute.xlu0 %4554  ;;  %v4549_v50 = vpop.permute.xlu1 %4548  ;;  %v4776_v41 = vsel %vm10725_vm13, %v7565_v11, %v7566_v36  ;;  %v4802_v19 = vsel %vm10726_vm15, %v7575_v20, %v7576_v18  ;;  %vm10727_vm10 = vmmov %vm10722_vm11  ;;  %v6553_v7 = vpack.c.bf16 %v4779_v3, %v4767_v14  ;;  %v4788_v31 = vsel %vm1791_vm14, %v7580_v48, %v7581_v47  ;;  %v4562_v47 = vld [vmem:[%s10651_s12 + $0x10] sm:$0xff]  ;;  %s10743_s12 = sld [smem:[#allocation20_spill]] }
0x16c6   : > { %v4556_v22 = vsel %vm10727_vm10, %v4553_v38, %v4555_v23  ;;  %vm10728_vm11 = vmmov %vm10727_vm10  ;;  %v6567_v29 = vpack.c.bf16 %v4776_v41, %v4764_v12  ;;  %v6569_v55 = vpack.c.bf16 %v4777_v17, %v4765_v61  ;;  %v6555_v37 = vpack.c.bf16 %v4802_v19, %v4790_v49 }
0x16c7   : > { %v4558_v21 = vsel %vm10728_vm11, %v4549_v50, %v4551_v2  ;;  %vm10729_vm6 = vmmov %vm10727_vm10  ;;  %v4789_v36 = vsel %vm1791_vm14, %v7571_v63, %v7580_v48  ;;  %vm10733_vm10 = vcmp.lt.s32.totalorder %v8418_v13, 126 }
0x16c8   : > { %v4559_v1 = vsel %vm10729_vm6, %v4555_v23, %v4549_v50  ;;  %vm10730_vm7 = vmmov %vm10726_vm15  ;;  %4607 = vmatpush1.msra.mxu0 %v4558_v21 }
0x16c9   : > { %v4800_v26 = vsel %vm10730_vm7, %v7585_v30, %v7586_v33  ;;  %4689 = vmatprep.subr.mxu1 %v4559_v1  ;;  %vm10731_vm13 = vmmov %vm10730_vm7  ;;  %6552 = vmatprep.subr.bf16.mxu0 %v6551_v25  ;;  %v7664_v4 = vpop.permute.xlu0 %7663  ;;  %v7659_v45 = vpop.permute.xlu1 %7658 }
0x16ca   : > { %v4803_v42 = vsel %vm10731_vm13, %v7586_v33, %v7575_v20  ;;  %6133 = vmatmul.mubr.msk.f32.vlgmr.msra.gmra.mrb[34].mxu0 %vm1118_vm8, %v4560_v0  ;;  %vm10732_vm15 = vmmov %vm10730_vm7  ;;  %4690 = vmatpush1.msra.mxu1 %v4556_v22  ;;  %v6571_v35 = vpack.c.bf16 %v4800_v26, %v4788_v31  ;;  %v7666_v24 = vunpack.i.h.bf16 %v7664_v4  ;;  %v7665_v40 = vunpack.i.l.bf16 %v7664_v4 }
0x16cb   : > { %v4801_v6 = vsel %vm10732_vm15, %v7576_v18, %v7585_v30  ;;  %6554 = vmatpush1.bf16.msra.mxu0 %v6553_v7  ;;  %v7661_v52 = vunpack.i.h.bf16 %v7659_v45  ;;  %v7660_v59 = vunpack.i.l.bf16 %v7659_v45  ;;  %6568 = vmatprep.subr.bf16.mxu1 %v6567_v29  ;;  %v6557_v5 = vpack.c.bf16 %v4803_v42, %v4791_v58  ;;  %vm10734_vm11 = vmmov %vm10733_vm10  ;;  %v4852_v42 = vld [vmem:[%s10743_s12] sm:$0xff]  ;;  %v4853_v4 = vld [vmem:[%s10743_s12 + $0x8] sm:$0xff]  ;;  %s10750_s12 = sld [smem:[#allocation23_spill]] }
0x16cc   : > { %6136 = vmatmul.mubr.msk.f32.vlgmr.msra.gmra.mrb[34].mxu1 %vm1118_vm8, %v4560_v0  ;;  %6556 = vmatprep.subr.bf16.mxu0 %v6555_v37  ;;  %vm10735_vm6 = vmmov %vm10733_vm10  ;;  %v6573_v62 = vpack.c.bf16 %v4801_v6, %v4789_v36  ;;  %vm10737_vm13 = vcmp.lt.s32.totalorder %v8418_v13, 90  ;;  %vm10738_vm15 = vcmp.lt.s32.totalorder %v8418_v13, 88 }
0x16cd   : > { %6570 = vmatpush1.bf16.msra.mxu1 %v6569_v55  ;;  %v4814_v11 = vsel %vm10733_vm10, %v7665_v40, %v7660_v59  ;;  %v4813_v18 = vsel %vm10734_vm11, %v7660_v59, %v7661_v52  ;;  %v4815_v20 = vsel %vm10735_vm6, %v7666_v24, %v7665_v40  ;;  %vm10736_vm7 = vmmov %vm10735_vm6  ;;  %v7674_v53 = vpop.permute.xlu0 %7673  ;;  %v7669_v43 = vpop.permute.xlu1 %7668  ;;  %4660 = vmatprep.mubr.f32.mxu0 %v10670_v27 }
0x16ce   : > { %6572 = vmatprep.subr.bf16.mxu1 %v6571_v35  ;;  %v4812_v10 = vsel %vm10736_vm7, %v7661_v52, %v7666_v24  ;;  %v6559_v54 = vpack.c.bf16 %v4813_v18, %v10699_v8  ;;  %v6575_v63 = vpack.c.bf16 %v4815_v20, %v10688_v51  ;;  %v7676_v56 = vunpack.i.h.bf16 %v7674_v53  ;;  %4743 = vmatprep.mubr.f32.mxu1 %v10670_v27  ;;  %vm10739_vm10 = vmmov %vm10738_vm15 }
0x16cf   : > { %6558 = vmatpush1.bf16.msra.mxu0 %v6557_v5  ;;  %v7675_v38 = vunpack.i.l.bf16 %v7674_v53  ;;  %v7671_v2 = vunpack.i.h.bf16 %v7669_v43  ;;  %v7670_v9 = vunpack.i.l.bf16 %v7669_v43  ;;  %v6561_v16 = vpack.c.bf16 %v4814_v11, %v10700_v60  ;;  %vm10740_vm11 = vmmov %vm10739_vm10 }
0x16d0   : > { %6560 = vmatprep.subr.bf16.mxu0 %v6559_v54  ;;  %6134 = vmatmul.mubr.msk.f32.gmra.mrb[36].mxu0 %vm1118_vm8, %v4561_v46  ;;  %v6577_v57 = vpack.c.bf16 %v4812_v10, %v8883_v15  ;;  %vm10741_vm6 = vmmov %vm10737_vm13 }
0x16d1   : > { %6574 = vmatpush1.bf16.msra.mxu1 %v6573_v62  ;;  %v4825_v33 = vsel %vm10737_vm13, %v7670_v9, %v7671_v2  ;;  %v4837_v30 = vsel %vm10738_vm15, %v7675_v38, %v7676_v56  ;;  %v7684_v28 = vpop.permute.xlu0 %7683  ;;  %v7679_v61 = vpop.permute.xlu1 %7678  ;;  %4666 = vmatprep.mubr.f32.mxu0 %v10670_v27  ;;  %vm10742_vm7 = vmmov %vm10741_vm6 }
0x16d2   : > { %6576 = vmatprep.subr.bf16.mxu1 %v6575_v63  ;;  %v6563_v14 = vpack.c.bf16 %v4837_v30, %v4825_v33  ;;  %6137 = vmatmul.mubr.msk.f32.gmra.mrb[36].mxu1 %vm1118_vm8, %v4561_v46  ;;  %v7686_v48 = vunpack.i.h.bf16 %v7684_v28  ;;  %v7685_v3 = vunpack.i.l.bf16 %v7684_v28  ;;  %v7681_v12 = vunpack.i.h.bf16 %v7679_v61  ;;  %vm10744_vm13 = vmmov %vm10741_vm6 }
0x16d3   : > { %6562 = vmatpush1.bf16.msra.mxu0 %v6561_v16  ;;  %v7680_v49 = vunpack.i.l.bf16 %v7679_v61  ;;  %4749 = vmatprep.mubr.f32.mxu1 %v10670_v27  ;;  %vm10745_vm15 = vmmov %vm10739_vm10 }
0x16d4   : > { %6564 = vmatprep.subr.bf16.mxu0 %v6563_v14  ;;  %v4836_v17 = vsel %vm10739_vm10, %v7676_v56, %v7686_v48  ;;  %v4838_v23 = vsel %vm10740_vm11, %v7685_v3, %v7675_v38  ;;  %v4824_v50 = vsel %vm10741_vm6, %v7671_v2, %v7681_v12  ;;  %6135 = vmatmul.mubr.msk.f32.gmra.mrb[38].mxu0 %vm1118_vm8, %v4562_v47  ;;  %vm10746_vm10 = vcmp.lt.s32.totalorder %v8418_v13, 86 }
0x16d5   : > { %6578 = vmatpush1.bf16.msra.mxu1 %v6577_v57  ;;  %v4826_v25 = vsel %vm10742_vm7, %v7680_v49, %v7670_v9  ;;  %v6581_v41 = vpack.c.bf16 %v4836_v17, %v4824_v50  ;;  %v4845_v19 = vpop.permute.xlu0 %4844  ;;  %v4843_v22 = vpop.permute.xlu1 %4842  ;;  %v4827_v21 = vsel %vm10744_vm13, %v7681_v12, %v7680_v49  ;;  %v4839_v1 = vsel %vm10745_vm15, %v7686_v48, %v7685_v3  ;;  %vm10747_vm11 = vmmov %vm10746_vm10 }
0x16d6   : > { %v6565_v0 = vpack.c.bf16 %v4838_v23, %v4826_v25  ;;  %6138 = vmatmul.mubr.msk.f32.gmra.mrb[38].mxu1 %vm1118_vm8, %v4562_v47  ;;  %v6579_v26 = vpack.c.bf16 %v4839_v1, %v4827_v21  ;;  %v4849_v58 = vsel %vm10746_vm10, %v4843_v22, %v4845_v19  ;;  %4936 = vmatprep.mubr.f32.mxu0 %v10670_v27  ;;  %vm10748_vm6 = vmmov %vm10746_vm10  ;;  %vm10751_vm13 = vcmp.lt.s32.totalorder %v8418_v13, 40 }
0x16d7   : > { %5013 = vmatprep.mubr.f32.mxu1 %v10670_v27  ;;  %vm10749_vm7 = vmmov %vm10748_vm6 }
0x16d8   : > { %6566 = vmatpush1.bf16.msra.mxu0 %v6565_v0  ;;  %6580 = vmatprep.subr.bf16.mxu1 %v6579_v26  ;;  %v4854_v0 = vld [vmem:[%s10696_s24] sm:$0xff]  ;;  %vm10752_vm15 = vmmov %vm10751_vm13 }
0x16d9   : > { %4888 = vmatprep.subr.mxu0 %v4849_v58  ;;  %6582 = vmatpush1.bf16.msra.mxu1 %v6581_v41  ;;  %v4847_v7 = vpop.permute.xlu0 %4846  ;;  %v4841_v31 = vpop.permute.xlu1 %4840  ;;  %v4563_v41 = vld [vmem:[%s8290_s20] sm:$0xff]  ;;  %vm10753_vm10 = vmmov %vm10751_vm13 }
0x16da   : > { %v4848_v29 = vsel %vm10747_vm11, %v4845_v19, %v4847_v7  ;;  %v4850_v55 = vsel %vm10748_vm6, %v4841_v31, %v4843_v22  ;;  %v4851_v6 = vsel %vm10749_vm7, %v4847_v7, %v4841_v31  ;;  %v5183_v19 = vld [vmem:[%s10750_s12] sm:$0xff]  ;;  %v4565_v22 = vld [vmem:[%s8290_s20 + $0x10] sm:$0xff]  ;;  %vm10754_vm11 = vmmov %vm10753_vm10  ;;  %vm10755_vm6 = vcmp.lt.s32.totalorder %v8418_v13, 2 }
0x16db   : > { %4965 = vmatprep.subr.mxu1 %v4851_v6  ;;  %vm10757_vm7 = vmmov %vm10755_vm6 }
0x16dc   : > { %4889 = vmatpush1.msra.mxu0 %v4850_v55 }
0x16dd   : > { %6139 = vmatmul.mubr.msk.f32.vlgmr.msra.gmra.mrb[34].mxu0 %vm1118_vm8, %v4852_v42  ;;  %4966 = vmatpush1.msra.mxu1 %v4848_v29 }
0x16de   : > { %4942 = vmatprep.mubr.f32.mxu0 %v10670_v27  ;;  %6141 = vmatmul.mubr.msk.f32.vlgmr.msra.gmra.mrb[34].mxu1 %vm1118_vm8, %v4852_v42 }
0x16df   : > { %5019 = vmatprep.mubr.f32.mxu1 %v10670_v27 }
0x16e1   : > { %6140 = vmatmul.mubr.msk.f32.gmra.mrb[36].mxu0 %vm1118_vm8, %v4853_v4 }
0x16e2   : > { %5256 = vmatprep.mubr.f32.mxu0 %v10670_v27  ;;  %6142 = vmatmul.mubr.msk.f32.gmra.mrb[36].mxu1 %vm1118_vm8, %v4853_v4 }
0x16e3   : > { %5327 = vmatprep.mubr.f32.mxu1 %v10670_v27 }
0x16ea   : > { %v4864_v45 = vpop.permute.xlu0 %4863  ;;  %v4574_v37 = vpop.permute.xlu1 %4573 }
0x16eb   : > { %v6731_v52 = vadd.f32 %v4864_v45, %v4574_v37 }
0x17b0   : > { %v10162_v35 = vpop.f32.mrb[34].mxu0 }
0x17b1   : > { %v10164_v24 = vpop.f32.mrb[35].mxu0  ;;  %v10166_v40 = vpop.f32.mrb[34].mxu1 }
0x17b2   : > { %v10168_v59 = vpop.f32.mrb[35].mxu1 }
0x17b4   : > { %v4944_v5 = vpop.f32.mrb[36].mxu0 }
0x17b5   : > { %v6732_v36 = vadd.f32 %v6731_v52, %v4944_v5  ;;  %v4946_v11 = vpop.f32.mrb[37].mxu0  ;;  %v5021_v20 = vpop.f32.mrb[36].mxu1 }
0x17b6   : > { %v6734_v18 = vadd.f32 %v6731_v52, %v4946_v11  ;;  %v6744_v10 = vadd.f32 %v6731_v52, %v5021_v20  ;;  %v5023_v53 = vpop.f32.mrb[37].mxu1 }
0x17b7   : > { %v6147_v62 = vmul.f32 -1.442695, %v6732_v36  ;;  %v6746_v54 = vadd.f32 %v6731_v52, %v5023_v53 }
0x17b8   : > { %v6148_v43 = vmul.f32 -1.442695, %v6734_v18  ;;  %v6149_v63 = vmul.f32 -1.442695, %v6744_v10 }
0x17b9   : > { %8073 = vpow2.f32 %v6147_v62  ;;  %v6150_v46 = vmul.f32 -1.442695, %v6746_v54 }
0x17ba   : > { %8075 = vpow2.f32 %v6148_v43 }
0x17bb   : > { %8077 = vpow2.f32 %v6149_v63 }
0x17bc   : > { %8079 = vpow2.f32 %v6150_v46 }
0x17c3   : > { %v8074_v56 = vpop.eup %8073 }
0x17c4   : > { %v8076_v38 = vpop.eup %8075  ;;  %v5070_v2 = vadd.f32 1.0, %v8074_v56 }
0x17c5   : > { %v8078_v9 = vpop.eup %8077  ;;  %v5071_v16 = vadd.f32 1.0, %v8076_v38 }
0x17c6   : > { %v8080_v33 = vpop.eup %8079  ;;  %8081 = vrcp.f32 %v5070_v2  ;;  %v5072_v30 = vadd.f32 1.0, %v8078_v9 }
0x17c7   : > { %8083 = vrcp.f32 %v5071_v16  ;;  %v5073_v57 = vadd.f32 1.0, %v8080_v33 }
0x17c8   : > { %8085 = vrcp.f32 %v5072_v30 }
0x17c9   : > { %8087 = vrcp.f32 %v5073_v57 }
0x17d0   : > { %v8082_v28 = vpop.eup %8081 }
0x17d1   : > { %v8084_v61 = vpop.eup %8083  ;;  %v10171_v14 = vmul.f32 %v8082_v28, %v10700_v60 }
0x17d2   : > { %v8086_v47 = vpop.eup %8085  ;;  %v10174_v48 = vmul.f32 %v8084_v61, %v10699_v8 }
0x17d3   : > { %v8088_v3 = vpop.eup %8087  ;;  %v10177_v12 = vmul.f32 %v8086_v47, %v8883_v15 }
0x17d4   : > { %v10180_v49 = vmul.f32 %v8088_v3, %v10688_v51  ;;  %v7692_v17 = vpack.i.bf16 %v10174_v48, %v10171_v14 }
0x17d5   : > { %v7727_v25 = vpack.i.bf16 %v10177_v12, %v10174_v48 }
0x17d6   : > { %7693 = vrot.lane.b32.xlu0 %v7692_v17, %s10690_s13  ;;  %7688 = vrot.lane.b32.xlu1 %v7692_v17, %s10687_s8  ;;  %v7702_v23 = vpack.i.bf16 %v10177_v12, %v10180_v49  ;;  %v7732_v50 = vpack.i.bf16 %v10180_v49, %v10171_v14 }
0x17da   : > { %7703 = vrot.lane.b32.xlu0 %v7702_v23, %s10690_s13  ;;  %7698 = vrot.lane.b32.xlu1 %v7702_v23, %s10687_s8 }
0x17de   : > { %7713 = vrot.lane.b32.xlu0 %v7692_v17, %s10691_s14  ;;  %7708 = vrot.lane.b32.xlu1 %v7692_v17, %s10689_s10 }
0x17e2   : > { %7723 = vrot.lane.b32.xlu0 %v7702_v23, %s10691_s14  ;;  %7718 = vrot.lane.b32.xlu1 %v7702_v23, %s10689_s10 }
0x17e6   : > { %7733 = vrot.lane.b32.xlu0 %v7732_v50, %s10692_s4  ;;  %7728 = vrot.lane.b32.xlu1 %v7727_v25, %s10692_s4 }
0x17ea   : > { %7743 = vrot.lane.b32.xlu0 %v7727_v25, %s10694_s19  ;;  %7738 = vrot.lane.b32.xlu1 %v7727_v25, %s10693_s17 }
0x17ee   : > { %7753 = vrot.lane.b32.xlu0 %v7732_v50, %s10694_s19  ;;  %7748 = vrot.lane.b32.xlu1 %v7732_v50, %s10693_s17  ;;  %s10769_s17 = sld [smem:[#allocation22_spill]] }
0x17f2   : > { %5174 = vrot.lane.b32.xlu0 %v10177_v12, %s10695_s21  ;;  %5172 = vrot.lane.b32.xlu1 %v10174_v48, %s10695_s21 }
0x17f6   : > { %5176 = vrot.lane.b32.xlu0 %v10180_v49, %s10695_s21  ;;  %5170 = vrot.lane.b32.xlu1 %v10171_v14, %s10695_s21 }
0x17fa   : > { %4858 = vperm.xlu0 %6915, %v4854_v0   ;;  %4568 = vperm.xlu1 %6916, %v4563_v41  }
0x17fe   : > { %5186 = vperm.xlu0 %6915, %v5183_v19   ;;  %4578 = vperm.xlu1 %6916, %v4565_v22  }
0x1848   : > { %v7694_v21 = vpop.permute.xlu0 %7693  ;;  %v7689_v1 = vpop.permute.xlu1 %7688 }
0x1849   : > { %v7696_v26 = vunpack.i.h.bf16 %v7694_v21  ;;  %v7695_v58 = vunpack.i.l.bf16 %v7694_v21  ;;  %v7691_v7 = vunpack.i.h.bf16 %v7689_v1  ;;  %v7690_v31 = vunpack.i.l.bf16 %v7689_v1 }
0x184b   : > { %v5096_v42 = vsel %vm1765_vm12, %v7690_v31, %v7691_v7  ;;  %v5108_v29 = vsel %vm10751_vm13, %v7695_v58, %v7696_v26  ;;  %vm10758_vm13 = vmmov %vm10755_vm6 }
0x184c   : > { %v7704_v55 = vpop.permute.xlu0 %7703  ;;  %v7699_v6 = vpop.permute.xlu1 %7698  ;;  %v6583_v4 = vpack.c.bf16 %v5108_v29, %v5096_v42 }
0x184d   : > { %v7706_v45 = vunpack.i.h.bf16 %v7704_v55  ;;  %v7705_v37 = vunpack.i.l.bf16 %v7704_v55  ;;  %v7701_v52 = vunpack.i.h.bf16 %v7699_v6  ;;  %v7700_v5 = vunpack.i.l.bf16 %v7699_v6 }
0x184e   : > { %6584 = vmatprep.subr.bf16.mxu0 %v6583_v4 }
0x184f   : > { %v5107_v36 = vsel %vm10752_vm15, %v7696_v26, %v7706_v45  ;;  %v5109_v11 = vsel %vm10753_vm10, %v7705_v37, %v7695_v58  ;;  %v5095_v18 = vsel %vm1765_vm12, %v7691_v7, %v7701_v52  ;;  %v5097_v20 = vsel %vm1765_vm12, %v7700_v5, %v7690_v31 }
0x1850   : > { %v6585_v62 = vpack.c.bf16 %v5109_v11, %v5097_v20  ;;  %v6601_v10 = vpack.c.bf16 %v5107_v36, %v5095_v18  ;;  %v7714_v53 = vpop.permute.xlu0 %7713  ;;  %v7709_v43 = vpop.permute.xlu1 %7708  ;;  %v5094_v54 = vsel %vm1765_vm12, %v7701_v52, %v7700_v5  ;;  %v5106_v63 = vsel %vm10754_vm11, %v7706_v45, %v7705_v37  ;;  %vm10756_vm12 = vmmov %vm10755_vm6 }
0x1851   : > { %v7716_v46 = vunpack.i.h.bf16 %v7714_v53  ;;  %v7715_v56 = vunpack.i.l.bf16 %v7714_v53  ;;  %v7711_v38 = vunpack.i.h.bf16 %v7709_v43  ;;  %v7710_v2 = vunpack.i.l.bf16 %v7709_v43 }
0x1852   : > { %6586 = vmatpush1.bf16.msra.mxu0 %v6585_v62  ;;  %v6599_v9 = vpack.c.bf16 %v5106_v63, %v5094_v54  ;;  %vm10759_vm15 = vcmp.lt.s32.totalorder %v8418_v13, 126 }
0x1853   : > { %v5120_v16 = vsel %vm1791_vm14, %v7710_v2, %v7711_v38  ;;  %v5132_v33 = vsel %vm10755_vm6, %v7715_v56, %v7716_v46  ;;  %vm10760_vm10 = vmmov %vm10759_vm15  ;;  %vm10763_vm6 = vcmp.lt.s32.totalorder %v8418_v13, 90 }
0x1854   : > { %6600 = vmatprep.subr.bf16.mxu1 %v6599_v9  ;;  %v7724_v30 = vpop.permute.xlu0 %7723  ;;  %v7719_v57 = vpop.permute.xlu1 %7718  ;;  %v6587_v28 = vpack.c.bf16 %v5132_v33, %v5120_v16  ;;  %vm10761_vm11 = vmmov %vm10760_vm10 }
0x1855   : > { %6602 = vmatpush1.bf16.msra.mxu1 %v6601_v10  ;;  %v7726_v61 = vunpack.i.h.bf16 %v7724_v30  ;;  %v7725_v47 = vunpack.i.l.bf16 %v7724_v30  ;;  %v7721_v3 = vunpack.i.h.bf16 %v7719_v57  ;;  %v7720_v17 = vunpack.i.l.bf16 %v7719_v57 }
0x1856   : > { %6588 = vmatprep.subr.bf16.mxu0 %v6587_v28 }
0x1857   : > { %v5131_v23 = vsel %vm10756_vm12, %v7716_v46, %v7726_v61  ;;  %v5133_v50 = vsel %vm10757_vm7, %v7725_v47, %v7715_v56  ;;  %v5119_v25 = vsel %vm1791_vm14, %v7711_v38, %v7721_v3  ;;  %v5121_v0 = vsel %vm1791_vm14, %v7720_v17, %v7710_v2 }
0x1858   : > { %v6589_v41 = vpack.c.bf16 %v5133_v50, %v5121_v0  ;;  %v6605_v19 = vpack.c.bf16 %v5131_v23, %v5119_v25  ;;  %v7734_v22 = vpop.permute.xlu0 %7733  ;;  %v7729_v21 = vpop.permute.xlu1 %7728  ;;  %v5118_v1 = vsel %vm1791_vm14, %v7721_v3, %v7720_v17  ;;  %v5130_v26 = vsel %vm10758_vm13, %v7726_v61, %v7725_v47  ;;  %vm10762_vm14 = vmmov %vm10760_vm10  ;;  %v5182_v25 = vld [vmem:[%s10769_s17] sm:$0xff] }
0x1859   : > { %v7736_v58 = vunpack.i.h.bf16 %v7734_v22  ;;  %v7735_v7 = vunpack.i.l.bf16 %v7734_v22  ;;  %v7731_v31 = vunpack.i.h.bf16 %v7729_v21  ;;  %v7730_v42 = vunpack.i.l.bf16 %v7729_v21 }
0x185a   : > { %6590 = vmatpush1.bf16.msra.mxu0 %v6589_v41  ;;  %v6603_v29 = vpack.c.bf16 %v5130_v26, %v5118_v1  ;;  %vm10764_vm12 = vcmp.lt.s32.totalorder %v8418_v13, 88 }
0x185b   : > { %v5142_v55 = vsel %vm10759_vm15, %v7731_v31, %v7736_v58  ;;  %v5144_v6 = vsel %vm10760_vm10, %v7735_v7, %v7730_v42  ;;  %v5143_v4 = vsel %vm10761_vm11, %v7730_v42, %v7731_v31  ;;  %v5145_v45 = vsel %vm10762_vm14, %v7736_v58, %v7735_v7  ;;  %vm10765_vm7 = vmmov %vm10764_vm12 }
0x185c   : > { %v6609_v37 = vpack.c.bf16 %v5142_v55, %v10177_v12  ;;  %v6593_v52 = vpack.c.bf16 %v5144_v6, %v10171_v14  ;;  %6604 = vmatprep.subr.bf16.mxu1 %v6603_v29  ;;  %v7744_v5 = vpop.permute.xlu0 %7743  ;;  %v7739_v36 = vpop.permute.xlu1 %7738  ;;  %v6591_v11 = vpack.c.bf16 %v5143_v4, %v10174_v48  ;;  %v6607_v18 = vpack.c.bf16 %v5145_v45, %v10180_v49  ;;  %vm10766_vm13 = vmmov %vm10765_vm7 }
0x185d   : > { %6606 = vmatpush1.bf16.msra.mxu1 %v6605_v19  ;;  %v7746_v20 = vunpack.i.h.bf16 %v7744_v5  ;;  %v7745_v62 = vunpack.i.l.bf16 %v7744_v5  ;;  %v7741_v10 = vunpack.i.h.bf16 %v7739_v36  ;;  %v7740_v53 = vunpack.i.l.bf16 %v7739_v36  ;;  %vm10767_vm15 = vmmov %vm10763_vm6 }
0x185e   : > { %6592 = vmatprep.subr.bf16.mxu0 %v6591_v11  ;;  %6608 = vmatprep.subr.bf16.mxu1 %v6607_v18  ;;  %vm10768_vm10 = vmmov %vm10763_vm6 }
0x185f   : > { %6594 = vmatpush1.bf16.msra.mxu0 %v6593_v52  ;;  %v5155_v12 = vsel %vm10763_vm6, %v7740_v53, %v7741_v10  ;;  %v5167_v14 = vsel %vm10764_vm12, %v7745_v62, %v7746_v20  ;;  %vm10770_vm11 = vmmov %vm10763_vm6  ;;  %vm10772_vm6 = vcmp.lt.s32.totalorder %v8418_v13, 86 }
0x1860   : > { %v7754_v43 = vpop.permute.xlu0 %7753  ;;  %v7749_v54 = vpop.permute.xlu1 %7748  ;;  %v6595_v63 = vpack.c.bf16 %v5167_v14, %v5155_v12  ;;  %vm10771_vm14 = vmmov %vm10765_vm7 }
0x1861   : > { %6610 = vmatpush1.bf16.msra.mxu1 %v6609_v37  ;;  %v7756_v48 = vunpack.i.h.bf16 %v7754_v43  ;;  %v7755_v49 = vunpack.i.l.bf16 %v7754_v43  ;;  %v7751_v46 = vunpack.i.h.bf16 %v7749_v54  ;;  %v7750_v56 = vunpack.i.l.bf16 %v7749_v54  ;;  %vm10773_vm12 = vmmov %vm10772_vm6 }
0x1862   : > { %6596 = vmatprep.subr.bf16.mxu0 %v6595_v63 }
0x1863   : > { %v5166_v38 = vsel %vm10765_vm7, %v7746_v20, %v7756_v48  ;;  %v5168_v2 = vsel %vm10766_vm13, %v7755_v49, %v7745_v62  ;;  %v5154_v9 = vsel %vm10767_vm15, %v7741_v10, %v7751_v46  ;;  %v5156_v16 = vsel %vm10768_vm10, %v7750_v56, %v7740_v53  ;;  %vm10774_vm7 = vmmov %vm10772_vm6 }
0x1864   : > { %v6597_v33 = vpack.c.bf16 %v5168_v2, %v5156_v16  ;;  %v6613_v30 = vpack.c.bf16 %v5166_v38, %v5154_v9  ;;  %v5175_v57 = vpop.permute.xlu0 %5174  ;;  %v5173_v28 = vpop.permute.xlu1 %5172  ;;  %v5157_v61 = vsel %vm10770_vm11, %v7751_v46, %v7750_v56  ;;  %v5169_v47 = vsel %vm10771_vm14, %v7756_v48, %v7755_v49  ;;  %vm10775_vm13 = vmmov %vm10772_vm6 }
0x1865   : > { %v6611_v3 = vpack.c.bf16 %v5169_v47, %v5157_v61  ;;  %v5179_v17 = vsel %vm10772_vm6, %v5173_v28, %v5175_v57  ;;  %vm10776_vm6 = vcmp.lt.s32.totalorder %v8418_v13, 108 }
0x1866   : > { %6598 = vmatpush1.bf16.msra.mxu0 %v6597_v33 }
0x1867   : > { %6612 = vmatprep.subr.bf16.mxu1 %v6611_v3  ;;  %5208 = vmatprep.subr.mxu0 %v5179_v17 }
0x1868   : > { %6614 = vmatpush1.bf16.msra.mxu1 %v6613_v30  ;;  %v5177_v23 = vpop.permute.xlu0 %5176  ;;  %v5171_v50 = vpop.permute.xlu1 %5170 }
0x1869   : > { %v5178_v0 = vsel %vm10773_vm12, %v5175_v57, %v5177_v23  ;;  %v5180_v41 = vsel %vm10774_vm7, %v5171_v50, %v5173_v28  ;;  %v5181_v19 = vsel %vm10775_vm13, %v5177_v23, %v5171_v50  ;;  %vm10777_vm12 = vmmov %vm10776_vm6 }
0x186a   : > { %5209 = vmatpush1.msra.mxu0 %v5180_v41  ;;  %5279 = vmatprep.subr.mxu1 %v5181_v19  ;;  %vm10778_vm7 = vmmov %vm10776_vm6 }
0x186b   : > { %6151 = vmatmul.mubr.msk.f32.vlgmr.msra.gmra.mrb[38].mxu0 %vm1118_vm8, %v5182_v25  ;;  %vm10779_vm13 = vmmov %vm10776_vm6 }
0x186c   : > { %5280 = vmatpush1.msra.mxu1 %v5178_v0  ;;  %5571 = vmatprep.mubr.f32.mxu0 %v10670_v27 }
0x186d   : > { %6152 = vmatmul.mubr.msk.f32.vlgmr.msra.gmra.mrb[38].mxu1 %vm1118_vm8, %v5182_v25 }
0x186e   : > { %5642 = vmatprep.mubr.f32.mxu1 %v10670_v27 }
0x1879   : > { %v4859_v22 = vpop.permute.xlu0 %4858  ;;  %v4569_v21 = vpop.permute.xlu1 %4568 }
0x187a   : > { %v6727_v1 = vadd.f32 %v4859_v22, %v4569_v21 }
0x187c   : > { %v6728_v26 = vadd.f32 %v6727_v1, %v10162_v35  ;;  %v6730_v58 = vadd.f32 %v6727_v1, %v10164_v24  ;;  %v6740_v42 = vadd.f32 %v6727_v1, %v10166_v40  ;;  %v6742_v29 = vadd.f32 %v6727_v1, %v10168_v59 }
0x187d   : > { %v5187_v37 = vpop.permute.xlu0 %5186  ;;  %v4579_v52 = vpop.permute.xlu1 %4578 }
0x187e   : > { %v6143_v7 = vmul.f32 -1.442695, %v6728_v26  ;;  %v6144_v31 = vmul.f32 -1.442695, %v6730_v58  ;;  %v6145_v55 = vmul.f32 -1.442695, %v6740_v42  ;;  %v6735_v36 = vadd.f32 %v5187_v37, %v4579_v52 }
0x187f   : > { %v6146_v6 = vmul.f32 -1.442695, %v6742_v29 }
0x1880   : > { %8089 = vpow2.f32 %v6143_v7 }
0x1881   : > { %8091 = vpow2.f32 %v6144_v31 }
0x1882   : > { %8093 = vpow2.f32 %v6145_v55 }
0x1883   : > { %8095 = vpow2.f32 %v6146_v6  ;;  %v5374_v6 = vld [vmem:[%s8320_s6] sm:$0xff] }
0x188a   : > { %v8090_v4 = vpop.eup %8089 }
0x188b   : > { %v8092_v45 = vpop.eup %8091  ;;  %v5042_v5 = vadd.f32 1.0, %v8090_v4 }
0x188c   : > { %v5043_v35 = vadd.f32 1.0, %v8092_v45  ;;  %v8094_v24 = vpop.eup %8093 }
0x188d   : > { %v8096_v18 = vpop.eup %8095  ;;  %8097 = vrcp.f32 %v5042_v5  ;;  %v5044_v10 = vadd.f32 1.0, %v8094_v24 }
0x188e   : > { %8099 = vrcp.f32 %v5043_v35  ;;  %v5045_v14 = vadd.f32 1.0, %v8096_v18 }
0x1897   : > { %v8098_v54 = vpop.eup %8097 }
0x1898   : > { %v8100_v63 = vpop.eup %8099 }
0x193e   : > { %v5258_v11 = vpop.f32.mrb[38].mxu0 }
0x193f   : > { %v6736_v40 = vadd.f32 %v6735_v36, %v5258_v11  ;;  %v5260_v20 = vpop.f32.mrb[39].mxu0 }
0x1940   : > { %v6738_v59 = vadd.f32 %v6735_v36, %v5260_v20  ;;  %v5329_v62 = vpop.f32.mrb[38].mxu1 }
0x1941   : > { %8101 = vtanh.f32 %v6736_v40  ;;  %v6748_v53 = vadd.f32 %v6735_v36, %v5329_v62  ;;  %v5331_v12 = vpop.f32.mrb[39].mxu1 }
0x1942   : > { %8103 = vtanh.f32 %v6738_v59  ;;  %v6750_v43 = vadd.f32 %v6735_v36, %v5331_v12 }
0x1943   : > { %8105 = vtanh.f32 %v6748_v53 }
0x1944   : > { %8107 = vtanh.f32 %v6750_v43 }
0x1945   : > { %8109 = vrcp.f32 %v5044_v10 }
0x1946   : > { %8111 = vrcp.f32 %v5045_v14 }
0x194b   : > { %v8102_v48 = vpop.eup %8101 }
0x194c   : > { %v8104_v49 = vpop.eup %8103  ;;  %v5342_v46 = vsub.f32 %v8102_v48, %v10700_v60 }
0x194d   : > { %v8106_v56 = vpop.eup %8105  ;;  %v5343_v38 = vsub.f32 %v8104_v49, %v10699_v8 }
0x194e   : > { %v8108_v2 = vpop.eup %8107  ;;  %v5344_v9 = vsub.f32 %v8106_v56, %v8883_v15  ;;  %v5346_v16 = vmul.f32 %v8098_v54, %v5342_v46  ;;  %v5498_v56 = vld [vmem:[%s10664_s0] sm:$0xff] }
0x194f   : > { %v8110_v33 = vpop.eup %8109  ;;  %v5345_v30 = vsub.f32 %v8108_v2, %v10688_v51  ;;  %v5347_v57 = vmul.f32 %v8100_v63, %v5343_v38 }
0x1950   : > { %v8112_v28 = vpop.eup %8111  ;;  %v5348_v61 = vmul.f32 %v8110_v33, %v5344_v9  ;;  %v5350_v47 = vadd.f32 %v5346_v16, %v10700_v60  ;;  %v5364_v60 = vld [vmem:[%s8315_s30] sm:$0xff] }
0x1951   : > { %v5349_v3 = vmul.f32 %v8112_v28, %v5345_v30  ;;  %v5351_v17 = vadd.f32 %v5347_v57, %v10699_v8 }
0x1952   : > { %v5352_v23 = vadd.f32 %v5348_v61, %v8883_v15  ;;  %v5354_v50 = vmul.f32 %v5350_v47, %v8513_v32 }
0x1953   : > { %v5353_v25 = vadd.f32 %v5349_v3, %v10688_v51  ;;  %v5355_v0 = vmul.f32 %v5351_v17, %v8515_v34 }
0x1954   : > { %v5356_v41 = vmul.f32 %v5352_v23, %v8517_v39 }
0x1955   : > { %v5358_v19 = vadd.f32 %v5355_v0, %v5354_v50  ;;  %v5357_v22 = vmul.f32 %v5353_v25, %v8520_v44 }
0x1957   : > { %v5359_v21 = vadd.f32 %v5358_v19, %v5356_v41 }
0x1959   : > { %v5360_v1 = vadd.f32 %v5359_v21, %v5357_v22 }
0x195b   : > { %5361 = vadd.xlane.f32.xlu1 %v5360_v1 }
0x19e8   : > { %v5362_v26 = vpop.xlane.xlu1 %5361 }
0x19e9   : > { %v5363_v8 = vmul.f32 0.00390625, %v5362_v26 }
0x19eb   : > { %v5365_v58 = vmul.f32 %v5364_v60, %v5363_v8 }
0x19ed   : > { %v5366_v15 = vsel %vm1355_vm9, %v5365_v58, 0.0 }
0x19ee   : > { %v5367_v7 = vrot.slane %v5366_v15, 4 }
0x19f0   : > { %v5368_v31 = vadd.f32 %v5367_v7, %v5366_v15 }
0x19f2   : > { %v5369_v51 = vrot.slane %v5368_v31, 2 }
0x19f4   : > { %v5370_v42 = vadd.f32 %v5369_v51, %v5368_v31 }
0x19f6   : > { %v5371_v29 = vrot.slane %v5370_v42, 1 }
0x19f8   : > { %v5372_v55 = vadd.f32 %v5371_v29, %v5370_v42 }
0x19fa   : > { %v5373_v4 = vmax.f32 %v5372_v55, 0.0 }
0x19fc   : > { %v5375_v45 = vmul.f32 %v5374_v6, %v5373_v4 }
0x19fe   : > { %v5376_v37 = vsel %vm1355_vm9, %v5375_v45, 0.0 }
0x19ff   : > { %5377 = vadd.xlane.f32.xlu0 %v5376_v37 }
0x1a8c   : > { %v5378_v52 = vpop.xlane.xlu0 %5377 }
0x1a8d   : > { %v6153_v5 = vmul.f32 -1.442695, %v5378_v52 }
0x1a8f   : > { %8113 = vpow2.f32 %v6153_v5 }
0x1a99   : > { %v8114_v35 = vpop.eup %8113 }
0x1a9a   : > { %v5382_v36 = vadd.f32 1.0, %v8114_v35 }
0x1a9c   : > { %8115 = vrcp.f32 %v5382_v36 }
0x1aa6   : > { %v8116_v24 = vpop.eup %8115 }
0x1aa7   : > { %v5385_v11 = vmul.f32 %v8116_v24, %v5354_v50  ;;  %v5386_v18 = vmul.f32 %v8116_v24, %v5355_v0  ;;  %v5387_v40 = vmul.f32 %v8116_v24, %v5356_v41  ;;  %v5388_v20 = vmul.f32 %v8116_v24, %v5357_v22 }
0x1aa9   : > { %vm5389_vm15 = vcmp.ge.f32.partialorder %v5385_v11, 0.0  ;;  %vm5390_vm10 = vcmp.ge.f32.partialorder %v5386_v18, 0.0  ;;  %v5393_v59 = vmul.f32 0.2, %v5385_v11  ;;  %v5394_v62 = vmul.f32 0.2, %v5386_v18 }
0x1aaa   : > { %vm5391_vm11 = vcmp.ge.f32.partialorder %v5387_v40, 0.0  ;;  %vm5392_vm14 = vcmp.ge.f32.partialorder %v5388_v20, 0.0  ;;  %v5395_v10 = vmul.f32 0.2, %v5387_v40  ;;  %v5396_v53 = vmul.f32 0.2, %v5388_v20 }
0x1aab   : > { %v10309_v12 = vsel %vm5389_vm15, %v5385_v11, %v5393_v59  ;;  %v10311_v14 = vsel %vm5390_vm10, %v5386_v18, %v5394_v62  ;;  %vm10780_vm15 = vcmp.lt.s32.totalorder %v8418_v13, 107 }
0x1aac   : > { %v7762_v43 = vpack.i.bf16 %v10311_v14, %v10309_v12  ;;  %v10315_v54 = vsel %vm5391_vm11, %v5387_v40, %v5395_v10  ;;  %v10317_v63 = vsel %vm5392_vm14, %v5388_v20, %v5396_v53  ;;  %vm10781_vm10 = vmmov %vm10780_vm15 }
0x1aad   : > { %v7767_v48 = vpack.i.bf16 %v10315_v54, %v10317_v63  ;;  %v7797_v49 = vpack.i.bf16 %v10315_v54, %v10311_v14  ;;  %v7802_v46 = vpack.i.bf16 %v10317_v63, %v10309_v12  ;;  %vm10782_vm11 = vmmov %vm10781_vm10 }
0x1aae   : > { %7763 = vrot.lane.b32.xlu1 %v7762_v43, %s10684_s5  ;;  %7758 = vrot.lane.b32.xlu0 %v7762_v43, %s10674_s1  ;;  %vm10783_vm14 = vmmov %vm10781_vm10 }
0x1ab2   : > { %7768 = vrot.lane.b32.xlu1 %v7767_v48, %s10674_s1  ;;  %7773 = vrot.lane.b32.xlu0 %v7767_v48, %s10684_s5 }
0x1ab6   : > { %7778 = vrot.lane.b32.xlu1 %v7762_v43, %s10675_s16  ;;  %7783 = vrot.lane.b32.xlu0 %v7762_v43, %s10679_s11 }
0x1aba   : > { %7788 = vrot.lane.b32.xlu1 %v7767_v48, %s10675_s16  ;;  %7793 = vrot.lane.b32.xlu0 %v7767_v48, %s10679_s11 }
0x1abe   : > { %7798 = vrot.lane.b32.xlu1 %v7797_v49, %s10677_s9  ;;  %7803 = vrot.lane.b32.xlu0 %v7802_v46, %s10677_s9 }
0x1ac2   : > { %7808 = vrot.lane.b32.xlu1 %v7797_v49, %s10672_s7  ;;  %7813 = vrot.lane.b32.xlu0 %v7797_v49, %s10667_s18 }
0x1ac6   : > { %7818 = vrot.lane.b32.xlu1 %v7802_v46, %s10672_s7  ;;  %7823 = vrot.lane.b32.xlu0 %v7802_v46, %s10667_s18 }
0x1aca   : > { %5487 = vrot.lane.b32.xlu1 %v10311_v14, %s10668_s23  ;;  %5489 = vrot.lane.b32.xlu0 %v10315_v54, %s10668_s23 }
0x1ace   : > { %5485 = vrot.lane.b32.xlu1 %v10309_v12, %s10668_s23  ;;  %5491 = vrot.lane.b32.xlu0 %v10317_v63, %s10668_s23 }
0x1ad2   : > { %5501 = vperm.xlu1 %6916, %v5498_v56  }
0x1b20   : > { %v7764_v38 = vpop.permute.xlu1 %7763  ;;  %v7759_v2 = vpop.permute.xlu0 %7758 }
0x1b21   : > { %v7766_v9 = vunpack.i.h.bf16 %v7764_v38  ;;  %v7765_v16 = vunpack.i.l.bf16 %v7764_v38  ;;  %v7761_v33 = vunpack.i.h.bf16 %v7759_v2  ;;  %v7760_v30 = vunpack.i.l.bf16 %v7759_v2 }
0x1b23   : > { %v5411_v57 = vsel %vm1002_vm0, %v7760_v30, %v7761_v33  ;;  %v5423_v28 = vsel %vm1015_vm1, %v7765_v16, %v7766_v9 }
0x1b24   : > { %v7769_v61 = vpop.permute.xlu1 %7768  ;;  %v7774_v47 = vpop.permute.xlu0 %7773  ;;  %v6615_v3 = vpack.c.bf16 %v5423_v28, %v5411_v57 }
0x1b25   : > { %v7771_v17 = vunpack.i.h.bf16 %v7769_v61  ;;  %v7770_v23 = vunpack.i.l.bf16 %v7769_v61  ;;  %v7776_v50 = vunpack.i.h.bf16 %v7774_v47  ;;  %v7775_v25 = vunpack.i.l.bf16 %v7774_v47 }
0x1b26   : > { %6616 = vmatprep.subr.bf16.mxu0 %v6615_v3 }
0x1b27   : > { %v5410_v0 = vsel %vm1002_vm0, %v7761_v33, %v7771_v17  ;;  %v5412_v41 = vsel %vm1002_vm0, %v7770_v23, %v7760_v30  ;;  %v5422_v19 = vsel %vm1015_vm1, %v7766_v9, %v7776_v50  ;;  %v5424_v22 = vsel %vm1015_vm1, %v7775_v25, %v7765_v16 }
0x1b28   : > { %v6617_v21 = vpack.c.bf16 %v5424_v22, %v5412_v41  ;;  %v6633_v1 = vpack.c.bf16 %v5422_v19, %v5410_v0  ;;  %v7779_v60 = vpop.permute.xlu1 %7778  ;;  %v7784_v26 = vpop.permute.xlu0 %7783  ;;  %v5409_v8 = vsel %vm1002_vm0, %v7771_v17, %v7770_v23  ;;  %v5421_v58 = vsel %vm1015_vm1, %v7776_v50, %v7775_v25 }
0x1b29   : > { %v7781_v15 = vunpack.i.h.bf16 %v7779_v60  ;;  %v7780_v7 = vunpack.i.l.bf16 %v7779_v60  ;;  %v7786_v31 = vunpack.i.h.bf16 %v7784_v26  ;;  %v7785_v51 = vunpack.i.l.bf16 %v7784_v26 }
0x1b2a   : > { %6618 = vmatpush1.bf16.msra.mxu0 %v6617_v21  ;;  %v6631_v42 = vpack.c.bf16 %v5421_v58, %v5409_v8 }
0x1b2b   : > { %v5435_v29 = vsel %vm1028_vm2, %v7780_v7, %v7781_v15  ;;  %v5447_v55 = vsel %vm1041_vm3, %v7785_v51, %v7786_v31 }
0x1b2c   : > { %6632 = vmatprep.subr.bf16.mxu1 %v6631_v42  ;;  %v7789_v6 = vpop.permute.xlu1 %7788  ;;  %v7794_v4 = vpop.permute.xlu0 %7793  ;;  %v6619_v45 = vpack.c.bf16 %v5447_v55, %v5435_v29 }
0x1b2d   : > { %6634 = vmatpush1.bf16.msra.mxu1 %v6633_v1  ;;  %v7791_v37 = vunpack.i.h.bf16 %v7789_v6  ;;  %v7790_v52 = vunpack.i.l.bf16 %v7789_v6  ;;  %v7796_v5 = vunpack.i.h.bf16 %v7794_v4  ;;  %v7795_v35 = vunpack.i.l.bf16 %v7794_v4  ;;  %v5497_v4 = vld [vmem:[%s10669_s26] sm:$0xff] }
0x1b2e   : > { %6620 = vmatprep.subr.bf16.mxu0 %v6619_v45 }
0x1b2f   : > { %v5434_v36 = vsel %vm1028_vm2, %v7781_v15, %v7791_v37  ;;  %v5436_v24 = vsel %vm1028_vm2, %v7790_v52, %v7780_v7  ;;  %v5446_v11 = vsel %vm1041_vm3, %v7786_v31, %v7796_v5  ;;  %v5448_v18 = vsel %vm1041_vm3, %v7795_v35, %v7785_v51 }
0x1b30   : > { %v6621_v40 = vpack.c.bf16 %v5448_v18, %v5436_v24  ;;  %v6637_v20 = vpack.c.bf16 %v5446_v11, %v5434_v36  ;;  %v7799_v59 = vpop.permute.xlu1 %7798  ;;  %v7804_v62 = vpop.permute.xlu0 %7803  ;;  %v5433_v10 = vsel %vm1028_vm2, %v7791_v37, %v7790_v52  ;;  %v5445_v53 = vsel %vm1041_vm3, %v7796_v5, %v7795_v35 }
0x1b31   : > { %v7801_v43 = vunpack.i.h.bf16 %v7799_v59  ;;  %v7800_v48 = vunpack.i.l.bf16 %v7799_v59  ;;  %v7806_v49 = vunpack.i.h.bf16 %v7804_v62  ;;  %v7805_v46 = vunpack.i.l.bf16 %v7804_v62 }
0x1b32   : > { %6622 = vmatpush1.bf16.msra.mxu0 %v6621_v40  ;;  %v6635_v56 = vpack.c.bf16 %v5445_v53, %v5433_v10 }
0x1b33   : > { %v5457_v38 = vsel %vm1054_vm4, %v7801_v43, %v7806_v49  ;;  %v5459_v2 = vsel %vm1054_vm4, %v7805_v46, %v7800_v48  ;;  %v5458_v9 = vsel %vm1054_vm4, %v7800_v48, %v7801_v43  ;;  %v5460_v16 = vsel %vm1054_vm4, %v7806_v49, %v7805_v46  ;;  %v5659_v46 = vld [vmem:[%s10671_s22] sm:$0xff] }
0x1b34   : > { %v6641_v33 = vpack.c.bf16 %v5457_v38, %v10315_v54  ;;  %v6625_v30 = vpack.c.bf16 %v5459_v2, %v10309_v12  ;;  %6636 = vmatprep.subr.bf16.mxu1 %v6635_v56  ;;  %v7809_v57 = vpop.permute.xlu1 %7808  ;;  %v7814_v28 = vpop.permute.xlu0 %7813  ;;  %v6623_v61 = vpack.c.bf16 %v5458_v9, %v10311_v14  ;;  %v6639_v47 = vpack.c.bf16 %v5460_v16, %v10317_v63 }
0x1b35   : > { %6638 = vmatpush1.bf16.msra.mxu1 %v6637_v20  ;;  %v7811_v3 = vunpack.i.h.bf16 %v7809_v57  ;;  %v7810_v17 = vunpack.i.l.bf16 %v7809_v57  ;;  %v7816_v23 = vunpack.i.h.bf16 %v7814_v28  ;;  %v7815_v50 = vunpack.i.l.bf16 %v7814_v28 }
0x1b36   : > { %6624 = vmatprep.subr.bf16.mxu0 %v6623_v61  ;;  %6640 = vmatprep.subr.bf16.mxu1 %v6639_v47  ;;  %v5669_v47 = vld [vmem:[%s8340_s25] sm:$0xff] }
0x1b37   : > { %6626 = vmatpush1.bf16.msra.mxu0 %v6625_v30  ;;  %v5470_v54 = vsel %vm1067_vm5, %v7810_v17, %v7811_v3  ;;  %v5482_v12 = vsel %vm10776_vm6, %v7815_v50, %v7816_v23 }
0x1b38   : > { %v7819_v25 = vpop.permute.xlu1 %7818  ;;  %v7824_v0 = vpop.permute.xlu0 %7823  ;;  %v6627_v41 = vpack.c.bf16 %v5482_v12, %v5470_v54 }
0x1b39   : > { %6642 = vmatpush1.bf16.msra.mxu1 %v6641_v33  ;;  %v7821_v14 = vunpack.i.h.bf16 %v7819_v25  ;;  %v7820_v63 = vunpack.i.l.bf16 %v7819_v25  ;;  %v7826_v19 = vunpack.i.h.bf16 %v7824_v0  ;;  %v7825_v22 = vunpack.i.l.bf16 %v7824_v0 }
0x1b3a   : > { %6628 = vmatprep.subr.bf16.mxu0 %v6627_v41 }
0x1b3b   : > { %v5469_v21 = vsel %vm1067_vm5, %v7811_v3, %v7821_v14  ;;  %v5471_v1 = vsel %vm1067_vm5, %v7820_v63, %v7810_v17  ;;  %v5481_v60 = vsel %vm10777_vm12, %v7816_v23, %v7826_v19  ;;  %v5483_v26 = vsel %vm10778_vm7, %v7825_v22, %v7815_v50 }
0x1b3c   : > { %v6629_v8 = vpack.c.bf16 %v5483_v26, %v5471_v1  ;;  %v6645_v58 = vpack.c.bf16 %v5481_v60, %v5469_v21  ;;  %v5488_v15 = vpop.permute.xlu1 %5487  ;;  %v5490_v7 = vpop.permute.xlu0 %5489  ;;  %v5472_v31 = vsel %vm1067_vm5, %v7821_v14, %v7820_v63  ;;  %v5484_v51 = vsel %vm10779_vm13, %v7826_v19, %v7825_v22 }
0x1b3d   : > { %v6643_v42 = vpack.c.bf16 %v5484_v51, %v5472_v31  ;;  %v5494_v29 = vsel %vm10780_vm15, %v5488_v15, %v5490_v7  ;;  %v5793_v51 = vld [vmem:[%s8350_s3] sm:$0xff] }
0x1b3e   : > { %6630 = vmatpush1.bf16.msra.mxu0 %v6629_v8 }
0x1b3f   : > { %6644 = vmatprep.subr.bf16.mxu1 %v6643_v42  ;;  %5523 = vmatprep.subr.mxu0 %v5494_v29 }
0x1b40   : > { %6646 = vmatpush1.bf16.msra.mxu1 %v6645_v58  ;;  %v5486_v55 = vpop.permute.xlu1 %5485  ;;  %v5492_v6 = vpop.permute.xlu0 %5491 }
0x1b41   : > { %v5495_v45 = vsel %vm10781_vm10, %v5486_v55, %v5488_v15  ;;  %v5493_v37 = vsel %vm10782_vm11, %v5490_v7, %v5492_v6  ;;  %v5496_v52 = vsel %vm10783_vm14, %v5492_v6, %v5486_v55 }
0x1b42   : > { %5524 = vmatpush1.msra.mxu0 %v5495_v45  ;;  %5594 = vmatprep.subr.mxu1 %v5496_v52 }
0x1b43   : > { %6154 = vmatmul.mubr.msk.f32.vlgmr.msra.gmra.mrb[40].mxu0 %vm1118_vm8, %v5497_v4 }
0x1b44   : > { %5595 = vmatpush1.msra.mxu1 %v5493_v37  ;;  %5866 = vmatprep.mubr.f32.mxu0 %v10670_v27 }
0x1b45   : > { %6155 = vmatmul.mubr.msk.f32.vlgmr.msra.gmra.mrb[40].mxu1 %vm1118_vm8, %v5497_v4 }
0x1b46   : > { %5937 = vmatprep.mubr.f32.mxu1 %v10670_v27 }
0x1b51   : > { %v5502_v5 = vpop.permute.xlu1 %5501 }
0x1c16   : > { %v5573_v35 = vpop.f32.mrb[40].mxu0 }
0x1c17   : > { %v5574_v36 = vadd.f32 %v5573_v35, %v5502_v5  ;;  %v5575_v24 = vpop.f32.mrb[41].mxu0 }
0x1c18   : > { %v5576_v11 = vadd.f32 %v5575_v24, %v5502_v5  ;;  %v5644_v18 = vpop.f32.mrb[40].mxu1 }
0x1c19   : > { %v5649_v40 = vmul.f32 %v5574_v36, %v8513_v32  ;;  %v5645_v20 = vadd.f32 %v5644_v18, %v5502_v5  ;;  %v5646_v59 = vpop.f32.mrb[41].mxu1 }
0x1c1a   : > { %v5650_v62 = vmul.f32 %v5576_v11, %v8515_v34  ;;  %v5647_v10 = vadd.f32 %v5646_v59, %v5502_v5 }
0x1c1b   : > { %v5651_v43 = vmul.f32 %v5645_v20, %v8517_v39 }
0x1c1c   : > { %v5653_v53 = vadd.f32 %v5650_v62, %v5649_v40  ;;  %v5652_v27 = vmul.f32 %v5647_v10, %v8520_v44 }
0x1c1e   : > { %v5654_v48 = vadd.f32 %v5653_v53, %v5651_v43 }
0x1c20   : > { %v5655_v49 = vadd.f32 %v5654_v48, %v5652_v27 }
0x1c22   : > { %5656 = vadd.xlane.f32.xlu0 %v5655_v49 }
0x1caf   : > { %v5657_v56 = vpop.xlane.xlu0 %5656 }
0x1cb0   : > { %v5658_v38 = vmul.f32 0.00390625, %v5657_v56 }
0x1cb2   : > { %v5660_v2 = vmul.f32 %v5659_v46, %v5658_v38 }
0x1cb4   : > { %v5661_v9 = vsel %vm1355_vm9, %v5660_v2, 0.0 }
0x1cb5   : > { %v5662_v16 = vrot.slane %v5661_v9, 4 }
0x1cb7   : > { %v5663_v33 = vadd.f32 %v5662_v16, %v5661_v9 }
0x1cb9   : > { %v5664_v30 = vrot.slane %v5663_v33, 2 }
0x1cbb   : > { %v5665_v57 = vadd.f32 %v5664_v30, %v5663_v33 }
0x1cbd   : > { %v5666_v28 = vrot.slane %v5665_v57, 1 }
0x1cbf   : > { %v5667_v61 = vadd.f32 %v5666_v28, %v5665_v57 }
0x1cc1   : > { %v5668_v3 = vmax.f32 %v5667_v61, 0.0 }
0x1cc3   : > { %v5670_v17 = vmul.f32 %v5669_v47, %v5668_v3 }
0x1cc5   : > { %v5671_v23 = vsel %vm1355_vm9, %v5670_v17, 0.0 }
0x1cc6   : > { %5672 = vadd.xlane.f32.xlu1 %v5671_v23 }
0x1d53   : > { %v5673_v50 = vpop.xlane.xlu1 %5672 }
0x1d54   : > { %v6156_v54 = vmul.f32 -1.442695, %v5673_v50 }
0x1d56   : > { %8117 = vpow2.f32 %v6156_v54 }
0x1d60   : > { %v8118_v12 = vpop.eup %8117 }
0x1d61   : > { %v5677_v25 = vadd.f32 1.0, %v8118_v12 }
0x1d63   : > { %8119 = vrcp.f32 %v5677_v25 }
0x1d6d   : > { %v8120_v0 = vpop.eup %8119 }
0x1d6e   : > { %v5682_v41 = vmul.f32 %v8120_v0, %v5651_v43  ;;  %v5683_v14 = vmul.f32 %v8120_v0, %v5652_v27  ;;  %v5680_v63 = vmul.f32 %v8120_v0, %v5649_v40  ;;  %v5681_v19 = vmul.f32 %v8120_v0, %v5650_v62 }
0x1d70   : > { %vm5686_vm6 = vcmp.ge.f32.partialorder %v5682_v41, 0.0  ;;  %vm5687_vm12 = vcmp.ge.f32.partialorder %v5683_v14, 0.0  ;;  %v5690_v22 = vmul.f32 0.2, %v5682_v41  ;;  %v5691_v21 = vmul.f32 0.2, %v5683_v14 }
0x1d71   : > { %vm5684_vm7 = vcmp.ge.f32.partialorder %v5680_v63, 0.0  ;;  %vm5685_vm13 = vcmp.ge.f32.partialorder %v5681_v19, 0.0  ;;  %v5688_v1 = vmul.f32 0.2, %v5680_v63  ;;  %v5689_v60 = vmul.f32 0.2, %v5681_v19 }
0x1d72   : > { %v10429_v26 = vsel %vm5686_vm6, %v5682_v41, %v5690_v22  ;;  %v10431_v8 = vsel %vm5687_vm12, %v5683_v14, %v5691_v21 }
0x1d73   : > { %v7832_v58 = vpack.i.bf16 %v10431_v8, %v10429_v26  ;;  %v10435_v15 = vsel %vm5684_vm7, %v5680_v63, %v5688_v1  ;;  %v10437_v7 = vsel %vm5685_vm13, %v5681_v19, %v5689_v60 }
0x1d74   : > { %v7827_v31 = vpack.i.bf16 %v10437_v7, %v10435_v15 }
0x1d75   : > { %7833 = vrot.lane.b32.xlu1 %v7832_v58, %s10674_s1 }
0x1d76   : > { %7828 = vrot.lane.b32.xlu0 %v7827_v31, %s10674_s1 }
0x1d79   : > { %7843 = vrot.lane.b32.xlu1 %v7832_v58, %s10684_s5 }
0x1d7a   : > { %7838 = vrot.lane.b32.xlu0 %v7827_v31, %s10684_s5 }
0x1d7d   : > { %7853 = vrot.lane.b32.xlu1 %v7832_v58, %s10675_s16 }
0x1d7e   : > { %7848 = vrot.lane.b32.xlu0 %v7827_v31, %s10675_s16 }
0x1d81   : > { %7863 = vrot.lane.b32.xlu1 %v7832_v58, %s10679_s11 }
0x1d82   : > { %7858 = vrot.lane.b32.xlu0 %v7827_v31, %s10679_s11 }
0x1d85   : > { %7873 = vrot.lane.b32.xlu1 %v7832_v58, %s10677_s9 }
0x1d86   : > { %7868 = vrot.lane.b32.xlu0 %v7827_v31, %s10677_s9 }
0x1d89   : > { %7883 = vrot.lane.b32.xlu1 %v7832_v58, %s10672_s7 }
0x1d8a   : > { %7878 = vrot.lane.b32.xlu0 %v7827_v31, %s10672_s7 }
0x1d8d   : > { %7893 = vrot.lane.b32.xlu1 %v7832_v58, %s10667_s18 }
0x1d8e   : > { %7888 = vrot.lane.b32.xlu0 %v7827_v31, %s10667_s18 }
0x1d91   : > { %5782 = vrot.lane.b32.xlu1 %v10437_v7, %s10668_s23 }
0x1d92   : > { %5780 = vrot.lane.b32.xlu0 %v10435_v15, %s10668_s23 }
0x1d95   : > { %5786 = vrot.lane.b32.xlu1 %v10431_v8, %s10668_s23 }
0x1d96   : > { %5784 = vrot.lane.b32.xlu0 %v10429_v26, %s10668_s23 }
0x1d9a   : > { %5796 = vperm.xlu0 %6915, %v5793_v51  }
0x1de7   : > { %v7834_v42 = vpop.permute.xlu1 %7833 }
0x1de8   : > { %v7829_v29 = vpop.permute.xlu0 %7828  ;;  %v7836_v55 = vunpack.i.h.bf16 %v7834_v42  ;;  %v7835_v6 = vunpack.i.l.bf16 %v7834_v42 }
0x1de9   : > { %v7831_v4 = vunpack.i.h.bf16 %v7829_v29  ;;  %v7830_v45 = vunpack.i.l.bf16 %v7829_v29 }
0x1dea   : > { %v5704_v40 = vsel %vm1002_vm0, %v7835_v6, %v7836_v55 }
0x1deb   : > { %v7844_v37 = vpop.permute.xlu1 %7843  ;;  %v5705_v11 = vsel %vm1002_vm0, %v7831_v4, %v7835_v6  ;;  %v5707_v18 = vsel %vm1002_vm0, %v7836_v55, %v7830_v45  ;;  %v5706_v46 = vsel %vm1002_vm0, %v7830_v45, %v7831_v4  ;;  %vm10784_vm0 = vcmp.lt.s32.totalorder %v8418_v13, 108 }
0x1dec   : > { %v7846_v52 = vunpack.i.h.bf16 %v7844_v37  ;;  %v7845_v5 = vunpack.i.l.bf16 %v7844_v37  ;;  %v7839_v35 = vpop.permute.xlu0 %7838 }
0x1ded   : > { %v7841_v36 = vunpack.i.h.bf16 %v7839_v35  ;;  %v7840_v24 = vunpack.i.l.bf16 %v7839_v35 }
0x1dee   : > { %v5716_v20 = vsel %vm1015_vm1, %v7845_v5, %v7846_v52 }
0x1def   : > { %v5717_v59 = vsel %vm1015_vm1, %v7841_v36, %v7845_v5  ;;  %v5719_v62 = vsel %vm1015_vm1, %v7846_v52, %v7840_v24  ;;  %v7854_v10 = vpop.permute.xlu1 %7853  ;;  %v5718_v53 = vsel %vm1015_vm1, %v7840_v24, %v7841_v36  ;;  %v6663_v43 = vpack.c.bf16 %v5716_v20, %v5704_v40  ;;  %vm10785_vm1 = vmmov %vm10784_vm0 }
0x1df0   : > { %v6649_v48 = vpack.c.bf16 %v5719_v62, %v5707_v18  ;;  %v6665_v27 = vpack.c.bf16 %v5717_v59, %v5705_v11  ;;  %v7849_v49 = vpop.permute.xlu0 %7848  ;;  %v7856_v56 = vunpack.i.h.bf16 %v7854_v10  ;;  %v7855_v38 = vunpack.i.l.bf16 %v7854_v10 }
0x1df1   : > { %v6647_v2 = vpack.c.bf16 %v5718_v53, %v5706_v46  ;;  %6664 = vmatprep.subr.bf16.mxu1 %v6663_v43  ;;  %v7851_v9 = vunpack.i.h.bf16 %v7849_v49  ;;  %v7850_v16 = vunpack.i.l.bf16 %v7849_v49 }
0x1df2   : > { %6666 = vmatpush1.bf16.msra.mxu1 %v6665_v27  ;;  %v5728_v3 = vsel %vm1028_vm2, %v7855_v38, %v7856_v56 }
0x1df3   : > { %6648 = vmatprep.subr.bf16.mxu0 %v6647_v2  ;;  %v7864_v33 = vpop.permute.xlu1 %7863  ;;  %v5729_v17 = vsel %vm1028_vm2, %v7851_v9, %v7855_v38  ;;  %v5731_v23 = vsel %vm1028_vm2, %v7856_v56, %v7850_v16  ;;  %v5730_v50 = vsel %vm1028_vm2, %v7850_v16, %v7851_v9  ;;  %vm10786_vm2 = vmmov %vm10784_vm0 }
0x1df4   : > { %6650 = vmatpush1.bf16.msra.mxu0 %v6649_v48  ;;  %v7866_v30 = vunpack.i.h.bf16 %v7864_v33  ;;  %v7865_v57 = vunpack.i.l.bf16 %v7864_v33  ;;  %v7859_v28 = vpop.permute.xlu0 %7858 }
0x1df5   : > { %v7861_v61 = vunpack.i.h.bf16 %v7859_v28  ;;  %v7860_v47 = vunpack.i.l.bf16 %v7859_v28 }
0x1df6   : > { %v5740_v54 = vsel %vm1041_vm3, %v7865_v57, %v7866_v30 }
0x1df7   : > { %v5741_v12 = vsel %vm1041_vm3, %v7861_v61, %v7865_v57  ;;  %v5743_v25 = vsel %vm1041_vm3, %v7866_v30, %v7860_v47  ;;  %v7874_v0 = vpop.permute.xlu1 %7873  ;;  %v5742_v41 = vsel %vm1041_vm3, %v7860_v47, %v7861_v61  ;;  %v6667_v14 = vpack.c.bf16 %v5740_v54, %v5728_v3  ;;  %vm10787_vm3 = vmmov %vm10784_vm0  ;;  %v5792_v61 = vld [vmem:[%s8345_s29] sm:$0xff] }
0x1df8   : > { %v6653_v63 = vpack.c.bf16 %v5743_v25, %v5731_v23  ;;  %v6669_v19 = vpack.c.bf16 %v5741_v12, %v5729_v17  ;;  %v7876_v22 = vunpack.i.h.bf16 %v7874_v0  ;;  %v7875_v21 = vunpack.i.l.bf16 %v7874_v0  ;;  %v7869_v1 = vpop.permute.xlu0 %7868 }
0x1df9   : > { %v7871_v60 = vunpack.i.h.bf16 %v7869_v1  ;;  %v7870_v58 = vunpack.i.l.bf16 %v7869_v1  ;;  %v6651_v31 = vpack.c.bf16 %v5742_v41, %v5730_v50  ;;  %6668 = vmatprep.subr.bf16.mxu1 %v6667_v14  ;;  %v8126_v1 = vld [vmem:[%s8369_s2 + $0x10] sm:$0xff] }
0x1dfa   : > { %v5752_v51 = vsel %vm1054_vm4, %v7875_v21, %v7876_v22  ;;  %6670 = vmatpush1.bf16.msra.mxu1 %v6669_v19 }
0x1dfb   : > { %v5754_v42 = vsel %vm1054_vm4, %v7870_v58, %v7871_v60  ;;  %6652 = vmatprep.subr.bf16.mxu0 %v6651_v31  ;;  %v7884_v29 = vpop.permute.xlu1 %7883  ;;  %v5753_v55 = vsel %vm1054_vm4, %v7871_v60, %v7875_v21  ;;  %v5755_v6 = vsel %vm1054_vm4, %v7876_v22, %v7870_v58  ;;  %v6673_v4 = vpack.c.bf16 %v5752_v51, %v10429_v26  ;;  %vm10788_vm4 = vmmov %vm10781_vm10  ;;  %v8125_v22 = vld [vmem:[%s8369_s2] sm:$0xff]  ;;  %v8127_v58 = vld [vmem:[%s8369_s2 + $0x8] sm:$0xff] }
0x1dfc   : > { %v6657_v45 = vpack.c.bf16 %v5754_v42, %v10435_v15  ;;  %6654 = vmatpush1.bf16.msra.mxu0 %v6653_v63  ;;  %v7879_v37 = vpop.permute.xlu0 %7878  ;;  %v6655_v52 = vpack.c.bf16 %v5753_v55, %v10437_v7  ;;  %v7886_v5 = vunpack.i.h.bf16 %v7884_v29  ;;  %v7885_v35 = vunpack.i.l.bf16 %v7884_v29  ;;  %vm10790_vm9 = vmmov %vm10788_vm4  ;;  %v8128_v51 = vld [vmem:[%s8369_s2 + $0x18] sm:$0xff] }
0x1dfd   : > { %v6671_v36 = vpack.c.bf16 %v5755_v6, %v10431_v8  ;;  %v7881_v24 = vunpack.i.h.bf16 %v7879_v37  ;;  %v7880_v11 = vunpack.i.l.bf16 %v7879_v37  ;;  %vm10791_vm15 = vmmov %vm10788_vm4 }
0x1dfe   : > { %6656 = vmatprep.subr.bf16.mxu0 %v6655_v52  ;;  %v5764_v15 = vsel %vm1067_vm5, %v7885_v35, %v7886_v5 }
0x1dff   : > { %6672 = vmatprep.subr.bf16.mxu1 %v6671_v36  ;;  %v7894_v18 = vpop.permute.xlu1 %7893  ;;  %v5766_v7 = vsel %vm1067_vm5, %v7880_v11, %v7881_v24  ;;  %v5765_v10 = vsel %vm1067_vm5, %v7881_v24, %v7885_v35  ;;  %v5767_v53 = vsel %vm1067_vm5, %v7886_v5, %v7880_v11  ;;  %vm10789_vm5 = vmmov %vm10788_vm4 }
0x1e00   : > { %6658 = vmatpush1.bf16.msra.mxu0 %v6657_v45  ;;  %6674 = vmatpush1.bf16.msra.mxu1 %v6673_v4  ;;  %v7896_v40 = vunpack.i.h.bf16 %v7894_v18  ;;  %v7895_v20 = vunpack.i.l.bf16 %v7894_v18  ;;  %v7889_v26 = vpop.permute.xlu0 %7888 }
0x1e01   : > { %v7891_v59 = vunpack.i.h.bf16 %v7889_v26  ;;  %v7890_v62 = vunpack.i.l.bf16 %v7889_v26 }
0x1e02   : > { %v5776_v8 = vsel %vm10784_vm0, %v7895_v20, %v7896_v40 }
0x1e03   : > { %v6677_v43 = vpack.c.bf16 %v5776_v8, %v5764_v15  ;;  %v5778_v48 = vsel %vm10785_vm1, %v7890_v62, %v7891_v59  ;;  %v5783_v27 = vpop.permute.xlu1 %5782  ;;  %v5777_v49 = vsel %vm10786_vm2, %v7891_v59, %v7895_v20  ;;  %v5779_v46 = vsel %vm10787_vm3, %v7896_v40, %v7890_v62 }
0x1e04   : > { %v6661_v56 = vpack.c.bf16 %v5778_v48, %v5766_v7  ;;  %v5781_v38 = vpop.permute.xlu0 %5780  ;;  %v6659_v2 = vpack.c.bf16 %v5777_v49, %v5765_v10  ;;  %v6675_v9 = vpack.c.bf16 %v5779_v46, %v5767_v53 }
0x1e05   : > { %v5790_v47 = vsel %vm10791_vm15, %v5781_v38, %v5783_v27 }
0x1e06   : > { %6660 = vmatprep.subr.bf16.mxu0 %v6659_v2  ;;  %6676 = vmatprep.subr.bf16.mxu1 %v6675_v9 }
0x1e07   : > { %6662 = vmatpush1.bf16.msra.mxu0 %v6661_v56  ;;  %6678 = vmatpush1.bf16.msra.mxu1 %v6677_v43  ;;  %v5787_v16 = vpop.permute.xlu1 %5786 }
0x1e08   : > { %v5785_v33 = vpop.permute.xlu0 %5784  ;;  %v5791_v30 = vsel %vm10788_vm4, %v5787_v16, %v5781_v38 }
0x1e09   : > { %v5788_v57 = vsel %vm10789_vm5, %v5785_v33, %v5787_v16  ;;  %v5789_v28 = vsel %vm10790_vm9, %v5783_v27, %v5785_v33  ;;  %5889 = vmatprep.subr.mxu1 %v5791_v30 }
0x1e0a   : > { %5818 = vmatprep.subr.mxu0 %v5789_v28 }
0x1e0b   : > { %5819 = vmatpush1.msra.mxu0 %v5790_v47  ;;  %5890 = vmatpush1.msra.mxu1 %v5788_v57 }
0x1e0c   : > { %6157 = vmatmul.mubr.msk.f32.vlgmr.msra.gmra.mrb[42].mxu0 %vm1118_vm8, %v5792_v61  ;;  %6158 = vmatmul.mubr.msk.f32.vlgmr.msra.gmra.mrb[42].mxu1 %vm1118_vm8, %v5792_v61 }
0x1e19   : > { %v5797_v3 = vpop.permute.xlu0 %5796 }
0x1edf   : > { %v5868_v17 = vpop.f32.mrb[42].mxu0  ;;  %v5939_v23 = vpop.f32.mrb[42].mxu1 }
0x1ee0   : > { %v5869_v50 = vadd.f32 %v5868_v17, %v5797_v3  ;;  %v5940_v54 = vadd.f32 %v5939_v23, %v5797_v3  ;;  %v5870_v12 = vpop.f32.mrb[43].mxu0  ;;  %v5941_v13 = vpop.f32.mrb[43].mxu1 }
0x1ee1   : > { %v5871_v25 = vadd.f32 %v5870_v12, %v5797_v3  ;;  %v5942_v0 = vadd.f32 %v5941_v13, %v5797_v3 }
0x1ee2   : > { %v5944_v41 = vmul.f32 %v5869_v50, %v8513_v32  ;;  %v5946_v14 = vmul.f32 %v5940_v54, %v8517_v39 }
0x1ee3   : > { %v5945_v63 = vmul.f32 %v5871_v25, %v8515_v34  ;;  %v5947_v19 = vmul.f32 %v5942_v0, %v8520_v44 }
0x1ee4   : > { %v5948_v21 = vsub.f32 %v8125_v22, %v5944_v41  ;;  %v5950_v60 = vsub.f32 %v8126_v1, %v5946_v14 }
0x1ee5   : > { %v5949_v31 = vsub.f32 %v8127_v58, %v5945_v63  ;;  %v5951_v42 = vsub.f32 %v8128_v51, %v5947_v19 }
0x1ee6   : > { %6159 = vst [vmem:[%s9127_s15 + $0x20] sm:$0xff] %v5948_v21  ;;  %6161 = vst [vmem:[%s9127_s15 + $0x30] sm:$0xff] %v5950_v60 }
0x1ee7   : > { %6160 = vst [vmem:[%s9127_s15 + $0x28] sm:$0xff] %v5949_v31  ;;  %6162 = vst [vmem:[%s9127_s15 + $0x38] sm:$0xff] %v5951_v42 }
0x1ee8 PF: > { %s75_s28 = sadd.s32 1, %s8135_s28  }
0x1ee9   : > { %p72_p4 = scmp.ge.s32.totalorder %s75_s28, 4  }
0x1eeb   :  { %74 = sbr.rel (!%p72_p4) target bundleno = 68 (0x44), region = 211 }

</bundles_post_ra>
